<compile_context>
chip_gen: v5e
topology: v5e:2x2
jax: 0.10.0
libtpu: 0.0.40
codegen_flags: <defaults>
</compile_context>

<pallas_src>
import functools

import jax
import jax.numpy as jnp
from jax import lax
from jax.experimental import pallas as pl
from jax.experimental.pallas import tpu as pltpu


MATMUL_DTYPE = jnp.bfloat16   # MXU-native operand dtype; accumulation is f32.


def _dense_block_kernel(x_ref, *refs, H, W, in_planes, growth, nb_layers,
                        mm_dtype):
    """Fused DenseBlock: nb_layers x (conv3x3 + bias + ReLU + concat), 1 image.

    refs = (w_0, b_0, w_1, b_1, ..., w_{L-1}, b_{L-1}, o_ref)
      w_l   : (9*C_l, growth) bf16, pre-reshaped for the im2col matmul
      b_l   : (1, growth) f32
      o_ref : (1, H, W, in_planes + nb_layers*growth) f32
    """
    o_ref = refs[-1]
    wb_refs = refs[:-1]

    act = x_ref[0]                                   # (H, W, C), f32
    c = in_planes
    for l in range(nb_layers):
        w_ref = wb_refs[2 * l]                       # (9*c, G) bf16
        b_ref = wb_refs[2 * l + 1]                   # (1, G)  f32

        # padding=1 zero halo built on-chip (no HBM pad round trip per layer).
        zrow = jnp.zeros((1, W + 2, c), jnp.float32)
        zcol = jnp.zeros((H, 1, c), jnp.float32)
        xp = jnp.concatenate(
            [zrow, jnp.concatenate([zcol, act, zcol], axis=1), zrow], axis=0)
        # xp: (H+2, W+2, c)

        # im2col: 9 shifted views concatenated on the lane (channel) axis, then
        # a SINGLE MXU matmul with K = 9*c (instead of 9 tiny K=c pushes).
        taps = [xp[dy:dy + H, dx:dx + W, :]
                for dy in range(3) for dx in range(3)]
        patches = jnp.concatenate(taps, axis=-1)          # (H, W, 9*c)
        patches = patches.reshape(H * W, 9 * c)           # merge non-lane dims

        acc = jnp.dot(patches.astype(mm_dtype), w_ref[...],
                      preferred_element_type=jnp.float32)  # (H*W, G), f32 acc
        y = jnp.maximum(acc + b_ref[...], 0.0)              # bias + ReLU in f32
        y = y.reshape(H, W, growth)

        # Dense connectivity: channel concat stays in VMEM / vregs.
        act = jnp.concatenate([act, y], axis=-1)
        c += growth

    o_ref[0] = act.astype(o_ref.dtype)


def dense_block_forward(x_nchw, params, *, mm_dtype=MATMUL_DTYPE):
    """DenseBlock forward. Input/output in NCHW (PyTorch convention)."""
    N, c_in, H, W = x_nchw.shape
    nb_layers = len(params)
    growth = params[0][0].shape[-1]
    c_out = c_in + nb_layers * growth

    x = jnp.transpose(x_nchw, (0, 2, 3, 1))            # NCHW -> NHWC

    # Host-side weight prep: (3,3,C_l,G) -> (9*C_l, G) matmul form, bf16.
    flat_inputs = [x]
    in_specs = [pl.BlockSpec((1, H, W, c_in), lambda n: (n, 0, 0, 0))]
    for l, (w, b) in enumerate(params):
        c_l = c_in + l * growth
        assert w.shape == (3, 3, c_l, growth), w.shape
        w2 = w.reshape(9 * c_l, growth).astype(mm_dtype)
        b2 = b.reshape(1, growth).astype(jnp.float32)
        flat_inputs += [w2, b2]
        in_specs += [pl.BlockSpec((9 * c_l, growth), lambda n: (0, 0)),
                     pl.BlockSpec((1, growth), lambda n: (0, 0))]

    kernel = functools.partial(
        _dense_block_kernel, H=H, W=W, in_planes=c_in, growth=growth,
        nb_layers=nb_layers, mm_dtype=mm_dtype)

    flops = N * sum(2 * H * W * 9 * (c_in + l * growth) * growth
                    for l in range(nb_layers))
    bytes_accessed = (int(x.size) * x.dtype.itemsize
                      + N * H * W * c_out * 4
                      + sum(int(a.size) * a.dtype.itemsize
                            for a in flat_inputs[1:]))

    # Per-image on-chip working set (padded activation + bf16 im2col slab +
    # double-buffered output block).  Only raise the scoped-VMEM limit when the
    # default is actually too small, and stay well under v7x's 64 MiB physical.
    est = (4 * (H + 2) * (W + 2) * c_out           # padded f32 activation
           + 2 * H * W * 9 * c_out                 # bf16 im2col slab
           + 2 * 4 * H * W * c_out)                # double-buffered output
    vmem_limit = None
    if est > 24 * 1024 * 1024:
        vmem_limit = int(min(2 * est, 56 * 1024 * 1024))

    out = pl.pallas_call(
        kernel,
        out_shape=jax.ShapeDtypeStruct((N, H, W, c_out), jnp.float32),
        grid_spec=pltpu.PrefetchScalarGridSpec(
            num_scalar_prefetch=0,
            grid=(N,),                               # one image per grid step
            in_specs=in_specs,
            out_specs=pl.BlockSpec((1, H, W, c_out), lambda n: (n, 0, 0, 0)),
        ),
        compiler_params=pltpu.CompilerParams(
            dimension_semantics=("parallel",),       # shard batch over cores
            vmem_limit_bytes=vmem_limit),
        cost_estimate=pl.CostEstimate(flops=flops, transcendentals=0,
                                      bytes_accessed=bytes_accessed),
    )(*flat_inputs)

    return jnp.transpose(out, (0, 3, 1, 2))            # NHWC -> NCHW


def init_dense_block_params(key, nb_layers, in_planes, growth_rate):
    """Deterministic synthetic params. Layer i: conv (3,3,in+i*g,g) + bias (1,g)."""
    params = []
    for i in range(nb_layers):
        c_in = in_planes + i * growth_rate
        k_w = jax.random.fold_in(key, 2 * i)
        k_b = jax.random.fold_in(key, 2 * i + 1)
        fan_in = 9 * c_in
        w = jax.random.normal(k_w, (3, 3, c_in, growth_rate), jnp.float32)
        w = w * (1.0 / jnp.sqrt(fan_in))
        b = 0.01 * jax.random.normal(k_b, (1, growth_rate), jnp.float32)
        params.append((w, b))
    return params


def dense_block_reference(x_nchw, params, *, mm_dtype=MATMUL_DTYPE):
    """Pure-JAX reference (lax.conv) with the same bf16-operand / f32-accum
    mixed precision as the kernel."""
    x = x_nchw
    for (w, b) in params:
        # w is (3, 3, Cin, G) -> OIHW for lax.conv: (G, Cin, 3, 3)
        w_oihw = jnp.transpose(w, (3, 2, 0, 1))
        y = lax.conv_general_dilated(
            x.astype(mm_dtype), w_oihw.astype(mm_dtype),
            window_strides=(1, 1), padding="SAME",
            dimension_numbers=("NCHW", "OIHW", "NCHW"),
            preferred_element_type=jnp.float32)
        y = jnp.maximum(y + b.reshape(1, -1, 1, 1), 0.0)
        x = jnp.concatenate([x, y], axis=1)
    return x


if __name__ == "__main__":
    nb_layers, in_planes, growth_rate = 3, 4, 8
    N, H, W = 2, 16, 16

    key = jax.random.PRNGKey(0)
    kx, kp = jax.random.split(key)
    x = jax.random.normal(kx, (N, in_planes, H, W), jnp.float32)
    params = init_dense_block_params(kp, nb_layers, in_planes, growth_rate)

    out = jax.block_until_ready(dense_block_forward(x, params))

    expected_c = in_planes + nb_layers * growth_rate
    assert out.shape == (N, expected_c, H, W), out.shape

    ref = jax.block_until_ready(dense_block_reference(x, params))
    max_err = float(jnp.max(jnp.abs(out - ref)))
    assert jnp.allclose(out, ref, atol=2e-2, rtol=2e-2), max_err

    print("KERNEL_OK")
</pallas_src>

<mosaic_0001>
module attributes {stable_mosaic.version = 11 : i64} {
  func.func @_dense_block_kernel(%arg0: i32, %arg1: memref<1x16x16x4xf32, #tpu.memory_space<vmem>>, %arg2: memref<36x8xbf16, #tpu.memory_space<vmem>>, %arg3: memref<1x8xf32, #tpu.memory_space<vmem>>, %arg4: memref<108x8xbf16, #tpu.memory_space<vmem>>, %arg5: memref<1x8xf32, #tpu.memory_space<vmem>>, %arg6: memref<180x8xbf16, #tpu.memory_space<vmem>>, %arg7: memref<1x8xf32, #tpu.memory_space<vmem>>, %arg8: memref<1x16x16x28xf32, #tpu.memory_space<vmem>>) attributes {dimension_semantics = [#tpu.dimension_semantics<parallel>], iteration_bounds = array<i64: 2>, scalar_prefetch = 0 : i64, scratch_operands = 0 : i64, tpu.core_type = #tpu.core_type<tc>, window_params = [{transform_indices = @transform_0, window_bounds = array<i64: 1, 16, 16, 4>}, {pipeline_mode = #tpu.pipeline_mode<synchronous>, transform_indices = @transform_1, window_bounds = array<i64: 36, 8>}, {pipeline_mode = #tpu.pipeline_mode<synchronous>, transform_indices = @transform_2, window_bounds = array<i64: 1, 8>}, {pipeline_mode = #tpu.pipeline_mode<synchronous>, transform_indices = @transform_3, window_bounds = array<i64: 108, 8>}, {pipeline_mode = #tpu.pipeline_mode<synchronous>, transform_indices = @transform_4, window_bounds = array<i64: 1, 8>}, {pipeline_mode = #tpu.pipeline_mode<synchronous>, transform_indices = @transform_5, window_bounds = array<i64: 180, 8>}, {pipeline_mode = #tpu.pipeline_mode<synchronous>, transform_indices = @transform_6, window_bounds = array<i64: 1, 8>}, {transform_indices = @transform_7, window_bounds = array<i64: 1, 16, 16, 28>}]} {
    %c0 = arith.constant 0 : index
    %c0_0 = arith.constant 0 : index
    %c0_1 = arith.constant 0 : index
    %c0_2 = arith.constant 0 : index
    %0 = vector.load %arg1[%c0, %c0_0, %c0_1, %c0_2] : memref<1x16x16x4xf32, #tpu.memory_space<vmem>>, vector<1x16x16x4xf32>
    %1 = vector.shape_cast %0 : vector<1x16x16x4xf32> to vector<16x16x4xf32>
    %cst = arith.constant 0.000000e+00 : f32
    %2 = vector.broadcast %cst : f32 to vector<1x18x4xf32>
    %cst_3 = arith.constant 0.000000e+00 : f32
    %3 = vector.broadcast %cst_3 : f32 to vector<16x1x4xf32>
    %4 = tpu.concatenate %3, %1, %3 in 1 : vector<16x1x4xf32>, vector<16x16x4xf32>, vector<16x1x4xf32> -> vector<16x18x4xf32>
    %5 = tpu.concatenate %2, %4, %2 in 0 : vector<1x18x4xf32>, vector<16x18x4xf32>, vector<1x18x4xf32> -> vector<18x18x4xf32>
    %6 = vector.extract_strided_slice %5 {offsets = [0, 0, 0], sizes = [16, 16, 4], strides = [1, 1, 1]} : vector<18x18x4xf32> to vector<16x16x4xf32>
    %7 = vector.extract_strided_slice %5 {offsets = [0, 1, 0], sizes = [16, 16, 4], strides = [1, 1, 1]} : vector<18x18x4xf32> to vector<16x16x4xf32>
    %8 = vector.extract_strided_slice %5 {offsets = [0, 2, 0], sizes = [16, 16, 4], strides = [1, 1, 1]} : vector<18x18x4xf32> to vector<16x16x4xf32>
    %9 = vector.extract_strided_slice %5 {offsets = [1, 0, 0], sizes = [16, 16, 4], strides = [1, 1, 1]} : vector<18x18x4xf32> to vector<16x16x4xf32>
    %10 = vector.extract_strided_slice %5 {offsets = [1, 1, 0], sizes = [16, 16, 4], strides = [1, 1, 1]} : vector<18x18x4xf32> to vector<16x16x4xf32>
    %11 = vector.extract_strided_slice %5 {offsets = [1, 2, 0], sizes = [16, 16, 4], strides = [1, 1, 1]} : vector<18x18x4xf32> to vector<16x16x4xf32>
    %12 = vector.extract_strided_slice %5 {offsets = [2, 0, 0], sizes = [16, 16, 4], strides = [1, 1, 1]} : vector<18x18x4xf32> to vector<16x16x4xf32>
    %13 = vector.extract_strided_slice %5 {offsets = [2, 1, 0], sizes = [16, 16, 4], strides = [1, 1, 1]} : vector<18x18x4xf32> to vector<16x16x4xf32>
    %14 = vector.extract_strided_slice %5 {offsets = [2, 2, 0], sizes = [16, 16, 4], strides = [1, 1, 1]} : vector<18x18x4xf32> to vector<16x16x4xf32>
    %15 = tpu.concatenate %6, %7, %8, %9, %10, %11, %12, %13, %14 in 2 : vector<16x16x4xf32>, vector<16x16x4xf32>, vector<16x16x4xf32>, vector<16x16x4xf32>, vector<16x16x4xf32>, vector<16x16x4xf32>, vector<16x16x4xf32>, vector<16x16x4xf32>, vector<16x16x4xf32> -> vector<16x16x36xf32>
    %16 = vector.shape_cast %15 : vector<16x16x36xf32> to vector<256x36xf32>
    %17 = arith.truncf %16 : vector<256x36xf32> to vector<256x36xbf16>
    %c0_4 = arith.constant 0 : index
    %c0_5 = arith.constant 0 : index
    %18 = vector.load %arg2[%c0_4, %c0_5] : memref<36x8xbf16, #tpu.memory_space<vmem>>, vector<36x8xbf16>
    %cst_6 = arith.constant dense<0.000000e+00> : vector<256x8xf32>
    %19 = tpu.matmul %17, %18, %cst_6 {dimension_numbers = #tpu.dot_dimension_numbers<[1], [0], [0], [1], [0, 0, 1, 1], [], []>} : vector<256x36xbf16>, vector<36x8xbf16>, vector<256x8xf32> -> vector<256x8xf32>
    %c0_7 = arith.constant 0 : index
    %c0_8 = arith.constant 0 : index
    %20 = vector.load %arg3[%c0_7, %c0_8] : memref<1x8xf32, #tpu.memory_space<vmem>>, vector<1x8xf32>
    %21 = vector.broadcast %20 : vector<1x8xf32> to vector<256x8xf32>
    %22 = arith.addf %19, %21 : vector<256x8xf32>
    %cst_9 = arith.constant 0.000000e+00 : f32
    %23 = vector.broadcast %cst_9 : f32 to vector<256x8xf32>
    %24 = arith.maximumf %22, %23 : vector<256x8xf32>
    %25 = vector.shape_cast %24 : vector<256x8xf32> to vector<16x16x8xf32>
    %26 = tpu.concatenate %1, %25 in 2 : vector<16x16x4xf32>, vector<16x16x8xf32> -> vector<16x16x12xf32>
    %cst_10 = arith.constant 0.000000e+00 : f32
    %27 = vector.broadcast %cst_10 : f32 to vector<1x18x12xf32>
    %cst_11 = arith.constant 0.000000e+00 : f32
    %28 = vector.broadcast %cst_11 : f32 to vector<16x1x12xf32>
    %29 = tpu.concatenate %28, %26, %28 in 1 : vector<16x1x12xf32>, vector<16x16x12xf32>, vector<16x1x12xf32> -> vector<16x18x12xf32>
    %30 = tpu.concatenate %27, %29, %27 in 0 : vector<1x18x12xf32>, vector<16x18x12xf32>, vector<1x18x12xf32> -> vector<18x18x12xf32>
    %31 = vector.extract_strided_slice %30 {offsets = [0, 0, 0], sizes = [16, 16, 12], strides = [1, 1, 1]} : vector<18x18x12xf32> to vector<16x16x12xf32>
    %32 = vector.extract_strided_slice %30 {offsets = [0, 1, 0], sizes = [16, 16, 12], strides = [1, 1, 1]} : vector<18x18x12xf32> to vector<16x16x12xf32>
    %33 = vector.extract_strided_slice %30 {offsets = [0, 2, 0], sizes = [16, 16, 12], strides = [1, 1, 1]} : vector<18x18x12xf32> to vector<16x16x12xf32>
    %34 = vector.extract_strided_slice %30 {offsets = [1, 0, 0], sizes = [16, 16, 12], strides = [1, 1, 1]} : vector<18x18x12xf32> to vector<16x16x12xf32>
    %35 = vector.extract_strided_slice %30 {offsets = [1, 1, 0], sizes = [16, 16, 12], strides = [1, 1, 1]} : vector<18x18x12xf32> to vector<16x16x12xf32>
    %36 = vector.extract_strided_slice %30 {offsets = [1, 2, 0], sizes = [16, 16, 12], strides = [1, 1, 1]} : vector<18x18x12xf32> to vector<16x16x12xf32>
    %37 = vector.extract_strided_slice %30 {offsets = [2, 0, 0], sizes = [16, 16, 12], strides = [1, 1, 1]} : vector<18x18x12xf32> to vector<16x16x12xf32>
    %38 = vector.extract_strided_slice %30 {offsets = [2, 1, 0], sizes = [16, 16, 12], strides = [1, 1, 1]} : vector<18x18x12xf32> to vector<16x16x12xf32>
    %39 = vector.extract_strided_slice %30 {offsets = [2, 2, 0], sizes = [16, 16, 12], strides = [1, 1, 1]} : vector<18x18x12xf32> to vector<16x16x12xf32>
    %40 = tpu.concatenate %31, %32, %33, %34, %35, %36, %37, %38, %39 in 2 : vector<16x16x12xf32>, vector<16x16x12xf32>, vector<16x16x12xf32>, vector<16x16x12xf32>, vector<16x16x12xf32>, vector<16x16x12xf32>, vector<16x16x12xf32>, vector<16x16x12xf32>, vector<16x16x12xf32> -> vector<16x16x108xf32>
    %41 = vector.shape_cast %40 : vector<16x16x108xf32> to vector<256x108xf32>
    %42 = arith.truncf %41 : vector<256x108xf32> to vector<256x108xbf16>
    %c0_12 = arith.constant 0 : index
    %c0_13 = arith.constant 0 : index
    %43 = vector.load %arg4[%c0_12, %c0_13] : memref<108x8xbf16, #tpu.memory_space<vmem>>, vector<108x8xbf16>
    %cst_14 = arith.constant dense<0.000000e+00> : vector<256x8xf32>
    %44 = tpu.matmul %42, %43, %cst_14 {dimension_numbers = #tpu.dot_dimension_numbers<[1], [0], [0], [1], [0, 0, 1, 1], [], []>} : vector<256x108xbf16>, vector<108x8xbf16>, vector<256x8xf32> -> vector<256x8xf32>
    %c0_15 = arith.constant 0 : index
    %c0_16 = arith.constant 0 : index
    %45 = vector.load %arg5[%c0_15, %c0_16] : memref<1x8xf32, #tpu.memory_space<vmem>>, vector<1x8xf32>
    %46 = vector.broadcast %45 : vector<1x8xf32> to vector<256x8xf32>
    %47 = arith.addf %44, %46 : vector<256x8xf32>
    %cst_17 = arith.constant 0.000000e+00 : f32
    %48 = vector.broadcast %cst_17 : f32 to vector<256x8xf32>
    %49 = arith.maximumf %47, %48 : vector<256x8xf32>
    %50 = vector.shape_cast %49 : vector<256x8xf32> to vector<16x16x8xf32>
    %51 = tpu.concatenate %26, %50 in 2 : vector<16x16x12xf32>, vector<16x16x8xf32> -> vector<16x16x20xf32>
    %cst_18 = arith.constant 0.000000e+00 : f32
    %52 = vector.broadcast %cst_18 : f32 to vector<1x18x20xf32>
    %cst_19 = arith.constant 0.000000e+00 : f32
    %53 = vector.broadcast %cst_19 : f32 to vector<16x1x20xf32>
    %54 = tpu.concatenate %53, %51, %53 in 1 : vector<16x1x20xf32>, vector<16x16x20xf32>, vector<16x1x20xf32> -> vector<16x18x20xf32>
    %55 = tpu.concatenate %52, %54, %52 in 0 : vector<1x18x20xf32>, vector<16x18x20xf32>, vector<1x18x20xf32> -> vector<18x18x20xf32>
    %56 = vector.extract_strided_slice %55 {offsets = [0, 0, 0], sizes = [16, 16, 20], strides = [1, 1, 1]} : vector<18x18x20xf32> to vector<16x16x20xf32>
    %57 = vector.extract_strided_slice %55 {offsets = [0, 1, 0], sizes = [16, 16, 20], strides = [1, 1, 1]} : vector<18x18x20xf32> to vector<16x16x20xf32>
    %58 = vector.extract_strided_slice %55 {offsets = [0, 2, 0], sizes = [16, 16, 20], strides = [1, 1, 1]} : vector<18x18x20xf32> to vector<16x16x20xf32>
    %59 = vector.extract_strided_slice %55 {offsets = [1, 0, 0], sizes = [16, 16, 20], strides = [1, 1, 1]} : vector<18x18x20xf32> to vector<16x16x20xf32>
    %60 = vector.extract_strided_slice %55 {offsets = [1, 1, 0], sizes = [16, 16, 20], strides = [1, 1, 1]} : vector<18x18x20xf32> to vector<16x16x20xf32>
    %61 = vector.extract_strided_slice %55 {offsets = [1, 2, 0], sizes = [16, 16, 20], strides = [1, 1, 1]} : vector<18x18x20xf32> to vector<16x16x20xf32>
    %62 = vector.extract_strided_slice %55 {offsets = [2, 0, 0], sizes = [16, 16, 20], strides = [1, 1, 1]} : vector<18x18x20xf32> to vector<16x16x20xf32>
    %63 = vector.extract_strided_slice %55 {offsets = [2, 1, 0], sizes = [16, 16, 20], strides = [1, 1, 1]} : vector<18x18x20xf32> to vector<16x16x20xf32>
    %64 = vector.extract_strided_slice %55 {offsets = [2, 2, 0], sizes = [16, 16, 20], strides = [1, 1, 1]} : vector<18x18x20xf32> to vector<16x16x20xf32>
    %65 = tpu.concatenate %56, %57, %58, %59, %60, %61, %62, %63, %64 in 2 : vector<16x16x20xf32>, vector<16x16x20xf32>, vector<16x16x20xf32>, vector<16x16x20xf32>, vector<16x16x20xf32>, vector<16x16x20xf32>, vector<16x16x20xf32>, vector<16x16x20xf32>, vector<16x16x20xf32> -> vector<16x16x180xf32>
    %66 = vector.shape_cast %65 : vector<16x16x180xf32> to vector<256x180xf32>
    %67 = arith.truncf %66 : vector<256x180xf32> to vector<256x180xbf16>
    %c0_20 = arith.constant 0 : index
    %c0_21 = arith.constant 0 : index
    %68 = vector.load %arg6[%c0_20, %c0_21] : memref<180x8xbf16, #tpu.memory_space<vmem>>, vector<180x8xbf16>
    %cst_22 = arith.constant dense<0.000000e+00> : vector<256x8xf32>
    %69 = tpu.matmul %67, %68, %cst_22 {dimension_numbers = #tpu.dot_dimension_numbers<[1], [0], [0], [1], [0, 0, 1, 1], [], []>} : vector<256x180xbf16>, vector<180x8xbf16>, vector<256x8xf32> -> vector<256x8xf32>
    %c0_23 = arith.constant 0 : index
    %c0_24 = arith.constant 0 : index
    %70 = vector.load %arg7[%c0_23, %c0_24] : memref<1x8xf32, #tpu.memory_space<vmem>>, vector<1x8xf32>
    %71 = vector.broadcast %70 : vector<1x8xf32> to vector<256x8xf32>
    %72 = arith.addf %69, %71 : vector<256x8xf32>
    %cst_25 = arith.constant 0.000000e+00 : f32
    %73 = vector.broadcast %cst_25 : f32 to vector<256x8xf32>
    %74 = arith.maximumf %72, %73 : vector<256x8xf32>
    %75 = vector.shape_cast %74 : vector<256x8xf32> to vector<16x16x8xf32>
    %76 = tpu.concatenate %51, %75 in 2 : vector<16x16x20xf32>, vector<16x16x8xf32> -> vector<16x16x28xf32>
    %c0_26 = arith.constant 0 : index
    %c0_27 = arith.constant 0 : index
    %c0_28 = arith.constant 0 : index
    %c0_29 = arith.constant 0 : index
    %77 = vector.load %arg8[%c0_26, %c0_27, %c0_28, %c0_29] : memref<1x16x16x28xf32, #tpu.memory_space<vmem>>, vector<1x16x16x28xf32>
    %78 = vector.shape_cast %77 : vector<1x16x16x28xf32> to vector<16x16x28xf32>
    %79 = vector.shape_cast %76 : vector<16x16x28xf32> to vector<1x16x16x28xf32>
    tpu.vector_store %arg8[%c0_26, %c0_27, %c0_28, %c0_29], %79 {strides = array<i32>} : memref<1x16x16x28xf32, #tpu.memory_space<vmem>>, vector<1x16x16x28xf32>,
    return
  }
  func.func @transform_0(%arg0: i32) -> (i32, i32, i32, i32) {
    %c0_i32 = arith.constant 0 : i32
    %c0_i32_0 = arith.constant 0 : i32
    %c0_i32_1 = arith.constant 0 : i32
    %c0_i32_2 = arith.constant 0 : i32
    return %arg0, %c0_i32, %c0_i32_0, %c0_i32_1 : i32, i32, i32, i32
  }
  func.func @transform_1(%arg0: i32) -> (i32, i32) {
    %c0_i32 = arith.constant 0 : i32
    %c0_i32_0 = arith.constant 0 : i32
    %c0_i32_1 = arith.constant 0 : i32
    return %c0_i32, %c0_i32_0 : i32, i32
  }
  func.func @transform_2(%arg0: i32) -> (i32, i32) {
    %c0_i32 = arith.constant 0 : i32
    %c0_i32_0 = arith.constant 0 : i32
    %c0_i32_1 = arith.constant 0 : i32
    return %c0_i32, %c0_i32_0 : i32, i32
  }
  func.func @transform_3(%arg0: i32) -> (i32, i32) {
    %c0_i32 = arith.constant 0 : i32
    %c0_i32_0 = arith.constant 0 : i32
    %c0_i32_1 = arith.constant 0 : i32
    return %c0_i32, %c0_i32_0 : i32, i32
  }
  func.func @transform_4(%arg0: i32) -> (i32, i32) {
    %c0_i32 = arith.constant 0 : i32
    %c0_i32_0 = arith.constant 0 : i32
    %c0_i32_1 = arith.constant 0 : i32
    return %c0_i32, %c0_i32_0 : i32, i32
  }
  func.func @transform_5(%arg0: i32) -> (i32, i32) {
    %c0_i32 = arith.constant 0 : i32
    %c0_i32_0 = arith.constant 0 : i32
    %c0_i32_1 = arith.constant 0 : i32
    return %c0_i32, %c0_i32_0 : i32, i32
  }
  func.func @transform_6(%arg0: i32) -> (i32, i32) {
    %c0_i32 = arith.constant 0 : i32
    %c0_i32_0 = arith.constant 0 : i32
    %c0_i32_1 = arith.constant 0 : i32
    return %c0_i32, %c0_i32_0 : i32, i32
  }
  func.func @transform_7(%arg0: i32) -> (i32, i32, i32, i32) {
    %c0_i32 = arith.constant 0 : i32
    %c0_i32_0 = arith.constant 0 : i32
    %c0_i32_1 = arith.constant 0 : i32
    %c0_i32_2 = arith.constant 0 : i32
    return %arg0, %c0_i32, %c0_i32_0, %c0_i32_1 : i32, i32, i32, i32
  }
}

</mosaic_0001>

<bundles_post_ra>
// kernel: tpu_custom_call.1
= control target key start
LH: loop header
LB: loop body
LE: loop exit
PB: predicated region body
PF: predicated region fallthrough
CT: control target
= control target key end

     0   :  { %12 = vsyncpa [#allocation3], 0  ;;  %s13397_s0 = inlined_call_operand.vmem [shape: f32[2,16,16,4], index: 0, kind: input, shape index: {}]   ;;  %s13398_s1 = inlined_call_operand.vmem [shape: bf16[36,8], index: 1, kind: input, shape index: {}]   ;;  %s13399_s2 = inlined_call_operand.vmem [shape: f32[1,8], index: 2, kind: input, shape index: {}]   ;;  %s13400_s3 = inlined_call_operand.vmem [shape: bf16[108,8], index: 3, kind: input, shape index: {}]   ;;  %s13401_s4 = inlined_call_operand.vmem [shape: f32[1,8], index: 4, kind: input, shape index: {}]   ;;  %s13402_s5 = inlined_call_operand.vmem [shape: bf16[180,8], index: 5, kind: input, shape index: {}]   ;;  %s13403_s6 = inlined_call_operand.vmem [shape: f32[1,8], index: 6, kind: input, shape index: {}]   ;;  %s13404_s7 = inlined_call_operand.hbm [shape: f32[2,16,16,28], index: 7, kind: output, shape index: {}]  }
   0x1   :  { %14 = vsyncpa [#allocation3 + $0x1], 0  ;;  %s8075_s24 = smov 0   ;;  %s8077_s25 = smov 0  }
   0x2   :  { %s8079_s26 = smov 0   ;;  %s8081_s27 = smov 0  }
   0x3 LB: > { %s8096_s28 = sadd.s32 4294967295, %s8013_s27   ;;  %s5843_s29 = sadd.s32 4294967294, %s8013_s27   ;;  %s8013_s27 = sphi %s8081_s27, %s14478_s27   ;;  %s8009_s26 = sphi %s8079_s26, %s14477_s26   ;;  %s8005_s25 = sphi %s8077_s25, %s14476_s25   ;;  %s8001_s24 = sphi %s8075_s24, %s14475_s24  }
   0x4   : > { %s8100_s30 = sadd.s32 1, %s8013_s27   ;;  %s179_s8 = sadd.s32 1, %s8009_s26 }
   0x5   : > { %s176_s9 = ssub.s32 %s8013_s27, %s8100_s30  ;;  %p189_p0 = scmp.ne.s32.totalorder %s8009_s26, %s8005_s25 }
   0x6   : > { %p177_p1 = scmp.eq.s32.totalorder %s176_s9, 0  ;;  %p190_p2 = scmp.eq.s32.totalorder %s8096_s28, 1 }
   0x7   : > { %p195_p3 = scmp.ne.s32.totalorder %s8005_s25, %s8001_s24  ;;  %p196_p4 = scmp.eq.s32.totalorder %s5843_s29, 1 }
   0x8   : > { %s8111_s10 = scalar_select %p177_p1, %s8009_s26, %s179_s8  }
   0x9   : > { %p8113_p5 = por %p190_p2, %p189_p0  ;;  %p8117_p6 = por %p196_p4, %p195_p3 }
   0xa   : > { %p5846_p7 = scmp.ge.s32.totalorder %s8013_s27, 1  ;;  %p240_p8 = scmp.lt.s32.totalorder %s8013_s27, 3 }
   0xc   : > { %p241_p9 = pnand %p5846_p7, %p240_p8 }
   0xe   : > { %244 = sbr.rel (%p241_p9) target bundleno = 2342 (0x926), region = 48 }
  0x13   : > { %p272_p10 = scmp.lt.s32.totalorder %s8096_s28, 1  ;;  %vm342_vm0 = vcmask 1040384   ;;  %vm501_vm1 = vcmask 1046528   ;;  %v13405_v40 = vmov 0.0   ;;  %s8016_s18 = smov 4   ;;  %vm672_vm2 = vcmask 1045504  }
  0x14   : > { %v8192_v41 = vrot.slane %v13405_v40, 1  ;;  %s8017_s19 = smov 8   ;;  %s8018_s20 = smov 12   ;;  %vm1773_vm3 = vcmask 1041408   ;;  %vm1422_vm4 = vcmask 31744   ;;  %vm1486_vm5 = vcmask 97280  }
  0x15   : > { %s273_s13 = scalar_select %p272_p10, %s8096_s28, 1  ;;  %vm1454_vm6 = vcmask 64512   ;;  %vm1519_vm7 = vcmask 130048   ;;  %vm1585_vm8 = vcmask 195584   ;;  %vm1552_vm9 = vcmask 162816  }
  0x16   : > { %13770 = vst [vmem:[#allocation13_spill] sm:$0xff] %v8192_v41  ;;  %s8019_s21 = smov 16   ;;  %s8020_s22 = smov 20   ;;  %vm1618_vm10 = vcmask 228352   ;;  %vm1651_vm11 = vcmask 261120   ;;  %vm1724_vm12 = vcmask 293888  }
  0x17   : > { %s5983_s14 = sshll.u32 %s273_s13, 8  ;;  %s8021_s23 = smov 24   ;;  %vm3256_vm13 = vcmask 392192   ;;  %vm3289_vm14 = vcmask 490496   ;;  %vm3322_vm15 = vcmask 588800  }
  0x18   : > { %s8128_s17 = scalar_lea.vmem %s13397_s0, %s5983_s14  ;;  %s8022_s29 = smov 28  }
  0x19   : > { %v284_v0 = vld [vmem:[%s8128_s17 + $0x30] sm:$0xff]  ;;  %v285_v1 = vld [vmem:[%s8128_s17 + $0x38] sm:$0xff]  ;;  %v286_v2 = vld [vmem:[%s8128_s17 + $0x40] sm:$0xff]  ;;  %s8023_s8 = smov 32   ;;  %s8024_s13 = smov 36  }
  0x1a   : > { %v287_v3 = vld [vmem:[%s8128_s17 + $0x48] sm:$0xff]  ;;  %v352_v4 = vrot.slane %v284_v0, 7  ;;  %v353_v5 = vrot.slane %v285_v1, 7  ;;  %v355_v6 = vrot.slane %v286_v2, 7  ;;  %v8135_v7 = vld [vmem:[%s8128_s17 + $0x10] sm:$0xff]  ;;  %v281_v8 = vld [vmem:[%s8128_s17 + $0x18] sm:$0xff] }
  0x1b   : > { %v356_v9 = vrot.slane %v287_v3, 7  ;;  %v282_v10 = vld [vmem:[%s8128_s17 + $0x20] sm:$0xff]  ;;  %v283_v11 = vld [vmem:[%s8128_s17 + $0x28] sm:$0xff]  ;;  %v346_v12 = vrot.slane %v8135_v7, 7  ;;  %v347_v13 = vrot.slane %v281_v8, 7  ;;  %v288_v31 = vld [vmem:[%s8128_s17 + $0x50] sm:$0xff] }
  0x1c   : > { %v8142_v14 = vsel %vm342_vm0, %v352_v4, %v353_v5  ;;  %v8145_v15 = vsel %vm342_vm0, 0.0, %v355_v6  ;;  %v8148_v16 = vsel %vm342_vm0, %v353_v5, 0.0  ;;  %v349_v17 = vrot.slane %v282_v10, 7  ;;  %v278_v25 = vld [vmem:[%s8128_s17] sm:$0xff]  ;;  %v279_v30 = vld [vmem:[%s8128_s17 + $0x8] sm:$0xff]  ;;  %v8178_v32 = vld [vmem:[%s8128_s17 + $0x58] sm:$0xff] }
  0x1d   : > { %13762 = vst [vmem:[#allocation5_spill] sm:$0xff] %v8142_v14  ;;  %v8151_v18 = vsel %vm342_vm0, %v355_v6, %v356_v9  ;;  %v520_v19 = vrot.slane %v8142_v14, 1  ;;  %v522_v20 = vrot.slane %v8148_v16, 1  ;;  %v524_v21 = vrot.slane %v8145_v15, 1  ;;  %v292_v2 = vld [vmem:[%s8128_s17 + $0x70] sm:$0xff]  ;;  %v293_v3 = vld [vmem:[%s8128_s17 + $0x78] sm:$0xff] }
  0x1e   : > { %13763 = vst [vmem:[#allocation6_spill] sm:$0xff] %v8145_v15  ;;  %v525_v22 = vrot.slane %v8151_v18, 1  ;;  %v8160_v23 = vsel %vm342_vm0, %v346_v12, %v347_v13  ;;  %v350_v24 = vrot.slane %v283_v11, 7  ;;  %v8169_v27 = vsel %vm342_vm0, 0.0, %v349_v17  ;;  %v8263_v10 = vld [vmem:[%s8128_s17 + $0x88] sm:$0xff]  ;;  %v290_v11 = vld [vmem:[%s8128_s17 + $0x60] sm:$0xff] }
  0x1f   : > { %13764 = vst [vmem:[#allocation7_spill] sm:$0xff] %v8151_v18  ;;  %v8166_v26 = vsel %vm501_vm1, %v520_v19, %v522_v20  ;;  %v8172_v28 = vsel %vm342_vm0, %v347_v13, 0.0  ;;  %v510_v29 = vrot.slane %v8160_v23, 1  ;;  %v514_v36 = vrot.slane %v8169_v27, 1  ;;  %v291_v13 = vld [vmem:[%s8128_s17 + $0x68] sm:$0xff]  ;;  %s8025_s14 = smov 48  }
  0x20   : > { %13765 = vst [vmem:[#allocation8_spill] sm:$0xff] %v8160_v23  ;;  %v8181_v33 = vsel %vm501_vm1, %v524_v21, %v525_v22  ;;  %v8184_v34 = vsel %vm342_vm0, %v349_v17, %v350_v24  ;;  %v512_v35 = vrot.slane %v8172_v28, 1  ;;  %v343_v39 = vrot.slane %v278_v25, 7  ;;  %s8032_s15 = smov 100   ;;  %s8033_s16 = smov 120  }
  0x21   : > { %13766 = vst [vmem:[#allocation9_spill] sm:$0xff] %v8166_v26  ;;  %v6084_v37 = vpack.i.bf16 %v8181_v33, %v8166_v26  ;;  %v515_v38 = vrot.slane %v8184_v34, 1  ;;  %v344_v43 = vrot.slane %v279_v30, 7  ;;  %v358_v44 = vrot.slane %v288_v31, 7 }
  0x22   : > { %13767 = vst [vmem:[#allocation10_spill] sm:$0xff] %v8169_v27  ;;  %v8197_v42 = vsel %vm501_vm1, %v510_v29, %v512_v35  ;;  %v359_v45 = vrot.slane %v8178_v32, 7  ;;  %v8205_v47 = vsel %vm342_vm0, 0.0, %v343_v39  ;;  %v8208_v48 = vsel %vm342_vm0, %v356_v9, 0.0 }
  0x23   : > { %13768 = vst [vmem:[#allocation11_spill] sm:$0xff] %v8181_v33  ;;  %6085 = vrot.lane.b32.xlu2 %v6084_v37, %s8016_s18  ;;  %v8202_v46 = vsel %vm501_vm1, %v514_v36, %v515_v38  ;;  %v8211_v49 = vsel %vm342_vm0, 0.0, %v352_v4  ;;  %v8216_v51 = vsel %vm342_vm0, %v343_v39, %v344_v43  ;;  %v8219_v52 = vsel %vm342_vm0, %v344_v43, 0.0  ;;  %v294_v4 = vld [vmem:[%s8128_s17 + $0x80] sm:$0xff] }
  0x24   : > { %13769 = vst [vmem:[#allocation12_spill] sm:$0xff] %v8184_v34  ;;  %v6074_v50 = vpack.i.bf16 %v8202_v46, %v8197_v42  ;;  %v504_v53 = vrot.slane %v8205_v47, 1  ;;  %v505_v54 = vrot.slane %v8216_v51, 1  ;;  %v507_v55 = vrot.slane %v8219_v52, 1 }
  0x25   : > { %13771 = vst [vmem:[#allocation14_spill] sm:$0xff] %v8197_v42  ;;  %v8227_v56 = vsel %vm342_vm0, %v358_v44, %v359_v45  ;;  %v8230_v57 = vsel %vm342_vm0, 0.0, %v358_v44  ;;  %v527_v58 = vrot.slane %v8208_v48, 1  ;;  %v8237_v61 = vsel %vm342_vm0, %v350_v24, 0.0 }
  0x26   : > { %13772 = vst [vmem:[#allocation15_spill] sm:$0xff] %v8205_v47  ;;  %6075 = vrot.lane.b32.xlu1 %v6074_v50, %s8016_s18  ;;  %v529_v59 = vrot.slane %v8230_v57, 1  ;;  %v530_v60 = vrot.slane %v8227_v56, 1  ;;  %v8240_v62 = vsel %vm501_vm1, %v504_v53, %v505_v54  ;;  %v8243_v63 = vsel %vm501_vm1, %v505_v54, %v507_v55 }
  0x27   : > { %13773 = vst [vmem:[#allocation16_spill] sm:$0xff] %v8211_v49  ;;  %v517_v0 = vrot.slane %v8237_v61, 1  ;;  %v519_v1 = vrot.slane %v8211_v49, 1  ;;  %v6064_v6 = vpack.i.bf16 %v8240_v62, %v8192_v41  ;;  %v8255_v8 = vsel %vm501_vm1, %v525_v22, %v527_v58 }
  0x28   : > { %13774 = vst [vmem:[#allocation17_spill] sm:$0xff] %v8216_v51  ;;  %v8260_v9 = vsel %vm501_vm1, %v529_v59, %v530_v60  ;;  %v8280_v22 = vsel %vm342_vm0, 0.0, %v346_v12  ;;  %v364_v30 = vrot.slane %v292_v2, 7  ;;  %v365_v31 = vrot.slane %v293_v3, 7  ;;  %v298_v59 = vld [vmem:[%s8128_s17 + $0xa0] sm:$0xff] }
  0x29   : > { %13775 = vst [vmem:[#allocation18_spill] sm:$0xff] %v8227_v56  ;;  %v6089_v17 = vpack.i.bf16 %v8260_v9, %v8255_v8  ;;  %v8270_v20 = vsel %vm501_vm1, %v515_v38, %v517_v0  ;;  %v8275_v21 = vsel %vm501_vm1, %v519_v1, %v520_v19  ;;  %6065 = vrot.lane.b32.xlu0 %v6064_v6, %s8016_s18  ;;  %v509_v25 = vrot.slane %v8280_v22, 1  ;;  %v300_v6 = vld [vmem:[%s8128_s17 + $0xb0] sm:$0xff] }
  0x2a   : > { %13776 = vst [vmem:[#allocation19_spill] sm:$0xff] %v8230_v57  ;;  %v6079_v24 = vpack.i.bf16 %v8275_v21, %v8270_v20  ;;  %v367_v35 = vrot.slane %v294_v4, 7  ;;  %v368_v19 = vrot.slane %v8263_v10, 7  ;;  %v361_v36 = vrot.slane %v290_v11, 7  ;;  %v299_v4 = vld [vmem:[%s8128_s17 + $0xa8] sm:$0xff] }
  0x2b   : > { %13777 = vst [vmem:[#allocation20_spill] sm:$0xff] %v8240_v62  ;;  %6090 = vrot.lane.b32.xlu2 %v6089_v17, %s8016_s18  ;;  %v362_v7 = vrot.slane %v291_v13, 7  ;;  %v8291_v12 = vsel %vm501_vm1, %v509_v25, %v510_v29  ;;  %v8294_v37 = vsel %vm342_vm0, %v364_v30, %v365_v31  ;;  %v8297_v38 = vsel %vm342_vm0, %v365_v31, 0.0 }
  0x2c   : > { %13778 = vst [vmem:[#allocation21_spill] sm:$0xff] %v8243_v63  ;;  %v8300_v39 = vsel %vm342_vm0, 0.0, %v364_v30  ;;  %v6069_v43 = vpack.i.bf16 %v8291_v12, %v8243_v63  ;;  %v8305_v44 = vsel %vm342_vm0, %v367_v35, %v368_v19  ;;  %v8308_v29 = vsel %vm342_vm0, 0.0, %v367_v35 }
  0x2d   : > { %13779 = vst [vmem:[#allocation22_spill] sm:$0xff] %v8255_v8  ;;  %v540_v50 = vrot.slane %v8294_v37, 1  ;;  %v542_v53 = vrot.slane %v8297_v38, 1  ;;  %v544_v54 = vrot.slane %v8308_v29, 1  ;;  %v13407_v55 = vrot.slane %v8305_v44, 1 }
  0x2e   : > { %13780 = vst [vmem:[#allocation23_spill] sm:$0xff] %v8260_v9  ;;  %6080 = vrot.lane.b32.xlu1 %v6079_v24, %s8016_s18  ;;  %v8316_v58 = vsel %vm342_vm0, %v361_v36, %v362_v7  ;;  %v8320_v0 = vsel %vm342_vm0, %v362_v7, 0.0  ;;  %v539_v2 = vrot.slane %v8300_v39, 1  ;;  %v8325_v3 = vsel %vm342_vm0, 0.0, %v361_v36  ;;  %v8344_v24 = vld [vmem:[%s8128_s17 + $0xb8] sm:$0xff] }
  0x2f   : > { %13781 = vst [vmem:[#allocation24_spill] sm:$0xff] %v8275_v21  ;;  %v535_v1 = vrot.slane %v8316_v58, 1  ;;  %v8330_v10 = vsel %vm501_vm1, %v540_v50, %v542_v53  ;;  %v8335_v11 = vsel %vm501_vm1, %v544_v54, %v13407_v55  ;;  %v537_v13 = vrot.slane %v8320_v0, 1 }
  0x30   : > { %13782 = vst [vmem:[#allocation25_spill] sm:$0xff] %v8280_v22  ;;  %v8341_v17 = vsel %vm342_vm0, %v359_v45, 0.0  ;;  %v6104_v25 = vpack.i.bf16 %v8335_v11, %v8330_v10  ;;  %v8349_v30 = vsel %vm501_vm1, %v539_v2, %v540_v50  ;;  %v534_v35 = vrot.slane %v8325_v3, 1  ;;  %v296_v2 = vld [vmem:[%s8128_s17 + $0x90] sm:$0xff] }
  0x31   : > { %13783 = vst [vmem:[#allocation26_spill] sm:$0xff] %v8294_v37  ;;  %v532_v31 = vrot.slane %v8341_v17, 1  ;;  %6070 = vrot.lane.b32.xlu0 %v6069_v43, %s8016_s18  ;;  %v8355_v32 = vsel %vm501_vm1, %v535_v1, %v537_v13  ;;  %v373_v45 = vrot.slane %v298_v59, 7  ;;  %v374_v36 = vrot.slane %v299_v4, 7  ;;  %v297_v13 = vld [vmem:[%s8128_s17 + $0x98] sm:$0xff] }
  0x32   : > { %13784 = vst [vmem:[#allocation27_spill] sm:$0xff] %v8300_v39  ;;  %v376_v7 = vrot.slane %v300_v6, 7  ;;  %v6099_v53 = vpack.i.bf16 %v8349_v30, %v8355_v32  ;;  %v8366_v54 = vsel %vm501_vm1, %v534_v35, %v535_v1  ;;  %v13410_v43 = vrot.slane %v8344_v24, 7  ;;  %v304_v1 = vld [vmem:[%s8128_s17 + $0xd0] sm:$0xff] }
  0x33   : > { %13785 = vst [vmem:[#allocation28_spill] sm:$0xff] %v8305_v44  ;;  %6105 = vrot.lane.b32.xlu2 %v6104_v25, %s8016_s18  ;;  %v8363_v50 = vsel %vm501_vm1, %v530_v60, %v532_v31  ;;  %v8374_v4 = vsel %vm342_vm0, %v373_v45, %v374_v36  ;;  %v8380_v60 = vsel %vm342_vm0, %v374_v36, 0.0  ;;  %v370_v36 = vrot.slane %v296_v2, 7 }
  0x34   : > { %13786 = vst [vmem:[#allocation29_spill] sm:$0xff] %v8308_v29  ;;  %v6094_v59 = vpack.i.bf16 %v8366_v54, %v8363_v50  ;;  %v8377_v6 = vsel %vm342_vm0, 0.0, %v376_v7  ;;  %v8386_v25 = vsel %vm342_vm0, %v376_v7, %v13410_v43  ;;  %v555_v31 = vrot.slane %v8374_v4, 1 }
  0x35   : > { %13787 = vst [vmem:[#allocation30_spill] sm:$0xff] %v8316_v58  ;;  %v557_v35 = vrot.slane %v8380_v60, 1  ;;  %v559_v5 = vrot.slane %v8377_v6, 1  ;;  %v13417_v40 = vrot.slane %v8386_v25, 1  ;;  %v371_v55 = vrot.slane %v297_v13, 7 }
  0x36   : > { %13788 = vst [vmem:[#allocation31_spill] sm:$0xff] %v8325_v3  ;;  %6100 = vrot.lane.b32.xlu1 %v6099_v53, %s8016_s18  ;;  %v8394_v41 = vsel %vm342_vm0, 0.0, %v373_v45  ;;  %v382_v53 = vrot.slane %v304_v1, 7  ;;  %v8417_v13 = vsel %vm342_vm0, 0.0, %v370_v36  ;;  %v676_v9 = vrot.slane %v8216_v51, 2 }
  0x37   : > { %13789 = vst [vmem:[#allocation32_spill] sm:$0xff] %v8330_v10  ;;  %v8397_v7 = vsel %vm501_vm1, %v555_v31, %v557_v35  ;;  %v554_v43 = vrot.slane %v8394_v41, 1  ;;  %v306_v10 = vld [vmem:[%s8128_s17 + $0xe0] sm:$0xff]  ;;  %v8411_v2 = vsel %vm342_vm0, %v370_v36, %v371_v55  ;;  %v8414_v45 = vsel %vm342_vm0, %v371_v55, 0.0  ;;  %v8420_v35 = vld [vmem:[%s8128_s17 + $0xe8] sm:$0xff] }
  0x38   : > { %13790 = vst [vmem:[#allocation33_spill] sm:$0xff] %v8335_v11  ;;  %v303_v11 = vld [vmem:[%s8128_s17 + $0xc8] sm:$0xff]  ;;  %v550_v26 = vrot.slane %v8411_v2, 1  ;;  %v549_v36 = vrot.slane %v8417_v13, 1  ;;  %v385_v8 = vrot.slane %v306_v10, 7 }
  0x39   : > { %13791 = vst [vmem:[#allocation34_spill] sm:$0xff] %v8349_v30  ;;  %v8408_v30 = vsel %vm501_vm1, %v559_v5, %v13417_v40  ;;  %v552_v5 = vrot.slane %v8414_v45, 1  ;;  %v8429_v40 = vsel %vm501_vm1, %v554_v43, %v555_v31  ;;  %6095 = vrot.lane.b32.xlu0 %v6094_v59, %s8016_s18  ;;  %v380_v62 = vrot.slane %v303_v11, 7 }
  0x3a   : > { %13792 = vst [vmem:[#allocation35_spill] sm:$0xff] %v8355_v32  ;;  %v8401_v32 = vsel %vm342_vm0, %v368_v19, 0.0  ;;  %v302_v19 = vld [vmem:[%s8128_s17 + $0xc0] sm:$0xff]  ;;  %v6119_v1 = vpack.i.bf16 %v8408_v30, %v8397_v7  ;;  %v13805_v59 = vrot.slane %v8305_v44, 1  ;;  %v8458_v11 = vsel %vm342_vm0, 0.0, %v385_v8 }
  0x3b   : > { %13793 = vst [vmem:[#allocation36_spill] sm:$0xff] %v8363_v50  ;;  %v547_v55 = vrot.slane %v8401_v32, 1  ;;  %v8436_v33 = vsel %vm501_vm1, %v550_v26, %v552_v5 }
  0x3c   : > { %13794 = vst [vmem:[#allocation37_spill] sm:$0xff] %v8366_v54  ;;  %v305_v54 = vld [vmem:[%s8128_s17 + $0xd8] sm:$0xff]  ;;  %6120 = vrot.lane.b32.xlu2 %v6119_v1, %s8016_s18  ;;  %v6114_v43 = vpack.i.bf16 %v8429_v40, %v8436_v33 }
  0x3d   : > { %13795 = vst [vmem:[#allocation38_spill] sm:$0xff] %v8374_v4  ;;  %v383_v21 = vrot.slane %v305_v54, 7  ;;  %v8444_v31 = vsel %vm501_vm1, %v13805_v59, %v547_v55  ;;  %v8447_v54 = vsel %vm501_vm1, %v549_v36, %v550_v26  ;;  %v574_v55 = vrot.slane %v8458_v11, 1 }
  0x3e   : > { %13796 = vst [vmem:[#allocation39_spill] sm:$0xff] %v8377_v6  ;;  %v6109_v1 = vpack.i.bf16 %v8447_v54, %v8444_v31  ;;  %6115 = vrot.lane.b32.xlu1 %v6114_v43, %s8016_s18 }
  0x3f   : > { %13797 = vst [vmem:[#allocation40_spill] sm:$0xff] %v8386_v25  ;;  %v8450_v10 = vsel %vm342_vm0, %v382_v53, %v383_v21 }
  0x40   : > { %13798 = vst [vmem:[#allocation41_spill] sm:$0xff] %v8394_v41  ;;  %v570_v26 = vrot.slane %v8450_v10, 1 }
  0x41   : > { %13799 = vst [vmem:[#allocation42_spill] sm:$0xff] %v8397_v7  ;;  %v386_v7 = vrot.slane %v8420_v35, 7  ;;  %6110 = vrot.lane.b32.xlu0 %v6109_v1, %s8016_s18  ;;  %v680_v1 = vrot.slane %v8280_v22, 2 }
  0x42   : > { %13800 = vst [vmem:[#allocation43_spill] sm:$0xff] %v8408_v30  ;;  %v379_v30 = vrot.slane %v302_v19, 7  ;;  %v8461_v19 = vsel %vm342_vm0, %v383_v21, 0.0 }
  0x43   : > { %13801 = vst [vmem:[#allocation44_spill] sm:$0xff] %v8411_v2  ;;  %v8455_v35 = vsel %vm342_vm0, %v385_v8, %v386_v7  ;;  %v572_v5 = vrot.slane %v8461_v19, 1  ;;  %v8475_v8 = vsel %vm342_vm0, %v380_v62, 0.0 }
  0x44   : > { %13802 = vst [vmem:[#allocation45_spill] sm:$0xff] %v8417_v13  ;;  %v575_v36 = vrot.slane %v8455_v35, 1  ;;  %v8469_v59 = vsel %vm342_vm0, %v379_v30, %v380_v62  ;;  %v8478_v21 = vsel %vm342_vm0, 0.0, %v379_v30  ;;  %v13816_v62 = vrot.slane %v8344_v24, 7 }
  0x45   : > { %13803 = vst [vmem:[#allocation46_spill] sm:$0xff] %v8429_v40  ;;  %v8481_v43 = vsel %vm501_vm1, %v570_v26, %v572_v5  ;;  %v565_v40 = vrot.slane %v8469_v59, 1  ;;  %v564_v5 = vrot.slane %v8478_v21, 1 }
  0x46   : > { %13804 = vst [vmem:[#allocation47_spill] sm:$0xff] %v8436_v33  ;;  %v8472_v33 = vsel %vm342_vm0, 0.0, %v382_v53  ;;  %v8494_v30 = vsel %vm342_vm0, %v13816_v62, 0.0  ;;  %v678_v62 = vrot.slane %v8219_v52, 2 }
  0x47   : > { %13806 = vst [vmem:[#allocation48_spill] sm:$0xff] %v8444_v31  ;;  %v567_v31 = vrot.slane %v8475_v8, 1  ;;  %v569_v63 = vrot.slane %v8472_v33, 1  ;;  %v562_v50 = vrot.slane %v8494_v30, 1  ;;  %v8508_v24 = vsel %vm501_vm1, %v564_v5, %v565_v40 }
  0x48   : > { %13807 = vst [vmem:[#allocation49_spill] sm:$0xff] %v8447_v54  ;;  %v8484_v54 = vsel %vm501_vm1, %v574_v55, %v575_v36  ;;  %v13823_v5 = vmov 0.0  }
  0x49   : > { %13808 = vst [vmem:[#allocation50_spill] sm:$0xff] %v8450_v10  ;;  %v6134_v53 = vpack.i.bf16 %v8484_v54, %v8481_v43  ;;  %v8499_v55 = vsel %vm501_vm1, %v565_v40, %v567_v31  ;;  %v675_v40 = vrot.slane %v8205_v47, 2 }
  0x4a   : > { %13809 = vst [vmem:[#allocation51_spill] sm:$0xff] %v8455_v35 }
  0x4b   : > { %13810 = vst [vmem:[#allocation52_spill] sm:$0xff] %v8458_v11  ;;  %6135 = vrot.lane.b32.xlu2 %v6134_v53, %s8016_s18  ;;  %v681_v53 = vrot.slane %v8160_v23, 2 }
  0x4c   : > { %13811 = vst [vmem:[#allocation53_spill] sm:$0xff] %v8469_v59 }
  0x4d   : > { %13812 = vst [vmem:[#allocation54_spill] sm:$0xff] %v8472_v33 }
  0x4e   : > { %13813 = vst [vmem:[#allocation55_spill] sm:$0xff] %v8478_v21 }
  0x4f   : > { %13814 = vst [vmem:[#allocation56_spill] sm:$0xff] %v8481_v43  ;;  %v8505_v43 = vsel %vm501_vm1, %v569_v63, %v570_v26  ;;  %v8521_v63 = vsel %vm672_vm2, %v676_v9, %v678_v62  ;;  %v8528_v26 = vsel %vm672_vm2, %v680_v1, %v681_v53  ;;  %v8539_v62 = vsel %vm342_vm0, %v386_v7, 0.0 }
  0x50   : > { %13815 = vst [vmem:[#allocation57_spill] sm:$0xff] %v8484_v54  ;;  %v6129_v31 = vpack.i.bf16 %v8505_v43, %v8499_v55  ;;  %v13820_v54 = vrot.slane %v8386_v25, 1  ;;  %v696_v1 = vrot.slane %v8151_v18, 2  ;;  %v690_v7 = vrot.slane %v8211_v49, 2 }
  0x51   : > { %13817 = vst [vmem:[#allocation58_spill] sm:$0xff] %v8499_v55  ;;  %v8531_v55 = vrot.slane %v13823_v5, 2 }
  0x52   : > { %13818 = vst [vmem:[#allocation59_spill] sm:$0xff] %v8505_v43  ;;  %v8517_v42 = vsel %vm501_vm1, %v13820_v54, %v562_v50  ;;  %6130 = vrot.lane.b32.xlu1 %v6129_v31, %s8016_s18  ;;  %v6144_v50 = vpack.i.bf16 %v8528_v26, %v8521_v63  ;;  %v8536_v54 = vsel %vm672_vm2, %v675_v40, %v676_v9  ;;  %v693_v31 = vrot.slane %v8148_v16, 2 }
  0x53   : > { %13819 = vst [vmem:[#allocation60_spill] sm:$0xff] %v8508_v24  ;;  %v6124_v52 = vpack.i.bf16 %v8508_v24, %v8517_v42  ;;  %v691_v43 = vrot.slane %v8142_v14, 2  ;;  %v695_v24 = vrot.slane %v8145_v15, 2  ;;  %v6139_v5 = vpack.i.bf16 %v8536_v54, %v8531_v55 }
  0x54   : > { %13821 = vst [vmem:[#allocation61_spill] sm:$0xff] %v8521_v63  ;;  %v577_v63 = vrot.slane %v8539_v62, 1  ;;  %6145 = vrot.lane.b32.xlu2 %v6144_v50, %s8017_s19  ;;  %v686_v9 = vrot.slane %v8184_v34, 2  ;;  %v688_v16 = vrot.slane %v8237_v61, 2 }
  0x55   : > { %13822 = vst [vmem:[#allocation62_spill] sm:$0xff] %v8528_v26  ;;  %6125 = vrot.lane.b32.xlu0 %v6124_v52, %s8016_s18  ;;  %v8554_v40 = vsel %vm672_vm2, %v691_v43, %v693_v31  ;;  %v8557_v26 = vsel %vm672_vm2, %v695_v24, %v696_v1  ;;  %v683_v52 = vrot.slane %v8172_v28, 2  ;;  %v685_v31 = vrot.slane %v8169_v27, 2 }
  0x56   : > { %13824 = vst [vmem:[#allocation63_spill] sm:$0xff] %v8531_v55  ;;  %v8562_v55 = vsel %vm501_vm1, %v575_v36, %v577_v63  ;;  %v6159_v50 = vpack.i.bf16 %v8557_v26, %v8554_v40  ;;  %v8567_v61 = vsel %vm672_vm2, %v686_v9, %v688_v16  ;;  %v706_v24 = vrot.slane %v8316_v58, 2 }
  0x57   : > { %13825 = vst [vmem:[#allocation64_spill] sm:$0xff] %v8536_v54  ;;  %v8570_v54 = vsel %vm672_vm2, %v690_v7, %v691_v43  ;;  %v708_v28 = vrot.slane %v8320_v0, 2  ;;  %v711_v36 = vrot.slane %v8294_v37, 2  ;;  %v8582_v16 = vsel %vm672_vm2, %v681_v53, %v683_v52 }
  0x58   : > { %13826 = vst [vmem:[#allocation65_spill] sm:$0xff] %v8554_v40  ;;  %v6154_v63 = vpack.i.bf16 %v8570_v54, %v8567_v61  ;;  %v8586_v43 = vsel %vm672_vm2, %v685_v31, %v686_v9  ;;  %v701_v0 = vrot.slane %v8227_v56, 2  ;;  %v703_v7 = vrot.slane %v8341_v17, 2 }
  0x59   : > { %13827 = vst [vmem:[#allocation66_spill] sm:$0xff] %v8557_v26  ;;  %v705_v40 = vrot.slane %v8325_v3, 2  ;;  %v8592_v26 = vsel %vm672_vm2, %v706_v24, %v708_v28  ;;  %v6149_v53 = vpack.i.bf16 %v8586_v43, %v8582_v16  ;;  %v698_v9 = vrot.slane %v8208_v48, 2 }
  0x5a   : > { %6140 = vrot.lane.b32.xlu1 %v6139_v5, %s8017_s19  ;;  %13828 = vst [vmem:[#allocation67_spill] sm:$0xff] %v8562_v55  ;;  %v710_v5 = vrot.slane %v8300_v39, 2  ;;  %v8604_v17 = vsel %vm672_vm2, %v701_v0, %v703_v7  ;;  %v700_v31 = vrot.slane %v8230_v57, 2  ;;  %v721_v28 = vrot.slane %v8411_v2, 2 }
  0x5b   : > { %13829 = vst [vmem:[#allocation68_spill] sm:$0xff] %v8567_v61  ;;  %v726_v61 = vrot.slane %v8374_v4, 2  ;;  %v8618_v7 = vsel %vm672_vm2, %v696_v1, %v698_v9 }
  0x5c   : > { %6160 = vrot.lane.b32.xlu2 %v6159_v50, %s8017_s19  ;;  %13830 = vst [vmem:[#allocation69_spill] sm:$0xff] %v8592_v26  ;;  %v8607_v50 = vsel %vm672_vm2, %v705_v40, %v706_v24  ;;  %v8622_v40 = vsel %vm672_vm2, %v700_v31, %v701_v0  ;;  %v716_v24 = vrot.slane %v8305_v44, 2  ;;  %v713_v0 = vrot.slane %v8297_v38, 2 }
  0x5d   : > { %639 = vrot.lane.b32.xlu0 %v8562_v55, %s8016_s18  ;;  %v8595_v55 = vsel %vm672_vm2, %v710_v5, %v711_v36  ;;  %13832 = vst [vmem:[#allocation71_spill] sm:$0xff] %v8604_v17  ;;  %v723_v5 = vrot.slane %v8414_v45, 2  ;;  %v6169_v48 = vpack.i.bf16 %v8607_v50, %v8604_v17  ;;  %v718_v45 = vrot.slane %v8401_v32, 2 }
  0x5e   : > { %13831 = vst [vmem:[#allocation70_spill] sm:$0xff] %v8595_v55  ;;  %v6174_v52 = vpack.i.bf16 %v8595_v55, %v8592_v26  ;;  %v720_v26 = vrot.slane %v8417_v13, 2  ;;  %v6164_v1 = vpack.i.bf16 %v8622_v40, %v8618_v7  ;;  %v715_v31 = vrot.slane %v8308_v29, 2 }
  0x5f   : > { %v8628_v55 = vsel %vm672_vm2, %v721_v28, %v723_v5  ;;  %v8640_v32 = vsel %vm672_vm2, %v716_v24, %v718_v45  ;;  %v736_v5 = vrot.slane %v8469_v59, 2  ;;  %v741_v17 = vrot.slane %v8450_v10, 2 }
  0x60   : > { %13833 = vst [vmem:[#allocation72_spill] sm:$0xff] %v8628_v55  ;;  %v8654_v45 = vsel %vm672_vm2, %v711_v36, %v713_v0 }
  0x62   : > { %6155 = vrot.lane.b32.xlu1 %v6154_v63, %s8017_s19  ;;  %v725_v63 = vrot.slane %v8394_v41, 2 }
  0x64   : > { %6175 = vrot.lane.b32.xlu2 %v6174_v52, %s8017_s19  ;;  %v8643_v52 = vsel %vm672_vm2, %v720_v26, %v721_v28  ;;  %v8658_v26 = vsel %vm672_vm2, %v715_v31, %v716_v24  ;;  %v731_v28 = vrot.slane %v8386_v25, 2  ;;  %v728_v24 = vrot.slane %v8380_v60, 2 }
  0x65   : > { %6150 = vrot.lane.b32.xlu0 %v6149_v53, %s8017_s19  ;;  %v8631_v53 = vsel %vm672_vm2, %v725_v63, %v726_v61  ;;  %v738_v63 = vrot.slane %v8475_v8, 2  ;;  %v6184_v38 = vpack.i.bf16 %v8643_v52, %v8640_v32  ;;  %v733_v8 = vrot.slane %v8494_v30, 2 }
  0x66   : > { %13834 = vst [vmem:[#allocation73_spill] sm:$0xff] %v8631_v53  ;;  %v6189_v9 = vpack.i.bf16 %v8631_v53, %v8628_v55  ;;  %v735_v55 = vrot.slane %v8478_v21, 2  ;;  %v6179_v36 = vpack.i.bf16 %v8658_v26, %v8654_v45  ;;  %v730_v31 = vrot.slane %v8377_v6, 2 }
  0x67   : > { %v8664_v53 = vsel %vm672_vm2, %v736_v5, %v738_v63  ;;  %v8676_v30 = vsel %vm672_vm2, %v731_v28, %v733_v8  ;;  %v8687_v60 = vsel %vm672_vm2, %v726_v61, %v728_v24  ;;  %v748_v8 = vrot.slane %v8539_v62, 2 }
  0x68   : > { %v745_v61 = vrot.slane %v8458_v11, 2  ;;  %v8718_v62 = vpack.i.bf16 %v8142_v14, %v8211_v49 }
  0x6a   : > { %6170 = vrot.lane.b32.xlu1 %v6169_v48, %s8017_s19  ;;  %v740_v48 = vrot.slane %v8472_v33, 2 }
  0x6c   : > { %6190 = vrot.lane.b32.xlu2 %v6189_v9, %s8017_s19  ;;  %v8679_v9 = vsel %vm672_vm2, %v735_v55, %v736_v5  ;;  %v6214_v5 = vpack.i.bf16 %v8216_v51, %v8205_v47  ;;  %v13884_v47 = vld [vmem:[#allocation62_spill] sm:$0xff] }
  0x6d   : > { %6165 = vrot.lane.b32.xlu0 %v6164_v1, %s8017_s19  ;;  %v8667_v1 = vsel %vm672_vm2, %v740_v48, %v741_v17  ;;  %v6199_v63 = vpack.i.bf16 %v8679_v9, %v8676_v30  ;;  %v8690_v48 = vsel %vm672_vm2, %v730_v31, %v731_v28  ;;  %v8723_v31 = vpack.i.bf16 %v8184_v34, %v8169_v27 }
  0x6e   : > { %v6204_v0 = vpack.i.bf16 %v8667_v1, %v8664_v53  ;;  %v6194_v55 = vpack.i.bf16 %v8690_v48, %v8687_v60 }
  0x72   : > { %6185 = vrot.lane.b32.xlu1 %v6184_v38, %s8017_s19  ;;  %v746_v38 = vrot.slane %v8455_v35, 2 }
  0x74   : > { %6205 = vrot.lane.b32.xlu2 %v6204_v0, %s8017_s19  ;;  %v8704_v28 = vsel %vm672_vm2, %v746_v38, %v748_v8  ;;  %v8710_v0 = vsel %vm672_vm2, %v745_v61, %v746_v38  ;;  %v8753_v8 = vpack.i.bf16 %v8151_v18, %v8145_v15  ;;  %v8763_v61 = vpack.i.bf16 %v8305_v44, %v8308_v29  ;;  %v13852_v18 = vld [vmem:[#allocation11_spill] sm:$0xff]  ;;  %v13853_v15 = vld [vmem:[#allocation22_spill] sm:$0xff] }
  0x75   : > { %6180 = vrot.lane.b32.xlu0 %v6179_v36, %s8017_s19  ;;  %v743_v36 = vrot.slane %v8461_v19, 2 }
  0x77   : > { %v8707_v24 = vsel %vm672_vm2, %v741_v17, %v743_v36  ;;  %v8757_v36 = vpack.i.bf16 %v8411_v2, %v8417_v13  ;;  %v8777_v13 = vpack.i.bf16 %v8294_v37, %v8300_v39  ;;  %v8781_v2 = vpack.i.bf16 %v8469_v59, %v8478_v21 }
  0x78   : > { %v6209_v19 = vpack.i.bf16 %v8710_v0, %v8707_v24 }
  0x7a   : > { %6200 = vrot.lane.b32.xlu1 %v6199_v63, %s8017_s19  ;;  %v8733_v63 = vpack.i.bf16 %v8160_v23, %v8280_v22 }
  0x7c   : > { %6215 = vrot.lane.b32.xlu2 %v6214_v5, %s8018_s20  ;;  %v8743_v5 = vpack.i.bf16 %v8227_v56, %v8230_v57 }
  0x7d   : > { %6195 = vrot.lane.b32.xlu0 %v6194_v55, %s8017_s19  ;;  %v8727_v17 = vpop.permute.xlu2 %6085  ;;  %v8737_v55 = vpack.i.bf16 %v8316_v58, %v8325_v3  ;;  %v308_v3 = vld [vmem:[%s8128_s17 + $0xf0] sm:$0xff]  ;;  %v8771_v58 = vld [vmem:[%s8128_s17 + $0xf8] sm:$0xff] }
  0x7e   : > { %13835 = vst [vmem:[#allocation74_spill] sm:$0xff] %v8727_v17  ;;  %v388_v44 = vrot.slane %v308_v3, 7  ;;  %v389_v29 = vrot.slane %v8771_v58, 7  ;;  %v8804_v58 = vpack.i.bf16 %v8374_v4, %v8394_v41  ;;  %v8828_v4 = vpack.i.bf16 %v8450_v10, %v8472_v33 }
  0x7f   : > { %v8832_v41 = vpack.i.bf16 %v8270_v20, %v8202_v46  ;;  %v13846_v46 = vld [vmem:[#allocation23_spill] sm:$0xff]  ;;  %v13847_v20 = vld [vmem:[#allocation36_spill] sm:$0xff] }
  0x80   : > { %v8793_v39 = vsel %vm342_vm0, %v388_v44, %v389_v29  ;;  %v8796_v37 = vsel %vm342_vm0, 0.0, %v388_v44  ;;  %v8816_v44 = vpack.i.bf16 %v8455_v35, %v8458_v11  ;;  %v13843_v11 = vld [vmem:[#allocation14_spill] sm:$0xff]  ;;  %v8852_v33 = vpack.i.bf16 %v13847_v20, %v13846_v46  ;;  %v13856_v46 = vld [vmem:[#allocation24_spill] sm:$0xff]  ;;  %v13857_v20 = vld [vmem:[#allocation9_spill] sm:$0xff] }
  0x81   : > { %v8808_v3 = vpack.i.bf16 %v8793_v39, %v8796_v37  ;;  %v942_v51 = vrot.slane %v8793_v39, 1 }
  0x82   : > { %810 = vrot.lane.b32.xlu1 %v8704_v28, %s8017_s19 }
  0x84   : > { %6230 = vrot.lane.b32.xlu2 %v8718_v62, %s8018_s20 }
  0x85   : > { %6210 = vrot.lane.b32.xlu0 %v6209_v19, %s8017_s19  ;;  %v8747_v38 = vpop.permute.xlu2 %6090 }
  0x86   : > { %13836 = vst [vmem:[#allocation75_spill] sm:$0xff] %v8747_v38  ;;  %v8862_v38 = vpack.i.bf16 %v13853_v15, %v13852_v18  ;;  %v13861_v18 = vld [vmem:[#allocation34_spill] sm:$0xff] }
  0x8a   : > { %6225 = vrot.lane.b32.xlu1 %v8723_v31, %s8018_s20 }
  0x8c   : > { %6245 = vrot.lane.b32.xlu2 %v8737_v55, %s8018_s20 }
  0x8d   : > { %6220 = vrot.lane.b32.xlu0 %v8733_v63, %s8018_s20  ;;  %v8767_v19 = vpop.permute.xlu2 %6105 }
  0x8e   : > { %13837 = vst [vmem:[#allocation76_spill] sm:$0xff] %v8767_v19  ;;  %v8788_v19 = vpack.i.bf16 %v8386_v25, %v8377_v6 }
  0x92   : > { %6240 = vrot.lane.b32.xlu1 %v8743_v5, %s8018_s20 }
  0x94   : > { %6260 = vrot.lane.b32.xlu2 %v8757_v36, %s8018_s20 }
  0x95   : > { %6235 = vrot.lane.b32.xlu0 %v8753_v8, %s8018_s20 }
  0x96   : > { %v8798_v21 = vpop.permute.xlu2 %6120 }
  0x97   : > { %13838 = vst [vmem:[#allocation77_spill] sm:$0xff] %v8798_v21  ;;  %v8840_v21 = vpack.i.bf16 %v13843_v11, %v8291_v12  ;;  %v13849_v12 = vld [vmem:[#allocation21_spill] sm:$0xff]  ;;  %v13850_v11 = vld [vmem:[#allocation20_spill] sm:$0xff] }
  0x98   : > { %v8810_v59 = vpop.permute.xlu1 %6075  ;;  %v13851_v57 = vpack.i.bf16 %v13849_v12, %v13850_v11  ;;  %v13858_v12 = vld [vmem:[#allocation33_spill] sm:$0xff] }
  0x99   : > { %13839 = vst [vmem:[#allocation78_spill] sm:$0xff] %v8810_v59 }
  0x9a   : > { %6255 = vrot.lane.b32.xlu1 %v8763_v61, %s8018_s20 }
  0x9b   : > { %v8820_v25 = vpop.permute.xlu0 %6065 }
  0x9c   : > { %6275 = vrot.lane.b32.xlu2 %v8781_v2, %s8018_s20  ;;  %13840 = vst [vmem:[#allocation79_spill] sm:$0xff] %v8820_v25 }
  0x9d   : > { %6250 = vrot.lane.b32.xlu0 %v8777_v13, %s8018_s20 }
  0xa0   : > { %v8834_v35 = vpop.permute.xlu1 %6080 }
  0xa1   : > { %13842 = vst [vmem:[#allocation81_spill] sm:$0xff] %v8834_v35  ;;  %v13876_v35 = vld [vmem:[#allocation67_spill] sm:$0xff] }
  0xa2   : > { %6270 = vrot.lane.b32.xlu1 %v8788_v19, %s8018_s20 }
  0xa4   : > { %6290 = vrot.lane.b32.xlu2 %v8808_v3, %s8018_s20 }
  0xa5   : > { %6265 = vrot.lane.b32.xlu0 %v8804_v58, %s8018_s20  ;;  %v8822_v6 = vpop.permute.xlu2 %6135 }
  0xa6   : > { %13841 = vst [vmem:[#allocation80_spill] sm:$0xff] %v8822_v6  ;;  %v8844_v6 = vpop.permute.xlu0 %6070 }
  0xa7   : > { %13844 = vst [vmem:[#allocation14_spill] sm:$0xff] %v8844_v6 }
  0xa8   : > { %v8854_v56 = vpop.permute.xlu1 %6100 }
  0xa9   : > { %13848 = vst [vmem:[#allocation23_spill] sm:$0xff] %v8854_v56  ;;  %v8874_v56 = vpack.i.bf16 %v13857_v20, %v13856_v46  ;;  %v13865_v20 = vld [vmem:[#allocation37_spill] sm:$0xff] }
  0xaa   : > { %6285 = vrot.lane.b32.xlu1 %v8816_v44, %s8018_s20 }
  0xac   : > { %6305 = vrot.lane.b32.xlu2 %v8832_v41, %s8019_s21 }
  0xad   : > { %6280 = vrot.lane.b32.xlu0 %v8828_v4, %s8018_s20 }
  0xae   : > { %v8846_v10 = vpop.permute.xlu2 %6145  ;;  %v8866_v49 = vpop.permute.xlu0 %6095 }
  0xaf   : > { %13845 = vst [vmem:[#allocation82_spill] sm:$0xff] %v8846_v10 }
  0xb0   : > { %13854 = vst [vmem:[#allocation36_spill] sm:$0xff] %v8866_v49  ;;  %v8880_v15 = vpop.permute.xlu1 %6115  ;;  %v13862_v49 = vld [vmem:[#allocation32_spill] sm:$0xff] }
  0xb1   : > { %13860 = vst [vmem:[#allocation20_spill] sm:$0xff] %v8880_v15  ;;  %v8886_v17 = vpack.i.bf16 %v13862_v49, %v13861_v18  ;;  %v13867_v15 = vld [vmem:[#allocation43_spill] sm:$0xff]  ;;  %v13869_v18 = vld [vmem:[#allocation46_spill] sm:$0xff] }
  0xb2   : > { %6300 = vrot.lane.b32.xlu1 %v8840_v21, %s8019_s21  ;;  %v8902_v34 = vpack.i.bf16 %v8517_v42, %v13867_v15  ;;  %v13873_v42 = vld [vmem:[#allocation49_spill] sm:$0xff]  ;;  %v13874_v15 = vld [vmem:[#allocation47_spill] sm:$0xff] }
  0xb4   : > { %6320 = vrot.lane.b32.xlu2 %v8852_v33, %s8019_s21 }
  0xb5   : > { %6295 = vrot.lane.b32.xlu0 %v13851_v57, %s8019_s21  ;;  %v13859_v57 = vld [vmem:[#allocation48_spill] sm:$0xff] }
  0xb6   : > { %v8868_v14 = vpop.permute.xlu2 %6160  ;;  %v8878_v11 = vpack.i.bf16 %v13859_v57, %v13858_v12  ;;  %v13866_v12 = vld [vmem:[#allocation35_spill] sm:$0xff] }
  0xb7   : > { %13855 = vst [vmem:[#allocation21_spill] sm:$0xff] %v8868_v14  ;;  %v8890_v14 = vpop.permute.xlu0 %6110  ;;  %v8898_v57 = vpack.i.bf16 %v13866_v12, %v13865_v20  ;;  %v8922_v12 = vpack.i.bf16 %v13874_v15, %v13873_v42  ;;  %v469_v42 = vsel %vm342_vm0, %v389_v29, 0.0  ;;  %v13886_v29 = vld [vmem:[#allocation64_spill] sm:$0xff] }
  0xb8   : > { %13863 = vst [vmem:[#allocation11_spill] sm:$0xff] %v8890_v14  ;;  %v13870_v14 = vld [vmem:[#allocation42_spill] sm:$0xff] }
  0xb9   : > { %v8910_v27 = vpack.i.bf16 %v13870_v14, %v13869_v18  ;;  %v13878_v18 = vld [vmem:[#allocation59_spill] sm:$0xff] }
  0xba   : > { %6315 = vrot.lane.b32.xlu1 %v8862_v38, %s8019_s21 }
  0xbc   : > { %6335 = vrot.lane.b32.xlu2 %v8878_v11, %s8019_s21 }
  0xbd   : > { %6310 = vrot.lane.b32.xlu0 %v8874_v56, %s8019_s21 }
  0xbe   : > { %v8892_v46 = vpop.permute.xlu2 %6175 }
  0xbf   : > { %13864 = vst [vmem:[#allocation22_spill] sm:$0xff] %v8892_v46 }
  0xc2   : > { %6330 = vrot.lane.b32.xlu1 %v8886_v17, %s8019_s21 }
  0xc4   : > { %v8904_v49 = vpop.permute.xlu1 %6130  ;;  %6350 = vrot.lane.b32.xlu2 %v8902_v34, %s8019_s21 }
  0xc5   : > { %13868 = vst [vmem:[#allocation24_spill] sm:$0xff] %v8904_v49  ;;  %6325 = vrot.lane.b32.xlu0 %v8898_v57, %s8019_s21  ;;  %v13875_v49 = vld [vmem:[#allocation57_spill] sm:$0xff] }
  0xc6   : > { %v8916_v20 = vpop.permute.xlu2 %6190  ;;  %v8926_v23 = vpack.i.bf16 %v13876_v35, %v13875_v49  ;;  %v13882_v35 = vld [vmem:[#allocation60_spill] sm:$0xff]  ;;  %v13883_v49 = vld [vmem:[#allocation58_spill] sm:$0xff] }
  0xc7   : > { %v8914_v46 = vpop.permute.xlu0 %6125  ;;  %13872 = vst [vmem:[#allocation33_spill] sm:$0xff] %v8916_v20  ;;  %v8947_v59 = vpack.i.bf16 %v13883_v49, %v13882_v35 }
  0xc8   : > { %13871 = vst [vmem:[#allocation9_spill] sm:$0xff] %v8914_v46  ;;  %v13879_v46 = vld [vmem:[#allocation56_spill] sm:$0xff] }
  0xc9   : > { %v8934_v22 = vpack.i.bf16 %v13879_v46, %v13878_v18  ;;  %v8951_v46 = vpack.i.bf16 %v8582_v16, %v13884_v47  ;;  %v941_v18 = vrot.slane %v8796_v37, 1 }
  0xca   : > { %6345 = vrot.lane.b32.xlu1 %v8910_v27, %s8019_s21 }
  0xcb   : > { %v943_v47 = vsel %vm501_vm1, %v941_v18, %v942_v51  ;;  %v13890_v18 = vld [vmem:[#allocation65_spill] sm:$0xff] }
  0xcc   : > { %v8928_v14 = vpop.permute.xlu1 %6140  ;;  %6365 = vrot.lane.b32.xlu2 %v8926_v23, %s8019_s21 }
  0xcd   : > { %13877 = vst [vmem:[#allocation48_spill] sm:$0xff] %v8928_v14  ;;  %6340 = vrot.lane.b32.xlu0 %v8922_v12, %s8019_s21  ;;  %v13888_v14 = vld [vmem:[#allocation66_spill] sm:$0xff] }
  0xce   : > { %v8941_v15 = vpop.permute.xlu2 %6205  ;;  %v8974_v25 = vpack.i.bf16 %v8618_v7, %v13888_v14  ;;  %v13891_v7 = vld [vmem:[#allocation68_spill] sm:$0xff] }
  0xcf   : > { %v8938_v20 = vpop.permute.xlu0 %639  ;;  %13881 = vst [vmem:[#allocation32_spill] sm:$0xff] %v8941_v15  ;;  %v13887_v15 = vld [vmem:[#allocation61_spill] sm:$0xff]  ;;  %v8994_v14 = vpack.i.bf16 %v13891_v7, %v8586_v43 }
  0xd0   : > { %13880 = vst [vmem:[#allocation34_spill] sm:$0xff] %v8938_v20  ;;  %v944_v20 = vrot.slane %v469_v42, 1  ;;  %v6374_v6 = vpack.i.bf16 %v13887_v15, %v13886_v29  ;;  %v13892_v29 = vld [vmem:[#allocation70_spill] sm:$0xff] }
  0xd2   : > { %6360 = vrot.lane.b32.xlu1 %v8934_v22, %s8019_s21  ;;  %v945_v16 = vsel %vm501_vm1, %v942_v51, %v944_v20  ;;  %v8982_v51 = vpack.i.bf16 %v13890_v18, %v8570_v54 }
  0xd4   : > { %v8955_v10 = vpop.permute.xlu1 %6155  ;;  %6380 = vrot.lane.b32.xlu2 %v8951_v46, %s8020_s22 }
  0xd5   : > { %13885 = vst [vmem:[#allocation37_spill] sm:$0xff] %v8955_v10  ;;  %6355 = vrot.lane.b32.xlu0 %v8947_v59, %s8019_s21  ;;  %v8970_v10 = vpack.i.bf16 %v945_v16, %v943_v47  ;;  %v8998_v47 = vpack.i.bf16 %v8654_v45, %v13892_v29  ;;  %v13894_v16 = vld [vmem:[#allocation69_spill] sm:$0xff]  ;;  %v13897_v45 = vld [vmem:[#allocation71_spill] sm:$0xff] }
  0xd6   : > { %v8967_v49 = vpop.permute.xlu2 %6215  ;;  %v9006_v18 = vpack.i.bf16 %v13894_v16, %v8607_v50  ;;  %v9018_v7 = vpack.i.bf16 %v13897_v45, %v8622_v40  ;;  %v13898_v29 = vld [vmem:[#allocation73_spill] sm:$0xff]  ;;  %v13900_v16 = vld [vmem:[#allocation72_spill] sm:$0xff]  ;;  %v9046_v45 = vpack.i.bf16 %v8707_v24, %v8667_v1  ;;  %v9068_v24 = vpack.i.bf16 %v8676_v30, %v8690_v48 }
  0xd7   : > { %v8965_v35 = vpop.permute.xlu0 %6150  ;;  %v9088_v30 = vpack.i.bf16 %v8704_v28, %v8710_v0 }
  0xda   : > { %6375 = vrot.lane.b32.xlu1 %v6374_v6, %s8020_s22 }
  0xdc   : > { %v8976_v15 = vpop.permute.xlu1 %6170  ;;  %6395 = vrot.lane.b32.xlu2 %v8974_v25, %s8020_s22 }
  0xdd   : > { %13889 = vst [vmem:[#allocation35_spill] sm:$0xff] %v8976_v15  ;;  %6370 = vrot.lane.b32.xlu0 %v8970_v10, %s8019_s21  ;;  %s8026_s21 = smov 60  }
  0xde   : > { %v8988_v6 = vpop.permute.xlu2 %6230 }
  0xdf   : > { %v8986_v20 = vpop.permute.xlu0 %6165 }
  0xe2   : > { %6390 = vrot.lane.b32.xlu1 %v8982_v51, %s8020_s22 }
  0xe4   : > { %v9000_v54 = vpop.permute.xlu1 %6185  ;;  %6410 = vrot.lane.b32.xlu2 %v8998_v47, %s8020_s22 }
  0xe5   : > { %13893 = vst [vmem:[#allocation43_spill] sm:$0xff] %v9000_v54  ;;  %6385 = vrot.lane.b32.xlu0 %v8994_v14, %s8020_s22  ;;  %v9022_v54 = vpack.i.bf16 %v8687_v60, %v13898_v29  ;;  %v9042_v60 = vpack.i.bf16 %v8640_v32, %v8658_v26  ;;  %v9054_v29 = vpack.i.bf16 %v8664_v53, %v8679_v9  ;;  %v1043_v32 = vrot.slane %v8793_v39, 2 }
  0xe6   : > { %v9012_v43 = vpop.permute.xlu2 %6245  ;;  %v1045_v26 = vrot.slane %v469_v42, 2 }
  0xe7   : > { %v9010_v15 = vpop.permute.xlu0 %6180  ;;  %13896 = vst [vmem:[#allocation42_spill] sm:$0xff] %v9012_v43 }
  0xe8   : > { %13895 = vst [vmem:[#allocation46_spill] sm:$0xff] %v9010_v15  ;;  %v9030_v15 = vpack.i.bf16 %v13900_v16, %v8643_v52  ;;  %v1042_v16 = vrot.slane %v8796_v37, 2  ;;  %v1046_v9 = vsel %vm672_vm2, %v1043_v32, %v1045_v26  ;;  %v13913_v26 = vld [vmem:[#allocation63_spill] sm:$0xff] }
  0xea   : > { %6405 = vrot.lane.b32.xlu1 %v9006_v18, %s8020_s22  ;;  %v1044_v53 = vsel %vm672_vm2, %v1042_v16, %v1043_v32 }
  0xeb   : > { %v9076_v37 = vpack.i.bf16 %v1046_v9, %v1044_v53 }
  0xec   : > { %v9024_v50 = vpop.permute.xlu1 %6200  ;;  %6425 = vrot.lane.b32.xlu2 %v9022_v54, %s8020_s22 }
  0xed   : > { %13899 = vst [vmem:[#allocation49_spill] sm:$0xff] %v9024_v50  ;;  %6400 = vrot.lane.b32.xlu0 %v9018_v7, %s8020_s22 }
  0xee   : > { %v9036_v40 = vpop.permute.xlu2 %6260 }
  0xef   : > { %v9034_v43 = vpop.permute.xlu0 %6195  ;;  %13902 = vst [vmem:[#allocation57_spill] sm:$0xff] %v9036_v40 }
  0xf0   : > { %13901 = vst [vmem:[#allocation47_spill] sm:$0xff] %v9034_v43 }
  0xf2   : > { %6420 = vrot.lane.b32.xlu1 %v9030_v15, %s8020_s22 }
  0xf4   : > { %v9048_v52 = vpop.permute.xlu1 %810  ;;  %6440 = vrot.lane.b32.xlu2 %v9046_v45, %s8020_s22 }
  0xf5   : > { %13903 = vst [vmem:[#allocation67_spill] sm:$0xff] %v9048_v52  ;;  %6415 = vrot.lane.b32.xlu0 %v9042_v60, %s8020_s22 }
  0xf6   : > { %v9062_v1 = vpop.permute.xlu2 %6275 }
  0xf7   : > { %v9060_v50 = vpop.permute.xlu0 %6210  ;;  %13905 = vst [vmem:[#allocation56_spill] sm:$0xff] %v9062_v1 }
  0xf8   : > { %13904 = vst [vmem:[#allocation59_spill] sm:$0xff] %v9060_v50 }
  0xfa   : > { %6435 = vrot.lane.b32.xlu1 %v9054_v29, %s8020_s22 }
  0xfc   : > { %v9072_v52 = vpop.permute.xlu1 %6225  ;;  %6455 = vrot.lane.b32.xlu2 %v8733_v63, %s8021_s23 }
  0xfd   : > { %6430 = vrot.lane.b32.xlu0 %v9068_v24, %s8020_s22 }
  0xfe   : > { %v9082_v42 = vpop.permute.xlu2 %6290 }
  0xff   : > { %v9080_v39 = vpop.permute.xlu0 %6220  ;;  %13906 = vst [vmem:[#allocation60_spill] sm:$0xff] %v9082_v42 }
 0x102   : > { %6450 = vrot.lane.b32.xlu1 %v9076_v37, %s8020_s22 }
 0x104   : > { %v9090_v48 = vpop.permute.xlu1 %6240  ;;  %6470 = vrot.lane.b32.xlu2 %v8753_v8, %s8021_s23 }
 0x105   : > { %6445 = vrot.lane.b32.xlu0 %v9088_v30, %s8020_s22 }
 0x106   : > { %v9098_v16 = vpop.permute.xlu2 %6305 }
 0x107   : > { %v9096_v63 = vpop.permute.xlu0 %6235 }
 0x10a   : > { %6465 = vrot.lane.b32.xlu1 %v8718_v62, %s8021_s23 }
 0x10c   : > { %v9102_v32 = vpop.permute.xlu1 %6255  ;;  %6485 = vrot.lane.b32.xlu2 %v8777_v13, %s8021_s23 }
 0x10d   : > { %6460 = vrot.lane.b32.xlu0 %v8723_v31, %s8021_s23 }
 0x10e   : > { %v9110_v0 = vpop.permute.xlu2 %6320 }
 0x10f   : > { %v9108_v28 = vpop.permute.xlu0 %6250 }
 0x112   : > { %6480 = vrot.lane.b32.xlu1 %v8737_v55, %s8021_s23 }
 0x114   : > { %v9114_v8 = vpop.permute.xlu1 %6270  ;;  %6500 = vrot.lane.b32.xlu2 %v8804_v58, %s8021_s23  ;;  %v13912_v58 = vmov 0.0  }
 0x115   : > { %13907 = vst [vmem:[#allocation58_spill] sm:$0xff] %v9114_v8  ;;  %6475 = vrot.lane.b32.xlu0 %v8743_v5, %s8021_s23  ;;  %v6529_v53 = vpack.i.bf16 %v13913_v26, %v13912_v58 }
 0x116   : > { %v9122_v31 = vpop.permute.xlu2 %6335 }
 0x117   : > { %v9120_v62 = vpop.permute.xlu0 %6265 }
 0x118   : > { %13908 = vst [vmem:[#allocation62_spill] sm:$0xff] %v9120_v62 }
 0x11a   : > { %6495 = vrot.lane.b32.xlu1 %v8757_v36, %s8021_s23 }
 0x11c   : > { %v9126_v13 = vpop.permute.xlu1 %6285  ;;  %6515 = vrot.lane.b32.xlu2 %v8828_v4, %s8021_s23 }
 0x11d   : > { %13909 = vst [vmem:[#allocation64_spill] sm:$0xff] %v9126_v13  ;;  %6490 = vrot.lane.b32.xlu0 %v8763_v61, %s8021_s23  ;;  %v1704_v13 = vld [vmem:[%s13398_s1 + $0x10] sm:$0x3] }
 0x11e   : > { %v9136_v5 = vpop.permute.xlu2 %6350  ;;  %v1718_v50 = vunpack.c.l.b16 %v1704_v13 }
 0x11f   : > { %v9132_v55 = vpop.permute.xlu0 %6280  ;;  %13911 = vst [vmem:[#allocation66_spill] sm:$0xff] %v9136_v5  ;;  %v6217_v5 = vunpack.i.l.bf16 %v8967_v49 }
 0x120   : > { %13910 = vst [vmem:[#allocation61_spill] sm:$0xff] %v9132_v55 }
 0x122   : > { %6510 = vrot.lane.b32.xlu1 %v8781_v2, %s8021_s23 }
 0x124   : > { %v9140_v9 = vpop.permute.xlu1 %6300  ;;  %6530 = vrot.lane.b32.xlu2 %v6529_v53, %s8021_s23 }
 0x125   : > { %6505 = vrot.lane.b32.xlu0 %v8788_v19, %s8021_s23 }
 0x126   : > { %v9149_v4 = vpop.permute.xlu2 %6365 }
 0x127   : > { %v9145_v36 = vpop.permute.xlu0 %6295  ;;  %13914 = vst [vmem:[#allocation65_spill] sm:$0xff] %v9149_v4 }
 0x12a   : > { %6525 = vrot.lane.b32.xlu1 %v8808_v3, %s8021_s23 }
 0x12c   : > { %v9151_v2 = vpop.permute.xlu1 %6315  ;;  %6545 = vrot.lane.b32.xlu2 %v8874_v56, %s8022_s29 }
 0x12d   : > { %6520 = vrot.lane.b32.xlu0 %v8816_v44, %s8021_s23 }
 0x12e   : > { %v9165_v3 = vpop.permute.xlu2 %6380 }
 0x12f   : > { %v9157_v61 = vpop.permute.xlu0 %6310 }
 0x132   : > { %6540 = vrot.lane.b32.xlu1 %v8832_v41, %s8022_s29 }
 0x134   : > { %v9161_v19 = vpop.permute.xlu1 %6330  ;;  %6560 = vrot.lane.b32.xlu2 %v8898_v57, %s8022_s29 }
 0x135   : > { %6535 = vrot.lane.b32.xlu0 %v8840_v21, %s8022_s29 }
 0x136   : > { %v9179_v41 = vpop.permute.xlu2 %6395 }
 0x137   : > { %v9169_v44 = vpop.permute.xlu0 %6325 }
 0x13a   : > { %6555 = vrot.lane.b32.xlu1 %v8852_v33, %s8022_s29 }
 0x13c   : > { %v9173_v56 = vpop.permute.xlu1 %6345  ;;  %6575 = vrot.lane.b32.xlu2 %v8922_v12, %s8022_s29 }
 0x13d   : > { %13915 = vst [vmem:[#allocation68_spill] sm:$0xff] %v9173_v56  ;;  %6550 = vrot.lane.b32.xlu0 %v8862_v38, %s8022_s29 }
 0x13e   : > { %v9193_v38 = vpop.permute.xlu2 %6410 }
 0x13f   : > { %v9181_v21 = vpop.permute.xlu0 %6340 }
 0x140   : > { %13916 = vst [vmem:[#allocation70_spill] sm:$0xff] %v9181_v21 }
 0x142   : > { %6570 = vrot.lane.b32.xlu1 %v8878_v11, %s8022_s29 }
 0x144   : > { %v9185_v57 = vpop.permute.xlu1 %6360  ;;  %6590 = vrot.lane.b32.xlu2 %v8947_v59, %s8022_s29 }
 0x145   : > { %13917 = vst [vmem:[#allocation69_spill] sm:$0xff] %v9185_v57  ;;  %6565 = vrot.lane.b32.xlu0 %v8886_v17, %s8022_s29 }
 0x146   : > { %v9207_v59 = vpop.permute.xlu2 %6425 }
 0x147   : > { %v9191_v33 = vpop.permute.xlu0 %6355  ;;  %13920 = vst [vmem:[#allocation72_spill] sm:$0xff] %v9207_v59  ;;  %v6298_v59 = vunpack.i.h.bf16 %v9145_v36 }
 0x148   : > { %13918 = vst [vmem:[#allocation71_spill] sm:$0xff] %v9191_v33  ;;  %v13936_v33 = vld [vmem:[#allocation79_spill] sm:$0xff] }
 0x149   : > { %v6067_v1 = vunpack.i.l.bf16 %v13936_v33 }
 0x14a   : > { %6585 = vrot.lane.b32.xlu1 %v8902_v34, %s8022_s29 }
 0x14b   : > { %v1423_v43 = vsel %vm1422_vm4, 0.0, %v6067_v1 }
 0x14c   : > { %v9197_v12 = vpop.permute.xlu1 %6375  ;;  %6605 = vrot.lane.b32.xlu2 %v8970_v10, %s8022_s29 }
 0x14d   : > { %6580 = vrot.lane.b32.xlu0 %v8910_v27, %s8022_s29  ;;  %v6378_v62 = vunpack.i.h.bf16 %v9197_v12 }
 0x14e   : > { %v9221_v10 = vpop.permute.xlu2 %6440 }
 0x14f   : > { %v9203_v11 = vpop.permute.xlu0 %6370  ;;  %13921 = vst [vmem:[#allocation83_spill] sm:$0xff] %v9221_v10  ;;  %v1721_v10 = vpack.c.b16 %v1718_v50, %v1718_v50 }
 0x150   : > { %13919 = vst [vmem:[#allocation73_spill] sm:$0xff] %v9203_v11 }
 0x151   : > { %v1775_v55 = vsel %vm1773_vm3, %v1721_v10, 0 }
 0x152   : > { %6600 = vrot.lane.b32.xlu1 %v8926_v23, %s8022_s29  ;;  %v13922_v23 = vld [vmem:[#allocation13_spill] sm:$0xff]  ;;  %1782 = vmatpush.bf16.msra.mxu0 %v1775_v55 }
 0x154   : > { %v9209_v17 = vpop.permute.xlu1 %6390  ;;  %6615 = vrot.lane.b32.xlu2 %v8994_v14, %s8023_s8 }
 0x155   : > { %6595 = vrot.lane.b32.xlu0 %v8934_v22, %s8022_s29 }
 0x157   : > { %v9215_v27 = vpop.permute.xlu0 %6385 }
 0x15a   : > { %6610 = vrot.lane.b32.xlu1 %v8951_v46, %s8023_s8  ;;  %v9237_v46 = vpop.permute.xlu2 %6455 }
 0x15b   : > { %v6458_v1 = vunpack.i.h.bf16 %v9237_v46 }
 0x15c   : > { %v9219_v34 = vpop.permute.xlu1 %6405  ;;  %6630 = vrot.lane.b32.xlu2 %v9018_v7, %s8023_s8 }
 0x15d   : > { %1296 = vrot.lane.b32.xlu0 %v13922_v23, %s8022_s29  ;;  %s8030_s29 = smov 40  }
 0x15f   : > { %v9227_v22 = vpop.permute.xlu0 %6400 }
 0x162   : > { %6625 = vrot.lane.b32.xlu1 %v8974_v25, %s8023_s8 }
 0x164   : > { %v9231_v14 = vpop.permute.xlu1 %6420  ;;  %6645 = vrot.lane.b32.xlu2 %v9042_v60, %s8023_s8 }
 0x165   : > { %13923 = vst [vmem:[#allocation84_spill] sm:$0xff] %v9231_v14  ;;  %6620 = vrot.lane.b32.xlu0 %v8982_v51, %s8023_s8  ;;  %v9251_v51 = vpop.permute.xlu2 %6470 }
 0x167   : > { %v9239_v53 = vpop.permute.xlu0 %6415 }
 0x16a   : > { %6640 = vrot.lane.b32.xlu1 %v8998_v47, %s8023_s8 }
 0x16c   : > { %v9243_v7 = vpop.permute.xlu1 %6435  ;;  %6660 = vrot.lane.b32.xlu2 %v9068_v24, %s8023_s8 }
 0x16d   : > { %13924 = vst [vmem:[#allocation85_spill] sm:$0xff] %v9243_v7  ;;  %6635 = vrot.lane.b32.xlu0 %v9006_v18, %s8023_s8  ;;  %v9265_v18 = vpop.permute.xlu2 %6485 }
 0x16f   : > { %v9249_v25 = vpop.permute.xlu0 %6430 }
 0x170   : > { %13925 = vst [vmem:[#allocation86_spill] sm:$0xff] %v9249_v25 }
 0x172   : > { %6655 = vrot.lane.b32.xlu1 %v9022_v54, %s8023_s8 }
 0x174   : > { %v9255_v60 = vpop.permute.xlu1 %6450  ;;  %6675 = vrot.lane.b32.xlu2 %v9088_v30, %s8023_s8 }
 0x175   : > { %13926 = vst [vmem:[#allocation87_spill] sm:$0xff] %v9255_v60  ;;  %6650 = vrot.lane.b32.xlu0 %v9030_v15, %s8023_s8  ;;  %v9277_v30 = vpop.permute.xlu2 %6500 }
 0x176   : > { %13928 = vst [vmem:[#allocation89_spill] sm:$0xff] %v9277_v30 }
 0x177   : > { %v9261_v47 = vpop.permute.xlu0 %6445 }
 0x178   : > { %13927 = vst [vmem:[#allocation88_spill] sm:$0xff] %v9261_v47 }
 0x17a   : > { %6670 = vrot.lane.b32.xlu1 %v9046_v45, %s8023_s8 }
 0x17c   : > { %v9267_v24 = vpop.permute.xlu1 %6465 }
 0x17d   : > { %6665 = vrot.lane.b32.xlu0 %v9054_v29, %s8023_s8  ;;  %v9285_v23 = vpop.permute.xlu2 %6515 }
 0x17e   : > { %13929 = vst [vmem:[#allocation90_spill] sm:$0xff] %v9285_v23  ;;  %v5984_v23 = vld [vmem:[%s13398_s1] sm:$0xff] }
 0x17f   : > { %v9271_v54 = vpop.permute.xlu0 %6460 }
 0x182   : > { %1389 = vrot.lane.b32.xlu1 %v13913_v26, %s8023_s8 }
 0x184   : > { %v9275_v15 = vpop.permute.xlu1 %6480 }
 0x185   : > { %6680 = vrot.lane.b32.xlu0 %v9076_v37, %s8023_s8  ;;  %v9293_v26 = vpop.permute.xlu2 %6530 }
 0x186   : > { %13932 = vst [vmem:[#allocation93_spill] sm:$0xff] %v9293_v26  ;;  %v5985_v26 = vld [vmem:[%s13398_s1 + $0x8] sm:$0xff] }
 0x187   : > { %v9281_v45 = vpop.permute.xlu0 %6475  ;;  %1783 = vmatpush.bf16.msra.mxu0 %v5985_v26  ;;  %v13938_v26 = vld [vmem:[#allocation48_spill] sm:$0xff] }
 0x188   : > { %v6142_v25 = vunpack.i.l.bf16 %v13938_v26 }
 0x18b   : > { %1784 = vmatpush.bf16.msra.mxu0 %v5984_v23  ;;  %v6218_v23 = vunpack.i.h.bf16 %v8967_v49 }
 0x18c   : > { %v9283_v58 = vpop.permute.xlu1 %6495 }
 0x18d   : > { %v9299_v4 = vpop.permute.xlu2 %6545 }
 0x18f   : > { %v9287_v60 = vpop.permute.xlu0 %6490 }
 0x194   : > { %v9289_v29 = vpop.permute.xlu1 %6510 }
 0x195   : > { %13930 = vst [vmem:[#allocation91_spill] sm:$0xff] %v9289_v29 }
 0x197   : > { %v9291_v11 = vpop.permute.xlu0 %6505 }
 0x198   : > { %13931 = vst [vmem:[#allocation92_spill] sm:$0xff] %v9291_v11  ;;  %v1455_v11 = vsel %vm1454_vm6, %v1423_v43, %v6142_v25 }
 0x199   : > { %v1487_v56 = vsel %vm1486_vm5, %v1455_v11, %v6217_v5  ;;  %v1488_v49 = vsel %vm1486_vm5, %v1455_v11, %v6218_v23 }
 0x19a   : > { %v1521_v14 = vsel %vm1519_vm7, %v1488_v49, %v6298_v59 }
 0x19c   : > { %v9295_v42 = vpop.permute.xlu1 %6525 }
 0x19d   : > { %13933 = vst [vmem:[#allocation94_spill] sm:$0xff] %v9295_v42 }
 0x19f   : > { %v9297_v47 = vpop.permute.xlu0 %6520 }
 0x1a0   : > { %13934 = vst [vmem:[#allocation95_spill] sm:$0xff] %v9297_v47  ;;  %v9312_v47 = vpop.permute.xlu2 %6560 }
 0x1a4   : > { %v9301_v37 = vpop.permute.xlu1 %6540 }
 0x1a7   : > { %v6536_v57 = vpop.permute.xlu0 %6535 }
 0x1a8   : > { %v9321_v10 = vpop.permute.xlu2 %6575  ;;  %v6537_v25 = vunpack.i.l.bf16 %v6536_v57 }
 0x1ac   : > { %v9310_v42 = vpop.permute.xlu1 %6555 }
 0x1af   : > { %v9317_v50 = vpop.permute.xlu0 %6550 }
 0x1b0   : > { %v9328_v29 = vpop.permute.xlu2 %6590 }
 0x1b1   : > { %13937 = vst [vmem:[#allocation79_spill] sm:$0xff] %v9328_v29  ;;  %v6377_v29 = vunpack.i.l.bf16 %v9197_v12  ;;  %v1554_v12 = vsel %vm1552_vm9, %v1521_v14, %v6378_v62  ;;  %v13941_v62 = vld [vmem:[#allocation14_spill] sm:$0xff] }
 0x1b2   : > { %v1587_v23 = vsel %vm1585_vm8, %v1554_v12, %v6458_v1  ;;  %v13942_v1 = vld [vmem:[#allocation82_spill] sm:$0xff]  ;;  %v6303_v12 = vunpack.i.h.bf16 %v9140_v9 }
 0x1b4   : > { %v9319_v13 = vpop.permute.xlu1 %6570 }
 0x1b7   : > { %v9325_v7 = vpop.permute.xlu0 %6565 }
 0x1bc   : > { %v9323_v55 = vpop.permute.xlu1 %6585 }
 0x1bd   : > { %13935 = vst [vmem:[#allocation96_spill] sm:$0xff] %v9323_v55  ;;  %v6297_v55 = vunpack.i.l.bf16 %v9145_v36  ;;  %v6538_v36 = vunpack.i.h.bf16 %v6536_v57 }
 0x1bf   : > { %v9343_v30 = vpop.permute.xlu0 %6580  ;;  %v1520_v43 = vsel %vm1519_vm7, %v1487_v56, %v6297_v55  ;;  %v1620_v57 = vsel %vm1618_vm10, %v1587_v23, %v6538_v36  ;;  %v6068_v55 = vunpack.i.h.bf16 %v13936_v33  ;;  %v13943_v36 = vld [vmem:[#allocation17_spill] sm:$0xff]  ;;  %v13944_v33 = vld [vmem:[#allocation15_spill] sm:$0xff] }
 0x1c0   : > { %13940 = vst [vmem:[#allocation97_spill] sm:$0xff] %v9343_v30  ;;  %v1553_v5 = vsel %vm1552_vm9, %v1520_v43, %v6377_v29  ;;  %v9352_v30 = vpop.permute.xlu2 %6605  ;;  %v6147_v43 = vunpack.i.l.bf16 %v13942_v1 }
 0x1c1   : > { %v1424_v23 = vsel %vm1422_vm4, %v13944_v33, %v6068_v55  ;;  %v6542_v55 = vunpack.i.l.bf16 %v9301_v37 }
 0x1c4   : > { %v9332_v8 = vpop.permute.xlu1 %6600 }
 0x1c5   : > { %13939 = vst [vmem:[#allocation48_spill] sm:$0xff] %v9332_v8  ;;  %v6457_v8 = vunpack.i.l.bf16 %v9237_v46 }
 0x1c7   : > { %v1586_v21 = vsel %vm1585_vm8, %v1553_v5, %v6457_v8  ;;  %v6072_v8 = vunpack.i.l.bf16 %v13941_v62  ;;  %v9361_v49 = vpop.permute.xlu0 %6595  ;;  %v6222_v5 = vunpack.i.l.bf16 %v9080_v39 }
 0x1c8   : > { %v1619_v56 = vsel %vm1618_vm10, %v1586_v21, %v6537_v25  ;;  %v6143_v21 = vunpack.i.h.bf16 %v13938_v26 }
 0x1c9   : > { %v1425_v25 = vsel %vm1422_vm4, %v13943_v36, %v6072_v8 }
 0x1ca   : > { %v1457_v26 = vsel %vm1454_vm6, %v1425_v25, %v6147_v43 }
 0x1cc   : > { %v6611_v11 = vpop.permute.xlu1 %6610 }
 0x1cd   : > { %v6613_v46 = vunpack.i.h.bf16 %v6611_v11  ;;  %v6612_v40 = vunpack.i.l.bf16 %v6611_v11  ;;  %v6302_v11 = vunpack.i.l.bf16 %v9140_v9 }
 0x1cf   : > { %v1652_v59 = vsel %vm1651_vm11, %v1619_v56, %v6612_v40  ;;  %v1653_v29 = vsel %vm1651_vm11, %v1620_v57, %v6613_v46  ;;  %v6223_v40 = vunpack.i.h.bf16 %v9080_v39  ;;  %v6383_v46 = vunpack.i.h.bf16 %v9165_v3  ;;  %v6616_v57 = vpop.permute.xlu2 %6615 }
 0x1d0   : > { %v1684_v14 = vpack.c.bf16 %v1653_v29, %v1652_v59  ;;  %v6382_v56 = vunpack.i.l.bf16 %v9165_v3  ;;  %v1456_v59 = vsel %vm1454_vm6, %v1424_v23, %v6143_v21  ;;  %v6463_v29 = vunpack.i.h.bf16 %v9271_v54  ;;  %v9390_v23 = vpop.permute.xlu0 %1296 }
 0x1d1   : > { %v6462_v39 = vunpack.i.l.bf16 %v9271_v54  ;;  %v1489_v8 = vsel %vm1486_vm5, %v1456_v59, %v6222_v5  ;;  %v1490_v9 = vsel %vm1486_vm5, %v1457_v26, %v6223_v40  ;;  %v6618_v33 = vunpack.i.h.bf16 %v6616_v57 }
 0x1d2   : > { %5858 = vmatmul.msk.bf16.vlgmr.msra.gmra.mxu0 %vm1724_vm12, %v1684_v14  ;;  %v6543_v14 = vunpack.i.h.bf16 %v9301_v37  ;;  %v1522_v36 = vsel %vm1519_vm7, %v1489_v8, %v6302_v11  ;;  %v1523_v3 = vsel %vm1519_vm7, %v1490_v9, %v6303_v12  ;;  %v6617_v43 = vunpack.i.l.bf16 %v6616_v57 }
 0x1d3   : > { %v1555_v21 = vsel %vm1552_vm9, %v1522_v36, %v6382_v56  ;;  %v1556_v25 = vsel %vm1552_vm9, %v1523_v3, %v6383_v46  ;;  %v6073_v57 = vunpack.i.h.bf16 %v13941_v62  ;;  %v13945_v56 = vld [vmem:[#allocation78_spill] sm:$0xff]  ;;  %v6148_v46 = vunpack.i.h.bf16 %v13942_v1  ;;  %v13947_v36 = vld [vmem:[#allocation8_spill] sm:$0xff] }
 0x1d4   : > { %v1588_v54 = vsel %vm1585_vm8, %v1555_v21, %v6462_v39  ;;  %v1589_v5 = vsel %vm1585_vm8, %v1556_v25, %v6463_v29  ;;  %v6077_v59 = vunpack.i.l.bf16 %v13945_v56  ;;  %v6152_v29 = vunpack.i.l.bf16 %v8965_v35  ;;  %v13946_v39 = vld [vmem:[#allocation25_spill] sm:$0xff] }
 0x1d5   : > { %v1621_v40 = vsel %vm1618_vm10, %v1588_v54, %v6542_v55  ;;  %v1622_v37 = vsel %vm1618_vm10, %v1589_v5, %v6543_v14  ;;  %v1426_v8 = vsel %vm1422_vm4, %v13946_v39, %v6073_v57  ;;  %v6228_v9 = vunpack.i.h.bf16 %v9072_v52 }
 0x1d6   : > { %v1654_v11 = vsel %vm1651_vm11, %v1621_v40, %v6617_v43  ;;  %v1655_v12 = vsel %vm1651_vm11, %v1622_v37, %v6618_v33  ;;  %v6227_v14 = vunpack.i.l.bf16 %v9072_v52  ;;  %v6308_v55 = vunpack.i.h.bf16 %v9098_v16 }
 0x1d7   : > { %v1685_v26 = vpack.c.bf16 %v1655_v12, %v1654_v11  ;;  %v6307_v62 = vunpack.i.l.bf16 %v9098_v16  ;;  %v1427_v3 = vsel %vm1422_vm4, %v13947_v36, %v6077_v59  ;;  %v6388_v33 = vunpack.i.h.bf16 %v9215_v27  ;;  %v13949_v36 = vld [vmem:[#allocation37_spill] sm:$0xff] }
 0x1d8   : > { %v6387_v1 = vunpack.i.l.bf16 %v9215_v27  ;;  %v6621_v43 = vpop.permute.xlu0 %6620  ;;  %v1458_v21 = vsel %vm1454_vm6, %v1426_v8, %v6148_v46  ;;  %v1459_v25 = vsel %vm1454_vm6, %v1427_v3, %v6152_v29  ;;  %v6468_v54 = vunpack.i.h.bf16 %v9267_v24 }
 0x1d9   : > { %v6467_v52 = vunpack.i.l.bf16 %v9267_v24  ;;  %v1491_v5 = vsel %vm1486_vm5, %v1458_v21, %v6227_v14  ;;  %v1492_v16 = vsel %vm1486_vm5, %v1459_v25, %v6228_v9  ;;  %v6548_v40 = vunpack.i.h.bf16 %v9299_v4 }
 0x1da   : > { %v6547_v37 = vunpack.i.l.bf16 %v9299_v4  ;;  %v1524_v11 = vsel %vm1519_vm7, %v1491_v5, %v6307_v62  ;;  %v1525_v27 = vsel %vm1519_vm7, %v1492_v16, %v6308_v55  ;;  %v6623_v12 = vunpack.i.h.bf16 %v6621_v43  ;;  %v13948_v55 = vld [vmem:[#allocation81_spill] sm:$0xff] }
 0x1db   : > { %v6622_v57 = vunpack.i.l.bf16 %v6621_v43  ;;  %v1558_v59 = vsel %vm1552_vm9, %v1525_v27, %v6388_v33  ;;  %v6078_v14 = vunpack.i.h.bf16 %v13945_v56  ;;  %v6082_v62 = vunpack.i.l.bf16 %v13948_v55  ;;  %v13951_v56 = vld [vmem:[#allocation12_spill] sm:$0xff] }
 0x1dc   : > { %v1591_v46 = vsel %vm1585_vm8, %v1558_v59, %v6468_v54  ;;  %v6157_v3 = vunpack.i.l.bf16 %v13949_v36  ;;  %v6153_v33 = vunpack.i.h.bf16 %v8965_v35  ;;  %v6232_v43 = vunpack.i.l.bf16 %v8988_v6  ;;  %v13950_v54 = vld [vmem:[#allocation10_spill] sm:$0xff] }
 0x1dd   : > { %v1624_v39 = vsel %vm1618_vm10, %v1591_v46, %v6548_v40  ;;  %v6313_v21 = vunpack.i.h.bf16 %v9157_v61  ;;  %v6312_v25 = vunpack.i.l.bf16 %v9157_v61  ;;  %v1429_v5 = vsel %vm1422_vm4, %v13951_v56, %v6082_v62 }
 0x1de   : > { %v1657_v8 = vsel %vm1651_vm11, %v1624_v39, %v6623_v12  ;;  %v6393_v16 = vunpack.i.h.bf16 %v9209_v17  ;;  %v6392_v40 = vunpack.i.l.bf16 %v9209_v17  ;;  %v1461_v35 = vsel %vm1454_vm6, %v1429_v5, %v6157_v3  ;;  %v13952_v3 = vld [vmem:[#allocation74_spill] sm:$0xff] }
 0x1df   : > { %v6472_v27 = vunpack.i.l.bf16 %v9251_v51  ;;  %v6318_v56 = vunpack.i.h.bf16 %v9151_v2  ;;  %v6317_v5 = vunpack.i.l.bf16 %v9151_v2 }
 0x1e2   : > { %5859 = vmatmul.msk.bf16.gmra.mxu0 %vm1724_vm12, %v1685_v26  ;;  %v1557_v26 = vsel %vm1552_vm9, %v1524_v11, %v6387_v1  ;;  %v6233_v1 = vunpack.i.h.bf16 %v8988_v6  ;;  %v6473_v6 = vunpack.i.h.bf16 %v9251_v51 }
 0x1e3   : > { %v1590_v24 = vsel %vm1585_vm8, %v1557_v26, %v6467_v52  ;;  %v1428_v52 = vsel %vm1422_vm4, %v13950_v54, %v6078_v14  ;;  %v6552_v26 = vunpack.i.l.bf16 %v9317_v50  ;;  %v6238_v54 = vunpack.i.h.bf16 %v9096_v63 }
 0x1e4   : > { %v1623_v29 = vsel %vm1618_vm10, %v1590_v24, %v6547_v37  ;;  %v6626_v37 = vpop.permute.xlu1 %6625  ;;  %v1460_v11 = vsel %vm1454_vm6, %v1428_v52, %v6153_v33  ;;  %v1494_v12 = vsel %vm1486_vm5, %v1461_v35, %v6233_v1  ;;  %v6087_v33 = vunpack.i.l.bf16 %v13952_v3 }
 0x1e5   : > { %v1656_v4 = vsel %vm1651_vm11, %v1623_v29, %v6622_v57  ;;  %v1493_v61 = vsel %vm1486_vm5, %v1460_v11, %v6232_v43  ;;  %v6553_v57 = vunpack.i.h.bf16 %v9317_v50  ;;  %v1527_v59 = vsel %vm1519_vm7, %v1494_v12, %v6313_v21  ;;  %v13953_v43 = vld [vmem:[#allocation21_spill] sm:$0xff] }
 0x1e6   : > { %v1686_v9 = vpack.c.bf16 %v1657_v8, %v1656_v4  ;;  %v1526_v17 = vsel %vm1519_vm7, %v1493_v61, %v6312_v25  ;;  %v6628_v24 = vunpack.i.h.bf16 %v6626_v37  ;;  %v6627_v46 = vunpack.i.l.bf16 %v6626_v37  ;;  %v13955_v37 = vld [vmem:[#allocation16_spill] sm:$0xff] }
 0x1e7   : > { %v1559_v29 = vsel %vm1552_vm9, %v1526_v17, %v6392_v40  ;;  %v1560_v39 = vsel %vm1552_vm9, %v1527_v59, %v6393_v16  ;;  %v6083_v1 = vunpack.i.h.bf16 %v13948_v55  ;;  %v6162_v21 = vunpack.i.l.bf16 %v13953_v43  ;;  %v13954_v16 = vld [vmem:[#allocation5_spill] sm:$0xff] }
 0x1e8   : > { %v1592_v51 = vsel %vm1585_vm8, %v1559_v29, %v6472_v27  ;;  %v1593_v4 = vsel %vm1585_vm8, %v1560_v39, %v6473_v6  ;;  %v6158_v25 = vunpack.i.h.bf16 %v13949_v36  ;;  %v6237_v52 = vunpack.i.l.bf16 %v9096_v63  ;;  %v6631_v6 = vpop.permute.xlu2 %6630 }
 0x1e9   : > { %v1625_v8 = vsel %vm1618_vm10, %v1592_v51, %v6552_v26  ;;  %v1431_v40 = vsel %vm1422_vm4, %v13954_v16, %v6087_v33  ;;  %v1430_v55 = vsel %vm1422_vm4, %v13955_v37, %v6083_v1  ;;  %v6398_v35 = vunpack.i.h.bf16 %v9179_v41  ;;  %v6636_v37 = vpop.permute.xlu0 %6635 }
 0x1ea   : > { %v1658_v50 = vsel %vm1651_vm11, %v1625_v8, %v6627_v46  ;;  %v6397_v11 = vunpack.i.l.bf16 %v9179_v41  ;;  %v1463_v36 = vsel %vm1454_vm6, %v1431_v40, %v6162_v21  ;;  %v1462_v27 = vsel %vm1454_vm6, %v1430_v55, %v6158_v25 }
 0x1eb   : > { %v6478_v63 = vunpack.i.h.bf16 %v9281_v45  ;;  %v6477_v61 = vunpack.i.l.bf16 %v9281_v45  ;;  %v1496_v2 = vsel %vm1486_vm5, %v1463_v36, %v6238_v54  ;;  %v1495_v12 = vsel %vm1486_vm5, %v1462_v27, %v6237_v52 }
 0x1ec   : > { %v6557_v26 = vunpack.i.l.bf16 %v9310_v42  ;;  %v1528_v59 = vsel %vm1519_vm7, %v1495_v12, %v6317_v5  ;;  %v1529_v41 = vsel %vm1519_vm7, %v1496_v2, %v6318_v56  ;;  %v6633_v17 = vunpack.i.h.bf16 %v6631_v6  ;;  %v13957_v56 = vld [vmem:[#allocation6_spill] sm:$0xff] }
 0x1ed   : > { %v1561_v46 = vsel %vm1552_vm9, %v1528_v59, %v6397_v11  ;;  %v1562_v29 = vsel %vm1552_vm9, %v1529_v41, %v6398_v35  ;;  %v6163_v33 = vunpack.i.h.bf16 %v13953_v43  ;;  %v6167_v1 = vunpack.i.l.bf16 %v8986_v20 }
 0x1ee   : > { %v1594_v45 = vsel %vm1585_vm8, %v1561_v46, %v6477_v61  ;;  %v1595_v39 = vsel %vm1585_vm8, %v1562_v29, %v6478_v63  ;;  %v6243_v21 = vunpack.i.h.bf16 %v9090_v48  ;;  %v6242_v25 = vunpack.i.l.bf16 %v9090_v48  ;;  %v13959_v29 = vld [vmem:[#allocation36_spill] sm:$0xff] }
 0x1ef   : > { %v1627_v51 = vsel %vm1618_vm10, %v1594_v45, %v6557_v26  ;;  %v6323_v54 = vunpack.i.h.bf16 %v9110_v0  ;;  %v6322_v52 = vunpack.i.l.bf16 %v9110_v0  ;;  %v6403_v40 = vunpack.i.h.bf16 %v9227_v22 }
 0x1f0   : > { %v6402_v43 = vunpack.i.l.bf16 %v9227_v22  ;;  %v6483_v48 = vunpack.i.h.bf16 %v9275_v15  ;;  %v6482_v11 = vunpack.i.l.bf16 %v9275_v15  ;;  %v6563_v36 = vunpack.i.h.bf16 %v9312_v47 }
 0x1f1   : > { %v6562_v27 = vunpack.i.l.bf16 %v9312_v47  ;;  %v6638_v61 = vunpack.i.h.bf16 %v6636_v37  ;;  %v6637_v2 = vunpack.i.l.bf16 %v6636_v37  ;;  %v6097_v45 = vunpack.i.l.bf16 %v13959_v29 }
 0x1f2   : > { %5860 = vmatmul.msk.bf16.gmra.mxu0 %vm1724_vm12, %v1686_v9  ;;  %v1626_v9 = vsel %vm1618_vm10, %v1593_v4, %v6553_v57  ;;  %v6558_v57 = vunpack.i.h.bf16 %v9310_v42 }
 0x1f3   : > { %v1659_v14 = vsel %vm1651_vm11, %v1626_v9, %v6628_v24  ;;  %v6632_v24 = vunpack.i.l.bf16 %v6631_v6 }
 0x1f4   : > { %v1687_v62 = vpack.c.bf16 %v1659_v14, %v1658_v50  ;;  %v1628_v4 = vsel %vm1618_vm10, %v1595_v39, %v6558_v57  ;;  %v6088_v50 = vunpack.i.h.bf16 %v13952_v3  ;;  %v13956_v14 = vld [vmem:[#allocation75_spill] sm:$0xff] }
 0x1f5   : > { %v1660_v42 = vsel %vm1651_vm11, %v1627_v51, %v6632_v24  ;;  %v1661_v8 = vsel %vm1651_vm11, %v1628_v4, %v6633_v17  ;;  %v13958_v3 = vld [vmem:[#allocation7_spill] sm:$0xff]  ;;  %v6093_v46 = vunpack.i.h.bf16 %v13956_v14  ;;  %v6168_v4 = vunpack.i.h.bf16 %v8986_v20 }
 0x1f6   : > { %v1688_v9 = vpack.c.bf16 %v1661_v8, %v1660_v42  ;;  %v1432_v5 = vsel %vm1422_vm4, %v13957_v56, %v6088_v50  ;;  %v13960_v39 = vld [vmem:[#allocation35_spill] sm:$0xff]  ;;  %v13961_v42 = vld [vmem:[#allocation42_spill] sm:$0xff]  ;;  %v6328_v50 = vunpack.i.h.bf16 %v9169_v44 }
 0x1f7   : > { %v1464_v55 = vsel %vm1454_vm6, %v1432_v5, %v6163_v33  ;;  %v6172_v51 = vunpack.i.l.bf16 %v13960_v39  ;;  %v6248_v8 = vunpack.i.h.bf16 %v13961_v42  ;;  %v13962_v33 = vld [vmem:[#allocation19_spill] sm:$0xff]  ;;  %v6488_v5 = vunpack.i.h.bf16 %v9265_v18 }
 0x1f8   : > { %v1497_v0 = vsel %vm1486_vm5, %v1464_v55, %v6242_v25  ;;  %v6408_v25 = vunpack.i.h.bf16 %v9219_v34 }
 0x1f9   : > { %v1530_v63 = vsel %vm1519_vm7, %v1497_v0, %v6322_v52  ;;  %v6641_v52 = vpop.permute.xlu1 %6640 }
 0x1fa   : > { %v1563_v12 = vsel %vm1552_vm9, %v1530_v63, %v6402_v43  ;;  %v6567_v43 = vunpack.i.l.bf16 %v9325_v7  ;;  %v6643_v55 = vunpack.i.h.bf16 %v6641_v52 }
 0x1fb   : > { %v1596_v15 = vsel %vm1585_vm8, %v1563_v12, %v6482_v11  ;;  %v13965_v12 = vld [vmem:[#allocation22_spill] sm:$0xff] }
 0x1fc   : > { %v1629_v59 = vsel %vm1618_vm10, %v1596_v15, %v6562_v27  ;;  %v6173_v15 = vunpack.i.h.bf16 %v13960_v39 }
 0x1fd   : > { %v1662_v47 = vsel %vm1651_vm11, %v1629_v59, %v6637_v2  ;;  %v6098_v2 = vunpack.i.h.bf16 %v13959_v29  ;;  %v6252_v59 = vunpack.i.l.bf16 %v9108_v28 }
 0x202   : > { %5861 = vmatmul.msk.bf16.gmra.mxu0 %vm1724_vm12, %v1687_v62  ;;  %v6092_v62 = vunpack.i.l.bf16 %v13956_v14  ;;  %v13963_v14 = vld [vmem:[#allocation18_spill] sm:$0xff] }
 0x204   : > { %v1433_v16 = vsel %vm1422_vm4, %v13958_v3, %v6092_v62  ;;  %v6327_v62 = vunpack.i.l.bf16 %v9169_v44  ;;  %v6487_v3 = vunpack.i.l.bf16 %v9265_v18 }
 0x205   : > { %v1465_v35 = vsel %vm1454_vm6, %v1433_v16, %v6167_v1  ;;  %v1434_v1 = vsel %vm1422_vm4, %v13962_v33, %v6093_v46  ;;  %v13967_v46 = vld [vmem:[#allocation31_spill] sm:$0xff] }
 0x206   : > { %v1498_v6 = vsel %vm1486_vm5, %v1465_v35, %v6243_v21  ;;  %v1435_v21 = vsel %vm1422_vm4, %v13963_v14, %v6097_v45  ;;  %v1466_v56 = vsel %vm1454_vm6, %v1434_v1, %v6168_v4  ;;  %v6642_v35 = vunpack.i.l.bf16 %v6641_v52  ;;  %v6646_v4 = vpop.permute.xlu2 %6645 }
 0x207   : > { %v1531_v22 = vsel %vm1519_vm7, %v1498_v6, %v6323_v54  ;;  %v6407_v54 = vunpack.i.l.bf16 %v9219_v34  ;;  %v1467_v20 = vsel %vm1454_vm6, %v1435_v21, %v6172_v51  ;;  %v1436_v29 = vsel %vm1422_vm4, %v13967_v46, %v6098_v2 }
 0x208   : > { %v1564_v57 = vsel %vm1552_vm9, %v1531_v22, %v6403_v40  ;;  %v1500_v16 = vsel %vm1486_vm5, %v1467_v20, %v6248_v8  ;;  %v6568_v40 = vunpack.i.h.bf16 %v9325_v7  ;;  %v13964_v22 = vld [vmem:[#allocation23_spill] sm:$0xff]  ;;  %v6413_v45 = vunpack.i.h.bf16 %v9193_v38 }
 0x209   : > { %v1597_v26 = vsel %vm1585_vm8, %v1564_v57, %v6483_v48  ;;  %v1533_v34 = vsel %vm1519_vm7, %v1500_v16, %v6328_v50  ;;  %v6177_v57 = vunpack.i.l.bf16 %v13965_v12  ;;  %v6412_v51 = vunpack.i.l.bf16 %v9193_v38 }
 0x20a   : > { %v1630_v41 = vsel %vm1618_vm10, %v1597_v26, %v6563_v36  ;;  %v1566_v11 = vsel %vm1552_vm9, %v1533_v34, %v6408_v25  ;;  %v6253_v26 = vunpack.i.h.bf16 %v9108_v28  ;;  %v6493_v28 = vunpack.i.h.bf16 %v9287_v60 }
 0x20b   : > { %v1663_v17 = vsel %vm1651_vm11, %v1630_v41, %v6638_v61  ;;  %v1599_v0 = vsel %vm1585_vm8, %v1566_v11, %v6488_v5  ;;  %v6102_v61 = vunpack.i.l.bf16 %v13964_v22  ;;  %v6333_v41 = vunpack.i.h.bf16 %v9161_v19  ;;  %v13970_v11 = vld [vmem:[#allocation26_spill] sm:$0xff] }
 0x20c   : > { %v1689_v24 = vpack.c.bf16 %v1663_v17, %v1662_v47  ;;  %v1632_v36 = vsel %vm1618_vm10, %v1599_v0, %v6568_v40  ;;  %v6332_v47 = vunpack.i.l.bf16 %v9161_v19  ;;  %v13966_v17 = vld [vmem:[#allocation30_spill] sm:$0xff]  ;;  %v6492_v8 = vunpack.i.l.bf16 %v9287_v60  ;;  %v13971_v0 = vld [vmem:[#allocation27_spill] sm:$0xff] }
 0x20d   : > { %v1665_v27 = vsel %vm1651_vm11, %v1632_v36, %v6643_v55  ;;  %v6573_v50 = vunpack.i.h.bf16 %v9319_v13  ;;  %v6648_v1 = vunpack.i.h.bf16 %v6646_v4  ;;  %v6647_v14 = vunpack.i.l.bf16 %v6646_v4 }
 0x20e   : > { %v6103_v16 = vunpack.i.h.bf16 %v13964_v22  ;;  %v6178_v40 = vunpack.i.h.bf16 %v13965_v12  ;;  %v6258_v34 = vunpack.i.h.bf16 %v9102_v32  ;;  %v6257_v55 = vunpack.i.l.bf16 %v9102_v32 }
 0x20f   : > { %v6418_v36 = vunpack.i.h.bf16 %v9239_v53  ;;  %v6498_v32 = vunpack.i.h.bf16 %v9283_v58  ;;  %v6578_v12 = vunpack.i.h.bf16 %v9321_v10 }
 0x212   : > { %5862 = vmatmul.msk.bf16.gmra.mxu0 %vm1724_vm12, %v1688_v9  ;;  %v6247_v9 = vunpack.i.l.bf16 %v13961_v42  ;;  %v1468_v42 = vsel %vm1454_vm6, %v1436_v29, %v6173_v15 }
 0x214   : > { %v1499_v44 = vsel %vm1486_vm5, %v1466_v56, %v6247_v9  ;;  %v1501_v9 = vsel %vm1486_vm5, %v1468_v42, %v6252_v59 }
 0x215   : > { %v1532_v37 = vsel %vm1519_vm7, %v1499_v44, %v6327_v62  ;;  %v6572_v62 = vunpack.i.l.bf16 %v9319_v13  ;;  %v1534_v33 = vsel %vm1519_vm7, %v1501_v9, %v6332_v47 }
 0x216   : > { %v1565_v48 = vsel %vm1552_vm9, %v1532_v37, %v6407_v54  ;;  %v1567_v21 = vsel %vm1552_vm9, %v1534_v33, %v6412_v51  ;;  %v13974_v33 = vld [vmem:[#allocation57_spill] sm:$0xff] }
 0x217   : > { %v1598_v18 = vsel %vm1585_vm8, %v1565_v48, %v6487_v3  ;;  %v1600_v60 = vsel %vm1585_vm8, %v1567_v21, %v6492_v8  ;;  %v13968_v3 = vld [vmem:[#allocation76_spill] sm:$0xff]  ;;  %v6337_v48 = vunpack.i.l.bf16 %v9122_v31 }
 0x218   : > { %v1631_v6 = vsel %vm1618_vm10, %v1598_v18, %v6567_v43  ;;  %v1633_v52 = vsel %vm1618_vm10, %v1600_v60, %v6572_v62  ;;  %v6107_v44 = vunpack.i.l.bf16 %v13968_v3  ;;  %v13969_v43 = vld [vmem:[#allocation46_spill] sm:$0xff]  ;;  %v6108_v42 = vunpack.i.h.bf16 %v13968_v3 }
 0x219   : > { %v1664_v7 = vsel %vm1651_vm11, %v1631_v6, %v6642_v35  ;;  %v1666_v13 = vsel %vm1651_vm11, %v1633_v52, %v6647_v14  ;;  %v6182_v37 = vunpack.i.l.bf16 %v13969_v43  ;;  %v6338_v35 = vunpack.i.h.bf16 %v9122_v31  ;;  %v13975_v14 = vld [vmem:[#allocation29_spill] sm:$0xff]  ;;  %v13977_v52 = vld [vmem:[#allocation28_spill] sm:$0xff] }
 0x21a   : > { %v1690_v63 = vpack.c.bf16 %v1665_v27, %v1664_v7  ;;  %v1439_v18 = vsel %vm1422_vm4, %v13970_v11, %v6107_v44  ;;  %v1438_v6 = vsel %vm1422_vm4, %v13971_v0, %v6103_v16  ;;  %v6417_v7 = vunpack.i.l.bf16 %v9239_v53  ;;  %v6651_v27 = vpop.permute.xlu0 %6650  ;;  %v6656_v44 = vpop.permute.xlu1 %6655 }
 0x21b   : > { %v1471_v22 = vsel %vm1454_vm6, %v1439_v18, %v6182_v37  ;;  %v6652_v59 = vunpack.i.l.bf16 %v6651_v27  ;;  %v1440_v21 = vsel %vm1422_vm4, %v13975_v14, %v6108_v42  ;;  %v6661_v14 = vpop.permute.xlu2 %6660 }
 0x21c   : > { %v1504_v2 = vsel %vm1486_vm5, %v1471_v22, %v6258_v34 }
 0x21d   : > { %v1537_v53 = vsel %vm1519_vm7, %v1504_v2, %v6338_v35 }
 0x21e   : > { %v1570_v47 = vsel %vm1552_vm9, %v1537_v53, %v6418_v36 }
 0x222   : > { %5863 = vmatmul.msk.bf16.gmra.mxu0 %vm1724_vm12, %v1689_v24  ;;  %v1437_v24 = vsel %vm1422_vm4, %v13966_v17, %v6102_v61  ;;  %v6497_v61 = vunpack.i.l.bf16 %v9283_v58  ;;  %v1603_v17 = vsel %vm1585_vm8, %v1570_v47, %v6498_v32 }
 0x223   : > { %v1469_v39 = vsel %vm1454_vm6, %v1437_v24, %v6177_v57  ;;  %v6577_v57 = vunpack.i.l.bf16 %v9321_v10  ;;  %v9626_v24 = vld [vmem:[%s13399_s2] ss:$0 sm:$0xff]  ;;  %v1636_v46 = vsel %vm1618_vm10, %v1603_v17, %v6578_v12 }
 0x224   : > { %v1502_v19 = vsel %vm1486_vm5, %v1469_v39, %v6253_v26  ;;  %v6653_v26 = vunpack.i.h.bf16 %v6651_v27  ;;  %v6657_v27 = vunpack.i.l.bf16 %v6656_v44  ;;  %v13982_v17 = vld [vmem:[#allocation33_spill] sm:$0xff] }
 0x225   : > { %v1535_v38 = vsel %vm1519_vm7, %v1502_v19, %v6333_v41  ;;  %v6183_v19 = vunpack.i.h.bf16 %v13969_v43  ;;  %v13979_v43 = vld [vmem:[#allocation89_spill] sm:$0xff] }
 0x226   : > { %v1568_v25 = vsel %vm1552_vm9, %v1535_v38, %v6413_v45  ;;  %v1669_v45 = vsel %vm1651_vm11, %v1636_v46, %v6653_v26  ;;  %v6262_v38 = vunpack.i.l.bf16 %v13974_v33  ;;  %v6503_v37 = vunpack.i.h.bf16 %v13979_v43 }
 0x227   : > { %v1601_v54 = vsel %vm1585_vm8, %v1568_v25, %v6493_v28  ;;  %v13972_v28 = vld [vmem:[#allocation11_spill] sm:$0xff]  ;;  %v13976_v25 = vld [vmem:[#allocation70_spill] sm:$0xff]  ;;  %v6502_v34 = vunpack.i.l.bf16 %v13979_v43  ;;  %v6663_v43 = vunpack.i.h.bf16 %v6661_v14 }
 0x228   : > { %v1634_v20 = vsel %vm1618_vm10, %v1601_v54, %v6573_v50  ;;  %v6112_v8 = vunpack.i.l.bf16 %v13972_v28  ;;  %v13973_v50 = vld [vmem:[#allocation43_spill] sm:$0xff]  ;;  %v6343_v60 = vunpack.i.h.bf16 %v13976_v25  ;;  %v6342_v54 = vunpack.i.l.bf16 %v13976_v25 }
 0x229   : > { %v1667_v56 = vsel %vm1651_vm11, %v1634_v20, %v6648_v1  ;;  %v6187_v62 = vunpack.i.l.bf16 %v13973_v50  ;;  %v6263_v1 = vunpack.i.h.bf16 %v13974_v33 }
 0x22a   : > { %v1691_v5 = vpack.c.bf16 %v1667_v56, %v1666_v13  ;;  %v1441_v20 = vsel %vm1422_vm4, %v13977_v52, %v6112_v8  ;;  %v1472_v13 = vsel %vm1454_vm6, %v1440_v21, %v6183_v19  ;;  %v13978_v56 = vld [vmem:[#allocation84_spill] sm:$0xff] }
 0x22b   : > { %v6422_v3 = vunpack.i.l.bf16 %v13978_v56  ;;  %v1473_v16 = vsel %vm1454_vm6, %v1441_v20, %v6187_v62  ;;  %v13985_v8 = vld [vmem:[#allocation68_spill] sm:$0xff] }
 0x22c   : > { %v1506_v35 = vsel %vm1486_vm5, %v1473_v16, %v6263_v1  ;;  %v6348_v19 = vunpack.i.h.bf16 %v13985_v8 }
 0x22d   : > { %v1539_v36 = vsel %vm1519_vm7, %v1506_v35, %v6343_v60  ;;  %v13988_v60 = vld [vmem:[#allocation92_spill] sm:$0xff] }
 0x22e   : > { %v6507_v52 = vunpack.i.l.bf16 %v13988_v60 }
 0x232   : > { %5864 = vmatmul.msk.bf16.gmra.mxu0 %vm1724_vm12, %v1690_v63  ;;  %v1470_v63 = vsel %vm1454_vm6, %v1438_v6, %v6178_v40  ;;  %v1505_v40 = vsel %vm1486_vm5, %v1472_v13, %v6262_v38  ;;  %v13987_v38 = vld [vmem:[#allocation72_spill] sm:$0xff] }
 0x233   : > { %v1503_v31 = vsel %vm1486_vm5, %v1470_v63, %v6257_v55  ;;  %v1538_v6 = vsel %vm1519_vm7, %v1505_v40, %v6342_v54  ;;  %v6427_v1 = vunpack.i.l.bf16 %v13987_v38  ;;  %v6508_v54 = vunpack.i.h.bf16 %v13988_v60 }
 0x234   : > { %v1536_v15 = vsel %vm1519_vm7, %v1503_v31, %v6337_v48  ;;  %v13980_v48 = vld [vmem:[#allocation97_spill] sm:$0xff]  ;;  %v1571_v63 = vsel %vm1552_vm9, %v1538_v6, %v6422_v3 }
 0x235   : > { %v1569_v41 = vsel %vm1552_vm9, %v1536_v15, %v6417_v7  ;;  %v6583_v11 = vunpack.i.h.bf16 %v13980_v48  ;;  %v6582_v18 = vunpack.i.l.bf16 %v13980_v48  ;;  %v6658_v7 = vunpack.i.h.bf16 %v6656_v44 }
 0x236   : > { %v1602_v58 = vsel %vm1585_vm8, %v1569_v41, %v6497_v61  ;;  %v1604_v61 = vsel %vm1585_vm8, %v1571_v63, %v6502_v34  ;;  %v13981_v41 = vld [vmem:[#allocation20_spill] sm:$0xff] }
 0x237   : > { %v1635_v10 = vsel %vm1618_vm10, %v1602_v58, %v6577_v57  ;;  %v1637_v2 = vsel %vm1618_vm10, %v1604_v61, %v6582_v18  ;;  %v6117_v47 = vunpack.i.l.bf16 %v13981_v41  ;;  %v6113_v58 = vunpack.i.h.bf16 %v13972_v28 }
 0x238   : > { %v1668_v29 = vsel %vm1651_vm11, %v1635_v10, %v6652_v59  ;;  %v1670_v57 = vsel %vm1651_vm11, %v1637_v2, %v6657_v27  ;;  %v6192_v10 = vunpack.i.l.bf16 %v13982_v17  ;;  %v6347_v28 = vunpack.i.l.bf16 %v13985_v8 }
 0x239   : > { %v1692_v39 = vpack.c.bf16 %v1669_v45, %v1668_v29  ;;  %v6188_v29 = vunpack.i.h.bf16 %v13973_v50  ;;  %v13983_v45 = vld [vmem:[#allocation62_spill] sm:$0xff]  ;;  %v6428_v50 = vunpack.i.h.bf16 %v13987_v38  ;;  %v13998_v38 = vld [vmem:[#allocation79_spill] sm:$0xff] }
 0x242   : > { %5865 = vmatmul.msk.bf16.gmra.mxu0 %vm1724_vm12, %v1691_v5  ;;  %v6423_v5 = vunpack.i.h.bf16 %v13978_v56  ;;  %v13989_v56 = vld [vmem:[#allocation96_spill] sm:$0xff] }
 0x243   : > { %v6587_v3 = vunpack.i.l.bf16 %v13989_v56 }
 0x244   : > { %v1572_v22 = vsel %vm1552_vm9, %v1539_v36, %v6423_v5  ;;  %v6588_v5 = vunpack.i.h.bf16 %v13989_v56 }
 0x245   : > { %v1605_v31 = vsel %vm1585_vm8, %v1572_v22, %v6503_v37  ;;  %v6662_v37 = vunpack.i.l.bf16 %v6661_v14  ;;  %v6118_v22 = vunpack.i.h.bf16 %v13981_v41 }
 0x246   : > { %v1638_v12 = vsel %vm1618_vm10, %v1605_v31, %v6583_v11  ;;  %v6193_v31 = vunpack.i.h.bf16 %v13982_v17 }
 0x247   : > { %v1671_v15 = vsel %vm1651_vm11, %v1638_v12, %v6658_v7  ;;  %v13991_v12 = vld [vmem:[#allocation47_spill] sm:$0xff] }
 0x248   : > { %v1693_v59 = vpack.c.bf16 %v1671_v15, %v1670_v57  ;;  %v6197_v57 = vunpack.i.l.bf16 %v13991_v12  ;;  %v13992_v15 = vld [vmem:[#allocation58_spill] sm:$0xff] }
 0x24f   : > { %v1786_v51 = vpop.f32.mrf.mxu0 }
 0x250   : > { %v1787_v4 = vadd.f32 %v9626_v24, %v1786_v51  ;;  %v6268_v51 = vunpack.i.h.bf16 %v13983_v45 }
 0x252   : > { %v1866_v9 = vmax.f32 %v1787_v4, 0.0  ;;  %5866 = vmatmul.msk.bf16.gmra.mxu0 %vm1724_vm12, %v1692_v39  ;;  %v6267_v4 = vunpack.i.l.bf16 %v13983_v45  ;;  %v13984_v39 = vld [vmem:[#allocation44_spill] sm:$0xff]  ;;  %v13996_v45 = vld [vmem:[#allocation86_spill] sm:$0xff] }
 0x253   : > { %v1443_v42 = vsel %vm1422_vm4, %v13984_v39, %v6117_v47  ;;  %v6666_v39 = vpop.permute.xlu0 %6665 }
 0x254   : > { %1930 = vrot.lane.b32.xlu2 %v1866_v9, %s8016_s18  ;;  %v13986_v9 = vld [vmem:[#allocation45_spill] sm:$0xff]  ;;  %v1475_v33 = vsel %vm1454_vm6, %v1443_v42, %v6192_v10  ;;  %v6668_v60 = vunpack.i.h.bf16 %v6666_v39 }
 0x255   : > { %v1442_v62 = vsel %vm1422_vm4, %v13986_v9, %v6113_v58  ;;  %v1508_v25 = vsel %vm1486_vm5, %v1475_v33, %v6268_v51  ;;  %v13994_v58 = vld [vmem:[#allocation66_spill] sm:$0xff]  ;;  %v6433_v51 = vunpack.i.h.bf16 %v13996_v45 }
 0x256   : > { %v1474_v21 = vsel %vm1454_vm6, %v1442_v62, %v6188_v29  ;;  %v1541_v40 = vsel %vm1519_vm7, %v1508_v25, %v6348_v19  ;;  %v6353_v41 = vunpack.i.h.bf16 %v13994_v58  ;;  %v6352_v10 = vunpack.i.l.bf16 %v13994_v58  ;;  %v13997_v19 = vld [vmem:[#allocation91_spill] sm:$0xff] }
 0x257   : > { %v1788_v55 = vpop.f32.mrf.mxu0  ;;  %v1507_v13 = vsel %vm1486_vm5, %v1474_v21, %v6267_v4  ;;  %v6432_v4 = vunpack.i.l.bf16 %v13996_v45  ;;  %v6512_v9 = vunpack.i.l.bf16 %v13997_v19  ;;  %v6598_v45 = vunpack.i.h.bf16 %v9361_v49 }
 0x258   : > { %v1789_v0 = vadd.f32 %v9626_v24, %v1788_v55  ;;  %v1540_v16 = vsel %vm1519_vm7, %v1507_v13, %v6347_v28  ;;  %v1574_v55 = vsel %vm1552_vm9, %v1541_v40, %v6428_v50  ;;  %v6513_v28 = vunpack.i.h.bf16 %v13997_v19 }
 0x259   : > { %v1573_v34 = vsel %vm1552_vm9, %v1540_v16, %v6427_v1  ;;  %v1607_v11 = vsel %vm1585_vm8, %v1574_v55, %v6508_v54  ;;  %v6593_v50 = vunpack.i.h.bf16 %v13998_v38  ;;  %v6592_v1 = vunpack.i.l.bf16 %v13998_v38 }
 0x25a   : > { %v1867_v32 = vmax.f32 %v1789_v0, 0.0  ;;  %v1606_v48 = vsel %vm1585_vm8, %v1573_v34, %v6507_v52  ;;  %v1640_v0 = vsel %vm1618_vm10, %v1607_v11, %v6588_v5  ;;  %v6667_v54 = vunpack.i.l.bf16 %v6666_v39 }
 0x25b   : > { %v1639_v18 = vsel %vm1618_vm10, %v1606_v48, %v6587_v3  ;;  %v1673_v36 = vsel %vm1651_vm11, %v1640_v0, %v6663_v43  ;;  %v6198_v11 = vunpack.i.h.bf16 %v13991_v12  ;;  %v14000_v0 = vld [vmem:[#allocation49_spill] sm:$0xff] }
 0x25c   : > { %1932 = vrot.lane.b32.xlu0 %v1867_v32, %s8016_s18  ;;  %v1672_v6 = vsel %vm1651_vm11, %v1639_v18, %v6662_v37  ;;  %v13990_v32 = vld [vmem:[#allocation77_spill] sm:$0xff] }
 0x25d   : > { %v1694_v63 = vpack.c.bf16 %v1673_v36, %v1672_v6  ;;  %v6122_v61 = vunpack.i.l.bf16 %v13990_v32  ;;  %v6123_v55 = vunpack.i.h.bf16 %v13990_v32  ;;  %v6202_v6 = vunpack.i.l.bf16 %v14000_v0  ;;  %v14001_v36 = vld [vmem:[#allocation56_spill] sm:$0xff] }
 0x25f   : > { %v1791_v53 = vpop.f32.mrf.mxu0 }
 0x260   : > { %v1792_v26 = vadd.f32 %v9626_v24, %v1791_v53  ;;  %v6272_v53 = vunpack.i.l.bf16 %v13992_v15 }
 0x262   : > { %v1868_v46 = vmax.f32 %v1792_v26, 0.0  ;;  %5867 = vmatmul.msk.bf16.gmra.mxu0 %vm1724_vm12, %v1693_v59  ;;  %v6273_v26 = vunpack.i.h.bf16 %v13992_v15  ;;  %v13993_v59 = vld [vmem:[#allocation41_spill] sm:$0xff] }
 0x263   : > { %v1444_v47 = vsel %vm1422_vm4, %v13993_v59, %v6118_v22  ;;  %v14005_v15 = vld [vmem:[#allocation85_spill] sm:$0xff]  ;;  %v6671_v59 = vpop.permute.xlu1 %6670 }
 0x264   : > { %1934 = vrot.lane.b32.xlu1 %v1868_v46, %s8016_s18  ;;  %v13995_v46 = vld [vmem:[#allocation38_spill] sm:$0xff]  ;;  %v1476_v29 = vsel %vm1454_vm6, %v1444_v47, %v6193_v31  ;;  %v6672_v19 = vunpack.i.l.bf16 %v6671_v59 }
 0x265   : > { %v1445_v17 = vsel %vm1422_vm4, %v13995_v46, %v6122_v61  ;;  %v1509_v8 = vsel %vm1486_vm5, %v1476_v29, %v6272_v53  ;;  %v14003_v61 = vld [vmem:[#allocation71_spill] sm:$0xff]  ;;  %v6438_v53 = vunpack.i.h.bf16 %v14005_v15 }
 0x266   : > { %v1477_v42 = vsel %vm1454_vm6, %v1445_v17, %v6197_v57  ;;  %v1542_v21 = vsel %vm1519_vm7, %v1509_v8, %v6352_v10  ;;  %v6358_v32 = vunpack.i.h.bf16 %v14003_v61  ;;  %v6357_v31 = vunpack.i.l.bf16 %v14003_v61 }
 0x267   : > { %v1793_v20 = vpop.f32.mrf.mxu0  ;;  %v1510_v33 = vsel %vm1486_vm5, %v1477_v42, %v6273_v26  ;;  %v1575_v52 = vsel %vm1552_vm9, %v1542_v21, %v6432_v4  ;;  %v6437_v26 = vunpack.i.l.bf16 %v14005_v15  ;;  %v6673_v8 = vunpack.i.h.bf16 %v6671_v59 }
 0x268   : > { %v1794_v44 = vadd.f32 %v9626_v24, %v1793_v20  ;;  %v1543_v25 = vsel %vm1519_vm7, %v1510_v33, %v6353_v41  ;;  %v1608_v56 = vsel %vm1585_vm8, %v1575_v52, %v6512_v9  ;;  %v14006_v41 = vld [vmem:[#allocation90_spill] sm:$0xff] }
 0x269   : > { %v1576_v20 = vsel %vm1552_vm9, %v1543_v25, %v6433_v51  ;;  %v1641_v3 = vsel %vm1618_vm10, %v1608_v56, %v6592_v1  ;;  %v6518_v10 = vunpack.i.h.bf16 %v14006_v41  ;;  %v6517_v46 = vunpack.i.l.bf16 %v14006_v41 }
 0x26a   : > { %v1869_v35 = vmax.f32 %v1794_v44, 0.0  ;;  %v1609_v5 = vsel %vm1585_vm8, %v1576_v20, %v6513_v28  ;;  %v1674_v16 = vsel %vm1651_vm11, %v1641_v3, %v6667_v54  ;;  %v6597_v51 = vunpack.i.l.bf16 %v9361_v49  ;;  %v14007_v54 = vld [vmem:[#allocation24_spill] sm:$0xff] }
 0x26b   : > { %v1642_v44 = vsel %vm1618_vm10, %v1609_v5, %v6593_v50  ;;  %v6132_v52 = vunpack.i.l.bf16 %v14007_v54  ;;  %v6203_v3 = vunpack.i.h.bf16 %v14000_v0 }
 0x26c   : > { %1936 = vrot.lane.b32.xlu2 %v1869_v35, %s8016_s18  ;;  %v1675_v40 = vsel %vm1651_vm11, %v1642_v44, %v6668_v60  ;;  %v13999_v35 = vld [vmem:[#allocation9_spill] sm:$0xff] }
 0x26d   : > { %v1695_v34 = vpack.c.bf16 %v1675_v40, %v1674_v16  ;;  %v6127_v48 = vunpack.i.l.bf16 %v13999_v35  ;;  %v6128_v20 = vunpack.i.h.bf16 %v13999_v35  ;;  %v14009_v44 = vld [vmem:[#allocation61_spill] sm:$0xff] }
 0x26e   : > { %v6283_v16 = vunpack.i.h.bf16 %v14009_v44  ;;  %v6282_v40 = vunpack.i.l.bf16 %v14009_v44 }
 0x26f   : > { %v1796_v7 = vpop.f32.mrf.mxu0 }
 0x270   : > { %v1797_v27 = vadd.f32 %v9626_v24, %v1796_v7  ;;  %v6277_v7 = vunpack.i.l.bf16 %v14001_v36 }
 0x272   : > { %v1870_v2 = vmax.f32 %v1797_v27, 0.0  ;;  %5868 = vmatmul.msk.bf16.gmra.mxu0 %vm1724_vm12, %v1694_v63  ;;  %v6278_v27 = vunpack.i.h.bf16 %v14001_v36  ;;  %v14002_v63 = vld [vmem:[#allocation39_spill] sm:$0xff] }
 0x273   : > { %v1446_v22 = vsel %vm1422_vm4, %v14002_v63, %v6123_v55 }
 0x274   : > { %1938 = vrot.lane.b32.xlu0 %v1870_v2, %s8016_s18  ;;  %v14004_v2 = vld [vmem:[#allocation40_spill] sm:$0xff]  ;;  %v1478_v57 = vsel %vm1454_vm6, %v1446_v22, %v6198_v11  ;;  %v14014_v22 = vld [vmem:[#allocation95_spill] sm:$0xff] }
 0x275   : > { %v1447_v12 = vsel %vm1422_vm4, %v14004_v2, %v6127_v48  ;;  %v1511_v58 = vsel %vm1486_vm5, %v1478_v57, %v6277_v7  ;;  %v14012_v48 = vld [vmem:[#allocation55_spill] sm:$0xff]  ;;  %v6676_v7 = vpop.permute.xlu2 %6675  ;;  %v6523_v61 = vunpack.i.h.bf16 %v14014_v22 }
 0x276   : > { %v1479_v47 = vsel %vm1454_vm6, %v1447_v12, %v6202_v6  ;;  %v1544_v39 = vsel %vm1519_vm7, %v1511_v58, %v6357_v31  ;;  %v1448_v11 = vsel %vm1422_vm4, %v14012_v48, %v6128_v20  ;;  %v14013_v6 = vld [vmem:[#allocation83_spill] sm:$0xff]  ;;  %v14015_v12 = vld [vmem:[#allocation48_spill] sm:$0xff]  ;;  %v6677_v58 = vunpack.i.l.bf16 %v6676_v7 }
 0x277   : > { %v1798_v62 = vpop.f32.mrf.mxu0  ;;  %v1512_v29 = vsel %vm1486_vm5, %v1479_v47, %v6278_v27  ;;  %v1577_v28 = vsel %vm1552_vm9, %v1544_v39, %v6437_v26  ;;  %v6443_v0 = vunpack.i.h.bf16 %v14013_v6  ;;  %v6442_v36 = vunpack.i.l.bf16 %v14013_v6 }
 0x278   : > { %v1799_v14 = vadd.f32 %v9626_v24, %v1798_v62  ;;  %v1545_v42 = vsel %vm1519_vm7, %v1512_v29, %v6358_v32  ;;  %v1610_v33 = vsel %vm1585_vm8, %v1577_v28, %v6517_v46  ;;  %v1480_v27 = vsel %vm1454_vm6, %v1448_v11, %v6203_v3  ;;  %v14022_v3 = vld [vmem:[#allocation88_spill] sm:$0xff] }
 0x279   : > { %v1578_v9 = vsel %vm1552_vm9, %v1545_v42, %v6438_v53  ;;  %v1643_v50 = vsel %vm1618_vm10, %v1610_v33, %v6597_v51  ;;  %v6522_v32 = vunpack.i.l.bf16 %v14014_v22  ;;  %v1513_v2 = vsel %vm1486_vm5, %v1480_v27, %v6282_v40  ;;  %v6681_v40 = vpop.permute.xlu0 %6680 }
 0x27a   : > { %v1871_v13 = vmax.f32 %v1799_v14, 0.0  ;;  %v1611_v38 = vsel %vm1585_vm8, %v1578_v9, %v6518_v10  ;;  %v1676_v1 = vsel %vm1651_vm11, %v1643_v50, %v6672_v19  ;;  %v6603_v57 = vunpack.i.h.bf16 %v14015_v12  ;;  %v14016_v9 = vld [vmem:[#allocation80_spill] sm:$0xff]  ;;  %v14017_v50 = vld [vmem:[#allocation59_spill] sm:$0xff] }
 0x27b   : > { %v1644_v49 = vsel %vm1618_vm10, %v1611_v38, %v6598_v45  ;;  %v6602_v15 = vunpack.i.l.bf16 %v14015_v12  ;;  %v6678_v47 = vunpack.i.h.bf16 %v6676_v7  ;;  %v6133_v28 = vunpack.i.h.bf16 %v14007_v54 }
 0x27c   : > { %1940 = vrot.lane.b32.xlu1 %v1871_v13, %s8016_s18  ;;  %v1677_v14 = vsel %vm1651_vm11, %v1644_v49, %v6673_v8  ;;  %v14008_v13 = vld [vmem:[#allocation32_spill] sm:$0xff]  ;;  %v6212_v49 = vunpack.i.l.bf16 %v14017_v50  ;;  %v6448_v44 = vunpack.i.h.bf16 %v14022_v3  ;;  %v6607_v6 = vunpack.i.l.bf16 %v9352_v30 }
 0x27d   : > { %v1696_v60 = vpack.c.bf16 %v1677_v14, %v1676_v1  ;;  %v6207_v56 = vunpack.i.l.bf16 %v14008_v13  ;;  %v6208_v33 = vunpack.i.h.bf16 %v14008_v13  ;;  %v14018_v1 = vld [vmem:[#allocation64_spill] sm:$0xff]  ;;  %v6683_v27 = vunpack.i.h.bf16 %v6681_v40 }
 0x27e   : > { %v6287_v14 = vunpack.i.l.bf16 %v14018_v1 }
 0x27f   : > { %v1801_v43 = vpop.f32.mrf.mxu0 }
 0x280   : > { %v1802_v37 = vadd.f32 %v9626_v24, %v1801_v43  ;;  %v14010_v43 = vld [vmem:[#allocation53_spill] sm:$0xff] }
 0x282   : > { %v1872_v18 = vmax.f32 %v1802_v37, 0.0  ;;  %5869 = vmatmul.msk.bf16.gmra.mxu0 %vm1724_vm12, %v1695_v34  ;;  %v1449_v37 = vsel %vm1422_vm4, %v14010_v43, %v6132_v52  ;;  %v14011_v34 = vld [vmem:[#allocation69_spill] sm:$0xff] }
 0x283   : > { %v6363_v55 = vunpack.i.h.bf16 %v14011_v34  ;;  %v6362_v35 = vunpack.i.l.bf16 %v14011_v34  ;;  %v14020_v52 = vld [vmem:[#allocation65_spill] sm:$0xff]  ;;  %v14023_v34 = vld [vmem:[#allocation94_spill] sm:$0xff] }
 0x284   : > { %1942 = vrot.lane.b32.xlu2 %v1872_v18, %s8016_s18  ;;  %v1481_v18 = vsel %vm1454_vm6, %v1449_v37, %v6207_v56  ;;  %v6368_v54 = vunpack.i.h.bf16 %v14020_v52  ;;  %v6367_v20 = vunpack.i.l.bf16 %v14020_v52  ;;  %v14021_v56 = vld [vmem:[#allocation50_spill] sm:$0xff] }
 0x285   : > { %v1514_v63 = vsel %vm1486_vm5, %v1481_v18, %v6283_v16  ;;  %v1546_v26 = vsel %vm1519_vm7, %v1513_v2, %v6362_v35  ;;  %v6447_v16 = vunpack.i.l.bf16 %v14022_v3  ;;  %v6527_v35 = vunpack.i.l.bf16 %v14023_v34 }
 0x286   : > { %v1547_v59 = vsel %vm1519_vm7, %v1514_v63, %v6363_v55  ;;  %v1579_v41 = vsel %vm1552_vm9, %v1546_v26, %v6442_v36  ;;  %v6528_v55 = vunpack.i.h.bf16 %v14023_v34  ;;  %v6608_v18 = vunpack.i.h.bf16 %v9352_v30 }
 0x287   : > { %v1803_v17 = vpop.f32.mrf.mxu0  ;;  %v1580_v10 = vsel %vm1552_vm9, %v1547_v59, %v6443_v0  ;;  %v6682_v63 = vunpack.i.l.bf16 %v6681_v40 }
 0x288   : > { %v1804_v4 = vadd.f32 %v9626_v24, %v1803_v17  ;;  %v1612_v17 = vsel %vm1585_vm8, %v1579_v41, %v6522_v32  ;;  %v1613_v29 = vsel %vm1585_vm8, %v1580_v10, %v6523_v61  ;;  %v6213_v41 = vunpack.i.h.bf16 %v14017_v50  ;;  %v14024_v10 = vld [vmem:[#allocation60_spill] sm:$0xff] }
 0x289   : > { %v1645_v45 = vsel %vm1618_vm10, %v1612_v17, %v6602_v15  ;;  %v1646_v51 = vsel %vm1618_vm10, %v1613_v29, %v6603_v57  ;;  %v6292_v17 = vunpack.i.l.bf16 %v14024_v10  ;;  %v14025_v29 = vld [vmem:[#allocation73_spill] sm:$0xff] }
 0x28a   : > { %v1873_v62 = vmax.f32 %v1804_v4, 0.0  ;;  %v1678_v4 = vsel %vm1651_vm11, %v1645_v45, %v6677_v58  ;;  %v1679_v39 = vsel %vm1651_vm11, %v1646_v51, %v6678_v47  ;;  %v6138_v47 = vunpack.i.h.bf16 %v14016_v9 }
 0x28b   : > { %v1697_v19 = vpack.c.bf16 %v1679_v39, %v1678_v4  ;;  %v6373_v45 = vunpack.i.h.bf16 %v14025_v29  ;;  %v6372_v51 = vunpack.i.l.bf16 %v14025_v29  ;;  %v14026_v4 = vld [vmem:[#allocation52_spill] sm:$0xff] }
 0x28c   : > { %1944 = vrot.lane.b32.xlu0 %v1873_v62, %s8016_s18  ;;  %v6137_v62 = vunpack.i.l.bf16 %v14016_v9  ;;  %v1452_v39 = vsel %vm1422_vm4, %v14026_v4, %v6138_v47 }
 0x28d   : > { %v1484_v50 = vsel %vm1454_vm6, %v1452_v39, %v6213_v41 }
 0x28e   : > { %v1451_v13 = vsel %vm1422_vm4, %v14021_v56, %v6137_v62 }
 0x28f   : > { %v1806_v21 = vpop.f32.mrf.mxu0  ;;  %v1483_v43 = vsel %vm1454_vm6, %v1451_v13, %v6212_v49  ;;  %v14031_v49 = vld [vmem:[#allocation93_spill] sm:$0xff]  ;;  %v9881_v13 = vpop.permute.xlu1 %1389 }
 0x290   : > { %v1807_v25 = vadd.f32 %v9626_v24, %v1806_v21  ;;  %v6288_v21 = vunpack.i.h.bf16 %v14018_v1  ;;  %v6532_v1 = vunpack.i.l.bf16 %v14031_v49  ;;  %14032 = vst [vmem:[#allocation14_spill] sm:$0xff] %v9881_v13 }
 0x292   : > { %v1874_v5 = vmax.f32 %v1807_v25, 0.0  ;;  %5870 = vmatmul.msk.bf16.gmra.mxu0 %vm1724_vm12, %v1696_v60  ;;  %v14019_v25 = vld [vmem:[#allocation54_spill] sm:$0xff]  ;;  %v1516_v11 = vsel %vm1486_vm5, %v1483_v43, %v6288_v21  ;;  %v1517_v21 = vsel %vm1486_vm5, %v1484_v50, %v6292_v17 }
 0x293   : > { %v1450_v60 = vsel %vm1422_vm4, %v14019_v25, %v6133_v28  ;;  %v1549_v7 = vsel %vm1519_vm7, %v1516_v11, %v6368_v54  ;;  %v14029_v28 = vld [vmem:[#allocation87_spill] sm:$0xff]  ;;  %v1550_v54 = vsel %vm1519_vm7, %v1517_v21, %v6372_v51 }
 0x294   : > { %1946 = vrot.lane.b32.xlu1 %v1874_v5, %s8016_s18  ;;  %v1482_v5 = vsel %vm1454_vm6, %v1450_v60, %v6208_v33  ;;  %v1582_v61 = vsel %vm1552_vm9, %v1549_v7, %v6448_v44  ;;  %v6453_v9 = vunpack.i.h.bf16 %v14029_v28  ;;  %v6452_v62 = vunpack.i.l.bf16 %v14029_v28  ;;  %v14030_v33 = vld [vmem:[#allocation67_spill] sm:$0xff] }
 0x295   : > { %v1515_v37 = vsel %vm1486_vm5, %v1482_v5, %v6287_v14  ;;  %v1615_v2 = vsel %vm1585_vm8, %v1582_v61, %v6528_v55  ;;  %v7918_v61 = vld [vmem:[%s8128_s17 + $0x18] sm:$0xff] }
 0x296   : > { %v1548_v36 = vsel %vm1519_vm7, %v1515_v37, %v6367_v20  ;;  %v1648_v30 = vsel %vm1618_vm10, %v1615_v2, %v6608_v18  ;;  %v1583_v20 = vsel %vm1552_vm9, %v1550_v54, %v6452_v62 }
 0x297   : > { %v1808_v31 = vpop.f32.mrf.mxu0  ;;  %v1581_v22 = vsel %vm1552_vm9, %v1548_v36, %v6447_v16  ;;  %v1681_v15 = vsel %vm1651_vm11, %v1648_v30, %v6683_v27  ;;  %v1616_v3 = vsel %vm1585_vm8, %v1583_v20, %v6532_v1 }
 0x298   : > { %v1809_v53 = vadd.f32 %v9626_v24, %v1808_v31  ;;  %v1614_v31 = vsel %vm1585_vm8, %v1581_v22, %v6527_v35  ;;  %v1649_v16 = vsel %vm1618_vm10, %v1616_v3, %v9390_v23 }
 0x299   : > { %v1647_v12 = vsel %vm1618_vm10, %v1614_v31, %v6607_v6  ;;  %v1682_v43 = vsel %vm1651_vm11, %v1649_v16, %v9881_v13  ;;  %v7919_v31 = vld [vmem:[%s8128_s17 + $0x8] sm:$0xff] }
 0x29a   : > { %v1875_v46 = vmax.f32 %v1809_v53, 0.0  ;;  %v1680_v57 = vsel %vm1651_vm11, %v1647_v12, %v6682_v63 }
 0x29b   : > { %v1698_v59 = vpack.c.bf16 %v1681_v15, %v1680_v57 }
 0x29c   : > { %1948 = vrot.lane.b32.xlu2 %v1875_v46, %s8016_s18  ;;  %v6293_v46 = vunpack.i.h.bf16 %v14024_v10 }
 0x29f   : > { %v1811_v42 = vpop.f32.mrf.mxu0 }
 0x2a0   : > { %v1812_v8 = vadd.f32 %v9626_v24, %v1811_v42  ;;  %v14027_v42 = vld [vmem:[#allocation34_spill] sm:$0xff] }
 0x2a2   : > { %v1876_v38 = vmax.f32 %v1812_v8, 0.0  ;;  %5871 = vmatmul.msk.bf16.gmra.mxu0 %vm1724_vm12, %v1697_v19  ;;  %v14028_v8 = vld [vmem:[#allocation51_spill] sm:$0xff] }
 0x2a3   : > { %v1453_v19 = vsel %vm1422_vm4, %v14028_v8, %v14027_v42 }
 0x2a4   : > { %1950 = vrot.lane.b32.xlu0 %v1876_v38, %s8016_s18  ;;  %v1485_v38 = vsel %vm1454_vm6, %v1453_v19, %v14030_v33  ;;  %v7920_v19 = vld [vmem:[%s8128_s17 + $0x10] sm:$0xff]  ;;  %v14039_v33 = vld [vmem:[#allocation13_spill] sm:$0xff]  ;;  %vm3388_vm6 = vcmask 785408  }
 0x2a5   : > { %v1518_v25 = vsel %vm1486_vm5, %v1485_v38, %v6293_v46 }
 0x2a6   : > { %v1551_v52 = vsel %vm1519_vm7, %v1518_v25, %v6373_v45  ;;  %vm3496_vm7 = vcmask 883712  }
 0x2a7   : > { %v1813_v48 = vpop.f32.mrf.mxu0  ;;  %v1584_v56 = vsel %vm1552_vm9, %v1551_v52, %v6453_v9 }
 0x2a8   : > { %v1814_v0 = vadd.f32 %v9626_v24, %v1813_v48  ;;  %v1617_v44 = vsel %vm1585_vm8, %v1584_v56, %v6532_v1 }
 0x2a9   : > { %v1650_v40 = vsel %vm1618_vm10, %v1617_v44, %v9390_v23  ;;  %v7917_v23 = vld [vmem:[%s8128_s17] sm:$0xff] }
 0x2aa   : > { %v1877_v32 = vmax.f32 %v1814_v0, 0.0  ;;  %v1683_v37 = vsel %vm1651_vm11, %v1650_v40, %v9881_v13 }
 0x2ab   : > { %v1699_v55 = vpack.c.bf16 %v1683_v37, %v1682_v43 }
 0x2ac   : > { %1952 = vrot.lane.b32.xlu1 %v1877_v32, %s8016_s18 }
 0x2ae   : > { %v1931_v11 = vpop.permute.xlu2 %1930 }
 0x2af   : > { %v1816_v53 = vpop.f32.mrf.mxu0  ;;  %v9899_v18 = vsel %vm1422_vm4, %v7917_v23, %v1931_v11 }
 0x2b0   : > { %v1817_v26 = vadd.f32 %v9626_v24, %v1816_v53  ;;  %14033 = vst [vmem:[#allocation82_spill] sm:$0xff] %v9899_v18  ;;  %v2090_v36 = vrot.slane %v9899_v18, 7 }
 0x2b2   : > { %v1878_v58 = vmax.f32 %v1817_v26, 0.0  ;;  %5872 = vmatmul.msk.bf16.gmra.mxu0 %vm1724_vm12, %v1698_v59  ;;  %v9905_v63 = vsel %vm342_vm0, 0.0, %v2090_v36 }
 0x2b3   : > { %14034 = vst [vmem:[#allocation17_spill] sm:$0xff] %v9905_v63  ;;  %v2415_v15 = vrot.slane %v9905_v63, 2  ;;  %v2247_v17 = vrot.slane %v9905_v63, 1 }
 0x2b4   : > { %1954 = vrot.lane.b32.xlu2 %v1878_v58, %s8016_s18 }
 0x2b7   : > { %v1818_v14 = vpop.f32.mrf.mxu0 }
 0x2b8   : > { %v1819_v60 = vadd.f32 %v9626_v24, %v1818_v14 }
 0x2ba   : > { %v1879_v5 = vmax.f32 %v1819_v60, 0.0 }
 0x2bc   : > { %1956 = vrot.lane.b32.xlu0 %v1879_v5, %s8016_s18 }
 0x2bf   : > { %v1821_v34 = vpop.f32.mrf.mxu0 }
 0x2c0   : > { %v1822_v35 = vadd.f32 %v9626_v24, %v1821_v34 }
 0x2c2   : > { %v1880_v48 = vmax.f32 %v1822_v35, 0.0  ;;  %5873 = vmatmul.msk.bf16.gmra.mxu0 %vm1724_vm12, %v1699_v55 }
 0x2c4   : > { %1958 = vrot.lane.b32.xlu1 %v1880_v48, %s8016_s18 }
 0x2c6   : > { %v1937_v27 = vpop.permute.xlu2 %1936 }
 0x2c7   : > { %v1823_v6 = vpop.f32.mrf.mxu0  ;;  %v9909_v32 = vsel %vm1422_vm4, %v7918_v61, %v1937_v27 }
 0x2c8   : > { %v1824_v0 = vadd.f32 %v9626_v24, %v1823_v6  ;;  %14035 = vst [vmem:[#allocation15_spill] sm:$0xff] %v9909_v32  ;;  %v2094_v53 = vrot.slane %v9909_v32, 7 }
 0x2ca   : > { %v1881_v7 = vmax.f32 %v1824_v0, 0.0  ;;  %v2202_v4 = vsel %vm342_vm0, %v2094_v53, 0.0  ;;  %v7921_v0 = vld [vmem:[%s8128_s17 + $0x20] sm:$0xff] }
 0x2cb   : > { %v2255_v1 = vrot.slane %v2202_v4, 1  ;;  %v2423_v14 = vrot.slane %v2202_v4, 2 }
 0x2cc   : > { %1960 = vrot.lane.b32.xlu2 %v1881_v7, %s8016_s18 }
 0x2ce   : > { %v1933_v22 = vpop.permute.xlu0 %1932 }
 0x2cf   : > { %v9913_v2 = vsel %vm1422_vm4, %v7919_v31, %v1933_v22  ;;  %v1826_v12 = vpop.f32.mrf.mxu0 }
 0x2d0   : > { %14036 = vst [vmem:[#allocation78_spill] sm:$0xff] %v9913_v2  ;;  %v2091_v30 = vrot.slane %v9913_v2, 7  ;;  %v1827_v57 = vadd.f32 %v9626_v24, %v1826_v12  ;;  %v7922_v12 = vld [vmem:[%s8128_s17 + $0x28] sm:$0xff] }
 0x2d2   : > { %v9920_v26 = vsel %vm342_vm0, %v2090_v36, %v2091_v30  ;;  %v2201_v59 = vsel %vm342_vm0, %v2091_v30, 0.0  ;;  %v1882_v47 = vmax.f32 %v1827_v57, 0.0 }
 0x2d3   : > { %14037 = vst [vmem:[#allocation25_spill] sm:$0xff] %v9920_v26  ;;  %v2250_v58 = vrot.slane %v2201_v59, 1  ;;  %v2416_v41 = vrot.slane %v9920_v26, 2  ;;  %v2418_v10 = vrot.slane %v2201_v59, 2  ;;  %v6684_v46 = vpack.i.bf16 %v9920_v26, %v9905_v63 }
 0x2d4   : > { %1962 = vrot.lane.b32.xlu0 %v1882_v47, %s8016_s18  ;;  %v2248_v29 = vrot.slane %v9920_v26, 1 }
 0x2d5   : > { %6685 = vrot.lane.b32.xlu2 %v6684_v46, %s8024_s13  ;;  %v2417_v45 = vsel %vm672_vm2, %v2415_v15, %v2416_v41  ;;  %v2419_v51 = vsel %vm672_vm2, %v2416_v41, %v2418_v10 }
 0x2d6   : > { %v1935_v39 = vpop.permute.xlu1 %1934  ;;  %v2249_v42 = vsel %vm501_vm1, %v2247_v17, %v2248_v29  ;;  %v9934_v8 = vpack.i.bf16 %v2419_v51, %v2417_v45  ;;  %v2251_v62 = vsel %vm501_vm1, %v2248_v29, %v2250_v58 }
 0x2d7   : > { %v9938_v28 = vsel %vm1422_vm4, %v7920_v19, %v1935_v39  ;;  %v1828_v9 = vpop.f32.mrf.mxu0  ;;  %v6689_v38 = vpack.i.bf16 %v2249_v42, %v14039_v33  ;;  %v6699_v52 = vpack.i.bf16 %v2251_v62, %v2249_v42 }
 0x2d8   : > { %14038 = vst [vmem:[#allocation8_spill] sm:$0xff] %v9938_v28  ;;  %v2093_v50 = vrot.slane %v9938_v28, 7  ;;  %v1829_v60 = vadd.f32 %v9626_v24, %v1828_v9 }
 0x2d9   : > { %6690 = vrot.lane.b32.xlu1 %v6689_v38, %s8018_s20  ;;  %v7923_v38 = vld [vmem:[%s8128_s17 + $0x30] sm:$0xff] }
 0x2da   : > { %v9945_v21 = vsel %vm342_vm0, %v2093_v50, %v2094_v53  ;;  %v9948_v25 = vsel %vm342_vm0, 0.0, %v2093_v50  ;;  %v1883_v37 = vmax.f32 %v1829_v60, 0.0 }
 0x2db   : > { %14040 = vst [vmem:[#allocation81_spill] sm:$0xff] %v9945_v21  ;;  %v2252_v54 = vrot.slane %v9948_v25, 1  ;;  %v2253_v20 = vrot.slane %v9945_v21, 1  ;;  %v2420_v56 = vrot.slane %v9948_v25, 2  ;;  %v2421_v5 = vrot.slane %v9945_v21, 2 }
 0x2dc   : > { %14041 = vst [vmem:[#allocation37_spill] sm:$0xff] %v9948_v25  ;;  %6700 = vrot.lane.b32.xlu0 %v6699_v52, %s8025_s14  ;;  %v9970_v11 = vpack.i.bf16 %v9945_v21, %v9948_v25 }
 0x2dd   : > { %6695 = vrot.lane.b32.xlu2 %v9934_v8, %s8021_s23  ;;  %v2254_v3 = vsel %vm501_vm1, %v2252_v54, %v2253_v20  ;;  %v2256_v44 = vsel %vm501_vm1, %v2253_v20, %v2255_v1  ;;  %v2422_v16 = vsel %vm672_vm2, %v2420_v56, %v2421_v5  ;;  %v2424_v40 = vsel %vm672_vm2, %v2421_v5, %v2423_v14 }
 0x2de   : > { %v9962_v43 = vpack.i.bf16 %v2424_v40, %v2422_v16  ;;  %v9964_v55 = vpack.i.bf16 %v2256_v44, %v2254_v3  ;;  %v6709_v27 = vpack.i.bf16 %v2254_v3, %v2251_v62  ;;  %v1943_v45 = vpop.permute.xlu2 %1942  ;;  %v7924_v40 = vld [vmem:[%s8128_s17 + $0x48] sm:$0xff] }
 0x2df   : > { %v1831_v34 = vpop.f32.mrf.mxu0  ;;  %v10022_v50 = vsel %vm1422_vm4, %v7923_v38, %v1943_v45 }
 0x2e0   : > { %v1832_v35 = vadd.f32 %v9626_v24, %v1831_v34  ;;  %14046 = vst [vmem:[#allocation5_spill] sm:$0xff] %v10022_v50  ;;  %v2099_v60 = vrot.slane %v10022_v50, 7  ;;  %v7925_v34 = vld [vmem:[%s8128_s17 + $0x38] sm:$0xff] }
 0x2e1   : > { %1964 = vrot.lane.b32.xlu1 %v1883_v37, %s8016_s18 }
 0x2e2   : > { %v1884_v48 = vmax.f32 %v1832_v35, 0.0  ;;  %v10031_v5 = vsel %vm342_vm0, 0.0, %v2099_v60 }
 0x2e3   : > { %14047 = vst [vmem:[#allocation16_spill] sm:$0xff] %v10031_v5 }
 0x2e4   : > { %6705 = vrot.lane.b32.xlu0 %v9970_v11, %s8024_s13 }
 0x2e5   : > { %1966 = vrot.lane.b32.xlu2 %v1884_v48, %s8016_s18 }
 0x2e6   : > { %v1939_v23 = vpop.permute.xlu0 %1938 }
 0x2e7   : > { %v1833_v6 = vpop.f32.mrf.mxu0  ;;  %v9977_v36 = vsel %vm1422_vm4, %v7921_v0, %v1939_v23  ;;  %v2430_v0 = vrot.slane %v10031_v5, 2 }
 0x2e8   : > { %14042 = vst [vmem:[#allocation10_spill] sm:$0xff] %v9977_v36  ;;  %v2096_v7 = vrot.slane %v9977_v36, 7  ;;  %v1834_v22 = vadd.f32 %v9626_v24, %v1833_v6  ;;  %v2262_v6 = vrot.slane %v10031_v5, 1 }
 0x2e9   : > { %6720 = vrot.lane.b32.xlu1 %v9964_v55, %s8025_s14 }
 0x2ea   : > { %v9987_v31 = vsel %vm342_vm0, 0.0, %v2096_v7  ;;  %v1885_v53 = vmax.f32 %v1834_v22, 0.0 }
 0x2eb   : > { %14043 = vst [vmem:[#allocation12_spill] sm:$0xff] %v9987_v31  ;;  %v2257_v59 = vrot.slane %v9987_v31, 1  ;;  %v2425_v47 = vrot.slane %v9987_v31, 2 }
 0x2ec   : > { %6715 = vrot.lane.b32.xlu0 %v9962_v43, %s8021_s23 }
 0x2ed   : > { %6710 = vrot.lane.b32.xlu2 %v6709_v27, %s8018_s20 }
 0x2ee   : > { %v1941_v61 = vpop.permute.xlu1 %1940 }
 0x2ef   : > { %v9991_v30 = vsel %vm1422_vm4, %v7922_v12, %v1941_v61  ;;  %v1836_v57 = vpop.f32.mrf.mxu0 }
 0x2f0   : > { %14044 = vst [vmem:[#allocation74_spill] sm:$0xff] %v9991_v30  ;;  %v2097_v15 = vrot.slane %v9991_v30, 7  ;;  %v1837_v14 = vadd.f32 %v9626_v24, %v1836_v57  ;;  %v7934_v30 = vld [vmem:[%s8128_s17 + $0x80] sm:$0xff] }
 0x2f2   : > { %v9997_v58 = vsel %vm342_vm0, %v2096_v7, %v2097_v15  ;;  %v2203_v41 = vsel %vm342_vm0, %v2097_v15, 0.0  ;;  %v1886_v20 = vmax.f32 %v1837_v14, 0.0 }
 0x2f3   : > { %14045 = vst [vmem:[#allocation21_spill] sm:$0xff] %v9997_v58  ;;  %v2258_v10 = vrot.slane %v9997_v58, 1  ;;  %v2260_v46 = vrot.slane %v2203_v41, 1  ;;  %v2426_v17 = vrot.slane %v9997_v58, 2  ;;  %v2428_v29 = vrot.slane %v2203_v41, 2 }
 0x2f4   : > { %1968 = vrot.lane.b32.xlu0 %v1885_v53, %s8016_s18  ;;  %v10005_v51 = vpack.i.bf16 %v9997_v58, %v9987_v31 }
 0x2f5   : > { %v2259_v4 = vsel %vm501_vm1, %v2257_v59, %v2258_v10  ;;  %v10009_v39 = vsel %vm501_vm1, %v2258_v10, %v2260_v46  ;;  %v2427_v42 = vsel %vm672_vm2, %v2425_v47, %v2426_v17  ;;  %v2429_v19 = vsel %vm672_vm2, %v2426_v17, %v2428_v29 }
 0x2f6   : > { %6725 = vrot.lane.b32.xlu1 %v10005_v51, %s8024_s13  ;;  %v10016_v9 = vpack.i.bf16 %v10009_v39, %v2259_v4  ;;  %v10018_v62 = vpack.i.bf16 %v2429_v19, %v2427_v42  ;;  %v6729_v54 = vpack.i.bf16 %v2259_v4, %v2256_v44  ;;  %v1949_v56 = vpop.permute.xlu2 %1948  ;;  %v7926_v4 = vld [vmem:[%s8128_s17 + $0x40] sm:$0xff] }
 0x2f7   : > { %v1838_v1 = vpop.f32.mrf.mxu0  ;;  %v10036_v37 = vsel %vm1422_vm4, %v7924_v40, %v1949_v56 }
 0x2f8   : > { %6740 = vrot.lane.b32.xlu2 %v10016_v9, %s8025_s14  ;;  %v1839_v52 = vadd.f32 %v9626_v24, %v1838_v1  ;;  %14048 = vst [vmem:[#allocation75_spill] sm:$0xff] %v10036_v37  ;;  %v2103_v7 = vrot.slane %v10036_v37, 7 }
 0x2fa   : > { %v1887_v3 = vmax.f32 %v1839_v52, 0.0  ;;  %v2205_v46 = vsel %vm342_vm0, %v2103_v7, 0.0 }
 0x2fb   : > { %v2270_v14 = vrot.slane %v2205_v46, 1 }
 0x2fc   : > { %6730 = vrot.lane.b32.xlu0 %v6729_v54, %s8018_s20 }
 0x2fe   : > { %1970 = vrot.lane.b32.xlu1 %v1886_v20, %s8016_s18  ;;  %v1945_v16 = vpop.permute.xlu0 %1944 }
 0x2ff   : > { %v10040_v35 = vsel %vm1422_vm4, %v7925_v34, %v1945_v16  ;;  %v1841_v44 = vpop.f32.mrf.mxu0 }
 0x300   : > { %14049 = vst [vmem:[#allocation6_spill] sm:$0xff] %v10040_v35  ;;  %v2100_v48 = vrot.slane %v10040_v35, 7  ;;  %v1842_v23 = vadd.f32 %v9626_v24, %v1841_v44  ;;  %1972 = vrot.lane.b32.xlu2 %v1887_v3, %s8016_s18 }
 0x302   : > { %v10049_v27 = vsel %vm342_vm0, %v2099_v60, %v2100_v48  ;;  %v2204_v22 = vsel %vm342_vm0, %v2100_v48, 0.0  ;;  %v1888_v61 = vmax.f32 %v1842_v23, 0.0  ;;  %v2438_v60 = vrot.slane %v2205_v46, 2 }
 0x303   : > { %14050 = vst [vmem:[#allocation7_spill] sm:$0xff] %v10049_v27  ;;  %v2263_v12 = vrot.slane %v10049_v27, 1  ;;  %v2265_v57 = vrot.slane %v2204_v22, 1  ;;  %v2431_v15 = vrot.slane %v10049_v27, 2  ;;  %v2433_v53 = vrot.slane %v2204_v22, 2 }
 0x304   : > { %1974 = vrot.lane.b32.xlu0 %v1888_v61, %s8016_s18  ;;  %v10064_v29 = vpack.i.bf16 %v10049_v27, %v10031_v5 }
 0x305   : > { %v2264_v59 = vsel %vm501_vm1, %v2262_v6, %v2263_v12  ;;  %v2266_v47 = vsel %vm501_vm1, %v2263_v12, %v2265_v57  ;;  %v2432_v41 = vsel %vm672_vm2, %v2430_v0, %v2431_v15  ;;  %v2434_v10 = vsel %vm672_vm2, %v2431_v15, %v2433_v53 }
 0x306   : > { %6735 = vrot.lane.b32.xlu1 %v10018_v62, %s8021_s23  ;;  %v1947_v17 = vpop.permute.xlu1 %1946  ;;  %v10066_v45 = vpack.i.bf16 %v2434_v10, %v2432_v41  ;;  %v10072_v38 = vpack.i.bf16 %v2266_v47, %v2264_v59  ;;  %v6749_v40 = vpack.i.bf16 %v2264_v59, %v10009_v39  ;;  %v7927_v59 = vld [vmem:[%s8128_s17 + $0x50] sm:$0xff] }
 0x307   : > { %v10070_v42 = vsel %vm1422_vm4, %v7926_v4, %v1947_v17  ;;  %v1843_v19 = vpop.f32.mrf.mxu0 }
 0x308   : > { %14051 = vst [vmem:[#allocation36_spill] sm:$0xff] %v10070_v42  ;;  %v2102_v1 = vrot.slane %v10070_v42, 7  ;;  %6745 = vrot.lane.b32.xlu2 %v10064_v29, %s8024_s13  ;;  %v1844_v22 = vadd.f32 %v9626_v24, %v1843_v19 }
 0x30a   : > { %v10078_v52 = vsel %vm342_vm0, %v2102_v1, %v2103_v7  ;;  %v10081_v54 = vsel %vm342_vm0, 0.0, %v2102_v1  ;;  %v1889_v12 = vmax.f32 %v1844_v22, 0.0 }
 0x30b   : > { %14052 = vst [vmem:[#allocation35_spill] sm:$0xff] %v10078_v52  ;;  %v2267_v20 = vrot.slane %v10081_v54, 1  ;;  %v2268_v56 = vrot.slane %v10078_v52, 1  ;;  %v2435_v3 = vrot.slane %v10081_v54, 2  ;;  %v2436_v16 = vrot.slane %v10078_v52, 2 }
 0x30c   : > { %14053 = vst [vmem:[#allocation42_spill] sm:$0xff] %v10081_v54  ;;  %6760 = vrot.lane.b32.xlu0 %v10072_v38, %s8025_s14  ;;  %v10105_v61 = vpack.i.bf16 %v10078_v52, %v10081_v54 }
 0x30d   : > { %v2437_v34 = vsel %vm672_vm2, %v2435_v3, %v2436_v16  ;;  %v2439_v44 = vsel %vm672_vm2, %v2436_v16, %v2438_v60  ;;  %v2269_v48 = vsel %vm501_vm1, %v2267_v20, %v2268_v56  ;;  %v2271_v23 = vsel %vm501_vm1, %v2268_v56, %v2270_v14  ;;  %v7928_v14 = vld [vmem:[%s8128_s17 + $0x58] sm:$0xff] }
 0x30e   : > { %6750 = vrot.lane.b32.xlu1 %v6749_v40, %s8018_s20  ;;  %v10095_v6 = vpack.i.bf16 %v2439_v44, %v2437_v34  ;;  %v10097_v7 = vpack.i.bf16 %v2271_v23, %v2269_v48  ;;  %v1955_v17 = vpop.permute.xlu2 %1954  ;;  %v6769_v19 = vpack.i.bf16 %v2269_v48, %v2266_v47 }
 0x30f   : > { %v1846_v0 = vpop.f32.mrf.mxu0 }
 0x310   : > { %6755 = vrot.lane.b32.xlu2 %v10066_v45, %s8021_s23  ;;  %v1847_v39 = vadd.f32 %v9626_v24, %v1846_v0 }
 0x312   : > { %v1890_v57 = vmax.f32 %v1847_v39, 0.0 }
 0x314   : > { %6765 = vrot.lane.b32.xlu0 %v10105_v61, %s8024_s13 }
 0x316   : > { %1976 = vrot.lane.b32.xlu1 %v1889_v12, %s8016_s18  ;;  %v1951_v15 = vpop.permute.xlu0 %1950 }
 0x317   : > { %v1848_v53 = vpop.f32.mrf.mxu0  ;;  %v10112_v41 = vsel %vm1422_vm4, %v7927_v59, %v1951_v15 }
 0x318   : > { %14054 = vst [vmem:[#allocation19_spill] sm:$0xff] %v10112_v41  ;;  %1978 = vrot.lane.b32.xlu2 %v1890_v57, %s8016_s18  ;;  %v2105_v10 = vrot.slane %v10112_v41, 7  ;;  %v1849_v46 = vadd.f32 %v9626_v24, %v1848_v53 }
 0x31a   : > { %v10122_v1 = vsel %vm342_vm0, 0.0, %v2105_v10  ;;  %v1891_v3 = vmax.f32 %v1849_v46, 0.0  ;;  %v7929_v46 = vld [vmem:[%s8128_s17 + $0x60] sm:$0xff] }
 0x31b   : > { %14055 = vst [vmem:[#allocation18_spill] sm:$0xff] %v10122_v1  ;;  %v2272_v24 = vrot.slane %v10122_v1, 1  ;;  %v2440_v16 = vrot.slane %v10122_v1, 2 }
 0x31c   : > { %6775 = vrot.lane.b32.xlu0 %v10095_v6, %s8021_s23 }
 0x31e   : > { %6780 = vrot.lane.b32.xlu1 %v10097_v7, %s8025_s14  ;;  %v1953_v4 = vpop.permute.xlu1 %1952 }
 0x31f   : > { %v10126_v60 = vsel %vm1422_vm4, %v7928_v14, %v1953_v4  ;;  %v1851_v20 = vpop.f32.mrf.mxu0  ;;  %v10158_v4 = vsel %vm1422_vm4, %v7929_v46, %v1955_v17  ;;  %v10163_v14 = vld [vmem:[%s13399_s2] ss:$0 sm:$0xff] }
 0x320   : > { %14056 = vst [vmem:[#allocation23_spill] sm:$0xff] %v10126_v60  ;;  %v2106_v56 = vrot.slane %v10126_v60, 7  ;;  %6770 = vrot.lane.b32.xlu2 %v6769_v19, %s8018_s20 }
 0x321   : > { %14058 = vst [vmem:[#allocation30_spill] sm:$0xff] %v10158_v4 }
 0x322   : > { %v10133_v40 = vsel %vm342_vm0, %v2105_v10, %v2106_v56  ;;  %v2206_v47 = vsel %vm342_vm0, %v2106_v56, 0.0  ;;  %v1852_v56 = vadd.f32 %v10163_v14, %v1851_v20 }
 0x323   : > { %14057 = vst [vmem:[#allocation22_spill] sm:$0xff] %v10133_v40  ;;  %v2273_v34 = vrot.slane %v10133_v40, 1  ;;  %v2275_v44 = vrot.slane %v2206_v47, 1  ;;  %v2441_v48 = vrot.slane %v10133_v40, 2  ;;  %v2443_v0 = vrot.slane %v2206_v47, 2 }
 0x324   : > { %1980 = vrot.lane.b32.xlu0 %v1891_v3, %s8016_s18  ;;  %v10141_v22 = vpack.i.bf16 %v10133_v40, %v10122_v1  ;;  %v2108_v3 = vrot.slane %v10158_v4, 7  ;;  %v1892_v47 = vmax.f32 %v1852_v56, 0.0 }
 0x325   : > { %v2274_v39 = vsel %vm501_vm1, %v2272_v24, %v2273_v34  ;;  %v10145_v12 = vsel %vm501_vm1, %v2273_v34, %v2275_v44  ;;  %v2442_v57 = vsel %vm672_vm2, %v2440_v16, %v2441_v48  ;;  %v2444_v15 = vsel %vm672_vm2, %v2441_v48, %v2443_v0  ;;  %v7931_v48 = vld [vmem:[%s8128_s17 + $0x78] sm:$0xff]  ;;  %v7932_v0 = vld [vmem:[%s8128_s17 + $0x68] sm:$0xff] }
 0x326   : > { %6785 = vrot.lane.b32.xlu1 %v10141_v22, %s8024_s13  ;;  %v1961_v53 = vpop.permute.xlu2 %1960  ;;  %v10152_v59 = vpack.i.bf16 %v10145_v12, %v2274_v39  ;;  %v10154_v10 = vpack.i.bf16 %v2444_v15, %v2442_v57  ;;  %v6789_v16 = vpack.i.bf16 %v2274_v39, %v2271_v23  ;;  %v10172_v17 = vsel %vm342_vm0, 0.0, %v2108_v3 }
 0x327   : > { %v1853_v19 = vpop.f32.mrf.mxu0  ;;  %14059 = vst [vmem:[#allocation31_spill] sm:$0xff] %v10172_v17  ;;  %v10177_v20 = vsel %vm1422_vm4, %v7931_v48, %v1961_v53  ;;  %v2445_v56 = vrot.slane %v10172_v17, 2 }
 0x328   : > { %6805 = vrot.lane.b32.xlu2 %v10152_v59, %s8025_s14  ;;  %v1854_v24 = vadd.f32 %v10163_v14, %v1853_v19  ;;  %14060 = vst [vmem:[#allocation76_spill] sm:$0xff] %v10177_v20  ;;  %v2277_v19 = vrot.slane %v10172_v17, 1  ;;  %v2112_v53 = vrot.slane %v10177_v20, 7 }
 0x32a   : > { %v1893_v34 = vmax.f32 %v1854_v24, 0.0  ;;  %v2208_v20 = vsel %vm342_vm0, %v2112_v53, 0.0 }
 0x32b   : > { %v2453_v4 = vrot.slane %v2208_v20, 2 }
 0x32c   : > { %6790 = vrot.lane.b32.xlu0 %v6789_v16, %s8018_s20 }
 0x32e   : > { %1982 = vrot.lane.b32.xlu1 %v1892_v47, %s8016_s18  ;;  %v1957_v44 = vpop.permute.xlu0 %1956 }
 0x32f   : > { %v10181_v57 = vsel %vm1422_vm4, %v7932_v0, %v1957_v44  ;;  %v1856_v15 = vpop.f32.mrf.mxu0  ;;  %v10183_v23 = vpop.permute.xlu2 %6685 }
 0x330   : > { %14061 = vst [vmem:[#allocation46_spill] sm:$0xff] %v10181_v57  ;;  %v2109_v39 = vrot.slane %v10181_v57, 7  ;;  %v1857_v46 = vadd.f32 %v10163_v14, %v1856_v15  ;;  %1984 = vrot.lane.b32.xlu2 %v1893_v34, %s8016_s18 }
 0x331   : > { %14062 = vst [vmem:[#allocation26_spill] sm:$0xff] %v10183_v23 }
 0x332   : > { %v10192_v24 = vsel %vm342_vm0, %v2108_v3, %v2109_v39  ;;  %v2207_v16 = vsel %vm342_vm0, %v2109_v39, 0.0  ;;  %v1894_v47 = vmax.f32 %v1857_v46, 0.0 }
 0x333   : > { %14063 = vst [vmem:[#allocation27_spill] sm:$0xff] %v10192_v24  ;;  %v2278_v44 = vrot.slane %v10192_v24, 1  ;;  %v2280_v48 = vrot.slane %v2207_v16, 1  ;;  %v2446_v0 = vrot.slane %v10192_v24, 2  ;;  %v2448_v15 = vrot.slane %v2207_v16, 2  ;;  %v7933_v16 = vld [vmem:[%s8128_s17 + $0x70] sm:$0xff] }
 0x334   : > { %1986 = vrot.lane.b32.xlu0 %v1894_v47, %s8016_s18  ;;  %v10207_v46 = vpack.i.bf16 %v10192_v24, %v10172_v17 }
 0x335   : > { %v2279_v34 = vsel %vm501_vm1, %v2277_v19, %v2278_v44  ;;  %v2281_v13 = vsel %vm501_vm1, %v2278_v44, %v2280_v48  ;;  %v2447_v57 = vsel %vm672_vm2, %v2445_v56, %v2446_v0  ;;  %v2449_v3 = vsel %vm672_vm2, %v2446_v0, %v2448_v15 }
 0x336   : > { %6795 = vrot.lane.b32.xlu1 %v10154_v10, %s8021_s23  ;;  %v1959_v39 = vpop.permute.xlu1 %1958  ;;  %v10215_v56 = vpack.i.bf16 %v2281_v13, %v2279_v34  ;;  %v10217_v48 = vpack.i.bf16 %v2449_v3, %v2447_v57  ;;  %v2285_v15 = vrot.slane %v2208_v20, 1 }
 0x337   : > { %v10211_v47 = vsel %vm1422_vm4, %v7933_v16, %v1959_v39  ;;  %v1858_v19 = vpop.f32.mrf.mxu0  ;;  %v10213_v44 = vpop.permute.xlu2 %6695 }
 0x338   : > { %14064 = vst [vmem:[#allocation11_spill] sm:$0xff] %v10211_v47  ;;  %v2111_v0 = vrot.slane %v10211_v47, 7  ;;  %6810 = vrot.lane.b32.xlu2 %v10207_v46, %s8024_s13 }
 0x339   : > { %14065 = vst [vmem:[#allocation43_spill] sm:$0xff] %v10213_v44 }
 0x33a   : > { %v10223_v60 = vsel %vm342_vm0, %v2111_v0, %v2112_v53  ;;  %v10226_v39 = vsel %vm342_vm0, 0.0, %v2111_v0 }
 0x33b   : > { %14066 = vst [vmem:[#allocation57_spill] sm:$0xff] %v10223_v60  ;;  %v2282_v16 = vrot.slane %v10226_v39, 1  ;;  %v2283_v41 = vrot.slane %v10223_v60, 1  ;;  %v2450_v57 = vrot.slane %v10226_v39, 2  ;;  %v2451_v3 = vrot.slane %v10223_v60, 2 }
 0x33c   : > { %14067 = vst [vmem:[#allocation29_spill] sm:$0xff] %v10226_v39  ;;  %6825 = vrot.lane.b32.xlu0 %v10215_v56, %s8025_s14 }
 0x33d   : > { %v2452_v47 = vsel %vm672_vm2, %v2450_v57, %v2451_v3  ;;  %v2454_v20 = vsel %vm672_vm2, %v2451_v3, %v2453_v4  ;;  %v2284_v53 = vsel %vm501_vm1, %v2282_v16, %v2283_v41  ;;  %v2286_v0 = vsel %vm501_vm1, %v2283_v41, %v2285_v15 }
 0x33e   : > { %6800 = vrot.lane.b32.xlu1 %v9934_v8, %s8026_s21  ;;  %v10240_v42 = vpack.i.bf16 %v2454_v20, %v2452_v47  ;;  %v10242_v37 = vpack.i.bf16 %v2286_v0, %v2284_v53  ;;  %v10249_v16 = vpack.i.bf16 %v10223_v60, %v10226_v39  ;;  %v6814_v8 = vpack.i.bf16 %v2279_v34, %v10145_v12 }
 0x33f   : > { %v1861_v35 = vpop.f32.mrf.mxu0  ;;  %v1967_v50 = vpop.permute.xlu2 %1966  ;;  %v1859_v15 = vadd.f32 %v10163_v14, %v1858_v19 }
 0x340   : > { %6820 = vrot.lane.b32.xlu2 %v10217_v48, %s8021_s23  ;;  %v1862_v4 = vadd.f32 %v10163_v14, %v1861_v35 }
 0x341   : > { %v1895_v20 = vmax.f32 %v1859_v15, 0.0 }
 0x342   : > { %v1896_v41 = vmax.f32 %v1862_v4, 0.0  ;;  %v6834_v4 = vpack.i.bf16 %v2284_v53, %v2281_v13 }
 0x344   : > { %6830 = vrot.lane.b32.xlu0 %v10249_v16, %s8024_s13 }
 0x346   : > { %6815 = vrot.lane.b32.xlu1 %v6814_v8, %s8018_s20  ;;  %v1963_v47 = vpop.permute.xlu0 %1962 }
 0x347   : > { %v10257_v57 = vpop.permute.xlu2 %6710  ;;  %v1863_v35 = vpop.f32.mrf.mxu0  ;;  %v10265_v12 = vsel %vm1422_vm4, %v7934_v30, %v1963_v47  ;;  %v7935_v30 = vld [vmem:[%s8128_s17 + $0x88] sm:$0xff] }
 0x348   : > { %1990 = vrot.lane.b32.xlu2 %v1896_v41, %s8016_s18  ;;  %14068 = vst [vmem:[#allocation70_spill] sm:$0xff] %v10257_v57  ;;  %v1864_v34 = vadd.f32 %v10163_v14, %v1863_v35  ;;  %v2114_v8 = vrot.slane %v10265_v12, 7 }
 0x349   : > { %14070 = vst [vmem:[#allocation84_spill] sm:$0xff] %v10265_v12 }
 0x34a   : > { %v1897_v41 = vmax.f32 %v1864_v34, 0.0  ;;  %v10276_v28 = vsel %vm342_vm0, 0.0, %v2114_v8 }
 0x34b   : > { %v10259_v3 = vpop.permute.xlu1 %6690  ;;  %14073 = vst [vmem:[#allocation20_spill] sm:$0xff] %v10276_v28  ;;  %v2287_v53 = vrot.slane %v10276_v28, 1  ;;  %v2455_v35 = vrot.slane %v10276_v28, 2 }
 0x34c   : > { %14069 = vst [vmem:[#allocation28_spill] sm:$0xff] %v10259_v3  ;;  %6845 = vrot.lane.b32.xlu0 %v10240_v42, %s8021_s23 }
 0x34e   : > { %1988 = vrot.lane.b32.xlu1 %v1895_v20, %s8016_s18  ;;  %v10269_v19 = vpop.permute.xlu0 %6700 }
 0x34f   : > { %14071 = vst [vmem:[#allocation89_spill] sm:$0xff] %v10269_v19 }
 0x350   : > { %6835 = vrot.lane.b32.xlu2 %v6834_v4, %s8018_s20 }
 0x352   : > { %v10273_v15 = vpop.permute.xlu2 %6740 }
 0x353   : > { %14072 = vst [vmem:[#allocation97_spill] sm:$0xff] %v10273_v15  ;;  %v1965_v36 = vpop.permute.xlu1 %1964 }
 0x354   : > { %v10280_v47 = vsel %vm1422_vm4, %v7935_v30, %v1965_v36  ;;  %1992 = vrot.lane.b32.xlu0 %v1897_v41, %s8016_s18  ;;  %s8028_s18 = smov 84  }
 0x355   : > { %14074 = vst [vmem:[#allocation33_spill] sm:$0xff] %v10280_v47  ;;  %v2115_v14 = vrot.slane %v10280_v47, 7 }
 0x356   : > { %6850 = vrot.lane.b32.xlu1 %v10242_v37, %s8025_s14  ;;  %v10286_v13 = vpop.permute.xlu0 %6705 }
 0x357   : > { %14075 = vst [vmem:[#allocation62_spill] sm:$0xff] %v10286_v13  ;;  %v10291_v20 = vsel %vm342_vm0, %v2114_v8, %v2115_v14  ;;  %v2209_v34 = vsel %vm342_vm0, %v2115_v14, 0.0 }
 0x358   : > { %14076 = vst [vmem:[#allocation44_spill] sm:$0xff] %v10291_v20  ;;  %v2288_v36 = vrot.slane %v10291_v20, 1  ;;  %v2290_v4 = vrot.slane %v2209_v34, 1  ;;  %v2456_v41 = vrot.slane %v10291_v20, 2  ;;  %v2458_v30 = vrot.slane %v2209_v34, 2  ;;  %6840 = vrot.lane.b32.xlu2 %v9962_v43, %s8026_s21 }
 0x359   : > { %v10304_v18 = vpack.i.bf16 %v10291_v20, %v10276_v28 }
 0x35a   : > { %v1973_v47 = vpop.permute.xlu2 %1972  ;;  %v2289_v12 = vsel %vm501_vm1, %v2287_v53, %v2288_v36  ;;  %v2291_v2 = vsel %vm501_vm1, %v2288_v36, %v2290_v4  ;;  %v2457_v8 = vsel %vm672_vm2, %v2455_v35, %v2456_v41  ;;  %v2459_v32 = vsel %vm672_vm2, %v2456_v41, %v2458_v30  ;;  %v7936_v35 = vld [vmem:[%s8128_s17 + $0x90] sm:$0xff]  ;;  %v7937_v41 = vld [vmem:[%s8128_s17 + $0x98] sm:$0xff] }
 0x35b   : > { %v6859_v14 = vpack.i.bf16 %v2289_v12, %v2286_v0  ;;  %v10307_v34 = vpack.i.bf16 %v2291_v2, %v2289_v12  ;;  %v10309_v39 = vpack.i.bf16 %v2459_v32, %v2457_v8  ;;  %v10317_v36 = vsel %vm1422_vm4, %v7936_v35, %v1967_v50  ;;  %v10319_v0 = vpop.permute.xlu1 %6720 }
 0x35c   : > { %14078 = vst [vmem:[#allocation45_spill] sm:$0xff] %v10317_v36  ;;  %v2117_v12 = vrot.slane %v10317_v36, 7 }
 0x35d   : > { %6860 = vrot.lane.b32.xlu0 %v6859_v14, %s8018_s20  ;;  %14079 = vst [vmem:[#allocation72_spill] sm:$0xff] %v10319_v0 }
 0x35e   : > { %6855 = vrot.lane.b32.xlu1 %v10304_v18, %s8024_s13  ;;  %v10313_v53 = vpop.permute.xlu0 %6715  ;;  %v10331_v50 = vsel %vm342_vm0, 0.0, %v2117_v12 }
 0x35f   : > { %14077 = vst [vmem:[#allocation68_spill] sm:$0xff] %v10313_v53  ;;  %v2292_v35 = vrot.slane %v10331_v50, 1  ;;  %v2460_v36 = vrot.slane %v10331_v50, 2 }
 0x360   : > { %6880 = vrot.lane.b32.xlu2 %v10307_v34, %s8025_s14  ;;  %14081 = vst [vmem:[#allocation96_spill] sm:$0xff] %v10331_v50 }
 0x362   : > { %v10323_v4 = vpop.permute.xlu2 %6745 }
 0x363   : > { %14080 = vst [vmem:[#allocation92_spill] sm:$0xff] %v10323_v4 }
 0x365   : > { %6865 = vrot.lane.b32.xlu0 %v10018_v62, %s8026_s21 }
 0x366   : > { %6870 = vrot.lane.b32.xlu1 %v10309_v39, %s8021_s23  ;;  %v1969_v32 = vpop.permute.xlu0 %1968 }
 0x367   : > { %v10335_v30 = vsel %vm1422_vm4, %v7937_v41, %v1969_v32 }
 0x368   : > { %14082 = vst [vmem:[#allocation77_spill] sm:$0xff] %v10335_v30  ;;  %v2118_v8 = vrot.slane %v10335_v30, 7  ;;  %v10338_v14 = vpop.permute.xlu1 %6725  ;;  %v7938_v30 = vld [vmem:[%s8128_s17 + $0xa8] sm:$0xff] }
 0x369   : > { %14083 = vst [vmem:[#allocation47_spill] sm:$0xff] %v10338_v14  ;;  %v10352_v1 = vsel %vm1422_vm4, %v7938_v30, %v1973_v47 }
 0x36a   : > { %v10343_v28 = vsel %vm342_vm0, %v2117_v12, %v2118_v8  ;;  %v2210_v20 = vsel %vm342_vm0, %v2118_v8, 0.0  ;;  %v10346_v60 = vpop.permute.xlu2 %6755  ;;  %14086 = vst [vmem:[#allocation66_spill] sm:$0xff] %v10352_v1  ;;  %v2121_v30 = vrot.slane %v10352_v1, 7 }
 0x36b   : > { %14084 = vst [vmem:[#allocation58_spill] sm:$0xff] %v10343_v28  ;;  %v2293_v24 = vrot.slane %v10343_v28, 1  ;;  %v2295_v17 = vrot.slane %v2210_v20, 1  ;;  %v2461_v32 = vrot.slane %v10343_v28, 2  ;;  %v2463_v41 = vrot.slane %v2210_v20, 2 }
 0x36c   : > { %14085 = vst [vmem:[#allocation41_spill] sm:$0xff] %v10346_v60  ;;  %v10356_v40 = vpack.i.bf16 %v10343_v28, %v10331_v50 }
 0x36d   : > { %v2294_v12 = vsel %vm501_vm1, %v2292_v35, %v2293_v24  ;;  %v2296_v8 = vsel %vm501_vm1, %v2293_v24, %v2295_v17  ;;  %v2462_v54 = vsel %vm672_vm2, %v2460_v36, %v2461_v32  ;;  %v2464_v52 = vsel %vm672_vm2, %v2461_v32, %v2463_v41  ;;  %v7939_v24 = vld [vmem:[%s8128_s17 + $0xa0] sm:$0xff] }
 0x36e   : > { %6875 = vrot.lane.b32.xlu1 %v10066_v45, %s8026_s21  ;;  %6885 = vrot.lane.b32.xlu2 %v10356_v40, %s8024_s13  ;;  %v10366_v47 = vpop.permute.xlu0 %6730  ;;  %v10368_v20 = vpack.i.bf16 %v2296_v8, %v2294_v12  ;;  %v10373_v17 = vpack.i.bf16 %v2464_v52, %v2462_v54  ;;  %v2211_v41 = vsel %vm342_vm0, %v2121_v30, 0.0  ;;  %v6889_v60 = vpack.i.bf16 %v2294_v12, %v2291_v2 }
 0x36f   : > { %14087 = vst [vmem:[#allocation38_spill] sm:$0xff] %v10366_v47  ;;  %v2468_v2 = vrot.slane %v2211_v41, 2 }
 0x370   : > { %v1971_v28 = vpop.permute.xlu1 %1970  ;;  %6905 = vrot.lane.b32.xlu0 %v10368_v20, %s8025_s14 }
 0x371   : > { %v10377_v36 = vsel %vm1422_vm4, %v7939_v24, %v1971_v28  ;;  %v2300_v24 = vrot.slane %v2211_v41, 1 }
 0x372   : > { %14088 = vst [vmem:[#allocation86_spill] sm:$0xff] %v10377_v36  ;;  %v2120_v35 = vrot.slane %v10377_v36, 7  ;;  %v1979_v32 = vpop.permute.xlu2 %1978 }
 0x374   : > { %v10382_v50 = vsel %vm342_vm0, %v2120_v35, %v2121_v30  ;;  %v10385_v1 = vsel %vm342_vm0, 0.0, %v2120_v35 }
 0x375   : > { %14089 = vst [vmem:[#allocation91_spill] sm:$0xff] %v10382_v50  ;;  %v2297_v5 = vrot.slane %v10385_v1, 1  ;;  %v2298_v52 = vrot.slane %v10382_v50, 1  ;;  %v2465_v54 = vrot.slane %v10385_v1, 2  ;;  %v2466_v28 = vrot.slane %v10382_v50, 2 }
 0x376   : > { %14090 = vst [vmem:[#allocation79_spill] sm:$0xff] %v10385_v1  ;;  %6895 = vrot.lane.b32.xlu2 %v10373_v17, %s8021_s23  ;;  %6890 = vrot.lane.b32.xlu1 %v6889_v60, %s8018_s20  ;;  %v1975_v30 = vpop.permute.xlu0 %1974  ;;  %v10396_v35 = vpack.i.bf16 %v10382_v50, %v10385_v1  ;;  %v7941_v50 = vld [vmem:[%s8128_s17 + $0xb8] sm:$0xff] }
 0x377   : > { %v2299_v36 = vsel %vm501_vm1, %v2297_v5, %v2298_v52  ;;  %v2301_v27 = vsel %vm501_vm1, %v2298_v52, %v2300_v24  ;;  %v2467_v31 = vsel %vm672_vm2, %v2465_v54, %v2466_v28  ;;  %v2469_v60 = vsel %vm672_vm2, %v2466_v28, %v2468_v2  ;;  %v7940_v54 = vld [vmem:[%s8128_s17 + $0xb0] sm:$0xff] }
 0x378   : > { %v10398_v12 = vpop.permute.xlu1 %6735  ;;  %6910 = vrot.lane.b32.xlu0 %v10396_v35, %s8024_s13  ;;  %v10408_v58 = vpack.i.bf16 %v2301_v27, %v2299_v36  ;;  %v10410_v1 = vpack.i.bf16 %v2469_v60, %v2467_v31  ;;  %v10426_v31 = vsel %vm1422_vm4, %v7940_v54, %v1975_v30  ;;  %v6914_v28 = vpack.i.bf16 %v2299_v36, %v2296_v8 }
 0x379   : > { %14091 = vst [vmem:[#allocation9_spill] sm:$0xff] %v10398_v12  ;;  %v2123_v2 = vrot.slane %v10426_v31, 7 }
 0x37a   : > { %v10406_v4 = vpop.permute.xlu2 %6770  ;;  %14096 = vst [vmem:[#allocation40_spill] sm:$0xff] %v10426_v31 }
 0x37b   : > { %14092 = vst [vmem:[#allocation49_spill] sm:$0xff] %v10406_v4  ;;  %v10442_v30 = vsel %vm342_vm0, 0.0, %v2123_v2 }
 0x37c   : > { %14099 = vst [vmem:[#allocation24_spill] sm:$0xff] %v10442_v30 }
 0x37e   : > { %6900 = vrot.lane.b32.xlu2 %v10095_v6, %s8026_s21  ;;  %6930 = vrot.lane.b32.xlu1 %v10217_v48, %s8026_s21  ;;  %v10416_v5 = vpop.permute.xlu0 %6760 }
 0x37f   : > { %14093 = vst [vmem:[#allocation56_spill] sm:$0xff] %v10416_v5 }
 0x380   : > { %v10418_v41 = vpop.permute.xlu1 %6750  ;;  %6920 = vrot.lane.b32.xlu0 %v10410_v1, %s8021_s23 }
 0x381   : > { %14094 = vst [vmem:[#allocation39_spill] sm:$0xff] %v10418_v41 }
 0x382   : > { %v10422_v52 = vpop.permute.xlu2 %6805 }
 0x383   : > { %14095 = vst [vmem:[#allocation71_spill] sm:$0xff] %v10422_v52 }
 0x386   : > { %6940 = vrot.lane.b32.xlu1 %v10408_v58, %s8025_s14  ;;  %6915 = vrot.lane.b32.xlu2 %v6914_v28, %s8018_s20  ;;  %v10431_v24 = vpop.permute.xlu0 %6765 }
 0x387   : > { %14097 = vst [vmem:[#allocation85_spill] sm:$0xff] %v10431_v24 }
 0x388   : > { %v1977_v60 = vpop.permute.xlu1 %1976  ;;  %6925 = vrot.lane.b32.xlu0 %v10154_v10, %s8026_s21 }
 0x389   : > { %v10438_v52 = vsel %vm1422_vm4, %v7941_v50, %v1977_v60  ;;  %v2302_v50 = vrot.slane %v10442_v30, 1 }
 0x38a   : > { %14098 = vst [vmem:[#allocation90_spill] sm:$0xff] %v10438_v52  ;;  %v2124_v8 = vrot.slane %v10438_v52, 7  ;;  %v1985_v36 = vpop.permute.xlu2 %1984 }
 0x38c   : > { %v10445_v54 = vsel %vm342_vm0, %v2123_v2, %v2124_v8  ;;  %v2212_v28 = vsel %vm342_vm0, %v2124_v8, 0.0  ;;  %v2470_v2 = vrot.slane %v10442_v30, 2  ;;  %v7942_v8 = vld [vmem:[%s8128_s17 + $0xc0] sm:$0xff] }
 0x38d   : > { %14100 = vst [vmem:[#allocation32_spill] sm:$0xff] %v10445_v54  ;;  %v2303_v31 = vrot.slane %v10445_v54, 1  ;;  %v2305_v24 = vrot.slane %v2212_v28, 1  ;;  %v2471_v4 = vrot.slane %v10445_v54, 2  ;;  %v2473_v5 = vrot.slane %v2212_v28, 2 }
 0x38e   : > { %6935 = vrot.lane.b32.xlu2 %v10240_v42, %s8026_s21  ;;  %v10453_v60 = vpop.permute.xlu0 %6775  ;;  %v10457_v52 = vpack.i.bf16 %v10445_v54, %v10442_v30  ;;  %v10462_v12 = vsel %vm1422_vm4, %v7942_v8, %v1979_v32 }
 0x38f   : > { %14101 = vst [vmem:[#allocation61_spill] sm:$0xff] %v10453_v60  ;;  %v2304_v41 = vsel %vm501_vm1, %v2302_v50, %v2303_v31  ;;  %v2306_v60 = vsel %vm501_vm1, %v2303_v31, %v2305_v24  ;;  %v2472_v54 = vsel %vm672_vm2, %v2470_v2, %v2471_v4  ;;  %v2474_v25 = vsel %vm672_vm2, %v2471_v4, %v2473_v5  ;;  %v7943_v24 = vld [vmem:[%s8128_s17 + $0xc8] sm:$0xff] }
 0x390   : > { %14102 = vst [vmem:[#allocation53_spill] sm:$0xff] %v10462_v12  ;;  %6945 = vrot.lane.b32.xlu1 %v10457_v52, %s8024_s13  ;;  %v10466_v28 = vpop.permute.xlu1 %6780  ;;  %v6949_v15 = vpack.i.bf16 %v2304_v41, %v2301_v27  ;;  %v2126_v30 = vrot.slane %v10462_v12, 7  ;;  %v10476_v8 = vpack.i.bf16 %v2306_v60, %v2304_v41  ;;  %v10478_v14 = vpack.i.bf16 %v2474_v25, %v2472_v54  ;;  %v7944_v12 = vld [vmem:[%s8128_s17 + $0xd8] sm:$0xff] }
 0x391   : > { %14103 = vst [vmem:[#allocation69_spill] sm:$0xff] %v10466_v28 }
 0x392   : > { %6950 = vrot.lane.b32.xlu0 %v6949_v15, %s8018_s20  ;;  %v10474_v32 = vpop.permute.xlu2 %6810  ;;  %v10483_v31 = vsel %vm342_vm0, 0.0, %v2126_v30 }
 0x393   : > { %14104 = vst [vmem:[#allocation55_spill] sm:$0xff] %v10474_v32  ;;  %v2307_v25 = vrot.slane %v10483_v31, 1  ;;  %v2475_v41 = vrot.slane %v10483_v31, 2  ;;  %v10506_v32 = vsel %vm1422_vm4, %v7944_v12, %v1985_v36 }
 0x394   : > { %14105 = vst [vmem:[#allocation83_spill] sm:$0xff] %v10483_v31  ;;  %v2130_v12 = vrot.slane %v10506_v32, 7 }
 0x395   : > { %14109 = vst [vmem:[#allocation59_spill] sm:$0xff] %v10506_v32 }
 0x396   : > { %6970 = vrot.lane.b32.xlu2 %v10476_v8, %s8025_s14  ;;  %v1981_v27 = vpop.permute.xlu0 %1980 }
 0x397   : > { %v10487_v4 = vsel %vm1422_vm4, %v7943_v24, %v1981_v27 }
 0x398   : > { %14106 = vst [vmem:[#allocation95_spill] sm:$0xff] %v10487_v4  ;;  %v2127_v15 = vrot.slane %v10487_v4, 7  ;;  %6960 = vrot.lane.b32.xlu1 %v10478_v14, %s8021_s23  ;;  %v10492_v5 = vpop.permute.xlu1 %6785 }
 0x399   : > { %14107 = vst [vmem:[#allocation48_spill] sm:$0xff] %v10492_v5 }
 0x39a   : > { %v10497_v54 = vsel %vm342_vm0, %v2126_v30, %v2127_v15  ;;  %v2213_v50 = vsel %vm342_vm0, %v2127_v15, 0.0  ;;  %6955 = vrot.lane.b32.xlu0 %v10309_v39, %s8026_s21  ;;  %v10512_v5 = vpop.permute.xlu2 %6820 }
 0x39b   : > { %14108 = vst [vmem:[#allocation80_spill] sm:$0xff] %v10497_v54  ;;  %v2308_v2 = vrot.slane %v10497_v54, 1  ;;  %v2310_v27 = vrot.slane %v2213_v50, 1  ;;  %v2476_v24 = vrot.slane %v10497_v54, 2  ;;  %v2478_v4 = vrot.slane %v2213_v50, 2 }
 0x39c   : > { %v10510_v30 = vpack.i.bf16 %v10497_v54, %v10483_v31  ;;  %14110 = vst [vmem:[#allocation64_spill] sm:$0xff] %v10512_v5 }
 0x39d   : > { %v2309_v15 = vsel %vm501_vm1, %v2307_v25, %v2308_v2  ;;  %v2311_v28 = vsel %vm501_vm1, %v2308_v2, %v2310_v27  ;;  %v2477_v50 = vsel %vm672_vm2, %v2475_v41, %v2476_v24  ;;  %v2479_v53 = vsel %vm672_vm2, %v2476_v24, %v2478_v4  ;;  %v7945_v2 = vld [vmem:[%s8128_s17 + $0xd0] sm:$0xff] }
 0x39e   : > { %6975 = vrot.lane.b32.xlu2 %v10510_v30, %s8024_s13  ;;  %v10520_v21 = vpop.permute.xlu0 %6790  ;;  %v10523_v36 = vpack.i.bf16 %v2311_v28, %v2309_v15  ;;  %v10527_v25 = vpack.i.bf16 %v2479_v53, %v2477_v50  ;;  %v2214_v27 = vsel %vm342_vm0, %v2130_v12, 0.0  ;;  %v6979_v5 = vpack.i.bf16 %v2309_v15, %v2306_v60 }
 0x39f   : > { %14111 = vst [vmem:[#allocation54_spill] sm:$0xff] %v10520_v21  ;;  %v2483_v21 = vrot.slane %v2214_v27, 2 }
 0x3a0   : > { %6965 = vrot.lane.b32.xlu1 %v10373_v17, %s8026_s21  ;;  %v1983_v54 = vpop.permute.xlu1 %1982 }
 0x3a1   : > { %v10531_v41 = vsel %vm1422_vm4, %v7945_v2, %v1983_v54 }
 0x3a2   : > { %14112 = vst [vmem:[#allocation65_spill] sm:$0xff] %v10531_v41  ;;  %v2129_v4 = vrot.slane %v10531_v41, 7  ;;  %6995 = vrot.lane.b32.xlu0 %v10523_v36, %s8025_s14  ;;  %v2315_v41 = vrot.slane %v2214_v27, 1 }
 0x3a4   : > { %v10538_v24 = vsel %vm342_vm0, %v2129_v4, %v2130_v12  ;;  %v10541_v32 = vsel %vm342_vm0, 0.0, %v2129_v4  ;;  %v1991_v12 = vpop.permute.xlu2 %1990 }
 0x3a5   : > { %14113 = vst [vmem:[#allocation50_spill] sm:$0xff] %v10538_v24  ;;  %v2312_v53 = vrot.slane %v10541_v32, 1  ;;  %v2313_v50 = vrot.slane %v10538_v24, 1  ;;  %v2480_v54 = vrot.slane %v10541_v32, 2  ;;  %v2481_v2 = vrot.slane %v10538_v24, 2 }
 0x3a6   : > { %14114 = vst [vmem:[#allocation88_spill] sm:$0xff] %v10541_v32  ;;  %6985 = vrot.lane.b32.xlu2 %v10527_v25, %s8021_s23  ;;  %v1987_v31 = vpop.permute.xlu0 %1986  ;;  %v10556_v44 = vpack.i.bf16 %v10538_v24, %v10541_v32 }
 0x3a7   : > { %v2314_v47 = vsel %vm501_vm1, %v2312_v53, %v2313_v50  ;;  %v2316_v0 = vsel %vm501_vm1, %v2313_v50, %v2315_v41  ;;  %v2482_v13 = vsel %vm672_vm2, %v2480_v54, %v2481_v2  ;;  %v2484_v63 = vsel %vm672_vm2, %v2481_v2, %v2483_v21  ;;  %v7946_v53 = vld [vmem:[%s8128_s17 + $0xe0] sm:$0xff] }
 0x3a8   : > { %6980 = vrot.lane.b32.xlu1 %v6979_v5, %s8018_s20  ;;  %v10551_v4 = vpop.permute.xlu1 %6795  ;;  %v10560_v60 = vpack.i.bf16 %v2316_v0, %v2314_v47  ;;  %v10564_v15 = vpack.i.bf16 %v2484_v63, %v2482_v13  ;;  %v7004_v21 = vpack.i.bf16 %v2314_v47, %v2311_v28  ;;  %v10585_v50 = vsel %vm1422_vm4, %v7946_v53, %v1987_v31  ;;  %v7947_v28 = vld [vmem:[%s8128_s17 + $0xf0] sm:$0xff]  ;;  %v7948_v31 = vld [vmem:[%s8128_s17 + $0xe8] sm:$0xff] }
 0x3a9   : > { %14115 = vst [vmem:[#allocation94_spill] sm:$0xff] %v10551_v4  ;;  %v2132_v2 = vrot.slane %v10585_v50, 7 }
 0x3aa   : > { %7000 = vrot.lane.b32.xlu0 %v10556_v44, %s8024_s13  ;;  %14116 = vst [vmem:[#allocation60_spill] sm:$0xff] %v10564_v15 }
 0x3ab   : > { %14122 = vst [vmem:[#allocation67_spill] sm:$0xff] %v10585_v50 }
 0x3ac   : > { %v10574_v27 = vpop.permute.xlu2 %6835 }
 0x3ad   : > { %14119 = vst [vmem:[#allocation34_spill] sm:$0xff] %v10574_v27 }
 0x3ae   : > { %6990 = vrot.lane.b32.xlu2 %v10410_v1, %s8026_s21  ;;  %v10568_v5 = vpop.permute.xlu0 %6825 }
 0x3af   : > { %14117 = vst [vmem:[#allocation73_spill] sm:$0xff] %v10568_v5 }
 0x3b0   : > { %7020 = vrot.lane.b32.xlu1 %v10560_v60, %s8025_s14  ;;  %v10572_v41 = vpop.permute.xlu1 %6800 }
 0x3b1   : > { %14118 = vst [vmem:[#allocation52_spill] sm:$0xff] %v10572_v41 }
 0x3b2   : > { %7010 = vrot.lane.b32.xlu0 %v10564_v15, %s8021_s23 }
 0x3b4   : > { %v10587_v54 = vpop.permute.xlu2 %6840 }
 0x3b5   : > { %14123 = vst [vmem:[#allocation98_spill] sm:$0xff] %v10587_v54 }
 0x3b6   : > { %7005 = vrot.lane.b32.xlu2 %v7004_v21, %s8018_s20  ;;  %v10579_v63 = vpop.permute.xlu0 %6830  ;;  %v10598_v21 = vsel %vm1422_vm4, %v7947_v28, %v1991_v12 }
 0x3b7   : > { %14120 = vst [vmem:[#allocation51_spill] sm:$0xff] %v10579_v63  ;;  %v2135_v24 = vrot.slane %v10598_v21, 7  ;;  %v10606_v63 = vsel %vm342_vm0, 0.0, %v2132_v2 }
 0x3b8   : > { %v10581_v13 = vpop.permute.xlu1 %6815  ;;  %14125 = vst [vmem:[#allocation100_spill] sm:$0xff] %v10598_v21  ;;  %v2317_v12 = vrot.slane %v10606_v63, 1 }
 0x3b9   : > { %14121 = vst [vmem:[#allocation87_spill] sm:$0xff] %v10581_v13 }
 0x3ba   : > { %7015 = vrot.lane.b32.xlu0 %v10478_v14, %s8026_s21  ;;  %14127 = vst [vmem:[#allocation102_spill] sm:$0xff] %v10606_v63 }
 0x3bc   : > { %v10614_v28 = vpop.permute.xlu2 %6880 }
 0x3bd   : > { %14129 = vst [vmem:[#allocation104_spill] sm:$0xff] %v10614_v28 }
 0x3be   : > { %7045 = vrot.lane.b32.xlu2 %v10564_v15, %s8026_s21  ;;  %v10594_v47 = vpop.permute.xlu0 %6845 }
 0x3bf   : > { %14124 = vst [vmem:[#allocation99_spill] sm:$0xff] %v10594_v47 }
 0x3c0   : > { %v1989_v32 = vpop.permute.xlu1 %1988 }
 0x3c1   : > { %v10602_v53 = vsel %vm1422_vm4, %v7948_v31, %v1989_v32  ;;  %v2200_v31 = vsel %vm342_vm0, 0.0, %v2135_v24 }
 0x3c2   : > { %14126 = vst [vmem:[#allocation101_spill] sm:$0xff] %v10602_v53  ;;  %v2133_v50 = vrot.slane %v10602_v53, 7  ;;  %v2782_v23 = vrot.slane %v2200_v31, 2 }
 0x3c4   : > { %v10610_v27 = vsel %vm342_vm0, %v2132_v2, %v2133_v50  ;;  %v2215_v47 = vsel %vm342_vm0, %v2133_v50, 0.0  ;;  %v7949_v2 = vld [vmem:[%s8128_s17 + $0xf8] sm:$0xff]  ;;  %s8027_s17 = smov 72  }
 0x3c5   : > { %14128 = vst [vmem:[#allocation103_spill] sm:$0xff] %v10610_v27  ;;  %v2318_v5 = vrot.slane %v10610_v27, 1  ;;  %v2320_v32 = vrot.slane %v2215_v47, 1  ;;  %v10620_v4 = vpack.i.bf16 %v10610_v27, %v10606_v63  ;;  %v2486_v53 = vrot.slane %v10610_v27, 2 }
 0x3c6   : > { %v1993_v21 = vpop.permute.xlu0 %1992  ;;  %v2488_v54 = vrot.slane %v2215_v47, 2  ;;  %v2681_v27 = vrot.slane %v2200_v31, 1 }
 0x3c7   : > { %v10625_v13 = vsel %vm1422_vm4, %v7949_v2, %v1993_v21  ;;  %v2319_v50 = vsel %vm501_vm1, %v2317_v12, %v2318_v5  ;;  %v2321_v28 = vsel %vm501_vm1, %v2318_v5, %v2320_v32  ;;  %7025 = vrot.lane.b32.xlu1 %v10620_v4, %s8024_s13  ;;  %v2485_v21 = vrot.slane %v10606_v63, 2 }
 0x3c8   : > { %14130 = vst [vmem:[#allocation105_spill] sm:$0xff] %v10625_v13  ;;  %v2136_v26 = vrot.slane %v10625_v13, 7  ;;  %v10632_v57 = vpop.permute.xlu1 %6850  ;;  %v7029_v41 = vpack.i.bf16 %v2319_v50, %v2316_v0  ;;  %v10634_v19 = vpack.i.bf16 %v2321_v28, %v2319_v50  ;;  %v2489_v50 = vsel %vm672_vm2, %v2486_v53, %v2488_v54 }
 0x3c9   : > { %14131 = vst [vmem:[#allocation106_spill] sm:$0xff] %v10632_v57  ;;  %v2487_v0 = vsel %vm672_vm2, %v2485_v21, %v2486_v53  ;;  %v10644_v57 = vpop.permute.xlu2 %6885  ;;  %vm3355_vm4 = vcmask 687104  }
 0x3ca   : > { %v2137_v2 = vsel %vm342_vm0, %v2135_v24, %v2136_v26  ;;  %v2216_v12 = vsel %vm342_vm0, %v2136_v26, 0.0  ;;  %7030 = vrot.lane.b32.xlu0 %v7029_v41, %s8018_s20  ;;  %7050 = vrot.lane.b32.xlu2 %v10634_v19, %s8025_s14  ;;  %v10652_v3 = vpack.i.bf16 %v2489_v50, %v2487_v0 }
 0x3cb   : > { %v2682_v5 = vrot.slane %v2137_v2, 1  ;;  %v2684_v47 = vrot.slane %v2216_v12, 1  ;;  %v2783_v32 = vrot.slane %v2137_v2, 2  ;;  %v2785_v13 = vrot.slane %v2216_v12, 2 }
 0x3cd   : > { %v2683_v63 = vsel %vm501_vm1, %v2681_v27, %v2682_v5  ;;  %v2685_v24 = vsel %vm501_vm1, %v2682_v5, %v2684_v47  ;;  %v2784_v26 = vsel %vm672_vm2, %v2782_v23, %v2783_v32  ;;  %v2786_v41 = vsel %vm672_vm2, %v2783_v32, %v2785_v13  ;;  %v14157_v5 = vld [vmem:[#allocation63_spill] sm:$0xff] }
 0x3ce   : > { %v10650_v49 = vpack.i.bf16 %v2685_v24, %v2683_v63  ;;  %v10654_v15 = vpack.i.bf16 %v2786_v41, %v2784_v26  ;;  %v7064_v63 = vpack.i.bf16 %v2137_v2, %v2200_v31  ;;  %v5900_v24 = vld [vmem:[%s13400_s3 + $0x30] sm:$0xf]  ;;  %v5992_v26 = vld [vmem:[%s13400_s3 + $0x30] sm:$0x30] }
 0x3cf   : > { %v10656_v12 = vpop.permute.xlu0 %6860  ;;  %2382 = vrot.lane.b32.xlu1 %v2321_v28, %s8018_s20 }
 0x3d0   : > { %v10659_v54 = vpop.permute.xlu1 %6855 }
 0x3d1   : > { %v10665_v23 = vpop.permute.xlu2 %6895 }
 0x3d2   : > { %7055 = vrot.lane.b32.xlu0 %v10652_v3, %s8026_s21  ;;  %7060 = vrot.lane.b32.xlu2 %v9970_v11, %s8027_s17 }
 0x3d7   : > { %7035 = vrot.lane.b32.xlu1 %v10652_v3, %s8021_s23  ;;  %v10671_v13 = vpop.permute.xlu0 %6865  ;;  %s8029_s23 = smov 96  }
 0x3d8   : > { %v10669_v27 = vpop.permute.xlu1 %6870 }
 0x3d9   : > { %v10678_v53 = vpop.permute.xlu2 %6900 }
 0x3da   : > { %7065 = vrot.lane.b32.xlu2 %v7064_v63, %s8024_s13  ;;  %7070 = vrot.lane.b32.xlu0 %v10650_v49, %s8025_s14  ;;  %s8031_s14 = smov 80  }
 0x3df   : > { %7040 = vrot.lane.b32.xlu1 %v10527_v25, %s8026_s21 }
 0x3e0   : > { %v10680_v11 = vpop.permute.xlu1 %6875 }
 0x3e1   : > { %v10696_v21 = vpop.permute.xlu2 %6915 }
 0x3e2   : > { %7090 = vrot.lane.b32.xlu2 %v10105_v61, %s8027_s17  ;;  %7075 = vrot.lane.b32.xlu0 %v10005_v51, %s8027_s17  ;;  %v10686_v28 = vpop.permute.xlu0 %6905 }
 0x3e7   : > { %7080 = vrot.lane.b32.xlu1 %v10654_v15, %s8026_s21 }
 0x3e8   : > { %v10698_v2 = vpop.permute.xlu1 %6890 }
 0x3e9   : > { %v10708_v61 = vpop.permute.xlu2 %6935 }
 0x3ea   : > { %7105 = vrot.lane.b32.xlu2 %v10249_v16, %s8027_s17  ;;  %7095 = vrot.lane.b32.xlu0 %v10141_v22, %s8027_s17  ;;  %v10694_v31 = vpop.permute.xlu0 %6910 }
 0x3ef   : > { %7085 = vrot.lane.b32.xlu1 %v10064_v29, %s8027_s17 }
 0x3f0   : > { %v10710_v22 = vpop.permute.xlu1 %6930 }
 0x3f1   : > { %v10720_v16 = vpop.permute.xlu2 %6970 }
 0x3f2   : > { %7120 = vrot.lane.b32.xlu2 %v10396_v35, %s8027_s17  ;;  %7110 = vrot.lane.b32.xlu0 %v10304_v18, %s8027_s17  ;;  %v10706_v51 = vpop.permute.xlu0 %6920  ;;  %14132 = vst [vmem:[#allocation107_spill] sm:$0xff] %v10720_v16  ;;  %v14133_v35 = vmov 0.0  }
 0x3f7   : > { %7100 = vrot.lane.b32.xlu1 %v10207_v46, %s8027_s17 }
 0x3f8   : > { %v10722_v18 = vpop.permute.xlu1 %6940 }
 0x3fa   : > { %7135 = vrot.lane.b32.xlu2 %v10556_v44, %s8027_s17  ;;  %7125 = vrot.lane.b32.xlu0 %v10457_v52, %s8027_s17  ;;  %v10718_v29 = vpop.permute.xlu0 %6925  ;;  %v10734_v44 = vpop.permute.xlu2 %6975 }
 0x3fb   : > { %14134 = vst [vmem:[#allocation108_spill] sm:$0xff] %v10734_v44 }
 0x3ff   : > { %7115 = vrot.lane.b32.xlu1 %v10356_v40, %s8027_s17 }
 0x402   : > { %2943 = vrot.lane.b32.xlu2 %v14133_v35, %s8027_s17  ;;  %7140 = vrot.lane.b32.xlu0 %v10620_v4, %s8027_s17  ;;  %v10736_v52 = vpop.permute.xlu1 %6945  ;;  %v5991_v35 = vld [vmem:[%s13400_s3 + $0x28] sm:$0xff] }
 0x403   : > { %14135 = vst [vmem:[#allocation109_spill] sm:$0xff] %v10736_v52 }
 0x404   : > { %v10730_v46 = vpop.permute.xlu0 %6950 }
 0x407   : > { %7130 = vrot.lane.b32.xlu1 %v10510_v30, %s8027_s17  ;;  %v10749_v30 = vpop.permute.xlu2 %6985 }
 0x408   : > { %14136 = vst [vmem:[#allocation110_spill] sm:$0xff] %v10749_v30 }
 0x40a   : > { %7160 = vrot.lane.b32.xlu2 %v10072_v38, %s8028_s18  ;;  %7150 = vrot.lane.b32.xlu0 %v9964_v55, %s8028_s18  ;;  %v10751_v4 = vpop.permute.xlu1 %6960 }
 0x40b   : > { %14137 = vst [vmem:[#allocation111_spill] sm:$0xff] %v10751_v4 }
 0x40c   : > { %v10742_v40 = vpop.permute.xlu0 %6955 }
 0x40f   : > { %7145 = vrot.lane.b32.xlu1 %v7064_v63, %s8027_s17  ;;  %v10761_v55 = vpop.permute.xlu2 %6990  ;;  %v5901_v63 = vor.u32 %v5992_v26, %v5900_v24  ;;  %v5989_v24 = vld [vmem:[%s13400_s3 + $0x18] sm:$0xff] }
 0x412   : > { %7175 = vrot.lane.b32.xlu2 %v10215_v56, %s8028_s18  ;;  %7165 = vrot.lane.b32.xlu0 %v10097_v7, %s8028_s18  ;;  %v10763_v56 = vpop.permute.xlu1 %6965 }
 0x414   : > { %v10755_v38 = vpop.permute.xlu0 %6995 }
 0x415   : > { %14138 = vst [vmem:[#allocation112_spill] sm:$0xff] %v10755_v38 }
 0x417   : > { %7155 = vrot.lane.b32.xlu1 %v10016_v9, %s8028_s18  ;;  %v10773_v7 = vpop.permute.xlu2 %7005 }
 0x418   : > { %14140 = vst [vmem:[#allocation114_spill] sm:$0xff] %v10773_v7  ;;  %v14168_v7 = vld [vmem:[#allocation89_spill] sm:$0xff] }
 0x419   : > { %v6703_v38 = vunpack.i.h.bf16 %v14168_v7 }
 0x41a   : > { %7190 = vrot.lane.b32.xlu2 %v10368_v20, %s8028_s18  ;;  %7180 = vrot.lane.b32.xlu0 %v10242_v37, %s8028_s18  ;;  %v10775_v20 = vpop.permute.xlu1 %6980 }
 0x41b   : > { %14141 = vst [vmem:[#allocation115_spill] sm:$0xff] %v10775_v20 }
 0x41c   : > { %v10771_v9 = vpop.permute.xlu0 %7000 }
 0x41d   : > { %14139 = vst [vmem:[#allocation113_spill] sm:$0xff] %v10771_v9 }
 0x41f   : > { %7170 = vrot.lane.b32.xlu1 %v10152_v59, %s8028_s18 }
 0x422   : > { %7205 = vrot.lane.b32.xlu2 %v10523_v36, %s8028_s18  ;;  %7195 = vrot.lane.b32.xlu0 %v10408_v58, %s8028_s18  ;;  %v10787_v58 = vpop.permute.xlu2 %7045  ;;  %v10789_v59 = vpop.permute.xlu1 %7020 }
 0x423   : > { %14143 = vst [vmem:[#allocation117_spill] sm:$0xff] %v10787_v58 }
 0x424   : > { %v10783_v37 = vpop.permute.xlu0 %7010  ;;  %14144 = vst [vmem:[#allocation118_spill] sm:$0xff] %v10789_v59  ;;  %v14167_v59 = vld [vmem:[#allocation26_spill] sm:$0xff] }
 0x425   : > { %14142 = vst [vmem:[#allocation116_spill] sm:$0xff] %v10783_v37  ;;  %v14164_v37 = vld [vmem:[#allocation93_spill] sm:$0xff]  ;;  %v6687_v9 = vunpack.i.l.bf16 %v14167_v59  ;;  %v6688_v30 = vunpack.i.h.bf16 %v14167_v59 }
 0x427   : > { %7185 = vrot.lane.b32.xlu1 %v10307_v34, %s8028_s18 }
 0x42a   : > { %7220 = vrot.lane.b32.xlu2 %v10650_v49, %s8028_s18  ;;  %7210 = vrot.lane.b32.xlu0 %v10560_v60, %s8028_s18  ;;  %v10799_v34 = vpop.permute.xlu2 %7050 }
 0x42b   : > { %14146 = vst [vmem:[#allocation120_spill] sm:$0xff] %v10799_v34  ;;  %v14163_v34 = vld [vmem:[#allocation28_spill] sm:$0xff] }
 0x42c   : > { %v10795_v49 = vpop.permute.xlu0 %7015 }
 0x42d   : > { %14145 = vst [vmem:[#allocation119_spill] sm:$0xff] %v10795_v49 }
 0x42f   : > { %7200 = vrot.lane.b32.xlu1 %v10476_v8, %s8028_s18 }
 0x432   : > { %7230 = vrot.lane.b32.xlu2 %v10018_v62, %s8029_s23  ;;  %3036 = vrot.lane.b32.xlu0 %v14039_v33, %s8028_s18 }
 0x437   : > { %7215 = vrot.lane.b32.xlu1 %v10634_v19, %s8028_s18  ;;  %v10817_v19 = vpop.permute.xlu2 %7060 }
 0x438   : > { %v7063_v59 = vunpack.i.h.bf16 %v10817_v19 }
 0x439   : > { %v10801_v36 = vpop.permute.xlu1 %7025 }
 0x43a   : > { %14147 = vst [vmem:[#allocation121_spill] sm:$0xff] %v10801_v36  ;;  %7245 = vrot.lane.b32.xlu2 %v10154_v10, %s8029_s23  ;;  %7235 = vrot.lane.b32.xlu0 %v10066_v45, %s8029_s23 }
 0x43c   : > { %v10807_v8 = vpop.permute.xlu0 %7030 }
 0x43d   : > { %14148 = vst [vmem:[#allocation122_spill] sm:$0xff] %v10807_v8  ;;  %v6533_v8 = vunpack.i.h.bf16 %v14164_v37 }
 0x43f   : > { %7225 = vrot.lane.b32.xlu1 %v9962_v43, %s8029_s23  ;;  %v10829_v43 = vpop.permute.xlu2 %7065 }
 0x440   : > { %14152 = vst [vmem:[#allocation126_spill] sm:$0xff] %v10829_v43  ;;  %v5986_v43 = vld [vmem:[%s13400_s3] sm:$0xff] }
 0x441   : > { %v10811_v62 = vpop.permute.xlu1 %2382 }
 0x442   : > { %14149 = vst [vmem:[#allocation123_spill] sm:$0xff] %v10811_v62  ;;  %7260 = vrot.lane.b32.xlu2 %v10309_v39, %s8029_s23  ;;  %7250 = vrot.lane.b32.xlu0 %v10217_v48, %s8029_s23 }
 0x444   : > { %v10821_v10 = vpop.permute.xlu0 %7055 }
 0x445   : > { %14150 = vst [vmem:[#allocation124_spill] sm:$0xff] %v10821_v10  ;;  %v13663_v10 = vunpack.i.l.bf16 %v14163_v34 }
 0x447   : > { %7240 = vrot.lane.b32.xlu1 %v10095_v6, %s8029_s23  ;;  %v10841_v39 = vpop.permute.xlu2 %7090 }
 0x449   : > { %v10823_v45 = vpop.permute.xlu1 %7035 }
 0x44a   : > { %14151 = vst [vmem:[#allocation125_spill] sm:$0xff] %v10823_v45  ;;  %7275 = vrot.lane.b32.xlu2 %v10478_v14, %s8029_s23  ;;  %7265 = vrot.lane.b32.xlu0 %v10373_v17, %s8029_s23  ;;  %v14156_v17 = vld [vmem:[#allocation60_spill] sm:$0xff] }
 0x44c   : > { %v10839_v6 = vpop.permute.xlu0 %7070 }
 0x44d   : > { %14154 = vst [vmem:[#allocation128_spill] sm:$0xff] %v10839_v6 }
 0x44f   : > { %7255 = vrot.lane.b32.xlu1 %v10240_v42, %s8029_s23 }
 0x451   : > { %v10833_v48 = vpop.permute.xlu1 %7040 }
 0x452   : > { %14153 = vst [vmem:[#allocation127_spill] sm:$0xff] %v10833_v48  ;;  %7290 = vrot.lane.b32.xlu2 %v10652_v3, %s8029_s23  ;;  %7280 = vrot.lane.b32.xlu0 %v10527_v25, %s8029_s23  ;;  %v10853_v3 = vpop.permute.xlu2 %7105 }
 0x454   : > { %v10849_v42 = vpop.permute.xlu0 %7075 }
 0x457   : > { %7270 = vrot.lane.b32.xlu1 %v10410_v1, %s8029_s23 }
 0x459   : > { %v10845_v14 = vpop.permute.xlu1 %7080 }
 0x45a   : > { %14155 = vst [vmem:[#allocation129_spill] sm:$0xff] %v10845_v14  ;;  %7295 = vrot.lane.b32.xlu0 %v10654_v15, %s8029_s23  ;;  %v10863_v47 = vpop.permute.xlu2 %7120  ;;  %v5990_v14 = vld [vmem:[%s13400_s3 + $0x20] sm:$0xff] }
 0x45c   : > { %v10857_v60 = vpop.permute.xlu0 %7095 }
 0x45f   : > { %7285 = vrot.lane.b32.xlu1 %v14156_v17, %s8029_s23  ;;  %v3546_v17 = vsel %vm672_vm2, %v5901_v63, 0 }
 0x460   : > { %3549 = vmatpush.bf16.msra.mxu1 %v3546_v17 }
 0x461   : > { %v10855_v25 = vpop.permute.xlu1 %7085 }
 0x462   : > { %v10869_v0 = vpop.permute.xlu2 %7135 }
 0x463   : > { %14158 = vst [vmem:[#allocation60_spill] sm:$0xff] %v10869_v0  ;;  %v6702_v0 = vunpack.i.l.bf16 %v14168_v7 }
 0x464   : > { %v10865_v32 = vpop.permute.xlu0 %7110  ;;  %3550 = vmatpush.bf16.msra.mxu1 %v5991_v35  ;;  %v5988_v35 = vld [vmem:[%s13400_s3 + $0x10] sm:$0xff] }
 0x467   : > { %3129 = vrot.lane.b32.xlu1 %v14157_v5, %s8029_s23 }
 0x468   : > { %3551 = vmatpush.bf16.msra.mxu1 %v5990_v14 }
 0x469   : > { %v10861_v1 = vpop.permute.xlu1 %7100 }
 0x46a   : > { %v10885_v5 = vpop.permute.xlu2 %2943 }
 0x46b   : > { %14160 = vst [vmem:[#allocation131_spill] sm:$0xff] %v10885_v5  ;;  %v5987_v5 = vld [vmem:[%s13400_s3 + $0x8] sm:$0xff] }
 0x46c   : > { %v10879_v41 = vpop.permute.xlu0 %7125  ;;  %3552 = vmatpush.bf16.msra.mxu1 %v5989_v24 }
 0x470   : > { %3553 = vmatpush.bf16.msra.mxu1 %v5988_v35 }
 0x471   : > { %v10867_v15 = vpop.permute.xlu1 %7115 }
 0x472   : > { %v10897_v26 = vpop.permute.xlu2 %7160 }
 0x474   : > { %v10892_v6 = vpop.permute.xlu0 %7140  ;;  %3554 = vmatpush.bf16.msra.mxu1 %v5987_v5  ;;  %v3162_v5 = vsel %vm1486_vm5, 0.0, %v13663_v10  ;;  %v14169_v10 = vld [vmem:[#allocation52_spill] sm:$0xff] }
 0x475   : > { %14162 = vst [vmem:[#allocation133_spill] sm:$0xff] %v10892_v6  ;;  %v6802_v44 = vunpack.i.l.bf16 %v14169_v10 }
 0x478   : > { %3555 = vmatpush.bf16.msra.mxu1 %v5986_v43  ;;  %v3193_v43 = vsel %vm1585_vm8, %v3162_v5, %v6533_v8  ;;  %v6803_v8 = vunpack.i.h.bf16 %v14169_v10  ;;  %v7062_v5 = vunpack.i.l.bf16 %v10817_v19 }
 0x479   : > { %v10871_v50 = vpop.permute.xlu1 %7130  ;;  %v3224_v48 = vsel %vm1724_vm12, %v3193_v43, %v6687_v9  ;;  %v3225_v37 = vsel %vm1724_vm12, %v3193_v43, %v6688_v30 }
 0x47a   : > { %14159 = vst [vmem:[#allocation130_spill] sm:$0xff] %v10871_v50  ;;  %v10912_v62 = vpop.permute.xlu2 %7175  ;;  %v3257_v4 = vsel %vm3256_vm13, %v3224_v48, %v6702_v0  ;;  %v3258_v7 = vsel %vm3256_vm13, %v3225_v37, %v6703_v38 }
 0x47b   : > { %v3291_v30 = vsel %vm3289_vm14, %v3258_v7, %v6803_v8  ;;  %v14176_v7 = vld [vmem:[#allocation43_spill] sm:$0xff] }
 0x47c   : > { %v7151_v17 = vpop.permute.xlu0 %7150  ;;  %v3324_v16 = vsel %vm3322_vm15, %v3291_v30, %v7063_v59  ;;  %v14175_v59 = vld [vmem:[#allocation62_spill] sm:$0xff]  ;;  %v6698_v30 = vunpack.i.h.bf16 %v14176_v7 }
 0x47d   : > { %v7153_v9 = vunpack.i.h.bf16 %v7151_v17  ;;  %v7152_v20 = vunpack.i.l.bf16 %v7151_v17  ;;  %v6693_v17 = vunpack.i.h.bf16 %v14163_v34 }
 0x47f   : > { %v3357_v0 = vsel %vm3355_vm4, %v3324_v16, %v7153_v9  ;;  %v6708_v9 = vunpack.i.h.bf16 %v14175_v59 }
 0x481   : > { %v10887_v33 = vpop.permute.xlu1 %7145 }
 0x482   : > { %14161 = vst [vmem:[#allocation132_spill] sm:$0xff] %v10887_v33  ;;  %v10918_v35 = vpop.permute.xlu2 %7190 }
 0x484   : > { %v10914_v24 = vpop.permute.xlu0 %7165 }
 0x489   : > { %v10899_v63 = vpop.permute.xlu1 %7155 }
 0x48a   : > { %v10929_v6 = vpop.permute.xlu2 %7205 }
 0x48b   : > { %14165 = vst [vmem:[#allocation93_spill] sm:$0xff] %v10929_v6  ;;  %v3290_v6 = vsel %vm3289_vm14, %v3257_v4, %v6802_v44  ;;  %v14171_v4 = vld [vmem:[#allocation70_spill] sm:$0xff] }
 0x48c   : > { %v10923_v36 = vpop.permute.xlu0 %7180  ;;  %v3323_v43 = vsel %vm3322_vm15, %v3290_v6, %v7062_v5  ;;  %v6712_v6 = vunpack.i.l.bf16 %v14171_v4 }
 0x48d   : > { %v3356_v48 = vsel %vm3355_vm4, %v3323_v43, %v7152_v20  ;;  %v14174_v20 = vld [vmem:[#allocation17_spill] sm:$0xff]  ;;  %v6697_v43 = vunpack.i.l.bf16 %v14176_v7 }
 0x48e   : > { %v3163_v16 = vsel %vm1486_vm5, %v14174_v20, %v6693_v17  ;;  %v7078_v20 = vunpack.i.h.bf16 %v10849_v42 }
 0x491   : > { %v10907_v14 = vpop.permute.xlu1 %7170 }
 0x492   : > { %v10951_v10 = vpop.permute.xlu2 %7220 }
 0x493   : > { %14170 = vst [vmem:[#allocation26_spill] sm:$0xff] %v10951_v10  ;;  %v7158_v10 = vunpack.i.h.bf16 %v10899_v63 }
 0x499   : > { %v10916_v45 = vpop.permute.xlu1 %7185 }
 0x4a1   : > { %v10920_v33 = vpop.permute.xlu1 %7200 }
 0x4a9   : > { %v10932_v58 = vpop.permute.xlu1 %7215 }
 0x4aa   : > { %14166 = vst [vmem:[#allocation134_spill] sm:$0xff] %v10932_v58  ;;  %v10943_v58 = vpop.permute.xlu0 %7195 }
 0x4b1   : > { %v7226_v50 = vpop.permute.xlu1 %7225 }
 0x4b2   : > { %v7228_v49 = vunpack.i.h.bf16 %v7226_v50  ;;  %v7227_v19 = vunpack.i.l.bf16 %v7226_v50  ;;  %v10960_v8 = vpop.permute.xlu0 %7210  ;;  %v14173_v50 = vld [vmem:[#allocation25_spill] sm:$0xff] }
 0x4b3   : > { %14172 = vst [vmem:[#allocation89_spill] sm:$0xff] %v10960_v8  ;;  %v3164_v5 = vsel %vm1486_vm5, %v14173_v50, %v6712_v6  ;;  %v7231_v6 = vpop.permute.xlu2 %7230  ;;  %v3194_v50 = vsel %vm1585_vm8, %v3163_v16, %v6697_v43  ;;  %v14179_v43 = vld [vmem:[#allocation38_spill] sm:$0xff] }
 0x4b4   : > { %v3389_v38 = vsel %vm3388_vm6, %v3356_v48, %v7227_v19  ;;  %v3390_v44 = vsel %vm3388_vm6, %v3357_v0, %v7228_v49  ;;  %v6707_v49 = vunpack.i.l.bf16 %v14175_v59  ;;  %v14177_v19 = vld [vmem:[#allocation72_spill] sm:$0xff]  ;;  %v3195_v17 = vsel %vm1585_vm8, %v3164_v5, %v6698_v30 }
 0x4b5   : > { %v3421_v37 = vpack.c.bf16 %v3390_v44, %v3389_v38  ;;  %v6723_v48 = vunpack.i.h.bf16 %v14177_v19  ;;  %v6722_v0 = vunpack.i.l.bf16 %v14177_v19  ;;  %v14178_v38 = vld [vmem:[#allocation98_spill] sm:$0xff]  ;;  %v7077_v59 = vunpack.i.l.bf16 %v10849_v42 }
 0x4b6   : > { %v6843_v44 = vunpack.i.h.bf16 %v14178_v38  ;;  %v3226_v34 = vsel %vm1724_vm12, %v3194_v50, %v6707_v49  ;;  %v3227_v7 = vsel %vm1724_vm12, %v3195_v17, %v6708_v9  ;;  %v7157_v19 = vunpack.i.l.bf16 %v10899_v63  ;;  %v14181_v17 = vld [vmem:[#allocation68_spill] sm:$0xff] }
 0x4b7   : > { %5902 = vmatmul.msk.bf16.vlgmr.msra.gmra.mxu1 %vm3496_vm7, %v3421_v37  ;;  %v6842_v37 = vunpack.i.l.bf16 %v14178_v38  ;;  %v3259_v8 = vsel %vm3256_vm13, %v3226_v34, %v6722_v0  ;;  %v3260_v38 = vsel %vm3256_vm13, %v3227_v7, %v6723_v48  ;;  %v7233_v52 = vunpack.i.h.bf16 %v7231_v6  ;;  %v14182_v7 = vld [vmem:[#allocation47_spill] sm:$0xff] }
 0x4b8   : > { %v7232_v16 = vunpack.i.l.bf16 %v7231_v6  ;;  %v3293_v30 = vsel %vm3289_vm14, %v3260_v38, %v6843_v44  ;;  %v6732_v9 = vunpack.i.l.bf16 %v14179_v43  ;;  %v6727_v38 = vunpack.i.l.bf16 %v14182_v7 }
 0x4b9   : > { %v3292_v5 = vsel %vm3289_vm14, %v3259_v8, %v6842_v37  ;;  %v3326_v49 = vsel %vm3322_vm15, %v3293_v30, %v7078_v20  ;;  %v6713_v8 = vunpack.i.h.bf16 %v14171_v4  ;;  %v14180_v37 = vld [vmem:[#allocation81_spill] sm:$0xff]  ;;  %v6718_v20 = vunpack.i.h.bf16 %v14181_v17 }
 0x4ba   : > { %v3325_v42 = vsel %vm3322_vm15, %v3292_v5, %v7077_v59  ;;  %v10990_v50 = vpop.permute.xlu0 %3036  ;;  %v3359_v34 = vsel %vm3355_vm4, %v3326_v49, %v7158_v10  ;;  %v3166_v44 = vsel %vm1486_vm5, %v14180_v37, %v6732_v9  ;;  %v6717_v59 = vunpack.i.l.bf16 %v14181_v17 }
 0x4bb   : > { %v3358_v63 = vsel %vm3355_vm4, %v3325_v42, %v7157_v19  ;;  %v3392_v0 = vsel %vm3388_vm6, %v3359_v34, %v7233_v52  ;;  %v3197_v10 = vsel %vm1585_vm8, %v3166_v44, %v6718_v20  ;;  %v14183_v19 = vld [vmem:[#allocation37_spill] sm:$0xff]  ;;  %v6728_v52 = vunpack.i.h.bf16 %v14182_v7 }
 0x4bc   : > { %v3391_v48 = vsel %vm3388_vm6, %v3358_v63, %v7232_v16  ;;  %v3165_v16 = vsel %vm1486_vm5, %v14183_v19, %v6713_v8  ;;  %v6868_v42 = vunpack.i.h.bf16 %v10671_v13  ;;  %v6867_v49 = vunpack.i.l.bf16 %v10671_v13  ;;  %v14184_v63 = vld [vmem:[#allocation97_spill] sm:$0xff]  ;;  %v14185_v19 = vld [vmem:[#allocation39_spill] sm:$0xff] }
 0x4bd   : > { %v3422_v6 = vpack.c.bf16 %v3392_v0, %v3391_v48  ;;  %v3196_v4 = vsel %vm1585_vm8, %v3165_v16, %v6717_v59  ;;  %v3229_v30 = vsel %vm1724_vm12, %v3197_v10, %v6728_v52  ;;  %v6743_v34 = vunpack.i.h.bf16 %v14184_v63 }
 0x4be   : > { %v3228_v5 = vsel %vm1724_vm12, %v3196_v4, %v6727_v38  ;;  %v6742_v48 = vunpack.i.l.bf16 %v14184_v63  ;;  %v7088_v0 = vunpack.i.h.bf16 %v10855_v25  ;;  %v7087_v8 = vunpack.i.l.bf16 %v10855_v25 }
 0x4bf   : > { %v7163_v37 = vunpack.i.h.bf16 %v10897_v26  ;;  %v7162_v44 = vunpack.i.l.bf16 %v10897_v26  ;;  %v3262_v17 = vsel %vm3256_vm13, %v3229_v30, %v6743_v34  ;;  %v6752_v25 = vunpack.i.l.bf16 %v14185_v19  ;;  %v14186_v30 = vld [vmem:[#allocation21_spill] sm:$0xff] }
 0x4c0   : > { %v3295_v7 = vsel %vm3289_vm14, %v3262_v17, %v6868_v42 }
 0x4c1   : > { %v3328_v10 = vsel %vm3322_vm15, %v3295_v7, %v7088_v0  ;;  %v14188_v0 = vld [vmem:[#allocation92_spill] sm:$0xff] }
 0x4c2   : > { %v7236_v9 = vpop.permute.xlu0 %7235  ;;  %v3361_v26 = vsel %vm3355_vm4, %v3328_v10, %v7163_v37  ;;  %v14189_v37 = vld [vmem:[#allocation12_spill] sm:$0xff] }
 0x4c3   : > { %v7238_v20 = vunpack.i.h.bf16 %v7236_v9  ;;  %v7237_v59 = vunpack.i.l.bf16 %v7236_v9  ;;  %v14187_v9 = vld [vmem:[#allocation9_spill] sm:$0xff] }
 0x4c4   : > { %v6738_v63 = vunpack.i.h.bf16 %v14187_v9  ;;  %v6737_v34 = vunpack.i.l.bf16 %v14187_v9 }
 0x4c5   : > { %v3394_v4 = vsel %vm3388_vm6, %v3361_v26, %v7238_v20  ;;  %v6747_v20 = vunpack.i.l.bf16 %v14188_v0 }
 0x4c7   : > { %5903 = vmatmul.msk.bf16.gmra.mxu1 %vm3496_vm7, %v3422_v6  ;;  %v3261_v6 = vsel %vm3256_vm13, %v3228_v5, %v6742_v48  ;;  %v6733_v5 = vunpack.i.h.bf16 %v14179_v43  ;;  %v14190_v43 = vld [vmem:[#allocation56_spill] sm:$0xff] }
 0x4c8   : > { %v3294_v13 = vsel %vm3289_vm14, %v3261_v6, %v6867_v49  ;;  %v3168_v49 = vsel %vm1486_vm5, %v14186_v30, %v6752_v25  ;;  %v6762_v17 = vunpack.i.l.bf16 %v14190_v43  ;;  %v6763_v10 = vunpack.i.h.bf16 %v14190_v43  ;;  %v14192_v43 = vld [vmem:[#allocation7_spill] sm:$0xff] }
 0x4c9   : > { %v3327_v38 = vsel %vm3322_vm15, %v3294_v13, %v7087_v8  ;;  %v3199_v48 = vsel %vm1585_vm8, %v3168_v49, %v6738_v63  ;;  %v6748_v8 = vunpack.i.h.bf16 %v14188_v0  ;;  %v6877_v13 = vunpack.i.l.bf16 %v10680_v11 }
 0x4ca   : > { %v3360_v16 = vsel %vm3355_vm4, %v3327_v38, %v7162_v44  ;;  %v3167_v44 = vsel %vm1486_vm5, %v14189_v37, %v6733_v5  ;;  %v7241_v38 = vpop.permute.xlu1 %7240  ;;  %v7093_v25 = vunpack.i.h.bf16 %v10841_v39 }
 0x4cb   : > { %v3393_v52 = vsel %vm3388_vm6, %v3360_v16, %v7237_v59  ;;  %v3198_v6 = vsel %vm1585_vm8, %v3167_v44, %v6737_v34  ;;  %v6878_v59 = vunpack.i.h.bf16 %v10680_v11  ;;  %v3231_v7 = vsel %vm1724_vm12, %v3199_v48, %v6748_v8  ;;  %v14191_v8 = vld [vmem:[#allocation49_spill] sm:$0xff] }
 0x4cc   : > { %v3423_v42 = vpack.c.bf16 %v3394_v4, %v3393_v52  ;;  %v7092_v16 = vunpack.i.l.bf16 %v10841_v39  ;;  %v3230_v26 = vsel %vm1724_vm12, %v3198_v6, %v6747_v20  ;;  %v7168_v52 = vunpack.i.h.bf16 %v10914_v24  ;;  %v14193_v20 = vld [vmem:[#allocation16_spill] sm:$0xff] }
 0x4cd   : > { %v7167_v4 = vunpack.i.l.bf16 %v10914_v24  ;;  %v3263_v5 = vsel %vm3256_vm13, %v3230_v26, %v6762_v17  ;;  %v3264_v30 = vsel %vm3256_vm13, %v3231_v7, %v6763_v10  ;;  %v7243_v11 = vunpack.i.h.bf16 %v7241_v38  ;;  %v14195_v10 = vld [vmem:[#allocation41_spill] sm:$0xff] }
 0x4ce   : > { %v7242_v49 = vunpack.i.l.bf16 %v7241_v38  ;;  %v3297_v9 = vsel %vm3289_vm14, %v3264_v30, %v6878_v59  ;;  %v6772_v37 = vunpack.i.l.bf16 %v14191_v8  ;;  %v6753_v44 = vunpack.i.h.bf16 %v14185_v19  ;;  %v14196_v26 = vld [vmem:[#allocation69_spill] sm:$0xff]  ;;  %v7246_v30 = vpop.permute.xlu2 %7245 }
 0x4cf   : > { %v3330_v39 = vsel %vm3322_vm15, %v3297_v9, %v7093_v25  ;;  %v6758_v25 = vunpack.i.h.bf16 %v14195_v10  ;;  %v6782_v19 = vunpack.i.l.bf16 %v14196_v26  ;;  %v7097_v9 = vunpack.i.l.bf16 %v10857_v60 }
 0x4d0   : > { %v3363_v48 = vsel %vm3355_vm4, %v3330_v39, %v7168_v52  ;;  %v3170_v17 = vsel %vm1486_vm5, %v14192_v43, %v6772_v37  ;;  %v3169_v59 = vsel %vm1486_vm5, %v14193_v20, %v6753_v44  ;;  %v6783_v52 = vunpack.i.h.bf16 %v14196_v26  ;;  %v14199_v26 = vld [vmem:[#allocation61_spill] sm:$0xff] }
 0x4d1   : > { %v3396_v0 = vsel %vm3388_vm6, %v3363_v48, %v7243_v11  ;;  %v7172_v48 = vunpack.i.l.bf16 %v10907_v14  ;;  %v7247_v37 = vunpack.i.l.bf16 %v7246_v30 }
 0x4d7   : > { %5904 = vmatmul.msk.bf16.gmra.mxu1 %vm3496_vm7, %v3423_v42  ;;  %v3296_v42 = vsel %vm3289_vm14, %v3263_v5, %v6877_v13  ;;  %v14194_v13 = vld [vmem:[#allocation85_spill] sm:$0xff]  ;;  %v6902_v5 = vunpack.i.l.bf16 %v10678_v53 }
 0x4d8   : > { %v3329_v63 = vsel %vm3322_vm15, %v3296_v42, %v7092_v16  ;;  %v6768_v7 = vunpack.i.h.bf16 %v14194_v13  ;;  %v6767_v38 = vunpack.i.l.bf16 %v14194_v13  ;;  %v6757_v16 = vunpack.i.l.bf16 %v14195_v10  ;;  %v14198_v10 = vld [vmem:[#allocation35_spill] sm:$0xff] }
 0x4d9   : > { %v3362_v34 = vsel %vm3355_vm4, %v3329_v63, %v7167_v4  ;;  %v6903_v4 = vunpack.i.h.bf16 %v10678_v53  ;;  %v7098_v42 = vunpack.i.h.bf16 %v10857_v60 }
 0x4da   : > { %v3395_v24 = vsel %vm3388_vm6, %v3362_v34, %v7242_v49  ;;  %v3200_v11 = vsel %vm1585_vm8, %v3169_v59, %v6757_v16  ;;  %v3201_v49 = vsel %vm1585_vm8, %v3170_v17, %v6758_v25  ;;  %v7173_v34 = vunpack.i.h.bf16 %v10907_v14  ;;  %v14197_v17 = vld [vmem:[#allocation54_spill] sm:$0xff] }
 0x4db   : > { %v3424_v6 = vpack.c.bf16 %v3396_v0, %v3395_v24  ;;  %v3232_v63 = vsel %vm1724_vm12, %v3200_v11, %v6767_v38  ;;  %v3233_v39 = vsel %vm1724_vm12, %v3201_v49, %v6768_v7  ;;  %v7248_v0 = vunpack.i.h.bf16 %v7246_v30  ;;  %v14201_v11 = vld [vmem:[#allocation42_spill] sm:$0xff] }
 0x4dc   : > { %v3265_v24 = vsel %vm3256_vm13, %v3232_v63, %v6782_v19  ;;  %v3266_v53 = vsel %vm3256_vm13, %v3233_v39, %v6783_v52  ;;  %v6792_v20 = vunpack.i.l.bf16 %v14197_v17  ;;  %v6773_v38 = vunpack.i.h.bf16 %v14191_v8 }
 0x4dd   : > { %v3298_v44 = vsel %vm3289_vm14, %v3265_v24, %v6902_v5  ;;  %v6778_v52 = vunpack.i.h.bf16 %v14199_v26  ;;  %v6777_v19 = vunpack.i.l.bf16 %v14199_v26  ;;  %v6928_v39 = vunpack.i.h.bf16 %v10718_v29  ;;  %v14202_v24 = vld [vmem:[#allocation71_spill] sm:$0xff] }
 0x4de   : > { %v3331_v60 = vsel %vm3322_vm15, %v3298_v44, %v7097_v9  ;;  %v3172_v25 = vsel %vm1486_vm5, %v14198_v10, %v6792_v20  ;;  %v3171_v49 = vsel %vm1486_vm5, %v14201_v11, %v6773_v38  ;;  %v7102_v44 = vunpack.i.l.bf16 %v10861_v1  ;;  %v14203_v10 = vld [vmem:[#allocation87_spill] sm:$0xff] }
 0x4df   : > { %v3364_v59 = vsel %vm3355_vm4, %v3331_v60, %v7172_v48  ;;  %v3203_v30 = vsel %vm1585_vm8, %v3172_v25, %v6778_v52  ;;  %v3202_v8 = vsel %vm1585_vm8, %v3171_v49, %v6777_v19  ;;  %v7251_v48 = vpop.permute.xlu0 %7250  ;;  %v7177_v60 = vunpack.i.l.bf16 %v10912_v62  ;;  %v14204_v19 = vld [vmem:[#allocation22_spill] sm:$0xff] }
 0x4e0   : > { %v3397_v13 = vsel %vm3388_vm6, %v3364_v59, %v7247_v37  ;;  %v7103_v37 = vunpack.i.h.bf16 %v10861_v1  ;;  %v7253_v59 = vunpack.i.h.bf16 %v7251_v48  ;;  %v6817_v1 = vunpack.i.l.bf16 %v14203_v10 }
 0x4e1   : > { %v6793_v52 = vunpack.i.h.bf16 %v14197_v17  ;;  %v14208_v17 = vld [vmem:[#allocation73_spill] sm:$0xff] }
 0x4e7   : > { %5905 = vmatmul.msk.bf16.gmra.mxu1 %vm3496_vm7, %v3424_v6  ;;  %v3299_v6 = vsel %vm3289_vm14, %v3266_v53, %v6903_v4  ;;  %v14200_v4 = vld [vmem:[#allocation48_spill] sm:$0xff]  ;;  %v6808_v53 = vunpack.i.h.bf16 %v14202_v24 }
 0x4e8   : > { %v3332_v43 = vsel %vm3322_vm15, %v3299_v6, %v7098_v42  ;;  %v6787_v5 = vunpack.i.l.bf16 %v14200_v4  ;;  %v6788_v42 = vunpack.i.h.bf16 %v14200_v4  ;;  %v7178_v6 = vunpack.i.h.bf16 %v10912_v62 }
 0x4e9   : > { %v3365_v14 = vsel %vm3355_vm4, %v3332_v43, %v7173_v34  ;;  %v6927_v34 = vunpack.i.l.bf16 %v10718_v29  ;;  %v3174_v4 = vsel %vm1486_vm5, %v14204_v19, %v6817_v1  ;;  %v14209_v19 = vld [vmem:[#allocation34_spill] sm:$0xff] }
 0x4ea   : > { %v3398_v7 = vsel %vm3388_vm6, %v3365_v14, %v7248_v0  ;;  %v3234_v9 = vsel %vm1724_vm12, %v3202_v8, %v6787_v5  ;;  %v3235_v63 = vsel %vm1724_vm12, %v3203_v30, %v6788_v42  ;;  %v6807_v0 = vunpack.i.l.bf16 %v14202_v24  ;;  %v14205_v30 = vld [vmem:[#allocation94_spill] sm:$0xff]  ;;  %v14206_v8 = vld [vmem:[#allocation55_spill] sm:$0xff] }
 0x4eb   : > { %v3425_v16 = vpack.c.bf16 %v3398_v7, %v3397_v13  ;;  %v3268_v20 = vsel %vm3256_vm13, %v3235_v63, %v6808_v53  ;;  %v7252_v14 = vunpack.i.l.bf16 %v7251_v48  ;;  %v6798_v11 = vunpack.i.h.bf16 %v14205_v30  ;;  %v14207_v63 = vld [vmem:[#allocation18_spill] sm:$0xff] }
 0x4ec   : > { %v3267_v43 = vsel %vm3256_vm13, %v3234_v9, %v6807_v0  ;;  %v3301_v13 = vsel %vm3289_vm14, %v3268_v20, %v6928_v39  ;;  %v6797_v49 = vunpack.i.l.bf16 %v14205_v30  ;;  %v6813_v9 = vunpack.i.h.bf16 %v14206_v8  ;;  %v14210_v30 = vld [vmem:[#allocation31_spill] sm:$0xff] }
 0x4ed   : > { %v3300_v29 = vsel %vm3289_vm14, %v3267_v43, %v6927_v34  ;;  %v3334_v38 = vsel %vm3322_vm15, %v3301_v13, %v7103_v37  ;;  %v3205_v42 = vsel %vm1585_vm8, %v3174_v4, %v6798_v11  ;;  %v3173_v39 = vsel %vm1486_vm5, %v14207_v63, %v6793_v52  ;;  %v14213_v63 = vld [vmem:[#allocation51_spill] sm:$0xff] }
 0x4ee   : > { %v3333_v7 = vsel %vm3322_vm15, %v3300_v29, %v7102_v44  ;;  %v3367_v62 = vsel %vm3355_vm4, %v3334_v38, %v7178_v6  ;;  %v3204_v34 = vsel %vm1585_vm8, %v3173_v39, %v6797_v49  ;;  %v6827_v48 = vunpack.i.l.bf16 %v14208_v17  ;;  %v7256_v44 = vpop.permute.xlu1 %7255  ;;  %v14211_v49 = vld [vmem:[#allocation64_spill] sm:$0xff] }
 0x4ef   : > { %v3366_v25 = vsel %vm3355_vm4, %v3333_v7, %v7177_v60  ;;  %v3400_v26 = vsel %vm3388_vm6, %v3367_v62, %v7253_v59  ;;  %v6812_v24 = vunpack.i.l.bf16 %v14206_v8  ;;  %v6933_v53 = vunpack.i.h.bf16 %v10710_v22  ;;  %v14212_v8 = vld [vmem:[#allocation27_spill] sm:$0xff] }
 0x4f0   : > { %v6932_v0 = vunpack.i.l.bf16 %v10710_v22  ;;  %v3237_v37 = vsel %vm1724_vm12, %v3205_v42, %v6813_v9  ;;  %v6828_v6 = vunpack.i.h.bf16 %v14208_v17  ;;  %v7108_v60 = vunpack.i.h.bf16 %v10853_v3 }
 0x4f1   : > { %v7107_v43 = vunpack.i.l.bf16 %v10853_v3  ;;  %v3236_v20 = vsel %vm1724_vm12, %v3204_v34, %v6812_v24  ;;  %v7183_v59 = vunpack.i.h.bf16 %v10923_v36  ;;  %v7258_v22 = vunpack.i.h.bf16 %v7256_v44 }
 0x4f2   : > { %v3269_v29 = vsel %vm3256_vm13, %v3236_v20, %v6827_v48  ;;  %v3270_v13 = vsel %vm3256_vm13, %v3237_v37, %v6828_v6  ;;  %v7257_v7 = vunpack.i.l.bf16 %v7256_v44  ;;  %v6818_v52 = vunpack.i.h.bf16 %v14203_v10  ;;  %v14214_v10 = vld [vmem:[#allocation106_spill] sm:$0xff]  ;;  %v7261_v44 = vpop.permute.xlu2 %7260 }
 0x4f3   : > { %v3302_v38 = vsel %vm3289_vm14, %v3269_v29, %v6932_v0  ;;  %v3303_v1 = vsel %vm3289_vm14, %v3270_v13, %v6933_v53  ;;  %v6837_v4 = vunpack.i.l.bf16 %v14209_v19  ;;  %v6822_v42 = vunpack.i.l.bf16 %v14211_v49 }
 0x4f4   : > { %v3336_v3 = vsel %vm3322_vm15, %v3303_v1, %v7108_v60  ;;  %v3175_v11 = vsel %vm1486_vm5, %v14210_v30, %v6818_v52  ;;  %v6833_v39 = vunpack.i.h.bf16 %v14213_v63  ;;  %v6823_v34 = vunpack.i.h.bf16 %v14211_v49  ;;  %v14215_v52 = vld [vmem:[#allocation57_spill] sm:$0xff]  ;;  %v14216_v30 = vld [vmem:[#allocation99_spill] sm:$0xff] }
 0x4f5   : > { %v3176_v9 = vsel %vm1486_vm5, %v14212_v8, %v6837_v4  ;;  %v3206_v17 = vsel %vm1585_vm8, %v3175_v11, %v6822_v42  ;;  %v6853_v48 = vunpack.i.h.bf16 %v14214_v10  ;;  %v6852_v24 = vunpack.i.l.bf16 %v14214_v10 }
 0x4f6   : > { %v6832_v53 = vunpack.i.l.bf16 %v14213_v63  ;;  %v6938_v0 = vunpack.i.h.bf16 %v10708_v61  ;;  %v6937_v37 = vunpack.i.l.bf16 %v10708_v61  ;;  %v3207_v6 = vsel %vm1585_vm8, %v3176_v9, %v6823_v34  ;;  %v14217_v63 = vld [vmem:[#allocation29_spill] sm:$0xff] }
 0x4f7   : > { %5906 = vmatmul.msk.bf16.gmra.mxu1 %vm3496_vm7, %v3425_v16  ;;  %v3399_v16 = vsel %vm3388_vm6, %v3366_v25, %v7252_v14  ;;  %v7182_v14 = vunpack.i.l.bf16 %v10923_v36  ;;  %v3335_v25 = vsel %vm3322_vm15, %v3302_v38, %v7107_v43  ;;  %v7113_v60 = vunpack.i.h.bf16 %v10865_v32 }
 0x4f8   : > { %v3426_v5 = vpack.c.bf16 %v3400_v26, %v3399_v16  ;;  %v3369_v16 = vsel %vm3355_vm4, %v3336_v3, %v7183_v59  ;;  %v7112_v43 = vunpack.i.l.bf16 %v10865_v32  ;;  %v3239_v20 = vsel %vm1724_vm12, %v3207_v6, %v6833_v39 }
 0x4f9   : > { %v3368_v62 = vsel %vm3355_vm4, %v3335_v25, %v7182_v14  ;;  %v3402_v26 = vsel %vm3388_vm6, %v3369_v16, %v7258_v22  ;;  %v3238_v59 = vsel %vm1724_vm12, %v3206_v17, %v6832_v53  ;;  %v7188_v14 = vunpack.i.h.bf16 %v10916_v45  ;;  %v14218_v53 = vld [vmem:[#allocation104_spill] sm:$0xff] }
 0x4fa   : > { %v3401_v36 = vsel %vm3388_vm6, %v3368_v62, %v7257_v7  ;;  %v7187_v29 = vunpack.i.l.bf16 %v10916_v45  ;;  %v3271_v13 = vsel %vm3256_vm13, %v3238_v59, %v6852_v24  ;;  %v3272_v22 = vsel %vm3256_vm13, %v3239_v20, %v6853_v48  ;;  %v7266_v24 = vpop.permute.xlu0 %7265 }
 0x4fb   : > { %v7263_v61 = vunpack.i.h.bf16 %v7261_v44  ;;  %v7262_v7 = vunpack.i.l.bf16 %v7261_v44  ;;  %v3304_v38 = vsel %vm3289_vm14, %v3271_v13, %v6937_v37  ;;  %v3305_v1 = vsel %vm3289_vm14, %v3272_v22, %v6938_v0 }
 0x4fc   : > { %v3337_v32 = vsel %vm3322_vm15, %v3304_v38, %v7112_v43  ;;  %v3338_v25 = vsel %vm3322_vm15, %v3305_v1, %v7113_v60  ;;  %v6862_v3 = vunpack.i.l.bf16 %v10656_v12  ;;  %v6848_v11 = vunpack.i.h.bf16 %v14216_v30 }
 0x4fd   : > { %v3370_v62 = vsel %vm3355_vm4, %v3337_v32, %v7187_v29  ;;  %v3371_v45 = vsel %vm3355_vm4, %v3338_v25, %v7188_v14  ;;  %v6847_v49 = vunpack.i.l.bf16 %v14216_v30  ;;  %v6858_v42 = vunpack.i.h.bf16 %v10659_v54  ;;  %v14220_v30 = vld [vmem:[#allocation20_spill] sm:$0xff] }
 0x4fe   : > { %v3403_v16 = vsel %vm3388_vm6, %v3370_v62, %v7262_v7  ;;  %v3178_v4 = vsel %vm1486_vm5, %v14215_v52, %v6862_v3  ;;  %v6857_v8 = vunpack.i.l.bf16 %v10659_v54  ;;  %v6958_v10 = vunpack.i.h.bf16 %v10742_v40  ;;  %v14219_v3 = vld [vmem:[#allocation44_spill] sm:$0xff] }
 0x4ff   : > { %v3209_v9 = vsel %vm1585_vm8, %v3178_v4, %v6848_v11  ;;  %v6957_v48 = vunpack.i.l.bf16 %v10742_v40  ;;  %v6883_v54 = vunpack.i.h.bf16 %v14218_v53  ;;  %v6882_v0 = vunpack.i.l.bf16 %v14218_v53 }
 0x500   : > { %v3241_v34 = vsel %vm1724_vm12, %v3209_v9, %v6858_v42  ;;  %v7118_v37 = vunpack.i.h.bf16 %v10867_v15  ;;  %v7117_v44 = vunpack.i.l.bf16 %v10867_v15  ;;  %v7193_v6 = vunpack.i.h.bf16 %v10918_v35 }
 0x501   : > { %v7192_v60 = vunpack.i.l.bf16 %v10918_v35  ;;  %v3274_v20 = vsel %vm3256_vm13, %v3241_v34, %v6883_v54  ;;  %v7268_v59 = vunpack.i.h.bf16 %v7266_v24  ;;  %v7267_v14 = vunpack.i.l.bf16 %v7266_v24  ;;  %v11226_v35 = vld [vmem:[%s13401_s4] ss:$0 sm:$0xff] }
 0x502   : > { %v3307_v29 = vsel %vm3289_vm14, %v3274_v20, %v6958_v10  ;;  %v6892_v15 = vunpack.i.l.bf16 %v10698_v2  ;;  %v6863_v25 = vunpack.i.h.bf16 %v10656_v12  ;;  %v6887_v42 = vunpack.i.l.bf16 %v10644_v57 }
 0x503   : > { %v3340_v22 = vsel %vm3322_vm15, %v3307_v29, %v7118_v37  ;;  %v7122_v34 = vunpack.i.l.bf16 %v10863_v47 }
 0x504   : > { %v3373_v7 = vsel %vm3355_vm4, %v3340_v22, %v7193_v6  ;;  %v3180_v62 = vsel %vm1486_vm5, %v14219_v3, %v6892_v15  ;;  %v3179_v12 = vsel %vm1486_vm5, %v14220_v30, %v6863_v25  ;;  %v14221_v22 = vld [vmem:[#allocation96_spill] sm:$0xff]  ;;  %v6898_v3 = vunpack.i.h.bf16 %v10665_v23 }
 0x505   : > { %v3406_v1 = vsel %vm3388_vm6, %v3373_v7, %v7268_v59 }
 0x507   : > { %5907 = vmatmul.msk.bf16.gmra.mxu1 %vm3496_vm7, %v3426_v5  ;;  %v3427_v5 = vpack.c.bf16 %v3402_v26, %v3401_v36  ;;  %v3404_v36 = vsel %vm3388_vm6, %v3371_v45, %v7263_v61  ;;  %v6838_v26 = vunpack.i.h.bf16 %v14209_v19 }
 0x509   : > { %v3177_v39 = vsel %vm1486_vm5, %v14217_v63, %v6838_v26  ;;  %v6872_v26 = vunpack.i.l.bf16 %v10669_v27  ;;  %v7271_v63 = vpop.permute.xlu1 %7270 }
 0x50a   : > { %v3208_v19 = vsel %vm1585_vm8, %v3177_v39, %v6847_v49  ;;  %v6907_v49 = vunpack.i.l.bf16 %v10686_v28  ;;  %v6908_v39 = vunpack.i.h.bf16 %v10686_v28  ;;  %v7273_v54 = vunpack.i.h.bf16 %v7271_v63 }
 0x50b   : > { %v3240_v17 = vsel %vm1724_vm12, %v3208_v19, %v6857_v8  ;;  %v3210_v11 = vsel %vm1585_vm8, %v3179_v12, %v6872_v26  ;;  %v6967_v8 = vunpack.i.l.bf16 %v10763_v56  ;;  %v7123_v19 = vunpack.i.h.bf16 %v10863_v47  ;;  %v7276_v26 = vpop.permute.xlu2 %7275 }
 0x50c   : > { %v3273_v43 = vsel %vm3256_vm13, %v3240_v17, %v6882_v0  ;;  %v3242_v10 = vsel %vm1724_vm12, %v3210_v11, %v6887_v42  ;;  %v7272_v0 = vunpack.i.l.bf16 %v7271_v63  ;;  %v7203_v12 = vunpack.i.h.bf16 %v10920_v33 }
 0x50d   : > { %v3306_v40 = vsel %vm3289_vm14, %v3273_v43, %v6957_v48  ;;  %v7198_v48 = vunpack.i.h.bf16 %v10943_v58  ;;  %v6893_v43 = vunpack.i.h.bf16 %v10698_v2  ;;  %v6912_v2 = vunpack.i.l.bf16 %v10694_v31 }
 0x50e   : > { %v3339_v13 = vsel %vm3322_vm15, %v3306_v40, %v7117_v44  ;;  %v6917_v40 = vunpack.i.l.bf16 %v10696_v21  ;;  %v7278_v42 = vunpack.i.h.bf16 %v7276_v26 }
 0x50f   : > { %v3372_v61 = vsel %vm3355_vm4, %v3339_v13, %v7192_v60  ;;  %v3181_v15 = vsel %vm1486_vm5, %v14221_v22, %v6893_v43 }
 0x510   : > { %v3405_v38 = vsel %vm3388_vm6, %v3372_v61, %v7267_v14  ;;  %v6897_v61 = vunpack.i.l.bf16 %v10665_v23 }
 0x512   : > { %v3212_v25 = vsel %vm1585_vm8, %v3181_v15, %v6897_v61  ;;  %v14228_v61 = vld [vmem:[#allocation130_spill] sm:$0xff] }
 0x517   : > { %5908 = vmatmul.msk.bf16.gmra.mxu1 %vm3496_vm7, %v3427_v5  ;;  %v3428_v5 = vpack.c.bf16 %v3404_v36, %v3403_v16  ;;  %v3429_v16 = vpack.c.bf16 %v3406_v1, %v3405_v38  ;;  %v6873_v36 = vunpack.i.h.bf16 %v10669_v27  ;;  %v6968_v27 = vunpack.i.h.bf16 %v10763_v56  ;;  %v14222_v38 = vld [vmem:[#allocation58_spill] sm:$0xff] }
 0x518   : > { %v3275_v56 = vsel %vm3256_vm13, %v3242_v10, %v6907_v49  ;;  %v3182_v1 = vsel %vm1486_vm5, %v14222_v38, %v6917_v40 }
 0x519   : > { %v3211_v4 = vsel %vm1585_vm8, %v3180_v62, %v6873_v36  ;;  %v3308_v28 = vsel %vm3289_vm14, %v3275_v56, %v6967_v8  ;;  %v6943_v62 = vunpack.i.h.bf16 %v10722_v18  ;;  %v6992_v36 = vunpack.i.l.bf16 %v10761_v55 }
 0x51a   : > { %v3341_v44 = vsel %vm3322_vm15, %v3308_v28, %v7122_v34  ;;  %v6922_v28 = vunpack.i.l.bf16 %v10706_v51 }
 0x527   : > { %5909 = vmatmul.msk.bf16.gmra.mxu1 %vm3496_vm7, %v3428_v5  ;;  %v6888_v5 = vunpack.i.h.bf16 %v10644_v57  ;;  %v7197_v57 = vunpack.i.l.bf16 %v10943_v58 }
 0x529   : > { %v3243_v9 = vsel %vm1724_vm12, %v3211_v4, %v6888_v5  ;;  %v3374_v58 = vsel %vm3355_vm4, %v3341_v44, %v7197_v57  ;;  %v3244_v4 = vsel %vm1724_vm12, %v3212_v25, %v6912_v2  ;;  %v7127_v5 = vunpack.i.l.bf16 %v10879_v41 }
 0x52a   : > { %v3276_v53 = vsel %vm3256_vm13, %v3243_v9, %v6908_v39  ;;  %v3407_v20 = vsel %vm3388_vm6, %v3374_v58, %v7272_v0  ;;  %v6918_v57 = vunpack.i.h.bf16 %v10696_v21  ;;  %v6923_v0 = vunpack.i.h.bf16 %v10706_v51  ;;  %v14225_v58 = vld [vmem:[#allocation79_spill] sm:$0xff] }
 0x52b   : > { %v3309_v37 = vsel %vm3289_vm14, %v3276_v53, %v6968_v27  ;;  %v7277_v27 = vunpack.i.l.bf16 %v7276_v26  ;;  %v7132_v2 = vunpack.i.l.bf16 %v14228_v61 }
 0x52c   : > { %v3342_v6 = vsel %vm3322_vm15, %v3309_v37, %v7123_v19  ;;  %v6952_v19 = vunpack.i.l.bf16 %v10730_v46  ;;  %v14224_v37 = vld [vmem:[#allocation109_spill] sm:$0xff]  ;;  %v3183_v21 = vsel %vm1486_vm5, %v14225_v58, %v6918_v57 }
 0x52d   : > { %v3375_v60 = vsel %vm3355_vm4, %v3342_v6, %v7198_v48  ;;  %v3214_v43 = vsel %vm1585_vm8, %v3183_v21, %v6922_v28 }
 0x52e   : > { %v3408_v59 = vsel %vm3388_vm6, %v3375_v60, %v7273_v54  ;;  %v6948_v60 = vunpack.i.h.bf16 %v14224_v37 }
 0x52f   : > { %v3430_v13 = vpack.c.bf16 %v3408_v59, %v3407_v20  ;;  %v14226_v59 = vld [vmem:[#allocation119_spill] sm:$0xff] }
 0x530   : > { %v7017_v40 = vunpack.i.l.bf16 %v14226_v59 }
 0x534   : > { %v3557_v32 = vpop.f32.mrf.mxu1 }
 0x535   : > { %v3558_v45 = vadd.f32 %v11226_v35, %v3557_v32  ;;  %v6913_v32 = vunpack.i.h.bf16 %v10694_v31  ;;  %v7128_v31 = vunpack.i.h.bf16 %v10879_v41 }
 0x537   : > { %v3637_v52 = vmax.f32 %v3558_v45, 0.0  ;;  %5910 = vmatmul.msk.bf16.gmra.mxu1 %vm3496_vm7, %v3429_v16  ;;  %v6942_v45 = vunpack.i.l.bf16 %v10722_v18  ;;  %v6993_v16 = vunpack.i.h.bf16 %v10761_v55  ;;  %v7202_v18 = vunpack.i.l.bf16 %v10920_v33 }
 0x539   : > { %3701 = vrot.lane.b32.xlu2 %v3637_v52, %s8018_s20  ;;  %v3213_v52 = vsel %vm1585_vm8, %v3182_v1, %v6898_v3  ;;  %v3277_v55 = vsel %vm3256_vm13, %v3244_v4, %v6942_v45  ;;  %v14229_v1 = vld [vmem:[#allocation93_spill] sm:$0xff] }
 0x53a   : > { %v3245_v23 = vsel %vm1724_vm12, %v3213_v52, %v6913_v32  ;;  %v3310_v8 = vsel %vm3289_vm14, %v3277_v55, %v6992_v36  ;;  %v7208_v32 = vunpack.i.h.bf16 %v14229_v1  ;;  %v7207_v25 = vunpack.i.l.bf16 %v14229_v1 }
 0x53b   : > { %v3278_v49 = vsel %vm3256_vm13, %v3245_v23, %v6943_v62  ;;  %v3343_v63 = vsel %vm3322_vm15, %v3310_v8, %v7127_v5 }
 0x53c   : > { %v3559_v17 = vpop.f32.mrf.mxu1  ;;  %v3311_v9 = vsel %vm3289_vm14, %v3278_v49, %v6993_v16  ;;  %v3376_v33 = vsel %vm3355_vm4, %v3343_v63, %v7202_v18  ;;  %v14232_v63 = vld [vmem:[#allocation111_spill] sm:$0xff] }
 0x53d   : > { %v3560_v24 = vadd.f32 %v11226_v35, %v3559_v17  ;;  %v3344_v39 = vsel %vm3322_vm15, %v3311_v9, %v7128_v31  ;;  %v3409_v17 = vsel %vm3388_vm6, %v3376_v33, %v7277_v27  ;;  %v14231_v27 = vld [vmem:[#allocation32_spill] sm:$0xff] }
 0x53e   : > { %v3377_v34 = vsel %vm3355_vm4, %v3344_v39, %v7203_v12  ;;  %v6963_v39 = vunpack.i.h.bf16 %v14232_v63 }
 0x53f   : > { %v3638_v47 = vmax.f32 %v3560_v24, 0.0  ;;  %v3410_v10 = vsel %vm3388_vm6, %v3377_v34, %v7278_v42  ;;  %v14223_v24 = vld [vmem:[#allocation91_spill] sm:$0xff]  ;;  %v6953_v42 = vunpack.i.h.bf16 %v10730_v46 }
 0x540   : > { %v3184_v56 = vsel %vm1486_vm5, %v14223_v24, %v6952_v19  ;;  %v3431_v54 = vpack.c.bf16 %v3410_v10, %v3409_v17  ;;  %v6962_v19 = vunpack.i.l.bf16 %v14232_v63  ;;  %v14233_v17 = vld [vmem:[#allocation108_spill] sm:$0xff] }
 0x541   : > { %3703 = vrot.lane.b32.xlu0 %v3638_v47, %s8018_s20  ;;  %v6947_v47 = vunpack.i.l.bf16 %v14224_v37  ;;  %v3215_v6 = vsel %vm1585_vm8, %v3184_v56, %v6923_v0  ;;  %v6978_v10 = vunpack.i.h.bf16 %v14233_v17  ;;  %v14235_v24 = vld [vmem:[#allocation112_spill] sm:$0xff] }
 0x542   : > { %v3247_v51 = vsel %vm1724_vm12, %v3215_v6, %v6948_v60  ;;  %v6997_v56 = vunpack.i.l.bf16 %v14235_v24  ;;  %v14237_v6 = vld [vmem:[#allocation60_spill] sm:$0xff] }
 0x543   : > { %v3246_v20 = vsel %vm1724_vm12, %v3214_v43, %v6947_v47  ;;  %v7286_v47 = vpop.permute.xlu1 %7285  ;;  %v7138_v58 = vunpack.i.h.bf16 %v14237_v6  ;;  %v7137_v21 = vunpack.i.l.bf16 %v14237_v6 }
 0x544   : > { %v3562_v14 = vpop.f32.mrf.mxu1 }
 0x545   : > { %v3563_v29 = vadd.f32 %v11226_v35, %v3562_v14  ;;  %v7018_v14 = vunpack.i.h.bf16 %v14226_v59 }
 0x547   : > { %v3639_v7 = vmax.f32 %v3563_v29, 0.0  ;;  %5911 = vmatmul.msk.bf16.gmra.mxu1 %vm3496_vm7, %v3430_v13  ;;  %v7281_v29 = vpop.permute.xlu0 %7280  ;;  %v14227_v13 = vld [vmem:[#allocation107_spill] sm:$0xff] }
 0x548   : > { %v6973_v22 = vunpack.i.h.bf16 %v14227_v13  ;;  %v6972_v15 = vunpack.i.l.bf16 %v14227_v13  ;;  %v7283_v16 = vunpack.i.h.bf16 %v7281_v29  ;;  %v7282_v36 = vunpack.i.l.bf16 %v7281_v29 }
 0x549   : > { %3705 = vrot.lane.b32.xlu1 %v3639_v7, %s8018_s20  ;;  %v7133_v7 = vunpack.i.h.bf16 %v14228_v61  ;;  %v7288_v13 = vunpack.i.h.bf16 %v7286_v47 }
 0x54a   : > { %v3279_v62 = vsel %vm3256_vm13, %v3246_v20, %v6972_v15  ;;  %v3280_v45 = vsel %vm3256_vm13, %v3247_v51, %v6973_v22  ;;  %v14238_v20 = vld [vmem:[#allocation89_spill] sm:$0xff]  ;;  %v7287_v22 = vunpack.i.l.bf16 %v7286_v47 }
 0x54b   : > { %v3312_v26 = vsel %vm3289_vm14, %v3279_v62, %v7017_v40  ;;  %v3313_v52 = vsel %vm3289_vm14, %v3280_v45, %v7018_v14  ;;  %v7213_v51 = vunpack.i.h.bf16 %v14238_v20  ;;  %v7212_v59 = vunpack.i.l.bf16 %v14238_v20  ;;  %v14239_v45 = vld [vmem:[#allocation114_spill] sm:$0xff] }
 0x54c   : > { %v3564_v30 = vpop.f32.mrf.mxu1  ;;  %v3345_v31 = vsel %vm3322_vm15, %v3312_v26, %v7132_v2  ;;  %v3346_v5 = vsel %vm3322_vm15, %v3313_v52, %v7133_v7  ;;  %v14240_v26 = vld [vmem:[#allocation83_spill] sm:$0xff]  ;;  %v14248_v20 = vld [vmem:[#allocation122_spill] sm:$0xff] }
 0x54d   : > { %v3565_v11 = vadd.f32 %v11226_v35, %v3564_v30  ;;  %v14230_v30 = vld [vmem:[#allocation115_spill] sm:$0xff]  ;;  %v3378_v12 = vsel %vm3355_vm4, %v3345_v31, %v7207_v25  ;;  %v3379_v18 = vsel %vm3355_vm4, %v3346_v5, %v7208_v32  ;;  %v14241_v5 = vld [vmem:[#allocation110_spill] sm:$0xff] }
 0x54e   : > { %v6982_v23 = vunpack.i.l.bf16 %v14230_v30  ;;  %v3412_v55 = vsel %vm3388_vm6, %v3379_v18, %v7283_v16  ;;  %v6983_v1 = vunpack.i.h.bf16 %v14230_v30  ;;  %v7007_v16 = vunpack.i.l.bf16 %v14239_v45  ;;  %v14243_v18 = vld [vmem:[#allocation113_spill] sm:$0xff] }
 0x54f   : > { %v3640_v41 = vmax.f32 %v3565_v11, 0.0  ;;  %v3411_v11 = vsel %vm3388_vm6, %v3378_v12, %v7282_v36  ;;  %v6987_v30 = vunpack.i.l.bf16 %v14241_v5 }
 0x550   : > { %v3186_v8 = vsel %vm1486_vm5, %v14231_v27, %v6982_v23  ;;  %v3187_v52 = vsel %vm1486_vm5, %v14240_v26, %v6983_v1  ;;  %v14242_v23 = vld [vmem:[#allocation80_spill] sm:$0xff] }
 0x551   : > { %3707 = vrot.lane.b32.xlu2 %v3640_v41, %s8018_s20  ;;  %v3432_v41 = vpack.c.bf16 %v3412_v55, %v3411_v11  ;;  %v3217_v34 = vsel %vm1585_vm8, %v3186_v8, %v6963_v39  ;;  %v3188_v12 = vsel %vm1486_vm5, %v14242_v23, %v7007_v16  ;;  %v7003_v11 = vunpack.i.h.bf16 %v14243_v18  ;;  %v14244_v8 = vld [vmem:[#allocation118_spill] sm:$0xff]  ;;  %v14245_v39 = vld [vmem:[#allocation117_spill] sm:$0xff] }
 0x552   : > { %v3249_v37 = vsel %vm1724_vm12, %v3217_v34, %v6978_v10  ;;  %v7002_v55 = vunpack.i.l.bf16 %v14243_v18  ;;  %v3218_v27 = vsel %vm1585_vm8, %v3187_v52, %v6987_v30  ;;  %v14254_v18 = vld [vmem:[#allocation120_spill] sm:$0xff] }
 0x554   : > { %v3567_v48 = vpop.f32.mrf.mxu1 }
 0x555   : > { %v3568_v53 = vadd.f32 %v11226_v35, %v3567_v48  ;;  %v14234_v48 = vld [vmem:[#allocation24_spill] sm:$0xff] }
 0x556   : > { %v3185_v46 = vsel %vm1486_vm5, %v14234_v48, %v6953_v42  ;;  %v6988_v42 = vunpack.i.h.bf16 %v14241_v5 }
 0x557   : > { %v3641_v44 = vmax.f32 %v3568_v53, 0.0  ;;  %5912 = vmatmul.msk.bf16.gmra.mxu1 %vm3496_vm7, %v3431_v54  ;;  %v3216_v57 = vsel %vm1585_vm8, %v3185_v46, %v6962_v19  ;;  %v6977_v53 = vunpack.i.l.bf16 %v14233_v17  ;;  %v14236_v54 = vld [vmem:[#allocation127_spill] sm:$0xff]  ;;  %v7048_v19 = vunpack.i.h.bf16 %v14245_v39  ;;  %v7291_v17 = vpop.permute.xlu2 %7290  ;;  %v14246_v46 = vld [vmem:[#allocation133_spill] sm:$0xff] }
 0x558   : > { %v7043_v0 = vunpack.i.h.bf16 %v14236_v54  ;;  %v7042_v28 = vunpack.i.l.bf16 %v14236_v54  ;;  %v3219_v63 = vsel %vm1585_vm8, %v3188_v12, %v6988_v42  ;;  %v14247_v54 = vld [vmem:[#allocation134_spill] sm:$0xff]  ;;  %v7293_v47 = vunpack.i.h.bf16 %v7291_v17  ;;  %v7296_v12 = vpop.permute.xlu0 %7295 }
 0x559   : > { %3709 = vrot.lane.b32.xlu0 %v3641_v44, %s8018_s20  ;;  %v6998_v44 = vunpack.i.h.bf16 %v14235_v24  ;;  %v3248_v43 = vsel %vm1724_vm12, %v3216_v57, %v6977_v53  ;;  %v3251_v34 = vsel %vm1724_vm12, %v3219_v63, %v7003_v11  ;;  %v7143_v57 = vunpack.i.h.bf16 %v14246_v46 }
 0x55a   : > { %v3281_v40 = vsel %vm3256_vm13, %v3248_v43, %v6997_v56  ;;  %v7142_v24 = vunpack.i.l.bf16 %v14246_v46  ;;  %v7047_v53 = vunpack.i.l.bf16 %v14245_v39  ;;  %v7053_v11 = vunpack.i.h.bf16 %v14254_v18 }
 0x55b   : > { %v3282_v29 = vsel %vm3256_vm13, %v3249_v37, %v6998_v44  ;;  %v3314_v15 = vsel %vm3289_vm14, %v3281_v40, %v7042_v28  ;;  %v7217_v28 = vunpack.i.l.bf16 %v14247_v54  ;;  %v7292_v44 = vunpack.i.l.bf16 %v7291_v17 }
 0x55c   : > { %v3569_v38 = vpop.f32.mrf.mxu1  ;;  %v3315_v61 = vsel %vm3289_vm14, %v3282_v29, %v7043_v0  ;;  %v3347_v2 = vsel %vm3322_vm15, %v3314_v15, %v7137_v21  ;;  %v7218_v0 = vunpack.i.h.bf16 %v14247_v54  ;;  %v14249_v15 = vld [vmem:[#allocation50_spill] sm:$0xff]  ;;  %v7297_v17 = vunpack.i.l.bf16 %v7296_v12 }
 0x55d   : > { %v3570_v3 = vadd.f32 %v11226_v35, %v3569_v38  ;;  %v3348_v38 = vsel %vm3322_vm15, %v3315_v61, %v7138_v58  ;;  %v3380_v32 = vsel %vm3355_vm4, %v3347_v2, %v7212_v59 }
 0x55e   : > { %v3381_v25 = vsel %vm3355_vm4, %v3348_v38, %v7213_v51  ;;  %v7032_v51 = vunpack.i.l.bf16 %v14248_v20  ;;  %v14250_v38 = vld [vmem:[#allocation116_spill] sm:$0xff] }
 0x55f   : > { %v3642_v4 = vmax.f32 %v3570_v3, 0.0  ;;  %v3413_v3 = vsel %vm3388_vm6, %v3380_v32, %v7287_v22  ;;  %v3414_v62 = vsel %vm3388_vm6, %v3381_v25, %v7288_v13  ;;  %v7008_v22 = vunpack.i.h.bf16 %v14239_v45  ;;  %v14251_v25 = vld [vmem:[#allocation121_spill] sm:$0xff] }
 0x560   : > { %v3433_v31 = vpack.c.bf16 %v3414_v62, %v3413_v3  ;;  %v3190_v61 = vsel %vm1486_vm5, %v14249_v15, %v7032_v51  ;;  %v7013_v1 = vunpack.i.h.bf16 %v14250_v38  ;;  %v7012_v32 = vunpack.i.l.bf16 %v14250_v38  ;;  %v14263_v38 = vld [vmem:[#allocation129_spill] sm:$0xff] }
 0x561   : > { %3711 = vrot.lane.b32.xlu1 %v3642_v4, %s8018_s20  ;;  %v7027_v3 = vunpack.i.l.bf16 %v14251_v25  ;;  %v7028_v26 = vunpack.i.h.bf16 %v14251_v25 }
 0x562   : > { %v3221_v16 = vsel %vm1585_vm8, %v3190_v61, %v7013_v1  ;;  %v14262_v61 = vld [vmem:[#allocation128_spill] sm:$0xff]  ;;  %v7083_v1 = vunpack.i.h.bf16 %v14263_v38 }
 0x563   : > { %v3253_v23 = vsel %vm1724_vm12, %v3221_v16, %v7028_v26 }
 0x564   : > { %v3572_v49 = vpop.f32.mrf.mxu1 }
 0x565   : > { %v3573_v9 = vadd.f32 %v11226_v35, %v3572_v49 }
 0x567   : > { %v3643_v33 = vmax.f32 %v3573_v9, 0.0  ;;  %5913 = vmatmul.msk.bf16.gmra.mxu1 %vm3496_vm7, %v3432_v41  ;;  %v7023_v9 = vunpack.i.h.bf16 %v14244_v8  ;;  %v7022_v41 = vunpack.i.l.bf16 %v14244_v8 }
 0x569   : > { %3713 = vrot.lane.b32.xlu2 %v3643_v33, %s8018_s20  ;;  %v3250_v33 = vsel %vm1724_vm12, %v3218_v27, %v7002_v55  ;;  %v3284_v48 = vsel %vm3256_vm13, %v3251_v34, %v7023_v9  ;;  %v7052_v55 = vunpack.i.l.bf16 %v14254_v18  ;;  %v14256_v9 = vld [vmem:[#allocation26_spill] sm:$0xff]  ;;  %v7298_v34 = vunpack.i.h.bf16 %v7296_v12 }
 0x56a   : > { %v3283_v10 = vsel %vm3256_vm13, %v3250_v33, %v7022_v41  ;;  %v3317_v58 = vsel %vm3289_vm14, %v3284_v48, %v7048_v19  ;;  %v7223_v41 = vunpack.i.h.bf16 %v14256_v9  ;;  %v7222_v63 = vunpack.i.l.bf16 %v14256_v9 }
 0x56b   : > { %v3316_v6 = vsel %vm3289_vm14, %v3283_v10, %v7047_v53  ;;  %v3350_v43 = vsel %vm3322_vm15, %v3317_v58, %v7143_v57  ;;  %v3286_v33 = vsel %vm3256_vm13, %v3253_v23, %v7053_v11  ;;  %v14258_v58 = vld [vmem:[#allocation102_spill] sm:$0xff] }
 0x56c   : > { %v3574_v60 = vpop.f32.mrf.mxu1 }
 0x56d   : > { %v3575_v14 = vadd.f32 %v11226_v35, %v3574_v60  ;;  %v3349_v60 = vsel %vm3322_vm15, %v3316_v6, %v7142_v24 }
 0x56e   : > { %v3382_v59 = vsel %vm3355_vm4, %v3349_v60, %v7217_v28  ;;  %v14259_v60 = vld [vmem:[#allocation123_spill] sm:$0xff] }
 0x56f   : > { %v3644_v7 = vmax.f32 %v3575_v14, 0.0  ;;  %v3383_v14 = vsel %vm3355_vm4, %v3350_v43, %v7218_v0  ;;  %v3415_v40 = vsel %vm3388_vm6, %v3382_v59, %v7292_v44  ;;  %v14257_v0 = vld [vmem:[#allocation125_spill] sm:$0xff]  ;;  %v14260_v43 = vld [vmem:[#allocation103_spill] sm:$0xff] }
 0x570   : > { %v3416_v29 = vsel %vm3388_vm6, %v3383_v14, %v7293_v47  ;;  %v7038_v28 = vunpack.i.h.bf16 %v14257_v0 }
 0x571   : > { %3715 = vrot.lane.b32.xlu0 %v3644_v7, %s8018_s20  ;;  %v3434_v2 = vpack.c.bf16 %v3416_v29, %v3415_v40  ;;  %v14261_v29 = vld [vmem:[#allocation126_spill] sm:$0xff] }
 0x574   : > { %v3577_v36 = vpop.f32.mrf.mxu1 }
 0x575   : > { %v3578_v4 = vadd.f32 %v11226_v35, %v3577_v36  ;;  %v14252_v36 = vld [vmem:[#allocation88_spill] sm:$0xff] }
 0x576   : > { %v3189_v45 = vsel %vm1486_vm5, %v14252_v36, %v7008_v22  ;;  %v7067_v22 = vunpack.i.l.bf16 %v14261_v29 }
 0x577   : > { %v3645_v49 = vmax.f32 %v3578_v4, 0.0  ;;  %5914 = vmatmul.msk.bf16.gmra.mxu1 %vm3496_vm7, %v3433_v31  ;;  %v3220_v52 = vsel %vm1585_vm8, %v3189_v45, %v7012_v32  ;;  %v14253_v31 = vld [vmem:[#allocation124_spill] sm:$0xff]  ;;  %v7082_v32 = vunpack.i.l.bf16 %v14263_v38 }
 0x578   : > { %v3252_v4 = vsel %vm1724_vm12, %v3220_v52, %v7027_v3  ;;  %v7058_v5 = vunpack.i.h.bf16 %v14253_v31  ;;  %v7057_v30 = vunpack.i.l.bf16 %v14253_v31 }
 0x579   : > { %3717 = vrot.lane.b32.xlu1 %v3645_v49, %s8018_s20  ;;  %v14255_v49 = vld [vmem:[#allocation132_spill] sm:$0xff]  ;;  %v3285_v19 = vsel %vm3256_vm13, %v3252_v4, %v7052_v55  ;;  %v3130_v4 = vpop.permute.xlu1 %3129 }
 0x57a   : > { %v7148_v42 = vunpack.i.h.bf16 %v14255_v49  ;;  %v7147_v27 = vunpack.i.l.bf16 %v14255_v49  ;;  %v3318_v10 = vsel %vm3289_vm14, %v3285_v19, %v7057_v30  ;;  %v3319_v48 = vsel %vm3289_vm14, %v3286_v33, %v7058_v5  ;;  %v14264_v5 = vld [vmem:[#allocation131_spill] sm:$0xff] }
 0x57c   : > { %v3579_v56 = vpop.f32.mrf.mxu1  ;;  %v3351_v57 = vsel %vm3322_vm15, %v3318_v10, %v7147_v27  ;;  %v3352_v24 = vsel %vm3322_vm15, %v3319_v48, %v7148_v42  ;;  %v14268_v48 = vld [vmem:[#allocation15_spill] sm:$0xff] }
 0x57d   : > { %v3580_v37 = vadd.f32 %v11226_v35, %v3579_v56  ;;  %v7033_v56 = vunpack.i.h.bf16 %v14248_v20  ;;  %v3384_v53 = vsel %vm3355_vm4, %v3351_v57, %v7222_v63  ;;  %v3385_v54 = vsel %vm3355_vm4, %v3352_v24, %v7223_v41  ;;  %v14265_v41 = vld [vmem:[#allocation82_spill] sm:$0xff] }
 0x57e   : > { %v3417_v47 = vsel %vm3388_vm6, %v3384_v53, %v7297_v17  ;;  %v3418_v44 = vsel %vm3388_vm6, %v3385_v54, %v7298_v34  ;;  %v3192_v20 = vsel %vm1486_vm5, %v14260_v43, %v14259_v60  ;;  %v14270_v57 = vld [vmem:[#allocation78_spill] sm:$0xff] }
 0x57f   : > { %v3646_v21 = vmax.f32 %v3580_v37, 0.0  ;;  %v7037_v37 = vunpack.i.l.bf16 %v14257_v0  ;;  %v3435_v59 = vpack.c.bf16 %v3418_v44, %v3417_v47  ;;  %v3223_v14 = vsel %vm1585_vm8, %v3192_v20, %v7038_v28 }
 0x581   : > { %3719 = vrot.lane.b32.xlu2 %v3646_v21, %s8018_s20  ;;  %v3191_v21 = vsel %vm1486_vm5, %v14258_v58, %v7033_v56 }
 0x582   : > { %v3222_v40 = vsel %vm1585_vm8, %v3191_v21, %v7037_v37  ;;  %vm4958_vm8 = vcmask 326656  }
 0x583   : > { %v3254_v25 = vsel %vm1724_vm12, %v3222_v40, %v7067_v22 }
 0x584   : > { %v3582_v13 = vpop.f32.mrf.mxu1 }
 0x585   : > { %v3583_v7 = vadd.f32 %v11226_v35, %v3582_v13  ;;  %v7068_v13 = vunpack.i.h.bf16 %v14261_v29 }
 0x587   : > { %v3647_v62 = vmax.f32 %v3583_v7, 0.0  ;;  %5915 = vmatmul.msk.bf16.gmra.mxu1 %vm3496_vm7, %v3434_v2  ;;  %v7073_v7 = vunpack.i.h.bf16 %v14262_v61  ;;  %v7072_v2 = vunpack.i.l.bf16 %v14262_v61  ;;  %v3255_v3 = vsel %vm1724_vm12, %v3223_v14, %v7068_v13 }
 0x589   : > { %3721 = vrot.lane.b32.xlu0 %v3647_v62, %s8018_s20  ;;  %v3287_v62 = vsel %vm3256_vm13, %v3254_v25, %v7072_v2  ;;  %v3288_v16 = vsel %vm3256_vm13, %v3255_v3, %v7073_v7 }
 0x58a   : > { %v3320_v45 = vsel %vm3289_vm14, %v3287_v62, %v7082_v32  ;;  %v3321_v26 = vsel %vm3289_vm14, %v3288_v16, %v7083_v1 }
 0x58b   : > { %v3353_v30 = vsel %vm3322_vm15, %v3320_v45, %v14264_v5  ;;  %v3354_v23 = vsel %vm3322_vm15, %v3321_v26, %v14264_v5 }
 0x58c   : > { %v3584_v8 = vpop.f32.mrf.mxu1  ;;  %v3386_v12 = vsel %vm3355_vm4, %v3353_v30, %v10990_v50  ;;  %v3387_v18 = vsel %vm3355_vm4, %v3354_v23, %v10990_v50 }
 0x58d   : > { %v3585_v39 = vadd.f32 %v11226_v35, %v3584_v8  ;;  %v3419_v11 = vsel %vm3388_vm6, %v3386_v12, %v3130_v4  ;;  %v3420_v55 = vsel %vm3388_vm6, %v3387_v18, %v3130_v4 }
 0x58e   : > { %v3436_v42 = vpack.c.bf16 %v3420_v55, %v3419_v11 }
 0x58f   : > { %v3648_v46 = vmax.f32 %v3585_v39, 0.0 }
 0x591   : > { %3723 = vrot.lane.b32.xlu1 %v3648_v46, %s8018_s20 }
 0x593   : > { %v3702_v9 = vpop.permute.xlu2 %3701 }
 0x594   : > { %v3587_v6 = vpop.f32.mrf.mxu1  ;;  %v11495_v63 = vsel %vm1486_vm5, %v14265_v41, %v3702_v9 }
 0x595   : > { %v3588_v51 = vadd.f32 %v11226_v35, %v3587_v6  ;;  %14266 = vst [vmem:[#allocation52_spill] sm:$0xff] %v11495_v63  ;;  %v3861_v19 = vrot.slane %v11495_v63, 7 }
 0x597   : > { %v3649_v15 = vmax.f32 %v3588_v51, 0.0  ;;  %5916 = vmatmul.msk.bf16.gmra.mxu1 %vm3496_vm7, %v3435_v59  ;;  %v11501_v17 = vsel %vm342_vm0, 0.0, %v3861_v19 }
 0x598   : > { %14267 = vst [vmem:[#allocation70_spill] sm:$0xff] %v11501_v17  ;;  %v4018_v0 = vrot.slane %v11501_v17, 1  ;;  %v4186_v28 = vrot.slane %v11501_v17, 2 }
 0x599   : > { %3725 = vrot.lane.b32.xlu2 %v3649_v15, %s8018_s20  ;;  %v14273_v15 = vld [vmem:[#allocation8_spill] sm:$0xff] }
 0x59c   : > { %v3589_v36 = vpop.f32.mrf.mxu1 }
 0x59d   : > { %v3590_v52 = vadd.f32 %v11226_v35, %v3589_v36 }
 0x59f   : > { %v3650_v31 = vmax.f32 %v3590_v52, 0.0 }
 0x5a1   : > { %3727 = vrot.lane.b32.xlu0 %v3650_v31, %s8018_s20 }
 0x5a4   : > { %v3592_v49 = vpop.f32.mrf.mxu1 }
 0x5a5   : > { %v3593_v27 = vadd.f32 %v11226_v35, %v3592_v49  ;;  %v14277_v49 = vld [vmem:[#allocation10_spill] sm:$0xff] }
 0x5a7   : > { %v3651_v8 = vmax.f32 %v3593_v27, 0.0  ;;  %5917 = vmatmul.msk.bf16.gmra.mxu1 %vm3496_vm7, %v3436_v42 }
 0x5a9   : > { %3729 = vrot.lane.b32.xlu1 %v3651_v8, %s8018_s20 }
 0x5ab   : > { %v3708_v34 = vpop.permute.xlu2 %3707 }
 0x5ac   : > { %v3594_v50 = vpop.f32.mrf.mxu1  ;;  %v11505_v46 = vsel %vm1486_vm5, %v14268_v48, %v3708_v34 }
 0x5ad   : > { %v3595_v39 = vadd.f32 %v11226_v35, %v3594_v50  ;;  %14269 = vst [vmem:[#allocation25_spill] sm:$0xff] %v11505_v46  ;;  %v3865_v37 = vrot.slane %v11505_v46, 7 }
 0x5af   : > { %v3652_v33 = vmax.f32 %v3595_v39, 0.0  ;;  %v3973_v40 = vsel %vm342_vm0, %v3865_v37, 0.0 }
 0x5b0   : > { %v4026_v1 = vrot.slane %v3973_v40, 1  ;;  %v4194_v32 = vrot.slane %v3973_v40, 2 }
 0x5b1   : > { %3731 = vrot.lane.b32.xlu2 %v3652_v33, %s8018_s20  ;;  %v14279_v33 = vld [vmem:[#allocation74_spill] sm:$0xff] }
 0x5b3   : > { %v3704_v10 = vpop.permute.xlu0 %3703 }
 0x5b4   : > { %v11509_v24 = vsel %vm1486_vm5, %v14270_v57, %v3704_v10  ;;  %v3597_v56 = vpop.f32.mrf.mxu1 }
 0x5b5   : > { %14271 = vst [vmem:[#allocation17_spill] sm:$0xff] %v11509_v24  ;;  %v3862_v53 = vrot.slane %v11509_v24, 7  ;;  %v3598_v54 = vadd.f32 %v11226_v35, %v3597_v56 }
 0x5b7   : > { %v11517_v47 = vsel %vm342_vm0, %v3861_v19, %v3862_v53  ;;  %v3972_v44 = vsel %vm342_vm0, %v3862_v53, 0.0  ;;  %v3653_v6 = vmax.f32 %v3598_v54, 0.0 }
 0x5b8   : > { %14272 = vst [vmem:[#allocation62_spill] sm:$0xff] %v11517_v47  ;;  %v4019_v58 = vrot.slane %v11517_v47, 1  ;;  %v4021_v21 = vrot.slane %v3972_v44, 1  ;;  %v4187_v60 = vrot.slane %v11517_v47, 2  ;;  %v4189_v43 = vrot.slane %v3972_v44, 2 }
 0x5b9   : > { %3733 = vrot.lane.b32.xlu0 %v3653_v6, %s8018_s20 }
 0x5ba   : > { %v11524_v20 = vsel %vm501_vm1, %v4019_v58, %v4021_v21  ;;  %v11527_v51 = vsel %vm501_vm1, %v4018_v0, %v4019_v58  ;;  %v11530_v59 = vsel %vm672_vm2, %v4186_v28, %v4187_v60  ;;  %v11533_v14 = vsel %vm672_vm2, %v4187_v60, %v4189_v43 }
 0x5bb   : > { %v3706_v29 = vpop.permute.xlu1 %3705  ;;  %v14327_v63 = vpack.i.bf16 %v11524_v20, %v11527_v51 }
 0x5bc   : > { %v11542_v61 = vsel %vm1486_vm5, %v14273_v15, %v3706_v29  ;;  %v3599_v7 = vpop.f32.mrf.mxu1 }
 0x5bd   : > { %14274 = vst [vmem:[#allocation43_spill] sm:$0xff] %v11542_v61  ;;  %v3864_v2 = vrot.slane %v11542_v61, 7  ;;  %v3600_v38 = vadd.f32 %v11226_v35, %v3599_v7 }
 0x5bf   : > { %v11547_v25 = vsel %vm342_vm0, %v3864_v2, %v3865_v37  ;;  %v11550_v3 = vsel %vm342_vm0, 0.0, %v3864_v2  ;;  %v3654_v62 = vmax.f32 %v3600_v38, 0.0  ;;  %v14281_v2 = vld [vmem:[#allocation5_spill] sm:$0xff] }
 0x5c0   : > { %14275 = vst [vmem:[#allocation72_spill] sm:$0xff] %v11547_v25  ;;  %v4023_v16 = vrot.slane %v11550_v3, 1  ;;  %v4024_v36 = vrot.slane %v11547_v25, 1  ;;  %v4191_v45 = vrot.slane %v11550_v3, 2  ;;  %v4192_v26 = vrot.slane %v11547_v25, 2 }
 0x5c1   : > { %14276 = vst [vmem:[#allocation98_spill] sm:$0xff] %v11550_v3  ;;  %3735 = vrot.lane.b32.xlu1 %v3654_v62, %s8018_s20 }
 0x5c2   : > { %v4025_v52 = vsel %vm501_vm1, %v4023_v16, %v4024_v36  ;;  %v4027_v4 = vsel %vm501_vm1, %v4024_v36, %v4026_v1  ;;  %v11560_v31 = vsel %vm672_vm2, %v4191_v45, %v4192_v26  ;;  %v11563_v5 = vsel %vm672_vm2, %v4192_v26, %v4194_v32  ;;  %v14283_v45 = vld [vmem:[#allocation13_spill] sm:$0xff] }
 0x5c3   : > { %v11565_v30 = vpack.i.bf16 %v4027_v4, %v4025_v52  ;;  %v11569_v12 = vpack.i.bf16 %v11563_v5, %v11560_v31  ;;  %v7304_v50 = vpack.i.bf16 %v4025_v52, %v11524_v20  ;;  %v3714_v21 = vpop.permute.xlu2 %3713  ;;  %v7299_v26 = vpack.i.bf16 %v11527_v51, %v14283_v45  ;;  %v14331_v51 = vld [vmem:[#allocation86_spill] sm:$0xff] }
 0x5c4   : > { %v3602_v23 = vpop.f32.mrf.mxu1  ;;  %v11612_v38 = vsel %vm1486_vm5, %v14281_v2, %v3714_v21 }
 0x5c5   : > { %v3603_v18 = vadd.f32 %v11226_v35, %v3602_v23  ;;  %14282 = vst [vmem:[#allocation68_spill] sm:$0xff] %v11612_v38  ;;  %v3870_v16 = vrot.slane %v11612_v38, 7 }
 0x5c7   : > { %v3655_v11 = vmax.f32 %v3603_v18, 0.0  ;;  %v14284_v18 = vld [vmem:[#allocation75_spill] sm:$0xff] }
 0x5c9   : > { %3737 = vrot.lane.b32.xlu2 %v3655_v11, %s8018_s20 }
 0x5cb   : > { %v3710_v55 = vpop.permute.xlu0 %3709 }
 0x5cc   : > { %v11575_v42 = vsel %vm1486_vm5, %v14277_v49, %v3710_v55  ;;  %v3604_v27 = vpop.f32.mrf.mxu1  ;;  %v14286_v55 = vld [vmem:[#allocation6_spill] sm:$0xff] }
 0x5cd   : > { %14278 = vst [vmem:[#allocation38_spill] sm:$0xff] %v11575_v42  ;;  %v3605_v8 = vadd.f32 %v11226_v35, %v3604_v27  ;;  %v3867_v9 = vrot.slane %v11575_v42, 7 }
 0x5cf   : > { %v3656_v41 = vmax.f32 %v3605_v8, 0.0  ;;  %v11583_v39 = vsel %vm342_vm0, 0.0, %v3867_v9 }
 0x5d0   : > { %v4028_v56 = vrot.slane %v11583_v39, 1  ;;  %v4196_v53 = vrot.slane %v11583_v39, 2 }
 0x5d1   : > { %3739 = vrot.lane.b32.xlu0 %v3656_v41, %s8018_s20  ;;  %7305 = vrot.lane.b32.xlu2 %v7304_v50, %s8020_s22 }
 0x5d3   : > { %v3712_v19 = vpop.permute.xlu1 %3711 }
 0x5d4   : > { %v11587_v34 = vsel %vm1486_vm5, %v14279_v33, %v3712_v19  ;;  %v3607_v10 = vpop.f32.mrf.mxu1  ;;  %v14288_v19 = vld [vmem:[#allocation63_spill] sm:$0xff] }
 0x5d5   : > { %14280 = vst [vmem:[#allocation81_spill] sm:$0xff] %v11587_v34  ;;  %v3868_v48 = vrot.slane %v11587_v34, 7  ;;  %v3608_v57 = vadd.f32 %v11226_v35, %v3607_v10  ;;  %v7314_v33 = vpack.i.bf16 %v11530_v59, %v14288_v19 }
 0x5d7   : > { %v11594_v54 = vsel %vm342_vm0, %v3867_v9, %v3868_v48  ;;  %v3974_v0 = vsel %vm342_vm0, %v3868_v48, 0.0  ;;  %v3657_v28 = vmax.f32 %v3608_v57, 0.0 }
 0x5d8   : > { %v4029_v37 = vrot.slane %v11594_v54, 1  ;;  %v4031_v44 = vrot.slane %v3974_v0, 1  ;;  %v4197_v6 = vrot.slane %v11594_v54, 2  ;;  %v4199_v58 = vrot.slane %v3974_v0, 2 }
 0x5d9   : > { %3741 = vrot.lane.b32.xlu1 %v3657_v28, %s8018_s20 }
 0x5da   : > { %v4030_v60 = vsel %vm501_vm1, %v4028_v56, %v4029_v37  ;;  %v4032_v43 = vsel %vm501_vm1, %v4029_v37, %v4031_v44  ;;  %v11603_v40 = vsel %vm672_vm2, %v4196_v53, %v4197_v6  ;;  %v11606_v29 = vsel %vm672_vm2, %v4197_v6, %v4199_v58 }
 0x5db   : > { %v7309_v15 = vpack.i.bf16 %v4030_v60, %v4027_v4  ;;  %v11608_v7 = vpack.i.bf16 %v4032_v43, %v4030_v60  ;;  %v11616_v32 = vpack.i.bf16 %v11606_v29, %v11603_v40  ;;  %v3720_v52 = vpop.permute.xlu2 %3719  ;;  %v11626_v4 = vsel %vm342_vm0, 0.0, %v3870_v16 }
 0x5dc   : > { %v3609_v1 = vpop.f32.mrf.mxu1  ;;  %v11630_v11 = vsel %vm1486_vm5, %v14284_v18, %v3720_v52  ;;  %v4033_v41 = vrot.slane %v11626_v4, 1  ;;  %v4201_v50 = vrot.slane %v11626_v4, 2 }
 0x5dd   : > { %v3610_v62 = vadd.f32 %v11226_v35, %v3609_v1  ;;  %7310 = vrot.lane.b32.xlu0 %v7309_v15, %s8020_s22  ;;  %14285 = vst [vmem:[#allocation47_spill] sm:$0xff] %v11630_v11  ;;  %v3874_v10 = vrot.slane %v11630_v11, 7 }
 0x5df   : > { %v3658_v36 = vmax.f32 %v3610_v62, 0.0  ;;  %v3976_v60 = vsel %vm342_vm0, %v3874_v10, 0.0 }
 0x5e0   : > { %v4041_v52 = vrot.slane %v3976_v60, 1  ;;  %v4209_v18 = vrot.slane %v3976_v60, 2 }
 0x5e1   : > { %7300 = vrot.lane.b32.xlu1 %v7299_v26, %s8020_s22  ;;  %3743 = vrot.lane.b32.xlu2 %v3658_v36, %s8018_s20 }
 0x5e3   : > { %v3716_v23 = vpop.permute.xlu0 %3715 }
 0x5e4   : > { %v11634_v49 = vsel %vm1486_vm5, %v14286_v55, %v3716_v23  ;;  %v3612_v27 = vpop.f32.mrf.mxu1  ;;  %v7319_v23 = vpack.i.bf16 %v11560_v31, %v11533_v14 }
 0x5e5   : > { %14287 = vst [vmem:[#allocation37_spill] sm:$0xff] %v11634_v49  ;;  %v3871_v8 = vrot.slane %v11634_v49, 7  ;;  %v3613_v9 = vadd.f32 %v11226_v35, %v3612_v27 }
 0x5e7   : > { %v11644_v48 = vsel %vm342_vm0, %v3870_v16, %v3871_v8  ;;  %v3975_v57 = vsel %vm342_vm0, %v3871_v8, 0.0  ;;  %v3659_v56 = vmax.f32 %v3613_v9, 0.0  ;;  %v14289_v16 = vld [vmem:[#allocation36_spill] sm:$0xff] }
 0x5e8   : > { %v4034_v53 = vrot.slane %v11644_v48, 1  ;;  %v4036_v0 = vrot.slane %v3975_v57, 1  ;;  %v4202_v28 = vrot.slane %v11644_v48, 2  ;;  %v4204_v37 = vrot.slane %v3975_v57, 2 }
 0x5e9   : > { %3745 = vrot.lane.b32.xlu0 %v3659_v56, %s8018_s20  ;;  %7315 = vrot.lane.b32.xlu2 %v7314_v33, %s8030_s29 }
 0x5ea   : > { %v4035_v44 = vsel %vm501_vm1, %v4033_v41, %v4034_v53  ;;  %v4205_v6 = vsel %vm672_vm2, %v4202_v28, %v4204_v37  ;;  %v4037_v58 = vsel %vm501_vm1, %v4034_v53, %v4036_v0  ;;  %v11655_v21 = vsel %vm672_vm2, %v4201_v50, %v4202_v28 }
 0x5eb   : > { %v3718_v15 = vpop.permute.xlu1 %3717  ;;  %v7324_v2 = vpack.i.bf16 %v4035_v44, %v4032_v43  ;;  %v11658_v1 = vpack.i.bf16 %v4037_v58, %v4035_v44  ;;  %v11661_v62 = vpack.i.bf16 %v4205_v6, %v11655_v21 }
 0x5ec   : > { %v11665_v36 = vsel %vm1486_vm5, %v14289_v16, %v3718_v15  ;;  %v3614_v45 = vpop.f32.mrf.mxu1  ;;  %v7329_v15 = vpack.i.bf16 %v11603_v40, %v11563_v5  ;;  %v14293_v40 = vld [vmem:[#allocation23_spill] sm:$0xff] }
 0x5ed   : > { %14290 = vst [vmem:[#allocation97_spill] sm:$0xff] %v11665_v36  ;;  %v3873_v26 = vrot.slane %v11665_v36, 7  ;;  %7325 = vrot.lane.b32.xlu1 %v7324_v2, %s8020_s22  ;;  %v3615_v27 = vadd.f32 %v11226_v35, %v3614_v45  ;;  %v14291_v2 = vld [vmem:[#allocation19_spill] sm:$0xff] }
 0x5ef   : > { %v11672_v43 = vsel %vm342_vm0, %v3873_v26, %v3874_v10  ;;  %v11675_v55 = vsel %vm342_vm0, 0.0, %v3873_v26  ;;  %v3660_v57 = vmax.f32 %v3615_v27, 0.0 }
 0x5f0   : > { %v4038_v8 = vrot.slane %v11675_v55, 1  ;;  %v4039_v9 = vrot.slane %v11672_v43, 1  ;;  %v4206_v41 = vrot.slane %v11675_v55, 2  ;;  %v4207_v50 = vrot.slane %v11672_v43, 2 }
 0x5f1   : > { %7320 = vrot.lane.b32.xlu0 %v7319_v23, %s8030_s29 }
 0x5f2   : > { %v4208_v31 = vsel %vm672_vm2, %v4206_v41, %v4207_v50  ;;  %v4040_v19 = vsel %vm501_vm1, %v4038_v8, %v4039_v9  ;;  %v4042_v33 = vsel %vm501_vm1, %v4039_v9, %v4041_v52  ;;  %v4210_v10 = vsel %vm672_vm2, %v4207_v50, %v4209_v18 }
 0x5f3   : > { %v11687_v56 = vpack.i.bf16 %v4042_v33, %v4040_v19  ;;  %v11689_v53 = vpack.i.bf16 %v4210_v10, %v4208_v31  ;;  %v7344_v44 = vpack.i.bf16 %v4208_v31, %v4205_v6  ;;  %v7334_v23 = vpack.i.bf16 %v4040_v19, %v4037_v58 }
 0x5f4   : > { %v3617_v0 = vpop.f32.mrf.mxu1  ;;  %v7339_v58 = vpack.i.bf16 %v11655_v21, %v11606_v29 }
 0x5f5   : > { %v3618_v28 = vadd.f32 %v11226_v35, %v3617_v0  ;;  %3747 = vrot.lane.b32.xlu1 %v3660_v57, %s8018_s20 }
 0x5f7   : > { %v3661_v37 = vmax.f32 %v3618_v28, 0.0  ;;  %v3726_v28 = vpop.permute.xlu2 %3725 }
 0x5f9   : > { %3749 = vrot.lane.b32.xlu2 %v3661_v37, %s8018_s20  ;;  %7345 = vrot.lane.b32.xlu0 %v7344_v44, %s8030_s29 }
 0x5fb   : > { %v3722_v60 = vpop.permute.xlu0 %3721 }
 0x5fc   : > { %v11699_v16 = vsel %vm1486_vm5, %v14291_v2, %v3722_v60  ;;  %v3619_v45 = vpop.f32.mrf.mxu1 }
 0x5fd   : > { %14292 = vst [vmem:[#allocation39_spill] sm:$0xff] %v11699_v16  ;;  %v3620_v26 = vadd.f32 %v11226_v35, %v3619_v45  ;;  %7330 = vrot.lane.b32.xlu1 %v7329_v15, %s8030_s29  ;;  %v3876_v52 = vrot.slane %v11699_v16, 7 }
 0x5ff   : > { %v3662_v6 = vmax.f32 %v3620_v26, 0.0  ;;  %v11707_v18 = vsel %vm342_vm0, 0.0, %v3876_v52 }
 0x600   : > { %v4043_v50 = vrot.slane %v11707_v18, 1  ;;  %v4211_v31 = vrot.slane %v11707_v18, 2 }
 0x601   : > { %3751 = vrot.lane.b32.xlu0 %v3662_v6, %s8018_s20  ;;  %7335 = vrot.lane.b32.xlu2 %v7334_v23, %s8020_s22 }
 0x603   : > { %v3724_v5 = vpop.permute.xlu1 %3723 }
 0x604   : > { %v11711_v27 = vsel %vm1486_vm5, %v14293_v40, %v3724_v5  ;;  %v3622_v8 = vpop.f32.mrf.mxu1 }
 0x605   : > { %14294 = vst [vmem:[#allocation21_spill] sm:$0xff] %v11711_v27  ;;  %v3877_v9 = vrot.slane %v11711_v27, 7  ;;  %v3623_v41 = vadd.f32 %v11226_v35, %v3622_v8 }
 0x607   : > { %v11720_v19 = vsel %vm342_vm0, %v3876_v52, %v3877_v9  ;;  %v3977_v57 = vsel %vm342_vm0, %v3877_v9, 0.0  ;;  %v3663_v0 = vmax.f32 %v3623_v41, 0.0  ;;  %v14296_v52 = vld [vmem:[#allocation30_spill] sm:$0xff]  ;;  %v11743_v9 = vpack.i.bf16 %v11594_v54, %v11583_v39 }
 0x608   : > { %v4044_v37 = vrot.slane %v11720_v19, 1  ;;  %v4046_v44 = vrot.slane %v3977_v57, 1  ;;  %v4212_v60 = vrot.slane %v11720_v19, 2  ;;  %v4214_v35 = vrot.slane %v3977_v57, 2 }
 0x609   : > { %3753 = vrot.lane.b32.xlu1 %v3663_v0, %s8018_s20  ;;  %7340 = vrot.lane.b32.xlu2 %v7339_v58, %s8030_s29  ;;  %v11735_v6 = vsel %vm1486_vm5, %v14296_v52, %v3726_v28  ;;  %v7354_v0 = vpack.i.bf16 %v11517_v47, %v11501_v17  ;;  %v14301_v28 = vld [vmem:[#allocation46_spill] sm:$0xff] }
 0x60a   : > { %v4045_v29 = vsel %vm501_vm1, %v4043_v50, %v4044_v37  ;;  %v4213_v21 = vsel %vm672_vm2, %v4211_v31, %v4212_v60  ;;  %v4215_v15 = vsel %vm672_vm2, %v4212_v60, %v4214_v35  ;;  %v4047_v2 = vsel %vm501_vm1, %v4044_v37, %v4046_v44  ;;  %14297 = vst [vmem:[#allocation92_spill] sm:$0xff] %v11735_v6  ;;  %v14299_v50 = vld [vmem:[#allocation76_spill] sm:$0xff] }
 0x60b   : > { %v7349_v45 = vpack.i.bf16 %v4045_v29, %v4042_v33  ;;  %v11731_v26 = vpack.i.bf16 %v4047_v2, %v4045_v29  ;;  %v11737_v5 = vpack.i.bf16 %v4215_v15, %v4213_v21  ;;  %v3879_v40 = vrot.slane %v11735_v6, 7  ;;  %v3732_v41 = vpop.permute.xlu2 %3731 }
 0x60c   : > { %v3624_v23 = vpop.f32.mrf.mxu1  ;;  %v7359_v8 = vpack.i.bf16 %v4213_v21, %v4210_v10  ;;  %v11753_v58 = vsel %vm1486_vm5, %v14299_v50, %v3732_v41  ;;  %v11758_v10 = vld [vmem:[%s13401_s4] ss:$0 sm:$0xff] }
 0x60d   : > { %14295 = vst [vmem:[#allocation9_spill] sm:$0xff] %v11731_v26  ;;  %7350 = vrot.lane.b32.xlu0 %v7349_v45, %s8020_s22  ;;  %v11749_v33 = vsel %vm342_vm0, 0.0, %v3879_v40  ;;  %v3625_v31 = vadd.f32 %v11758_v10, %v3624_v23  ;;  %v3883_v21 = vrot.slane %v11753_v58, 7  ;;  %v11774_v45 = vpack.i.bf16 %v11547_v25, %v11550_v3 }
 0x60e   : > { %14298 = vst [vmem:[#allocation12_spill] sm:$0xff] %v11737_v5  ;;  %v4048_v35 = vrot.slane %v11749_v33, 1  ;;  %v4216_v29 = vrot.slane %v11749_v33, 2 }
 0x60f   : > { %14300 = vst [vmem:[#allocation56_spill] sm:$0xff] %v11753_v58  ;;  %v3664_v52 = vmax.f32 %v3625_v31, 0.0 }
 0x611   : > { %7360 = vrot.lane.b32.xlu1 %v7359_v8, %s8030_s29  ;;  %7370 = vrot.lane.b32.xlu2 %v11743_v9, %s8026_s21 }
 0x613   : > { %v3728_v57 = vpop.permute.xlu0 %3727 }
 0x614   : > { %v11765_v37 = vsel %vm1486_vm5, %v14301_v28, %v3728_v57  ;;  %v3627_v44 = vpop.f32.mrf.mxu1 }
 0x615   : > { %14302 = vst [vmem:[#allocation49_spill] sm:$0xff] %v11765_v37  ;;  %v3880_v60 = vrot.slane %v11765_v37, 7  ;;  %7355 = vrot.lane.b32.xlu0 %v7354_v0, %s8026_s21  ;;  %v3628_v41 = vadd.f32 %v11758_v10, %v3627_v44  ;;  %v3979_v44 = vsel %vm342_vm0, %v3883_v21, 0.0 }
 0x617   : > { %v11777_v23 = vsel %vm342_vm0, %v3879_v40, %v3880_v60  ;;  %v3978_v8 = vsel %vm342_vm0, %v3880_v60, 0.0  ;;  %v3665_v13 = vmax.f32 %v3628_v41, 0.0 }
 0x618   : > { %v4049_v50 = vrot.slane %v11777_v23, 1  ;;  %v4051_v57 = vrot.slane %v3978_v8, 1  ;;  %v4217_v0 = vrot.slane %v11777_v23, 2  ;;  %v4219_v28 = vrot.slane %v3978_v8, 2  ;;  %v14304_v8 = vld [vmem:[#allocation11_spill] sm:$0xff] }
 0x619   : > { %7365 = vrot.lane.b32.xlu1 %v11774_v45, %s8026_s21  ;;  %3755 = vrot.lane.b32.xlu2 %v3664_v52, %s8018_s20 }
 0x61a   : > { %v4218_v31 = vsel %vm672_vm2, %v4216_v29, %v4217_v0  ;;  %v4050_v40 = vsel %vm501_vm1, %v4048_v35, %v4049_v50  ;;  %v4220_v22 = vsel %vm672_vm2, %v4217_v0, %v4219_v28  ;;  %v4052_v60 = vsel %vm501_vm1, %v4049_v50, %v4051_v57 }
 0x61b   : > { %v3730_v58 = vpop.permute.xlu1 %3729  ;;  %v11791_v6 = vpack.i.bf16 %v4220_v22, %v4218_v31  ;;  %v11797_v52 = vpack.i.bf16 %v4052_v60, %v4050_v40  ;;  %v4056_v35 = vrot.slane %v3979_v44, 1  ;;  %v4224_v0 = vrot.slane %v3979_v44, 2 }
 0x61c   : > { %v11795_v27 = vsel %vm1486_vm5, %v14304_v8, %v3730_v58  ;;  %v3629_v37 = vpop.f32.mrf.mxu1  ;;  %v7384_v57 = vpack.i.bf16 %v4218_v31, %v4215_v15  ;;  %v7379_v28 = vpack.i.bf16 %v4050_v40, %v4047_v2  ;;  %v11820_v31 = vpack.i.bf16 %v11644_v48, %v11626_v4 }
 0x61d   : > { %14303 = vst [vmem:[#allocation7_spill] sm:$0xff] %v11791_v6  ;;  %v3882_v29 = vrot.slane %v11795_v27, 7  ;;  %3757 = vrot.lane.b32.xlu0 %v3665_v13, %s8018_s20  ;;  %v3630_v2 = vadd.f32 %v11758_v10, %v3629_v37 }
 0x61e   : > { %14305 = vst [vmem:[#allocation16_spill] sm:$0xff] %v11795_v27 }
 0x61f   : > { %14306 = vst [vmem:[#allocation85_spill] sm:$0xff] %v11797_v52  ;;  %v11802_v50 = vsel %vm342_vm0, %v3882_v29, %v3883_v21  ;;  %v11805_v41 = vsel %vm342_vm0, 0.0, %v3882_v29 }
 0x620   : > { %v4053_v58 = vrot.slane %v11805_v41, 1  ;;  %v4054_v8 = vrot.slane %v11802_v50, 1  ;;  %v4221_v11 = vrot.slane %v11805_v41, 2  ;;  %v4222_v27 = vrot.slane %v11802_v50, 2 }
 0x621   : > { %7385 = vrot.lane.b32.xlu2 %v7384_v57, %s8030_s29  ;;  %7380 = vrot.lane.b32.xlu1 %v7379_v28, %s8020_s22 }
 0x622   : > { %v4223_v13 = vsel %vm672_vm2, %v4221_v11, %v4222_v27  ;;  %v4055_v21 = vsel %vm501_vm1, %v4053_v58, %v4054_v8  ;;  %v4057_v44 = vsel %vm501_vm1, %v4054_v8, %v4056_v35  ;;  %v4225_v15 = vsel %vm672_vm2, %v4222_v27, %v4224_v0  ;;  %v14309_v58 = vld [vmem:[#allocation84_spill] sm:$0xff] }
 0x623   : > { %v11822_v40 = vpack.i.bf16 %v4225_v15, %v4223_v13  ;;  %v11824_v57 = vpack.i.bf16 %v4057_v44, %v4055_v21  ;;  %v3666_v11 = vmax.f32 %v3630_v2, 0.0  ;;  %v7404_v37 = vpack.i.bf16 %v4223_v13, %v4220_v22  ;;  %v3738_v36 = vpop.permute.xlu2 %3737 }
 0x624   : > { %v3632_v29 = vpop.f32.mrf.mxu1  ;;  %v11839_v2 = vpack.i.bf16 %v11672_v43, %v11675_v55 }
 0x625   : > { %14307 = vst [vmem:[#allocation41_spill] sm:$0xff] %v11822_v40  ;;  %v3633_v28 = vadd.f32 %v11758_v10, %v3632_v29  ;;  %7375 = vrot.lane.b32.xlu0 %v11820_v31, %s8026_s21 }
 0x626   : > { %14308 = vst [vmem:[#allocation69_spill] sm:$0xff] %v11824_v57 }
 0x627   : > { %v3667_v35 = vmax.f32 %v3633_v28, 0.0  ;;  %14311 = vst [vmem:[#allocation35_spill] sm:$0xff] %v11839_v2  ;;  %v7394_v28 = vpack.i.bf16 %v4055_v21, %v4052_v60  ;;  %v11856_v60 = vpack.i.bf16 %v11802_v50, %v11805_v41  ;;  %v11860_v21 = vpack.i.bf16 %v11720_v19, %v11707_v18 }
 0x629   : > { %3761 = vrot.lane.b32.xlu2 %v3667_v35, %s8018_s20  ;;  %3759 = vrot.lane.b32.xlu1 %v3666_v11, %s8018_s20  ;;  %14314 = vst [vmem:[#allocation48_spill] sm:$0xff] %v11856_v60 }
 0x62a   : > { %14315 = vst [vmem:[#allocation42_spill] sm:$0xff] %v11860_v21 }
 0x62b   : > { %v3734_v27 = vpop.permute.xlu0 %3733 }
 0x62c   : > { %v3634_v0 = vpop.f32.mrf.mxu1  ;;  %v11833_v8 = vsel %vm1486_vm5, %v14309_v58, %v3734_v27  ;;  %v14312_v27 = vld [vmem:[#allocation33_spill] sm:$0xff] }
 0x62d   : > { %14310 = vst [vmem:[#allocation54_spill] sm:$0xff] %v11833_v8  ;;  %7405 = vrot.lane.b32.xlu0 %v7404_v37, %s8030_s29  ;;  %v3635_v29 = vadd.f32 %v11758_v10, %v3634_v0  ;;  %v3885_v35 = vrot.slane %v11833_v8, 7  ;;  %v11870_v8 = vpop.permute.xlu2 %7305 }
 0x62e   : > { %14316 = vst [vmem:[#allocation71_spill] sm:$0xff] %v11870_v8 }
 0x62f   : > { %v3668_v22 = vmax.f32 %v3635_v29, 0.0  ;;  %v11846_v11 = vsel %vm342_vm0, 0.0, %v3885_v35 }
 0x630   : > { %v4058_v0 = vrot.slane %v11846_v11, 1  ;;  %v4226_v58 = vrot.slane %v11846_v11, 2 }
 0x631   : > { %7390 = vrot.lane.b32.xlu1 %v11839_v2, %s8026_s21  ;;  %7395 = vrot.lane.b32.xlu2 %v7394_v28, %s8020_s22 }
 0x633   : > { %v3736_v13 = vpop.permute.xlu1 %3735 }
 0x634   : > { %v11850_v10 = vsel %vm1486_vm5, %v14312_v27, %v3736_v13 }
 0x635   : > { %14313 = vst [vmem:[#allocation61_spill] sm:$0xff] %v11850_v10  ;;  %v3886_v37 = vrot.slane %v11850_v10, 7  ;;  %3763 = vrot.lane.b32.xlu0 %v3668_v22, %s8018_s20 }
 0x637   : > { %v11865_v29 = vsel %vm342_vm0, %v3885_v35, %v3886_v37  ;;  %v3980_v28 = vsel %vm342_vm0, %v3886_v37, 0.0 }
 0x638   : > { %v4059_v13 = vrot.slane %v11865_v29, 1  ;;  %v4061_v22 = vrot.slane %v3980_v28, 1  ;;  %v4227_v27 = vrot.slane %v11865_v29, 2  ;;  %v4229_v10 = vrot.slane %v3980_v28, 2  ;;  %v14318_v28 = vld [vmem:[#allocation45_spill] sm:$0xff] }
 0x639   : > { %7420 = vrot.lane.b32.xlu1 %v11856_v60, %s8026_s21  ;;  %7400 = vrot.lane.b32.xlu2 %v11860_v21, %s8026_s21  ;;  %v11884_v46 = vsel %vm1486_vm5, %v14318_v28, %v3738_v36 }
 0x63a   : > { %v4060_v16 = vsel %vm501_vm1, %v4058_v0, %v4059_v13  ;;  %v4228_v35 = vsel %vm672_vm2, %v4226_v58, %v4227_v27  ;;  %v4230_v37 = vsel %vm672_vm2, %v4227_v27, %v4229_v10  ;;  %v4062_v38 = vsel %vm501_vm1, %v4059_v13, %v4061_v22  ;;  %14319 = vst [vmem:[#allocation22_spill] sm:$0xff] %v11884_v46  ;;  %v14325_v13 = vld [vmem:[#allocation77_spill] sm:$0xff] }
 0x63b   : > { %v7409_v34 = vpack.i.bf16 %v4060_v16, %v4057_v44  ;;  %v11880_v49 = vpack.i.bf16 %v4062_v38, %v4060_v16  ;;  %v11886_v61 = vpack.i.bf16 %v4230_v37, %v4228_v35  ;;  %v3888_v42 = vrot.slane %v11884_v46, 7  ;;  %v3744_v10 = vpop.permute.xlu2 %3743  ;;  %v14323_v44 = vld [vmem:[#allocation66_spill] sm:$0xff] }
 0x63c   : > { %v7429_v0 = vpack.i.bf16 %v4228_v35, %v4225_v15  ;;  %v11892_v58 = vpack.i.bf16 %v11865_v29, %v11846_v11  ;;  %v11906_v15 = vsel %vm1486_vm5, %v14323_v44, %v3744_v10 }
 0x63d   : > { %14317 = vst [vmem:[#allocation87_spill] sm:$0xff] %v11880_v49  ;;  %7410 = vrot.lane.b32.xlu0 %v7409_v34, %s8020_s22  ;;  %v11898_v36 = vsel %vm342_vm0, 0.0, %v3888_v42  ;;  %v11902_v34 = vpack.i.bf16 %v11777_v23, %v11749_v33 }
 0x63e   : > { %14320 = vst [vmem:[#allocation94_spill] sm:$0xff] %v11886_v61  ;;  %v4063_v35 = vrot.slane %v11898_v36, 1  ;;  %v4231_v28 = vrot.slane %v11898_v36, 2 }
 0x63f   : > { %14321 = vst [vmem:[#allocation55_spill] sm:$0xff] %v11892_v58 }
 0x640   : > { %14322 = vst [vmem:[#allocation18_spill] sm:$0xff] %v11902_v34 }
 0x641   : > { %7430 = vrot.lane.b32.xlu1 %v7429_v0, %s8030_s29  ;;  %7425 = vrot.lane.b32.xlu2 %v11892_v58, %s8026_s21  ;;  %14324 = vst [vmem:[#allocation73_spill] sm:$0xff] %v11906_v15  ;;  %v3892_v0 = vrot.slane %v11906_v15, 7 }
 0x643   : > { %v3740_v16 = vpop.permute.xlu0 %3739  ;;  %v3982_v25 = vsel %vm342_vm0, %v3892_v0, 0.0 }
 0x644   : > { %v11910_v22 = vsel %vm1486_vm5, %v14325_v13, %v3740_v16 }
 0x645   : > { %14326 = vst [vmem:[#allocation34_spill] sm:$0xff] %v11910_v22  ;;  %v3889_v27 = vrot.slane %v11910_v22, 7  ;;  %7415 = vrot.lane.b32.xlu0 %v11902_v34, %s8026_s21 }
 0x647   : > { %v11919_v46 = vsel %vm342_vm0, %v3888_v42, %v3889_v27  ;;  %v3981_v10 = vsel %vm342_vm0, %v3889_v27, 0.0 }
 0x648   : > { %v4064_v44 = vrot.slane %v11919_v46, 1  ;;  %v4066_v16 = vrot.slane %v3981_v10, 1  ;;  %v4232_v13 = vrot.slane %v11919_v46, 2  ;;  %v4234_v22 = vrot.slane %v3981_v10, 2  ;;  %v11935_v10 = vpop.permute.xlu2 %7315 }
 0x649   : > { %7435 = vrot.lane.b32.xlu1 %v14327_v63, %s8031_s14  ;;  %7440 = vrot.lane.b32.xlu2 %v11565_v30, %s8031_s14  ;;  %14328 = vst [vmem:[#allocation31_spill] sm:$0xff] %v11935_v10  ;;  %v11939_v20 = vpack.i.bf16 %v11919_v46, %v11898_v36 }
 0x64a   : > { %v4233_v42 = vsel %vm672_vm2, %v4231_v28, %v4232_v13  ;;  %v4065_v15 = vsel %vm501_vm1, %v4063_v35, %v4064_v44  ;;  %v4235_v27 = vsel %vm672_vm2, %v4232_v13, %v4234_v22  ;;  %v4067_v24 = vsel %vm501_vm1, %v4064_v44, %v4066_v16 }
 0x64b   : > { %v3742_v3 = vpop.permute.xlu1 %3741  ;;  %14329 = vst [vmem:[#allocation64_spill] sm:$0xff] %v11939_v20  ;;  %v11941_v63 = vpack.i.bf16 %v4235_v27, %v4233_v42  ;;  %v11947_v35 = vpack.i.bf16 %v4067_v24, %v4065_v15  ;;  %v4071_v44 = vrot.slane %v3982_v25, 1  ;;  %v4239_v16 = vrot.slane %v3982_v25, 2 }
 0x64c   : > { %v11945_v28 = vsel %vm1486_vm5, %v14331_v51, %v3742_v3  ;;  %v7464_v17 = vpack.i.bf16 %v4233_v42, %v4230_v37  ;;  %v7454_v8 = vpack.i.bf16 %v4065_v15, %v4062_v38 }
 0x64d   : > { %14330 = vst [vmem:[#allocation27_spill] sm:$0xff] %v11941_v63  ;;  %v3891_v22 = vrot.slane %v11945_v28, 7  ;;  %7445 = vrot.lane.b32.xlu0 %v11939_v20, %s8026_s21 }
 0x64e   : > { %14332 = vst [vmem:[#allocation51_spill] sm:$0xff] %v11945_v28 }
 0x64f   : > { %14333 = vst [vmem:[#allocation106_spill] sm:$0xff] %v11947_v35  ;;  %v11953_v13 = vsel %vm342_vm0, %v3891_v22, %v3892_v0  ;;  %v11956_v47 = vsel %vm342_vm0, 0.0, %v3891_v22  ;;  %v11968_v37 = vpop.permute.xlu0 %7310 }
 0x650   : > { %14334 = vst [vmem:[#allocation57_spill] sm:$0xff] %v11953_v13  ;;  %v4068_v3 = vrot.slane %v11956_v47, 1  ;;  %v4069_v51 = vrot.slane %v11953_v13, 1  ;;  %v4236_v10 = vrot.slane %v11956_v47, 2  ;;  %v4237_v28 = vrot.slane %v11953_v13, 2 }
 0x651   : > { %7465 = vrot.lane.b32.xlu2 %v7464_v17, %s8030_s29  ;;  %7455 = vrot.lane.b32.xlu1 %v7454_v8, %s8020_s22 }
 0x652   : > { %v4238_v25 = vsel %vm672_vm2, %v4236_v10, %v4237_v28  ;;  %v4070_v0 = vsel %vm501_vm1, %v4068_v3, %v4069_v51  ;;  %v4240_v22 = vsel %vm672_vm2, %v4237_v28, %v4239_v16  ;;  %v4072_v38 = vsel %vm501_vm1, %v4069_v51, %v4071_v44  ;;  %v14339_v51 = vld [vmem:[#allocation40_spill] sm:$0xff] }
 0x653   : > { %v3750_v15 = vpop.permute.xlu2 %3749  ;;  %v11972_v42 = vpack.i.bf16 %v4240_v22, %v4238_v25  ;;  %v11974_v63 = vpack.i.bf16 %v4072_v38, %v4070_v0  ;;  %v11976_v17 = vpop.permute.xlu1 %7300  ;;  %v7484_v28 = vpack.i.bf16 %v4238_v25, %v4235_v27  ;;  %v11989_v16 = vpack.i.bf16 %v11953_v13, %v11956_v47 }
 0x654   : > { %14337 = vst [vmem:[#allocation104_spill] sm:$0xff] %v11976_v17  ;;  %v7479_v3 = vpack.i.bf16 %v4070_v0, %v4067_v24  ;;  %v14343_v0 = vld [vmem:[#allocation90_spill] sm:$0xff] }
 0x655   : > { %7450 = vrot.lane.b32.xlu0 %v11608_v7, %s8031_s14  ;;  %14335 = vst [vmem:[#allocation99_spill] sm:$0xff] %v11972_v42 }
 0x656   : > { %14336 = vst [vmem:[#allocation29_spill] sm:$0xff] %v11974_v63 }
 0x657   : > { %14338 = vst [vmem:[#allocation44_spill] sm:$0xff] %v11989_v16 }
 0x659   : > { %7470 = vrot.lane.b32.xlu2 %v11687_v56, %s8031_s14  ;;  %7460 = vrot.lane.b32.xlu1 %v11658_v1, %s8031_s14 }
 0x65b   : > { %v3746_v8 = vpop.permute.xlu0 %3745  ;;  %v11982_v10 = vpop.permute.xlu2 %7335 }
 0x65c   : > { %v11993_v17 = vsel %vm1486_vm5, %v14339_v51, %v3746_v8 }
 0x65d   : > { %7485 = vrot.lane.b32.xlu0 %v7484_v28, %s8030_s29  ;;  %14340 = vst [vmem:[#allocation20_spill] sm:$0xff] %v11993_v17  ;;  %v3894_v25 = vrot.slane %v11993_v17, 7 }
 0x65f   : > { %v11985_v44 = vpop.permute.xlu1 %7325  ;;  %v12006_v24 = vsel %vm342_vm0, 0.0, %v3894_v25 }
 0x660   : > { %14342 = vst [vmem:[#allocation58_spill] sm:$0xff] %v12006_v24 }
 0x661   : > { %7475 = vrot.lane.b32.xlu1 %v11989_v16, %s8026_s21  ;;  %7480 = vrot.lane.b32.xlu2 %v7479_v3, %s8020_s22  ;;  %v14345_v3 = vld [vmem:[#allocation53_spill] sm:$0xff]  ;;  %v4241_v16 = vrot.slane %v12006_v24, 2 }
 0x662   : > { %v12019_v17 = vsel %vm1486_vm5, %v14345_v3, %v3750_v15 }
 0x663   : > { %v11998_v42 = vpop.permute.xlu0 %7320  ;;  %v12000_v27 = vpop.permute.xlu2 %7340  ;;  %14346 = vst [vmem:[#allocation109_spill] sm:$0xff] %v12019_v17  ;;  %v3897_v40 = vrot.slane %v12019_v17, 7 }
 0x664   : > { %14341 = vst [vmem:[#allocation96_spill] sm:$0xff] %v11998_v42  ;;  %v4073_v42 = vrot.slane %v12006_v24, 1 }
 0x665   : > { %7490 = vrot.lane.b32.xlu0 %v11731_v26, %s8031_s14 }
 0x667   : > { %v3748_v28 = vpop.permute.xlu1 %3747 }
 0x668   : > { %v12010_v8 = vsel %vm1486_vm5, %v14343_v0, %v3748_v28 }
 0x669   : > { %14344 = vst [vmem:[#allocation91_spill] sm:$0xff] %v12010_v8  ;;  %v3895_v51 = vrot.slane %v12010_v8, 7  ;;  %7495 = vrot.lane.b32.xlu1 %v11797_v52, %s8031_s14  ;;  %7500 = vrot.lane.b32.xlu2 %v11824_v57, %s8031_s14 }
 0x66b   : > { %v12024_v61 = vsel %vm342_vm0, %v3894_v25, %v3895_v51  ;;  %v3983_v28 = vsel %vm342_vm0, %v3895_v51, 0.0  ;;  %v12027_v0 = vpop.permute.xlu0 %7345  ;;  %v12029_v8 = vpop.permute.xlu2 %7370 }
 0x66c   : > { %14347 = vst [vmem:[#allocation79_spill] sm:$0xff] %v12024_v61  ;;  %v4074_v20 = vrot.slane %v12024_v61, 1  ;;  %v4076_v58 = vrot.slane %v3983_v28, 1  ;;  %v4242_v60 = vrot.slane %v12024_v61, 2  ;;  %v4244_v15 = vrot.slane %v3983_v28, 2 }
 0x66d   : > { %14348 = vst [vmem:[#allocation119_spill] sm:$0xff] %v12029_v8  ;;  %v12038_v51 = vpack.i.bf16 %v12024_v61, %v12006_v24  ;;  %v12053_v28 = vsel %vm342_vm0, 0.0, %v3897_v40 }
 0x66e   : > { %v4243_v3 = vsel %vm672_vm2, %v4241_v16, %v4242_v60  ;;  %v4075_v57 = vsel %vm501_vm1, %v4073_v42, %v4074_v20  ;;  %v4245_v52 = vsel %vm672_vm2, %v4242_v60, %v4244_v15  ;;  %v4077_v6 = vsel %vm501_vm1, %v4074_v20, %v4076_v58  ;;  %14352 = vst [vmem:[#allocation115_spill] sm:$0xff] %v12053_v28  ;;  %v14353_v15 = vld [vmem:[#allocation95_spill] sm:$0xff] }
 0x66f   : > { %v7519_v25 = vpack.i.bf16 %v4243_v3, %v4240_v22  ;;  %14349 = vst [vmem:[#allocation107_spill] sm:$0xff] %v12038_v51  ;;  %v7509_v8 = vpack.i.bf16 %v4075_v57, %v4072_v38  ;;  %v12045_v16 = vpack.i.bf16 %v4077_v6, %v4075_v57  ;;  %v12047_v42 = vpop.permute.xlu1 %7330  ;;  %v12050_v22 = vpack.i.bf16 %v4245_v52, %v4243_v3  ;;  %v14355_v20 = vld [vmem:[#allocation59_spill] sm:$0xff] }
 0x670   : > { %v4078_v17 = vrot.slane %v12053_v28, 1 }
 0x671   : > { %7520 = vrot.lane.b32.xlu1 %v7519_v25, %s8030_s29  ;;  %7505 = vrot.lane.b32.xlu2 %v12038_v51, %s8026_s21  ;;  %14350 = vst [vmem:[#allocation130_spill] sm:$0xff] %v12045_v16 }
 0x672   : > { %7510 = vrot.lane.b32.xlu0 %v7509_v8, %s8020_s22  ;;  %14351 = vst [vmem:[#allocation93_spill] sm:$0xff] %v12050_v22  ;;  %v4246_v8 = vrot.slane %v12053_v28, 2 }
 0x673   : > { %v3752_v60 = vpop.permute.xlu0 %3751  ;;  %v3756_v38 = vpop.permute.xlu2 %3755 }
 0x674   : > { %v12057_v58 = vsel %vm1486_vm5, %v14353_v15, %v3752_v60  ;;  %v12061_v25 = vsel %vm1486_vm5, %v14355_v20, %v3756_v38 }
 0x675   : > { %14354 = vst [vmem:[#allocation32_spill] sm:$0xff] %v12057_v58  ;;  %v3898_v57 = vrot.slane %v12057_v58, 7  ;;  %v3901_v51 = vrot.slane %v12061_v25, 7 }
 0x676   : > { %14356 = vst [vmem:[#allocation111_spill] sm:$0xff] %v12061_v25 }
 0x677   : > { %v12067_v3 = vsel %vm342_vm0, %v3897_v40, %v3898_v57  ;;  %v3984_v22 = vsel %vm342_vm0, %v3898_v57, 0.0  ;;  %v3985_v58 = vsel %vm342_vm0, %v3901_v51, 0.0 }
 0x678   : > { %14357 = vst [vmem:[#allocation108_spill] sm:$0xff] %v12067_v3  ;;  %v4079_v60 = vrot.slane %v12067_v3, 1  ;;  %v4081_v15 = vrot.slane %v3984_v22, 1  ;;  %v4247_v61 = vrot.slane %v12067_v3, 2  ;;  %v4249_v38 = vrot.slane %v3984_v22, 2 }
 0x679   : > { %7525 = vrot.lane.b32.xlu1 %v11947_v35, %s8031_s14  ;;  %7530 = vrot.lane.b32.xlu2 %v11974_v63, %s8031_s14  ;;  %v14359_v35 = vld [vmem:[#allocation65_spill] sm:$0xff] }
 0x67a   : > { %7515 = vrot.lane.b32.xlu0 %v11880_v49, %s8031_s14  ;;  %v4248_v40 = vsel %vm672_vm2, %v4246_v8, %v4247_v61  ;;  %v4080_v20 = vsel %vm501_vm1, %v4078_v17, %v4079_v60  ;;  %v4082_v57 = vsel %vm501_vm1, %v4079_v60, %v4081_v15  ;;  %v4250_v25 = vsel %vm672_vm2, %v4247_v61, %v4249_v38 }
 0x67b   : > { %v3754_v22 = vpop.permute.xlu1 %3753  ;;  %v7386_v5 = vpop.permute.xlu2 %7385  ;;  %v12084_v34 = vpack.i.bf16 %v4250_v25, %v4248_v40  ;;  %v12091_v13 = vpack.i.bf16 %v4082_v57, %v4080_v20  ;;  %v4086_v8 = vrot.slane %v3985_v58, 1  ;;  %v4254_v17 = vrot.slane %v3985_v58, 2 }
 0x67c   : > { %v12088_v63 = vsel %vm1486_vm5, %v14359_v35, %v3754_v22  ;;  %v12095_v60 = vpack.i.bf16 %v12067_v3, %v12053_v28  ;;  %v7549_v35 = vpack.i.bf16 %v4248_v40, %v4245_v52  ;;  %v7544_v22 = vpack.i.bf16 %v4080_v20, %v4077_v6 }
 0x67d   : > { %14358 = vst [vmem:[#allocation24_spill] sm:$0xff] %v12084_v34  ;;  %v3900_v49 = vrot.slane %v12088_v63, 7 }
 0x67e   : > { %14360 = vst [vmem:[#allocation112_spill] sm:$0xff] %v12088_v63 }
 0x67f   : > { %14361 = vst [vmem:[#allocation127_spill] sm:$0xff] %v12091_v13  ;;  %v12098_v61 = vsel %vm342_vm0, %v3900_v49, %v3901_v51  ;;  %v12101_v15 = vsel %vm342_vm0, 0.0, %v3900_v49  ;;  %v12103_v38 = vpop.permute.xlu0 %7350 }
 0x680   : > { %14362 = vst [vmem:[#allocation60_spill] sm:$0xff] %v12095_v60  ;;  %v4083_v63 = vrot.slane %v12101_v15, 1  ;;  %v4084_v34 = vrot.slane %v12098_v61, 1  ;;  %v4251_v58 = vrot.slane %v12101_v15, 2  ;;  %v4252_v24 = vrot.slane %v12098_v61, 2 }
 0x681   : > { %14363 = vst [vmem:[#allocation89_spill] sm:$0xff] %v12098_v61  ;;  %7550 = vrot.lane.b32.xlu2 %v7549_v35, %s8030_s29  ;;  %7545 = vrot.lane.b32.xlu1 %v7544_v22, %s8020_s22 }
 0x682   : > { %14364 = vst [vmem:[#allocation114_spill] sm:$0xff] %v12101_v15  ;;  %7535 = vrot.lane.b32.xlu0 %v12095_v60, %s8026_s21  ;;  %v4085_v49 = vsel %vm501_vm1, %v4083_v63, %v4084_v34  ;;  %v4253_v52 = vsel %vm672_vm2, %v4251_v58, %v4252_v24  ;;  %v12116_v6 = vsel %vm501_vm1, %v4084_v34, %v4086_v8 }
 0x683   : > { %v12119_v51 = vsel %vm672_vm2, %v4252_v24, %v4254_v17  ;;  %v12121_v40 = vpop.permute.xlu1 %7360  ;;  %v3762_v20 = vpop.permute.xlu2 %3761  ;;  %v12127_v22 = vpack.i.bf16 %v12116_v6, %v4085_v49  ;;  %v7564_v63 = vpack.i.bf16 %v4085_v49, %v4082_v57  ;;  %v12140_v17 = vpack.i.bf16 %v12098_v61, %v12101_v15 }
 0x684   : > { %v12124_v35 = vpack.i.bf16 %v12119_v51, %v4253_v52  ;;  %v7569_v58 = vpack.i.bf16 %v4253_v52, %v4250_v25 }
 0x685   : > { %14366 = vst [vmem:[#allocation110_spill] sm:$0xff] %v12127_v22 }
 0x686   : > { %14365 = vst [vmem:[#allocation83_spill] sm:$0xff] %v12124_v35 }
 0x687   : > { %v12129_v60 = vpop.permute.xlu0 %7355  ;;  %14369 = vst [vmem:[#allocation118_spill] sm:$0xff] %v12140_v17 }
 0x688   : > { %14367 = vst [vmem:[#allocation80_spill] sm:$0xff] %v12129_v60  ;;  %v14370_v60 = vld [vmem:[#allocation67_spill] sm:$0xff] }
 0x689   : > { %7555 = vrot.lane.b32.xlu1 %v12091_v13, %s8031_s14  ;;  %7565 = vrot.lane.b32.xlu2 %v7564_v63, %s8020_s22  ;;  %v7388_v13 = vunpack.i.h.bf16 %v7386_v5 }
 0x68a   : > { %7540 = vrot.lane.b32.xlu0 %v12045_v16, %s8031_s14 }
 0x68b   : > { %v12136_v34 = vpop.permute.xlu1 %7365  ;;  %v7396_v24 = vpop.permute.xlu2 %7395 }
 0x68c   : > { %14368 = vst [vmem:[#allocation113_spill] sm:$0xff] %v12136_v34  ;;  %v7387_v34 = vunpack.i.l.bf16 %v7386_v5 }
 0x68f   : > { %v3758_v8 = vpop.permute.xlu0 %3757 }
 0x690   : > { %v12151_v16 = vsel %vm1486_vm5, %v14370_v60, %v3758_v8  ;;  %v7397_v60 = vunpack.i.l.bf16 %v7396_v24 }
 0x691   : > { %7560 = vrot.lane.b32.xlu1 %v12140_v17, %s8026_s21  ;;  %7575 = vrot.lane.b32.xlu2 %v12127_v22, %s8031_s14  ;;  %14371 = vst [vmem:[#allocation117_spill] sm:$0xff] %v12151_v16  ;;  %v3903_v5 = vrot.slane %v12151_v16, 7  ;;  %v7398_v22 = vunpack.i.h.bf16 %v7396_v24 }
 0x692   : > { %7570 = vrot.lane.b32.xlu0 %v7569_v58, %s8030_s29  ;;  %v4941_v24 = vsel %vm1552_vm9, %v11777_v23, %v7397_v60 }
 0x693   : > { %v7381_v57 = vpop.permute.xlu1 %7380  ;;  %v12147_v49 = vpop.permute.xlu2 %7400 }
 0x694   : > { %v7383_v63 = vunpack.i.h.bf16 %v7381_v57  ;;  %v7382_v35 = vunpack.i.l.bf16 %v7381_v57 }
 0x696   : > { %v4940_v25 = vsel %vm1552_vm9, %v11749_v33, %v7383_v63  ;;  %v4939_v52 = vsel %vm1552_vm9, %v11720_v19, %v7382_v35  ;;  %v12169_v33 = vsel %vm342_vm0, 0.0, %v3903_v5  ;;  %v14373_v63 = vld [vmem:[#allocation101_spill] sm:$0xff]  ;;  %v14375_v35 = vld [vmem:[#allocation100_spill] sm:$0xff] }
 0x697   : > { %v12157_v17 = vpop.permute.xlu0 %7375  ;;  %v12160_v58 = vsel %vm4958_vm8, %v4940_v25, %v7388_v13  ;;  %v12163_v57 = vsel %vm4958_vm8, %v4939_v52, %v7387_v34  ;;  %14372 = vst [vmem:[#allocation133_spill] sm:$0xff] %v12169_v33  ;;  %v12178_v34 = vsel %vm1486_vm5, %v14375_v35, %v3762_v20  ;;  %v4942_v25 = vsel %vm1552_vm9, %v11805_v41, %v7398_v22 }
 0x698   : > { %14376 = vst [vmem:[#allocation122_spill] sm:$0xff] %v12178_v34  ;;  %v4088_v52 = vrot.slane %v12169_v33, 1  ;;  %v4256_v20 = vrot.slane %v12169_v33, 2 }
 0x69b   : > { %v3760_v8 = vpop.permute.xlu1 %3759  ;;  %v12166_v61 = vpop.permute.xlu2 %7425 }
 0x69c   : > { %v12173_v19 = vsel %vm1486_vm5, %v14373_v63, %v3760_v8 }
 0x69d   : > { %14374 = vst [vmem:[#allocation134_spill] sm:$0xff] %v12173_v19  ;;  %v3904_v13 = vrot.slane %v12173_v19, 7 }
 0x69f   : > { %v12186_v16 = vsel %vm342_vm0, %v3903_v5, %v3904_v13  ;;  %v3986_v8 = vsel %vm342_vm0, %v3904_v13, 0.0  ;;  %v7406_v63 = vpop.permute.xlu0 %7405 }
 0x6a0   : > { %14377 = vst [vmem:[#allocation50_spill] sm:$0xff] %v12186_v16  ;;  %v4091_v3 = vrot.slane %v3986_v8, 1  ;;  %v4259_v19 = vrot.slane %v3986_v8, 2  ;;  %v7408_v15 = vunpack.i.h.bf16 %v7406_v63  ;;  %v7407_v28 = vunpack.i.l.bf16 %v7406_v63 }
 0x6a1   : > { %v12192_v41 = vpack.i.bf16 %v12186_v16, %v12169_v33  ;;  %v4089_v23 = vrot.slane %v12186_v16, 1  ;;  %v4257_v22 = vrot.slane %v12186_v16, 2  ;;  %v3906_v16 = vrot.slane %v12178_v34, 7 }
 0x6a2   : > { %v4973_v5 = vsel %vm4958_vm8, %v4941_v24, %v7407_v28  ;;  %v4974_v60 = vsel %vm4958_vm8, %v4942_v25, %v7408_v15  ;;  %v7427_v15 = vunpack.i.l.bf16 %v12166_v61 }
 0x6a3   : > { %14378 = vst [vmem:[#allocation116_spill] sm:$0xff] %v12192_v41  ;;  %7580 = vrot.lane.b32.xlu2 %v12192_v41, %s8026_s21  ;;  %v12200_v13 = vpop.permute.xlu1 %7390  ;;  %v4090_v35 = vsel %vm501_vm1, %v4088_v52, %v4089_v23  ;;  %v4092_v8 = vsel %vm501_vm1, %v4089_v23, %v4091_v3  ;;  %v12204_v63 = vpop.permute.xlu2 %7440  ;;  %v4258_v33 = vsel %vm672_vm2, %v4256_v20, %v4257_v22  ;;  %v14383_v20 = vld [vmem:[#allocation105_spill] sm:$0xff] }
 0x6a4   : > { %14379 = vst [vmem:[#allocation121_spill] sm:$0xff] %v12204_v63  ;;  %v4260_v21 = vsel %vm672_vm2, %v4257_v22, %v4259_v19  ;;  %v12209_v28 = vpack.i.bf16 %v4092_v8, %v4090_v35  ;;  %4153 = vrot.lane.b32.xlu1 %v4092_v8, %s8020_s22  ;;  %v7584_v25 = vpack.i.bf16 %v4090_v35, %v12116_v6  ;;  %v3971_v19 = vsel %vm342_vm0, 0.0, %v3906_v16 }
 0x6a5   : > { %v12214_v24 = vpack.i.bf16 %v4260_v21, %v4258_v33  ;;  %v12218_v52 = vsel %vm3289_vm14, %v4974_v60, %v7427_v15  ;;  %v7337_v8 = vunpack.i.l.bf16 %v11982_v10  ;;  %v7589_v6 = vpack.i.bf16 %v4258_v33, %v12119_v51 }
 0x6a6   : > { %14380 = vst [vmem:[#allocation88_spill] sm:$0xff] %v12209_v28  ;;  %7585 = vrot.lane.b32.xlu0 %v7584_v25, %s8020_s22  ;;  %v7328_v35 = vunpack.i.h.bf16 %v11985_v44  ;;  %v4452_v34 = vrot.slane %v3971_v19, 1  ;;  %v4553_v63 = vrot.slane %v3971_v19, 2 }
 0x6a7   : > { %14381 = vst [vmem:[#allocation124_spill] sm:$0xff] %v12214_v24  ;;  %v3764_v3 = vpop.permute.xlu0 %3763 }
 0x6a8   : > { %14382 = vst [vmem:[#allocation120_spill] sm:$0xff] %v12218_v52  ;;  %v12223_v23 = vsel %vm1486_vm5, %v14383_v20, %v3764_v3  ;;  %v7343_v52 = vunpack.i.h.bf16 %v12000_v27 }
 0x6a9   : > { %14384 = vst [vmem:[#allocation132_spill] sm:$0xff] %v12223_v23  ;;  %v3907_v22 = vrot.slane %v12223_v23, 7 }
 0x6ab   : > { %v3908_v25 = vsel %vm342_vm0, %v3906_v16, %v3907_v22  ;;  %v3987_v60 = vsel %vm342_vm0, %v3907_v22, 0.0  ;;  %4321 = vrot.lane.b32.xlu2 %v4260_v21, %s8030_s29  ;;  %v7421_v15 = vpop.permute.xlu1 %7420  ;;  %v12232_v24 = vpop.permute.xlu2 %7465  ;;  %v7347_v21 = vunpack.i.l.bf16 %v12027_v0  ;;  %vm5022_vm0 = vcmask 654336  }
 0x6ac   : > { %v4453_v3 = vrot.slane %v3908_v25, 1  ;;  %v4455_v20 = vrot.slane %v3987_v60, 1  ;;  %v4554_v41 = vrot.slane %v3908_v25, 2  ;;  %v4556_v23 = vrot.slane %v3987_v60, 2  ;;  %7590 = vrot.lane.b32.xlu1 %v7589_v6, %s8030_s29 }
 0x6ad   : > { %v7423_v51 = vunpack.i.h.bf16 %v7421_v15  ;;  %v7422_v33 = vunpack.i.l.bf16 %v7421_v15  ;;  %v12238_v26 = vpack.i.bf16 %v3908_v25, %v3971_v19  ;;  %v7392_v19 = vunpack.i.l.bf16 %v12200_v13 }
 0x6ae   : > { %v4454_v16 = vsel %vm501_vm1, %v4452_v34, %v4453_v3  ;;  %v4456_v22 = vsel %vm501_vm1, %v4453_v3, %v4455_v20  ;;  %7600 = vrot.lane.b32.xlu0 %v12209_v28, %s8031_s14  ;;  %v4555_v15 = vsel %vm672_vm2, %v4553_v63, %v4554_v41  ;;  %v7393_v34 = vunpack.i.h.bf16 %v12200_v13 }
 0x6af   : > { %v12243_v2 = vsel %vm3289_vm14, %v12160_v58, %v7422_v33  ;;  %v12246_v60 = vsel %vm3289_vm14, %v4973_v5, %v7423_v51  ;;  %v7411_v6 = vpop.permute.xlu0 %7410  ;;  %v4557_v25 = vsel %vm672_vm2, %v4554_v41, %v4556_v23  ;;  %v12254_v3 = vpack.i.bf16 %v4456_v22, %v4454_v16 }
 0x6b0   : > { %v7413_v20 = vunpack.i.h.bf16 %v7411_v6  ;;  %v7412_v58 = vunpack.i.l.bf16 %v7411_v6  ;;  %v12256_v33 = vpack.i.bf16 %v4557_v25, %v4555_v15  ;;  %v4935_v5 = vsel %vm1552_vm9, %v11644_v48, %v7337_v8 }
 0x6b1   : > { %v4934_v51 = vsel %vm1552_vm9, %v11626_v4, %v7328_v35  ;;  %v4967_v28 = vsel %vm4958_vm8, %v4935_v5, %v7347_v21  ;;  %v7428_v13 = vunpack.i.h.bf16 %v12166_v61  ;;  %v14385_v41 = vpack.i.bf16 %v11533_v14, %v11530_v59 }
 0x6b2   : > { %v4966_v63 = vsel %vm4958_vm8, %v4934_v51, %v7343_v52  ;;  %v4999_v61 = vsel %vm3289_vm14, %v4967_v28, %v7393_v34  ;;  %v4944_v35 = vsel %vm1552_vm9, %v11846_v11, %v7413_v20  ;;  %v4943_v59 = vsel %vm1552_vm9, %v11802_v50, %v7412_v58 }
 0x6b3   : > { %7595 = vrot.lane.b32.xlu2 %v14385_v41, %s8032_s15  ;;  %v7431_v23 = vpop.permute.xlu1 %7430  ;;  %v7471_v16 = vpop.permute.xlu2 %7470  ;;  %v4998_v8 = vsel %vm3289_vm14, %v4966_v63, %v7392_v19  ;;  %v7468_v41 = vunpack.i.h.bf16 %v12232_v24  ;;  %vm5055_vm1 = vcmask 818176   ;;  %vm5088_vm2 = vcmask 982016  }
 0x6b4   : > { %v7433_v22 = vunpack.i.h.bf16 %v7431_v23  ;;  %v7432_v48 = vunpack.i.l.bf16 %v7431_v23  ;;  %7610 = vrot.lane.b32.xlu1 %v11565_v30, %s8018_s20  ;;  %v7473_v4 = vunpack.i.h.bf16 %v7471_v16  ;;  %v7472_v52 = vunpack.i.l.bf16 %v7471_v16 }
 0x6b5   : > { %v7467_v23 = vunpack.i.l.bf16 %v12232_v24 }
 0x6b6   : > { %v4975_v14 = vsel %vm4958_vm8, %v4943_v59, %v7432_v48  ;;  %v4976_v21 = vsel %vm4958_vm8, %v4944_v35, %v7433_v22  ;;  %v12280_v6 = vsel %vm5022_vm0, %v4998_v8, %v7472_v52  ;;  %v12283_v30 = vsel %vm5022_vm0, %v4999_v61, %v7473_v4  ;;  %7605 = vrot.lane.b32.xlu0 %v11774_v45, %s8033_s16 }
 0x6b7   : > { %v12287_v28 = vpop.permute.xlu0 %7415  ;;  %v12290_v11 = vsel %vm3289_vm14, %v4975_v14, %v7428_v13  ;;  %v7313_v4 = vunpack.i.h.bf16 %v11968_v37  ;;  %v7327_v52 = vunpack.i.l.bf16 %v11985_v44  ;;  %v7333_v8 = vunpack.i.h.bf16 %v12047_v42 }
 0x6b8   : > { %v7418_v50 = vunpack.i.h.bf16 %v12287_v28  ;;  %v7378_v61 = vunpack.i.h.bf16 %v12157_v17  ;;  %v7377_v44 = vunpack.i.l.bf16 %v12157_v17 }
 0x6b9   : > { %v4932_v35 = vsel %vm1552_vm9, %v11583_v39, %v7313_v4 }
 0x6ba   : > { %v12295_v15 = vsel %vm3289_vm14, %v12163_v57, %v7418_v50 }
 0x6bb   : > { %7615 = vrot.lane.b32.xlu2 %v11569_v12, %s8023_s8  ;;  %v12299_v34 = vpop.permute.xlu1 %7435  ;;  %v7481_v19 = vpop.permute.xlu2 %7480 }
 0x6bc   : > { %7630 = vrot.lane.b32.xlu1 %v12254_v3, %s8031_s14 }
 0x6be   : > { %7620 = vrot.lane.b32.xlu0 %v12238_v26, %s8026_s21 }
 0x6bf   : > { %v7446_v45 = vpop.permute.xlu0 %7445 }
 0x6c0   : > { %v7447_v25 = vunpack.i.l.bf16 %v7446_v45  ;;  %v7448_v16 = vunpack.i.h.bf16 %v7446_v45 }
 0x6c2   : > { %v12306_v20 = vsel %vm3289_vm14, %v4976_v21, %v7447_v25  ;;  %v4964_v21 = vsel %vm4958_vm8, %v4932_v35, %v7333_v8  ;;  %v7482_v25 = vunpack.i.l.bf16 %v7481_v19  ;;  %v7403_v8 = vunpack.i.h.bf16 %v12147_v49 }
 0x6c3   : > { %7640 = vrot.lane.b32.xlu2 %v11608_v7, %s8018_s20  ;;  %v7456_v57 = vpop.permute.xlu1 %7455  ;;  %v7501_v58 = vpop.permute.xlu2 %7500  ;;  %v4996_v39 = vsel %vm3289_vm14, %v4964_v21, %v7377_v44  ;;  %v7363_v21 = vunpack.i.h.bf16 %v12121_v40 }
 0x6c4   : > { %v7458_v5 = vunpack.i.h.bf16 %v7456_v57  ;;  %v7457_v51 = vunpack.i.l.bf16 %v7456_v57  ;;  %7635 = vrot.lane.b32.xlu1 %v11743_v9, %s8033_s16  ;;  %v7503_v63 = vunpack.i.h.bf16 %v7501_v58  ;;  %v7502_v13 = vunpack.i.l.bf16 %v7501_v58 }
 0x6c6   : > { %v4946_v22 = vsel %vm1552_vm9, %v11898_v36, %v7458_v5  ;;  %v4945_v7 = vsel %vm1552_vm9, %v11865_v29, %v7457_v51  ;;  %v12320_v48 = vsel %vm5022_vm0, %v12243_v2, %v7502_v13  ;;  %v12324_v9 = vsel %vm5022_vm0, %v12246_v60, %v7503_v63  ;;  %7625 = vrot.lane.b32.xlu0 %v11569_v12, %s8032_s15 }
 0x6c7   : > { %v4977_v24 = vsel %vm4958_vm8, %v4945_v7, %v7467_v23  ;;  %v12331_v36 = vpop.permute.xlu0 %7450  ;;  %v4978_v29 = vsel %vm4958_vm8, %v4946_v22, %v7468_v41  ;;  %v7342_v2 = vunpack.i.l.bf16 %v12000_v27  ;;  %v4933_v12 = vsel %vm1552_vm9, %v11594_v54, %v7327_v52 }
 0x6c8   : > { %v12337_v60 = vsel %vm3289_vm14, %v4977_v24, %v7448_v16  ;;  %v7483_v54 = vunpack.i.h.bf16 %v7481_v19  ;;  %v7338_v63 = vunpack.i.h.bf16 %v11982_v10  ;;  %v4947_v19 = vsel %vm1552_vm9, %v11919_v46, %v7482_v25 }
 0x6c9   : > { %v4965_v14 = vsel %vm4958_vm8, %v4933_v12, %v7342_v2  ;;  %v7348_v23 = vunpack.i.h.bf16 %v12027_v0  ;;  %v7362_v7 = vunpack.i.l.bf16 %v12121_v40 }
 0x6ca   : > { %v4997_v17 = vsel %vm3289_vm14, %v4965_v14, %v7378_v61  ;;  %v4948_v13 = vsel %vm1552_vm9, %v11956_v47, %v7483_v54  ;;  %v4936_v2 = vsel %vm1552_vm9, %v11675_v55, %v7338_v63  ;;  %v7402_v61 = vunpack.i.l.bf16 %v12147_v49 }
 0x6cb   : > { %7655 = vrot.lane.b32.xlu2 %v11820_v31, %s8033_s16  ;;  %v7461_v59 = vpop.permute.xlu1 %7460  ;;  %v12347_v27 = vpop.permute.xlu2 %7505  ;;  %v4968_v44 = vsel %vm4958_vm8, %v4936_v2, %v7348_v23 }
 0x6cc   : > { %v7463_v50 = vunpack.i.h.bf16 %v7461_v59  ;;  %v7462_v45 = vunpack.i.l.bf16 %v7461_v59  ;;  %7650 = vrot.lane.b32.xlu1 %v11616_v32, %s8032_s15  ;;  %v7507_v41 = vunpack.i.l.bf16 %v12347_v27  ;;  %v7353_v59 = vunpack.i.h.bf16 %v12103_v38 }
 0x6ce   : > { %v12356_v31 = vsel %vm5022_vm0, %v4996_v39, %v7462_v45  ;;  %v12359_v57 = vsel %vm5022_vm0, %v4997_v17, %v7463_v50  ;;  %7645 = vrot.lane.b32.xlu0 %v11616_v32, %s8023_s8  ;;  %v7352_v32 = vunpack.i.l.bf16 %v12103_v38  ;;  %v7417_v39 = vunpack.i.l.bf16 %v12287_v28 }
 0x6cf   : > { %v7486_v58 = vpop.permute.xlu0 %7485 }
 0x6d0   : > { %v7488_v5 = vunpack.i.h.bf16 %v7486_v58  ;;  %v7487_v51 = vunpack.i.l.bf16 %v7486_v58 }
 0x6d2   : > { %v4979_v16 = vsel %vm4958_vm8, %v4947_v19, %v7487_v51  ;;  %v4980_v22 = vsel %vm4958_vm8, %v4948_v13, %v7488_v5  ;;  %v14387_v19 = vld [vmem:[#allocation9_spill] sm:$0xff] }
 0x6d3   : > { %7670 = vrot.lane.b32.xlu2 %v11661_v62, %s8032_s15  ;;  %v7476_v10 = vpop.permute.xlu1 %7475  ;;  %v7531_v47 = vpop.permute.xlu2 %7530  ;;  %v12377_v4 = vsel %vm3289_vm14, %v4980_v22, %v7507_v41  ;;  %v14388_v22 = vld [vmem:[#allocation42_spill] sm:$0xff] }
 0x6d4   : > { %v7478_v46 = vunpack.i.h.bf16 %v7476_v10  ;;  %v7477_v52 = vunpack.i.l.bf16 %v7476_v10  ;;  %7665 = vrot.lane.b32.xlu1 %v11661_v62, %s8023_s8  ;;  %v7533_v0 = vunpack.i.h.bf16 %v7531_v47  ;;  %v7532_v24 = vunpack.i.l.bf16 %v7531_v47 }
 0x6d5   : > { %v4937_v62 = vsel %vm1552_vm9, %v11672_v43, %v7352_v32  ;;  %v5000_v43 = vsel %vm3289_vm14, %v4968_v44, %v7402_v61  ;;  %v7508_v10 = vunpack.i.h.bf16 %v12347_v27  ;;  %v14391_v61 = vld [vmem:[#allocation18_spill] sm:$0xff] }
 0x6d6   : > { %v5010_v35 = vsel %vm3289_vm14, %v4978_v29, %v7477_v52  ;;  %v5011_v12 = vsel %vm3289_vm14, %v4979_v16, %v7478_v46  ;;  %7660 = vrot.lane.b32.xlu0 %v11658_v1, %s8018_s20  ;;  %v4969_v29 = vsel %vm4958_vm8, %v4937_v62, %v7362_v7  ;;  %v4938_v1 = vsel %vm1552_vm9, %v11707_v18, %v7353_v59  ;;  %v14386_v18 = vld [vmem:[#allocation35_spill] sm:$0xff]  ;;  %v14390_v46 = vld [vmem:[#allocation57_spill] sm:$0xff]  ;;  %v14392_v59 = vld [vmem:[#allocation12_spill] sm:$0xff] }
 0x6d7   : > { %v12392_v14 = vsel %vm5022_vm0, %v5010_v35, %v7532_v24  ;;  %v12395_v55 = vsel %vm5022_vm0, %v5011_v12, %v7533_v0  ;;  %v7491_v49 = vpop.permute.xlu0 %7490  ;;  %v5001_v38 = vsel %vm3289_vm14, %v4969_v29, %v7403_v8  ;;  %v4970_v25 = vsel %vm4958_vm8, %v4938_v1, %v7363_v21  ;;  %v14393_v29 = vld [vmem:[#allocation120_spill] sm:$0xff] }
 0x6d8   : > { %v7493_v50 = vunpack.i.h.bf16 %v7491_v49  ;;  %v7492_v45 = vunpack.i.l.bf16 %v7491_v49  ;;  %v5002_v28 = vsel %vm3289_vm14, %v4970_v25, %v7417_v39 }
 0x6da   : > { %v12405_v17 = vsel %vm5022_vm0, %v5000_v43, %v7492_v45  ;;  %v12408_v54 = vsel %vm5022_vm0, %v5001_v38, %v7493_v50  ;;  %v14394_v38 = vld [vmem:[#allocation7_spill] sm:$0xff] }
 0x6db   : > { %7685 = vrot.lane.b32.xlu2 %v11689_v53, %s8023_s8  ;;  %v7496_v40 = vpop.permute.xlu1 %7495  ;;  %v7551_v13 = vpop.permute.xlu2 %7550 }
 0x6dc   : > { %v7498_v58 = vunpack.i.h.bf16 %v7496_v40  ;;  %v7497_v5 = vunpack.i.l.bf16 %v7496_v40  ;;  %7680 = vrot.lane.b32.xlu1 %v11687_v56, %s8018_s20  ;;  %v7553_v40 = vunpack.i.h.bf16 %v7551_v13  ;;  %v7552_v25 = vunpack.i.l.bf16 %v7551_v13 }
 0x6de   : > { %v12419_v51 = vsel %vm5022_vm0, %v5002_v28, %v7497_v5  ;;  %v12423_v63 = vsel %vm5022_vm0, %v12295_v15, %v7498_v58  ;;  %7675 = vrot.lane.b32.xlu0 %v14386_v18, %s8033_s16  ;;  %v14389_v15 = vld [vmem:[#allocation58_spill] sm:$0xff]  ;;  %v14395_v18 = vld [vmem:[#allocation115_spill] sm:$0xff] }
 0x6e3   : > { %7700 = vrot.lane.b32.xlu2 %v14387_v19, %s8018_s20  ;;  %v7521_v41 = vpop.permute.xlu1 %7520  ;;  %v12441_v8 = vpop.permute.xlu2 %7565 }
 0x6e4   : > { %v7523_v23 = vunpack.i.h.bf16 %v7521_v41  ;;  %v7522_v16 = vunpack.i.l.bf16 %v7521_v41  ;;  %v7511_v56 = vpop.permute.xlu0 %7510  ;;  %7695 = vrot.lane.b32.xlu1 %v14388_v22, %s8033_s16  ;;  %v14396_v41 = vld [vmem:[#allocation79_spill] sm:$0xff]  ;;  %v14397_v22 = vld [vmem:[#allocation85_spill] sm:$0xff] }
 0x6e5   : > { %v7513_v32 = vunpack.i.h.bf16 %v7511_v56  ;;  %v7512_v7 = vunpack.i.l.bf16 %v7511_v56 }
 0x6e6   : > { %7690 = vrot.lane.b32.xlu0 %v11689_v53, %s8032_s15 }
 0x6e7   : > { %v4950_v47 = vsel %vm1552_vm9, %v14389_v15, %v7513_v32  ;;  %v4949_v52 = vsel %vm1552_vm9, %v14390_v46, %v7512_v7  ;;  %v5998_v7 = vld [vmem:[%s13402_s5 + $0x28] sm:$0xff] }
 0x6e8   : > { %v4981_v0 = vsel %vm4958_vm8, %v4949_v52, %v7522_v16  ;;  %v4982_v24 = vsel %vm4958_vm8, %v4950_v47, %v7523_v23 }
 0x6e9   : > { %v5013_v2 = vsel %vm3289_vm14, %v4981_v0, %v7508_v10  ;;  %v14398_v10 = vld [vmem:[#allocation41_spill] sm:$0xff] }
 0x6ea   : > { %v14399_v0 = vld [vmem:[#allocation69_spill] sm:$0xff] }
 0x6eb   : > { %7715 = vrot.lane.b32.xlu2 %v14391_v61, %s8033_s16  ;;  %v7526_v27 = vpop.permute.xlu1 %7525  ;;  %v12475_v58 = vpop.permute.xlu2 %7575 }
 0x6ec   : > { %v7528_v44 = vunpack.i.h.bf16 %v7526_v27  ;;  %v7527_v35 = vunpack.i.l.bf16 %v7526_v27  ;;  %v7516_v12 = vpop.permute.xlu0 %7515  ;;  %7710 = vrot.lane.b32.xlu1 %v14392_v59, %s8032_s15 }
 0x6ed   : > { %v7518_v62 = vunpack.i.h.bf16 %v7516_v12  ;;  %v7517_v53 = vunpack.i.l.bf16 %v7516_v12 }
 0x6ee   : > { %v12449_v49 = vsel %vm5022_vm0, %v12306_v20, %v7527_v35  ;;  %v12453_v21 = vsel %vm5022_vm0, %v12337_v60, %v7528_v44  ;;  %7705 = vrot.lane.b32.xlu0 %v14392_v59, %s8023_s8  ;;  %v6000_v20 = vld [vmem:[%s13402_s5 + $0x38] sm:$0xff]  ;;  %v5999_v60 = vld [vmem:[%s13402_s5 + $0x30] sm:$0xff] }
 0x6ef   : > { %v12457_v50 = vsel %vm5022_vm0, %v14393_v29, %v7517_v53  ;;  %v12461_v45 = vsel %vm5022_vm0, %v12290_v11, %v7518_v62  ;;  %5363 = vmatpush.bf16.msra.mxu2 %v6000_v20  ;;  %v14400_v53 = vld [vmem:[#allocation48_spill] sm:$0xff] }
 0x6f0   : > { %v5237_v29 = vld [vmem:[%s13402_s5 + $0x58] sm:$0x3] }
 0x6f1   : > { %v5287_v20 = vunpack.c.l.b16 %v5237_v29  ;;  %v5993_v29 = vld [vmem:[%s13402_s5] sm:$0xff] }
 0x6f3   : > { %7730 = vrot.lane.b32.xlu2 %v14394_v38, %s8032_s15  ;;  %v7546_v43 = vpop.permute.xlu1 %7545  ;;  %5364 = vmatpush.bf16.msra.mxu2 %v5999_v60  ;;  %v5996_v60 = vld [vmem:[%s13402_s5 + $0x18] sm:$0xff] }
 0x6f4   : > { %v7536_v39 = vpop.permute.xlu0 %7535  ;;  %v7548_v1 = vunpack.i.h.bf16 %v7546_v43  ;;  %v7547_v11 = vunpack.i.l.bf16 %v7546_v43  ;;  %7725 = vrot.lane.b32.xlu1 %v14394_v38, %s8023_s8  ;;  %v7568_v38 = vunpack.i.h.bf16 %v12441_v8  ;;  %v5299_v43 = vpack.c.b16 %v5287_v20, %v5287_v20 }
 0x6f5   : > { %v7537_v5 = vunpack.i.l.bf16 %v7536_v39  ;;  %v7538_v28 = vunpack.i.h.bf16 %v7536_v39 }
 0x6f6   : > { %v4952_v19 = vsel %vm1552_vm9, %v14395_v18, %v7548_v1  ;;  %v4951_v23 = vsel %vm1552_vm9, %v14396_v41, %v7547_v11  ;;  %7720 = vrot.lane.b32.xlu0 %v14397_v22, %s8018_s20  ;;  %v14404_v22 = vld [vmem:[#allocation108_spill] sm:$0xff] }
 0x6f7   : > { %v5014_v16 = vsel %vm3289_vm14, %v4982_v24, %v7537_v5  ;;  %v4983_v56 = vsel %vm4958_vm8, %v4951_v23, %v7552_v25  ;;  %v4984_v13 = vsel %vm4958_vm8, %v4952_v19, %v7553_v40  ;;  %5365 = vmatpush.bf16.msra.mxu2 %v5998_v7  ;;  %v5997_v24 = vld [vmem:[%s13402_s5 + $0x20] sm:$0xff]  ;;  %v14402_v25 = vld [vmem:[#allocation55_spill] sm:$0xff]  ;;  %v5361_v5 = vsel %vm1773_vm3, %v5299_v43, 0 }
 0x6f8   : > { %v5015_v32 = vsel %vm3289_vm14, %v4983_v56, %v7538_v28  ;;  %v5995_v28 = vld [vmem:[%s13402_s5 + $0x10] sm:$0xff]  ;;  %5456 = vmatpush.bf16.msra.mxu3 %v5361_v5  ;;  %vm5311_vm3 = vcmask 424960  }
 0x6f9   : > { %v6003_v23 = vld [vmem:[%s13402_s5 + $0x50] sm:$0xff] }
 0x6fb   : > { %7745 = vrot.lane.b32.xlu2 %v14398_v10, %s8023_s8  ;;  %v7556_v15 = vpop.permute.xlu1 %7555  ;;  %5366 = vmatpush.bf16.msra.mxu2 %v5997_v24 }
 0x6fc   : > { %v7541_v47 = vpop.permute.xlu0 %7540  ;;  %v7558_v46 = vunpack.i.h.bf16 %v7556_v15  ;;  %v7557_v52 = vunpack.i.l.bf16 %v7556_v15  ;;  %7740 = vrot.lane.b32.xlu1 %v14399_v0, %s8018_s20  ;;  %v5994_v0 = vld [vmem:[%s13402_s5 + $0x8] sm:$0xff]  ;;  %5457 = vmatpush.bf16.msra.mxu3 %v6003_v23  ;;  %v14412_v23 = vld [vmem:[#allocation104_spill] sm:$0xff] }
 0x6fd   : > { %v7543_v61 = vunpack.i.h.bf16 %v7541_v47  ;;  %v7542_v27 = vunpack.i.l.bf16 %v7541_v47  ;;  %v12497_v44 = vpop.permute.xlu2 %7580  ;;  %v7578_v47 = vunpack.i.h.bf16 %v12475_v58 }
 0x6fe   : > { %v12500_v35 = vsel %vm5022_vm0, %v5014_v16, %v7557_v52  ;;  %v12503_v12 = vsel %vm5022_vm0, %v5015_v32, %v7558_v46  ;;  %7735 = vrot.lane.b32.xlu0 %v14400_v53, %s8033_s16  ;;  %v14403_v16 = vld [vmem:[#allocation114_spill] sm:$0xff]  ;;  %v7582_v7 = vunpack.i.l.bf16 %v12497_v44 }
 0x6ff   : > { %v12507_v59 = vsel %vm5022_vm0, %v12377_v4, %v7542_v27  ;;  %v12510_v62 = vsel %vm5022_vm0, %v5013_v2, %v7543_v61  ;;  %v7567_v4 = vunpack.i.l.bf16 %v12441_v8  ;;  %v14401_v2 = vld [vmem:[#allocation87_spill] sm:$0xff]  ;;  %5367 = vmatpush.bf16.msra.mxu2 %v5996_v60  ;;  %v7577_v8 = vunpack.i.l.bf16 %v12475_v58  ;;  %v6002_v58 = vld [vmem:[%s13402_s5 + $0x48] sm:$0xff]  ;;  %v6001_v60 = vld [vmem:[%s13402_s5 + $0x40] sm:$0xff] }
 0x700   : > { %v4954_v56 = vsel %vm1552_vm9, %v14403_v16, %v7568_v38  ;;  %v14406_v53 = vld [vmem:[#allocation94_spill] sm:$0xff]  ;;  %5458 = vmatpush.bf16.msra.mxu3 %v6002_v58  ;;  %v14407_v38 = vld [vmem:[#allocation27_spill] sm:$0xff]  ;;  %v7302_v16 = vunpack.i.l.bf16 %v14412_v23 }
 0x701   : > { %v4953_v32 = vsel %vm1552_vm9, %v14404_v22, %v7567_v4 }
 0x703   : > { %7760 = vrot.lane.b32.xlu2 %v14401_v2, %s8018_s20  ;;  %v7561_v39 = vpop.permute.xlu1 %7560  ;;  %5368 = vmatpush.bf16.msra.mxu2 %v5995_v28  ;;  %v14408_v2 = vld [vmem:[#allocation50_spill] sm:$0xff] }
 0x704   : > { %v7563_v1 = vunpack.i.h.bf16 %v7561_v39  ;;  %v7562_v11 = vunpack.i.l.bf16 %v7561_v39  ;;  %v7571_v40 = vpop.permute.xlu0 %7570  ;;  %7755 = vrot.lane.b32.xlu1 %v14402_v25, %s8033_s16  ;;  %5459 = vmatpush.bf16.msra.mxu3 %v6001_v60  ;;  %v14410_v25 = vld [vmem:[#allocation99_spill] sm:$0xff]  ;;  %v14416_v60 = vld [vmem:[#allocation130_spill] sm:$0xff] }
 0x705   : > { %v7573_v18 = vunpack.i.h.bf16 %v7571_v40  ;;  %v7572_v19 = vunpack.i.l.bf16 %v7571_v40  ;;  %v4322_v41 = vpop.permute.xlu2 %4321 }
 0x706   : > { %v5016_v15 = vsel %vm3289_vm14, %v4984_v13, %v7562_v11  ;;  %7750 = vrot.lane.b32.xlu0 %v14398_v10, %s8032_s15  ;;  %v14405_v10 = vld [vmem:[#allocation64_spill] sm:$0xff] }
 0x707   : > { %v4985_v46 = vsel %vm4958_vm8, %v4953_v32, %v7572_v19  ;;  %v4986_v52 = vsel %vm4958_vm8, %v4954_v56, %v7573_v18  ;;  %v12549_v24 = vsel %vm5022_vm0, %v5016_v15, %v7577_v8  ;;  %5369 = vmatpush.bf16.msra.mxu2 %v5994_v0  ;;  %v14411_v8 = vld [vmem:[#allocation29_spill] sm:$0xff]  ;;  %v14413_v32 = vld [vmem:[#allocation44_spill] sm:$0xff] }
 0x708   : > { %v5017_v61 = vsel %vm3289_vm14, %v4985_v46, %v7563_v1  ;;  %v5018_v13 = vsel %vm3289_vm14, %v4986_v52, %v7582_v7  ;;  %v14409_v1 = vld [vmem:[#allocation106_spill] sm:$0xff]  ;;  %v14414_v7 = vld [vmem:[#allocation133_spill] sm:$0xff] }
 0x709   : > { %v12557_v27 = vsel %vm5022_vm0, %v5017_v61, %v7578_v47  ;;  %v14415_v47 = vld [vmem:[#allocation89_spill] sm:$0xff] }
 0x70b   : > { %7775 = vrot.lane.b32.xlu2 %v14405_v10, %s8033_s16  ;;  %5370 = vmatpush.bf16.msra.mxu2 %v5993_v29  ;;  %v4927_v29 = vsel %vm1552_vm9, 0.0, %v7302_v16 }
 0x70c   : > { %7770 = vrot.lane.b32.xlu1 %v14406_v53, %s8032_s15 }
 0x70d   : > { %v12566_v20 = vpop.permute.xlu2 %7595 }
 0x70e   : > { %7765 = vrot.lane.b32.xlu0 %v14406_v53, %s8023_s8 }
 0x713   : > { %7790 = vrot.lane.b32.xlu2 %v14407_v38, %s8032_s15 }
 0x714   : > { %7785 = vrot.lane.b32.xlu1 %v14407_v38, %s8023_s8 }
 0x715   : > { %v12577_v4 = vpop.permute.xlu2 %7615 }
 0x716   : > { %v4154_v43 = vpop.permute.xlu1 %4153  ;;  %7780 = vrot.lane.b32.xlu0 %v14409_v1, %s8018_s20  ;;  %v14418_v1 = vld [vmem:[#allocation107_spill] sm:$0xff] }
 0x717   : > { %v4957_v39 = vsel %vm1552_vm9, %v14408_v2, %v4154_v43 }
 0x718   : > { %v12584_v11 = vsel %vm4958_vm8, %v4957_v39, %v4322_v41  ;;  %v7586_v40 = vpop.permute.xlu0 %7585  ;;  %v7583_v41 = vunpack.i.h.bf16 %v12497_v44  ;;  %v14417_v44 = vld [vmem:[#allocation80_spill] sm:$0xff] }
 0x719   : > { %v7588_v5 = vunpack.i.h.bf16 %v7586_v40  ;;  %v7587_v28 = vunpack.i.l.bf16 %v7586_v40  ;;  %v7358_v38 = vunpack.i.h.bf16 %v14417_v44  ;;  %v7357_v43 = vunpack.i.l.bf16 %v14417_v44  ;;  %v14419_v40 = vld [vmem:[#allocation31_spill] sm:$0xff]  ;;  %v14421_v44 = vld [vmem:[#allocation93_spill] sm:$0xff] }
 0x71b   : > { %7805 = vrot.lane.b32.xlu2 %v14410_v25, %s8023_s8  ;;  %v4956_v15 = vsel %vm1552_vm9, %v14414_v7, %v7588_v5  ;;  %v4955_v46 = vsel %vm1552_vm9, %v14415_v47, %v7587_v28  ;;  %v7317_v5 = vunpack.i.l.bf16 %v14419_v40  ;;  %v7438_v28 = vunpack.i.h.bf16 %v12299_v34 }
 0x71c   : > { %7800 = vrot.lane.b32.xlu1 %v14411_v8, %s8018_s20  ;;  %v7437_v8 = vunpack.i.l.bf16 %v12299_v34 }
 0x71d   : > { %v12590_v18 = vpop.permute.xlu2 %7640 }
 0x71e   : > { %v7591_v19 = vpop.permute.xlu1 %7590  ;;  %7795 = vrot.lane.b32.xlu0 %v14413_v32, %s8033_s16 }
 0x71f   : > { %v7593_v56 = vunpack.i.h.bf16 %v7591_v19  ;;  %v7592_v22 = vunpack.i.l.bf16 %v7591_v19 }
 0x720   : > { %v7601_v61 = vpop.permute.xlu0 %7600 }
 0x721   : > { %v4987_v52 = vsel %vm4958_vm8, %v4955_v46, %v7592_v22  ;;  %v4988_v0 = vsel %vm4958_vm8, %v4956_v15, %v7593_v56  ;;  %v7603_v58 = vunpack.i.h.bf16 %v7601_v61  ;;  %v7602_v10 = vunpack.i.l.bf16 %v7601_v61 }
 0x722   : > { %v5019_v53 = vsel %vm3289_vm14, %v4987_v52, %v7583_v41  ;;  %v4959_v56 = vsel %vm4958_vm8, %v4927_v29, %v7317_v5  ;;  %v7597_v22 = vunpack.i.l.bf16 %v12566_v20 }
 0x723   : > { %7820 = vrot.lane.b32.xlu2 %v14416_v60, %s8018_s20  ;;  %v12609_v2 = vsel %vm5022_vm0, %v5018_v13, %v7602_v10  ;;  %v12612_v39 = vsel %vm5022_vm0, %v5019_v53, %v7603_v58  ;;  %v7598_v13 = vunpack.i.h.bf16 %v12566_v20  ;;  %v4990_v32 = vsel %vm3289_vm14, %v4959_v56, %v7357_v43 }
 0x724   : > { %7815 = vrot.lane.b32.xlu1 %v14418_v1, %s8033_s16  ;;  %v4991_v41 = vsel %vm3289_vm14, %v4959_v56, %v7358_v38  ;;  %v5023_v7 = vsel %vm5022_vm0, %v4990_v32, %v7437_v8  ;;  %v7618_v20 = vunpack.i.h.bf16 %v12577_v4  ;;  %v7617_v58 = vunpack.i.l.bf16 %v12577_v4 }
 0x725   : > { %v12619_v19 = vpop.permute.xlu2 %7655  ;;  %v5024_v34 = vsel %vm5022_vm0, %v4991_v41, %v7438_v28  ;;  %v5056_v10 = vsel %vm5055_vm1, %v5023_v7, %v7597_v22 }
 0x726   : > { %v7611_v16 = vpop.permute.xlu1 %7610  ;;  %7810 = vrot.lane.b32.xlu0 %v14410_v25, %s8032_s15  ;;  %v14420_v25 = vld [vmem:[#allocation60_spill] sm:$0xff]  ;;  %v5057_v53 = vsel %vm5055_vm1, %v5024_v34, %v7598_v13  ;;  %v7303_v13 = vunpack.i.h.bf16 %v14412_v23 }
 0x727   : > { %v7613_v47 = vunpack.i.h.bf16 %v7611_v16  ;;  %v7612_v46 = vunpack.i.l.bf16 %v7611_v16  ;;  %v14422_v34 = vld [vmem:[#allocation24_spill] sm:$0xff] }
 0x728   : > { %v7606_v15 = vpop.permute.xlu0 %7605 }
 0x729   : > { %v7608_v52 = vunpack.i.h.bf16 %v7606_v15  ;;  %v7607_v61 = vunpack.i.l.bf16 %v7606_v15  ;;  %v14423_v15 = vld [vmem:[#allocation71_spill] sm:$0xff] }
 0x72b   : > { %7835 = vrot.lane.b32.xlu2 %v14420_v25, %s8033_s16  ;;  %v5122_v29 = vsel %vm1486_vm5, %v7608_v52, %v7613_v47  ;;  %v5121_v60 = vsel %vm1486_vm5, %v7607_v61, %v7612_v46  ;;  %v5089_v38 = vsel %vm5088_vm2, %v5056_v10, %v7607_v61  ;;  %v5090_v43 = vsel %vm5088_vm2, %v5057_v53, %v7608_v52  ;;  %v14424_v61 = vld [vmem:[#allocation96_spill] sm:$0xff]  ;;  %v14425_v10 = vld [vmem:[#allocation70_spill] sm:$0xff] }
 0x72c   : > { %7830 = vrot.lane.b32.xlu1 %v14421_v44, %s8032_s15  ;;  %v5183_v4 = vpack.c.bf16 %v5090_v43, %v5089_v38  ;;  %v5152_v5 = vsel %vm1651_vm11, %v5121_v60, %v7617_v58  ;;  %v5153_v28 = vsel %vm1651_vm11, %v5122_v29, %v7618_v20  ;;  %v7307_v47 = vunpack.i.l.bf16 %v14423_v15  ;;  %v14427_v38 = vld [vmem:[#allocation121_spill] sm:$0xff] }
 0x72d   : > { %v12642_v1 = vpop.permute.xlu2 %7670  ;;  %v5184_v16 = vpack.c.bf16 %v5153_v28, %v5152_v5  ;;  %v7322_v20 = vunpack.i.l.bf16 %v14424_v61  ;;  %v4928_v53 = vsel %vm1552_vm9, %v14425_v10, %v7303_v13  ;;  %v7443_v43 = vunpack.i.h.bf16 %v14427_v38  ;;  %v14428_v5 = vld [vmem:[#allocation127_spill] sm:$0xff]  ;;  %v14429_v28 = vld [vmem:[#allocation62_spill] sm:$0xff] }
 0x72e   : > { %v7631_v8 = vpop.permute.xlu1 %7630  ;;  %7825 = vrot.lane.b32.xlu0 %v14421_v44, %s8023_s8  ;;  %5371 = vmatmul.bf16.vlgmr.msra.gmra.mxu2 %v5183_v4  ;;  %v7318_v44 = vunpack.i.h.bf16 %v14419_v40  ;;  %v7442_v4 = vunpack.i.l.bf16 %v14427_v38  ;;  %v14430_v10 = vld [vmem:[#allocation83_spill] sm:$0xff]  ;;  %v7332_v38 = vunpack.i.l.bf16 %v12047_v42  ;;  %v7643_v42 = vunpack.i.h.bf16 %v12590_v18 }
 0x72f   : > { %5962 = vmatmul.msk.bf16.vlgmr.msra.gmra.mxu3 %vm5311_vm3, %v5184_v16  ;;  %v7633_v41 = vunpack.i.h.bf16 %v7631_v8  ;;  %v7632_v7 = vunpack.i.l.bf16 %v7631_v8  ;;  %v4929_v8 = vsel %vm1552_vm9, %v14429_v28, %v7307_v47  ;;  %v7308_v47 = vunpack.i.h.bf16 %v14423_v15  ;;  %v14432_v15 = vld [vmem:[#allocation118_spill] sm:$0xff]  ;;  %v14434_v28 = vld [vmem:[#allocation72_spill] sm:$0xff] }
 0x730   : > { %v7621_v56 = vpop.permute.xlu0 %7620  ;;  %v4961_v16 = vsel %vm4958_vm8, %v4929_v8, %v7322_v20  ;;  %v7312_v20 = vunpack.i.l.bf16 %v11968_v37  ;;  %v14433_v37 = vld [vmem:[#allocation98_spill] sm:$0xff] }
 0x731   : > { %v7623_v22 = vunpack.i.h.bf16 %v7621_v56  ;;  %v7622_v32 = vunpack.i.l.bf16 %v7621_v56  ;;  %v4960_v56 = vsel %vm4958_vm8, %v4928_v53, %v7318_v44  ;;  %v14431_v53 = vld [vmem:[#allocation110_spill] sm:$0xff] }
 0x732   : > { %v4931_v8 = vsel %vm1552_vm9, %v14434_v28, %v7312_v20  ;;  %v7452_v20 = vunpack.i.l.bf16 %v12331_v36 }
 0x733   : > { %7850 = vrot.lane.b32.xlu2 %v14422_v34, %s8032_s15  ;;  %v5020_v46 = vsel %vm3289_vm14, %v4988_v0, %v7622_v32  ;;  %v5021_v52 = vsel %vm3289_vm14, %v12584_v11, %v7623_v22  ;;  %v14426_v0 = vld [vmem:[#allocation113_spill] sm:$0xff] }
 0x734   : > { %7845 = vrot.lane.b32.xlu1 %v14422_v34, %s8023_s8  ;;  %v12662_v58 = vsel %vm5022_vm0, %v5020_v46, %v7632_v7  ;;  %v12665_v25 = vsel %vm5022_vm0, %v5021_v52, %v7633_v41  ;;  %v7368_v29 = vunpack.i.h.bf16 %v14426_v0  ;;  %v7367_v11 = vunpack.i.l.bf16 %v14426_v0 }
 0x735   : > { %v12659_v23 = vpop.permute.xlu2 %7685 }
 0x736   : > { %v7636_v60 = vpop.permute.xlu1 %7635  ;;  %7840 = vrot.lane.b32.xlu0 %v14428_v5, %s8018_s20  ;;  %v4992_v22 = vsel %vm3289_vm14, %v4960_v56, %v7367_v11  ;;  %v4993_v32 = vsel %vm3289_vm14, %v4961_v16, %v7368_v29  ;;  %v4930_v5 = vsel %vm1552_vm9, %v14433_v37, %v7308_v47  ;;  %v7323_v16 = vunpack.i.h.bf16 %v14424_v61  ;;  %v14435_v56 = vld [vmem:[#allocation119_spill] sm:$0xff] }
 0x737   : > { %v5025_v7 = vsel %vm5022_vm0, %v4992_v22, %v7442_v4  ;;  %v5026_v34 = vsel %vm5022_vm0, %v4993_v32, %v7443_v43  ;;  %v7638_v46 = vunpack.i.h.bf16 %v7636_v60  ;;  %v7637_v52 = vunpack.i.l.bf16 %v7636_v60 }
 0x738   : > { %v7626_v13 = vpop.permute.xlu0 %7625  ;;  %v7372_v22 = vunpack.i.l.bf16 %v14435_v56  ;;  %v7642_v32 = vunpack.i.l.bf16 %v12590_v18  ;;  %v7453_v47 = vunpack.i.h.bf16 %v12331_v36  ;;  %v14437_v18 = vld [vmem:[#allocation116_spill] sm:$0xff] }
 0x739   : > { %v7628_v40 = vunpack.i.h.bf16 %v7626_v13  ;;  %v7627_v41 = vunpack.i.l.bf16 %v7626_v13  ;;  %v7373_v13 = vunpack.i.h.bf16 %v14435_v56  ;;  %v7657_v56 = vunpack.i.l.bf16 %v12619_v19 }
 0x73a   : > { %v5123_v61 = vsel %vm1486_vm5, %v7637_v52, %v7642_v32 }
 0x73b   : > { %7865 = vrot.lane.b32.xlu2 %v14430_v10, %s8023_s8  ;;  %v5058_v0 = vsel %vm5055_vm1, %v5025_v7, %v7627_v41  ;;  %v5059_v29 = vsel %vm5055_vm1, %v5026_v34, %v7628_v40  ;;  %v4963_v41 = vsel %vm4958_vm8, %v4931_v8, %v7332_v38 }
 0x73c   : > { %7860 = vrot.lane.b32.xlu1 %v14431_v53, %s8018_s20  ;;  %v5091_v44 = vsel %vm5088_vm2, %v5058_v0, %v7637_v52  ;;  %v5092_v60 = vsel %vm5088_vm2, %v5059_v29, %v7638_v46  ;;  %v5124_v53 = vsel %vm1486_vm5, %v7638_v46, %v7643_v42  ;;  %v14436_v0 = vld [vmem:[#allocation88_spill] sm:$0xff]  ;;  %v4995_v46 = vsel %vm3289_vm14, %v4963_v41, %v7373_v13 }
 0x73d   : > { %v12692_v11 = vpop.permute.xlu2 %7700  ;;  %v5185_v4 = vpack.c.bf16 %v5092_v60, %v5091_v44 }
 0x73e   : > { %v7651_v43 = vpop.permute.xlu1 %7650  ;;  %7855 = vrot.lane.b32.xlu0 %v14432_v15, %s8033_s16 }
 0x73f   : > { %5376 = vmatmul.bf16.gmra.mxu2 %v5185_v4  ;;  %v7653_v29 = vunpack.i.h.bf16 %v7651_v43  ;;  %v7652_v44 = vunpack.i.l.bf16 %v7651_v43  ;;  %v4962_v4 = vsel %vm4958_vm8, %v4930_v5, %v7323_v16  ;;  %v5028_v43 = vsel %vm5022_vm0, %v4995_v46, %v7453_v47 }
 0x740   : > { %v7646_v40 = vpop.permute.xlu0 %7645  ;;  %v4994_v52 = vsel %vm3289_vm14, %v4962_v4, %v7372_v22  ;;  %v7658_v16 = vunpack.i.h.bf16 %v12619_v19  ;;  %v7672_v47 = vunpack.i.l.bf16 %v12642_v1 }
 0x741   : > { %v7648_v7 = vunpack.i.h.bf16 %v7646_v40  ;;  %v7647_v34 = vunpack.i.l.bf16 %v7646_v40  ;;  %v5027_v28 = vsel %vm5022_vm0, %v4994_v52, %v7452_v20  ;;  %v5061_v5 = vsel %vm5055_vm1, %v5028_v43, %v7653_v29  ;;  %v14438_v40 = vld [vmem:[#allocation124_spill] sm:$0xff] }
 0x742   : > { %v5060_v8 = vsel %vm5055_vm1, %v5027_v28, %v7652_v44 }
 0x743   : > { %7880 = vrot.lane.b32.xlu2 %v14436_v0, %s8018_s20  ;;  %v5154_v60 = vsel %vm1651_vm11, %v5123_v61, %v7647_v34  ;;  %v5155_v38 = vsel %vm1651_vm11, %v5124_v53, %v7648_v7  ;;  %v5093_v32 = vsel %vm5088_vm2, %v5060_v8, %v7657_v56  ;;  %v7673_v34 = vunpack.i.h.bf16 %v12642_v1 }
 0x744   : > { %7875 = vrot.lane.b32.xlu1 %v14437_v18, %s8033_s16  ;;  %v5186_v36 = vpack.c.bf16 %v5155_v38, %v5154_v60  ;;  %v5062_v1 = vsel %vm5055_vm1, %v12356_v31, %v7672_v47  ;;  %v7688_v47 = vunpack.i.h.bf16 %v12659_v23 }
 0x745   : > { %v12720_v15 = vpop.permute.xlu2 %7715  ;;  %v5063_v38 = vsel %vm5055_vm1, %v12359_v57, %v7673_v34 }
 0x746   : > { %v7666_v37 = vpop.permute.xlu1 %7665  ;;  %7870 = vrot.lane.b32.xlu0 %v14430_v10, %s8032_s15  ;;  %5963 = vmatmul.msk.bf16.gmra.mxu3 %vm5311_vm3, %v5186_v36  ;;  %v5094_v10 = vsel %vm5088_vm2, %v5061_v5, %v7658_v16 }
 0x747   : > { %v5187_v7 = vpack.c.bf16 %v5094_v10, %v5093_v32  ;;  %v7667_v53 = vunpack.i.l.bf16 %v7666_v37 }
 0x748   : > { %v7661_v22 = vpop.permute.xlu0 %7660 }
 0x749   : > { %v7663_v13 = vunpack.i.h.bf16 %v7661_v22  ;;  %v7662_v42 = vunpack.i.l.bf16 %v7661_v22 }
 0x74b   : > { %7895 = vrot.lane.b32.xlu2 %v12238_v26, %s8033_s16  ;;  %v5125_v19 = vsel %vm1486_vm5, %v7657_v56, %v7662_v42  ;;  %v5126_v20 = vsel %vm1486_vm5, %v7658_v16, %v7663_v13  ;;  %v7668_v26 = vunpack.i.h.bf16 %v7666_v37 }
 0x74c   : > { %7890 = vrot.lane.b32.xlu1 %v14438_v40, %s8032_s15  ;;  %v5156_v18 = vsel %vm1651_vm11, %v5125_v19, %v7667_v53  ;;  %v7717_v19 = vunpack.i.l.bf16 %v12720_v15 }
 0x74d   : > { %v12743_v61 = vpop.permute.xlu2 %7730  ;;  %v5157_v60 = vsel %vm1651_vm11, %v5126_v20, %v7668_v26 }
 0x74e   : > { %v7681_v41 = vpop.permute.xlu1 %7680  ;;  %7885 = vrot.lane.b32.xlu0 %v14438_v40, %s8023_s8  ;;  %v5188_v52 = vpack.c.bf16 %v5157_v60, %v5156_v18 }
 0x74f   : > { %5381 = vmatmul.bf16.gmra.mxu2 %v5187_v7  ;;  %v7683_v56 = vunpack.i.h.bf16 %v7681_v41  ;;  %v7682_v22 = vunpack.i.l.bf16 %v7681_v41  ;;  %v14439_v7 = vmov 0.0   ;;  %v7718_v41 = vunpack.i.h.bf16 %v12720_v15 }
 0x750   : > { %v7676_v0 = vpop.permute.xlu0 %7675 }
 0x751   : > { %v7678_v29 = vunpack.i.h.bf16 %v7676_v0  ;;  %v7677_v44 = vunpack.i.l.bf16 %v7676_v0 }
 0x753   : > { %7910 = vrot.lane.b32.xlu2 %v12256_v33, %s8032_s15  ;;  %v5095_v4 = vsel %vm5088_vm2, %v5062_v1, %v7677_v44  ;;  %v5096_v36 = vsel %vm5088_vm2, %v5063_v38, %v7678_v29  ;;  %v5127_v10 = vsel %vm1486_vm5, %v7677_v44, %v7682_v22  ;;  %v5128_v40 = vsel %vm1486_vm5, %v7678_v29, %v7683_v56  ;;  %s269_s15 = sand.u32 1, %s8005_s25  }
 0x754   : > { %7905 = vrot.lane.b32.xlu1 %v12256_v33, %s8023_s8  ;;  %v5189_v46 = vpack.c.bf16 %v5096_v36, %v5095_v4  ;;  %v5159_v29 = vsel %vm1651_vm11, %v5128_v40, %v7688_v47 }
 0x755   : > { %v12762_v28 = vpop.permute.xlu2 %7745 }
 0x756   : > { %v7696_v37 = vpop.permute.xlu1 %7695  ;;  %7900 = vrot.lane.b32.xlu0 %v12254_v3, %s8018_s20  ;;  %5964 = vmatmul.msk.bf16.gmra.mxu3 %vm5311_vm3, %v5188_v52  ;;  %v7703_v52 = vunpack.i.h.bf16 %v12692_v11 }
 0x757   : > { %v7698_v8 = vunpack.i.h.bf16 %v7696_v37  ;;  %v7697_v5 = vunpack.i.l.bf16 %v7696_v37  ;;  %v7733_v37 = vunpack.i.h.bf16 %v12743_v61 }
 0x758   : > { %v7691_v31 = vpop.permute.xlu0 %7690 }
 0x759   : > { %v7693_v43 = vunpack.i.h.bf16 %v7691_v31  ;;  %v7692_v57 = vunpack.i.l.bf16 %v7691_v31  ;;  %v7732_v31 = vunpack.i.l.bf16 %v12743_v61 }
 0x75b   : > { %v5064_v33 = vsel %vm5055_vm1, %v12280_v6, %v7692_v57  ;;  %v5065_v16 = vsel %vm5055_vm1, %v12283_v30, %v7693_v43  ;;  %v7687_v30 = vunpack.i.l.bf16 %v12659_v23  ;;  %v5130_v57 = vsel %vm1486_vm5, %v7698_v8, %v7703_v52 }
 0x75c   : > { %v5097_v13 = vsel %vm5088_vm2, %v5064_v33, %v7697_v5  ;;  %v5098_v3 = vsel %vm5088_vm2, %v5065_v16, %v7698_v8 }
 0x75d   : > { %v5191_v32 = vpack.c.bf16 %v5098_v3, %v5097_v13  ;;  %v5158_v0 = vsel %vm1651_vm11, %v5127_v10, %v7687_v30  ;;  %v12786_v18 = vpop.permute.xlu2 %7760  ;;  %v5068_v3 = vsel %vm5055_vm1, %v12419_v51, %v7732_v31 }
 0x75e   : > { %v7711_v42 = vpop.permute.xlu1 %7710  ;;  %4714 = vrot.lane.b32.xlu0 %v14439_v7, %s8033_s16  ;;  %v5190_v15 = vpack.c.bf16 %v5159_v29, %v5158_v0  ;;  %s5847_s16 = sshll.u32 %s269_s15, 8 }
 0x75f   : > { %v7713_v34 = vunpack.i.h.bf16 %v7711_v42  ;;  %v7712_v6 = vunpack.i.l.bf16 %v7711_v42  ;;  %5386 = vmatmul.bf16.gmra.mxu2 %v5189_v46  ;;  %v7702_v46 = vunpack.i.l.bf16 %v12692_v11  ;;  %v5069_v11 = vsel %vm5055_vm1, %v12423_v63, %v7733_v37  ;;  %s13185_s21 = scalar_lea.vmem [#allocation2], %s5847_s16  ;;  %s7971_s16 = scalar_lea.hbm %s13404_s7, 512 }
 0x760   : > { %v7706_v20 = vpop.permute.xlu0 %7705  ;;  %s5778_s29 = sshll.u32 %s13185_s21, 4  ;;  %s5779_s29 = int_to_ptr.vmem [resolvable:$true] %s5778_s29 }
 0x761   : > { %v5066_v26 = vsel %vm5055_vm1, %v12405_v17, %v7712_v6  ;;  %v5067_v53 = vsel %vm5055_vm1, %v12408_v54, %v7713_v34  ;;  %v7708_v4 = vunpack.i.h.bf16 %v7706_v20  ;;  %v7707_v54 = vunpack.i.l.bf16 %v7706_v20 }
 0x762   : > { %v5099_v44 = vsel %vm5088_vm2, %v5066_v26, %v7717_v19  ;;  %v5100_v23 = vsel %vm5088_vm2, %v5067_v53, %v7718_v41  ;;  %v5129_v43 = vsel %vm1486_vm5, %v7697_v5, %v7702_v46 }
 0x763   : > { %v5193_v60 = vpack.c.bf16 %v5100_v23, %v5099_v44  ;;  %v5160_v22 = vsel %vm1651_vm11, %v5129_v43, %v7707_v54  ;;  %v5161_v13 = vsel %vm1651_vm11, %v5130_v57, %v7708_v4 }
 0x764   : > { %v5192_v5 = vpack.c.bf16 %v5161_v13, %v5160_v22 }
 0x765   : > { %v12789_v17 = vpop.permute.xlu2 %7775 }
 0x766   : > { %v7726_v1 = vpop.permute.xlu1 %7725  ;;  %5965 = vmatmul.msk.bf16.gmra.mxu3 %vm5311_vm3, %v5190_v15  ;;  %v7778_v15 = vunpack.i.h.bf16 %v12789_v17 }
 0x767   : > { %v7728_v4 = vunpack.i.h.bf16 %v7726_v1  ;;  %v7727_v54 = vunpack.i.l.bf16 %v7726_v1 }
 0x768   : > { %v7721_v38 = vpop.permute.xlu0 %7720 }
 0x769   : > { %v7723_v6 = vunpack.i.h.bf16 %v7721_v38  ;;  %v7722_v47 = vunpack.i.l.bf16 %v7721_v38  ;;  %v7777_v38 = vunpack.i.l.bf16 %v12789_v17 }
 0x76b   : > { %v5131_v44 = vsel %vm1486_vm5, %v7717_v19, %v7722_v47 }
 0x76d   : > { %v7791_v10 = vpop.permute.xlu2 %7790 }
 0x76e   : > { %v12791_v36 = vpop.permute.xlu1 %7740 }
 0x76f   : > { %5391 = vmatmul.bf16.gmra.mxu2 %v5191_v32  ;;  %v7743_v22 = vunpack.i.h.bf16 %v12791_v36  ;;  %v7742_v13 = vunpack.i.l.bf16 %v12791_v36 }
 0x770   : > { %v7736_v33 = vpop.permute.xlu0 %7735 }
 0x771   : > { %v7738_v16 = vunpack.i.h.bf16 %v7736_v33  ;;  %v7737_v56 = vunpack.i.l.bf16 %v7736_v33 }
 0x773   : > { %v5101_v61 = vsel %vm5088_vm2, %v5068_v3, %v7737_v56  ;;  %v5102_v42 = vsel %vm5088_vm2, %v5069_v11, %v7738_v16  ;;  %v7793_v11 = vunpack.i.h.bf16 %v7791_v10 }
 0x774   : > { %v5195_v32 = vpack.c.bf16 %v5102_v42, %v5101_v61  ;;  %v7792_v61 = vunpack.i.l.bf16 %v7791_v10  ;;  %v5133_v42 = vsel %vm1486_vm5, %v7737_v56, %v7742_v13 }
 0x775   : > { %v12832_v52 = vpop.permute.xlu2 %7805 }
 0x776   : > { %v12807_v8 = vpop.permute.xlu1 %7755  ;;  %5966 = vmatmul.msk.bf16.gmra.mxu3 %vm5311_vm3, %v5192_v5  ;;  %v5134_v5 = vsel %vm1486_vm5, %v7738_v16, %v7743_v22  ;;  %v5074_v56 = vsel %vm5055_vm1, %v12449_v49, %v7792_v61  ;;  %v5075_v16 = vsel %vm5055_vm1, %v12453_v21, %v7793_v11  ;;  %v7762_v22 = vunpack.i.l.bf16 %v12786_v18 }
 0x777   : > { %v7758_v51 = vunpack.i.h.bf16 %v12807_v8  ;;  %v7757_v63 = vunpack.i.l.bf16 %v12807_v8 }
 0x778   : > { %v7751_v40 = vpop.permute.xlu0 %7750 }
 0x779   : > { %v7753_v7 = vunpack.i.h.bf16 %v7751_v40  ;;  %v7752_v34 = vunpack.i.l.bf16 %v7751_v40  ;;  %v7748_v40 = vunpack.i.h.bf16 %v12762_v28 }
 0x77b   : > { %v5070_v30 = vsel %vm5055_vm1, %v12320_v48, %v7752_v34  ;;  %v5071_v20 = vsel %vm5055_vm1, %v12324_v9, %v7753_v7  ;;  %v5132_v48 = vsel %vm1486_vm5, %v7718_v41, %v7723_v6  ;;  %v5162_v41 = vsel %vm1651_vm11, %v5131_v44, %v7727_v54 }
 0x77c   : > { %v12819_v26 = vsel %vm5088_vm2, %v5070_v30, %v7757_v63  ;;  %v12824_v53 = vsel %vm5088_vm2, %v5071_v20, %v7758_v51  ;;  %v5163_v31 = vsel %vm1651_vm11, %v5132_v48, %v7728_v4  ;;  %v7747_v7 = vunpack.i.l.bf16 %v12762_v28 }
 0x77d   : > { %v5197_v29 = vpack.c.bf16 %v12824_v53, %v12819_v26  ;;  %v5194_v1 = vpack.c.bf16 %v5163_v31, %v5162_v41  ;;  %v12859_v33 = vpop.permute.xlu2 %7820  ;;  %v5165_v30 = vsel %vm1651_vm11, %v5134_v5, %v7748_v40 }
 0x77e   : > { %v7771_v0 = vpop.permute.xlu1 %7770  ;;  %v5164_v36 = vsel %vm1651_vm11, %v5133_v42, %v7747_v7 }
 0x77f   : > { %v7773_v23 = vunpack.i.h.bf16 %v7771_v0  ;;  %v7772_v9 = vunpack.i.l.bf16 %v7771_v0  ;;  %5396 = vmatmul.bf16.gmra.mxu2 %v5193_v60  ;;  %v5196_v20 = vpack.c.bf16 %v5165_v30, %v5164_v36 }
 0x780   : > { %v12834_v46 = vpop.permute.xlu0 %7765 }
 0x781   : > { %v5072_v37 = vsel %vm5055_vm1, %v12457_v50, %v7772_v9  ;;  %v5073_v19 = vsel %vm5055_vm1, %v12461_v45, %v7773_v23  ;;  %v7768_v41 = vunpack.i.h.bf16 %v12834_v46  ;;  %v7767_v31 = vunpack.i.l.bf16 %v12834_v46 }
 0x782   : > { %v12845_v43 = vsel %vm5088_vm2, %v5072_v37, %v7777_v38  ;;  %v12850_v60 = vsel %vm5088_vm2, %v5073_v19, %v7778_v15  ;;  %v5135_v46 = vsel %vm1486_vm5, %v7757_v63, %v7762_v22 }
 0x783   : > { %v5199_v50 = vpack.c.bf16 %v12850_v60, %v12845_v43  ;;  %v5166_v30 = vsel %vm1651_vm11, %v5135_v46, %v7767_v31 }
 0x785   : > { %v12889_v10 = vpop.permute.xlu2 %7835 }
 0x786   : > { %v12854_v57 = vpop.permute.xlu1 %7785  ;;  %5967 = vmatmul.msk.bf16.gmra.mxu3 %vm5311_vm3, %v5194_v1  ;;  %v7838_v42 = vunpack.i.h.bf16 %v12889_v10  ;;  %v7837_v5 = vunpack.i.l.bf16 %v12889_v10 }
 0x788   : > { %v12857_v45 = vpop.permute.xlu0 %7780 }
 0x78d   : > { %v7851_v13 = vpop.permute.xlu2 %7850 }
 0x78e   : > { %v12863_v3 = vpop.permute.xlu1 %7800 }
 0x78f   : > { %5401 = vmatmul.bf16.gmra.mxu2 %v5195_v32 }
 0x790   : > { %v12869_v34 = vpop.permute.xlu0 %7795 }
 0x791   : > { %v7798_v6 = vunpack.i.h.bf16 %v12869_v34  ;;  %v7797_v47 = vunpack.i.l.bf16 %v12869_v34 }
 0x793   : > { %v12882_v28 = vsel %vm5088_vm2, %v5074_v56, %v7797_v47  ;;  %v12887_v32 = vsel %vm5088_vm2, %v5075_v16, %v7798_v6  ;;  %v7783_v56 = vunpack.i.h.bf16 %v12857_v45  ;;  %v7782_v16 = vunpack.i.l.bf16 %v12857_v45 }
 0x794   : > { %v5201_v0 = vpack.c.bf16 %v12887_v32, %v12882_v28  ;;  %v7787_v45 = vunpack.i.l.bf16 %v12854_v57 }
 0x796   : > { %v12893_v49 = vpop.permute.xlu1 %7815  ;;  %5968 = vmatmul.msk.bf16.gmra.mxu3 %vm5311_vm3, %v5196_v20 }
 0x797   : > { %v7818_v23 = vunpack.i.h.bf16 %v12893_v49  ;;  %v7817_v9 = vunpack.i.l.bf16 %v12893_v49 }
 0x798   : > { %v7811_v21 = vpop.permute.xlu0 %7810 }
 0x799   : > { %v7813_v44 = vunpack.i.h.bf16 %v7811_v21  ;;  %v7812_v48 = vunpack.i.l.bf16 %v7811_v21  ;;  %v5137_v21 = vsel %vm1486_vm5, %v7777_v38, %v7782_v16 }
 0x79b   : > { %v5076_v4 = vsel %vm5055_vm1, %v12392_v14, %v7812_v48  ;;  %v5077_v54 = vsel %vm5055_vm1, %v12395_v55, %v7813_v44  ;;  %v7763_v55 = vunpack.i.h.bf16 %v12786_v18  ;;  %v5138_v44 = vsel %vm1486_vm5, %v7778_v15, %v7783_v56 }
 0x79c   : > { %v12905_v37 = vsel %vm5088_vm2, %v5076_v4, %v7817_v9  ;;  %v12910_v19 = vsel %vm5088_vm2, %v5077_v54, %v7818_v23  ;;  %v7853_v48 = vunpack.i.h.bf16 %v7851_v13  ;;  %v7852_v4 = vunpack.i.l.bf16 %v7851_v13  ;;  %v12969_v54 = vld [vmem:[%s13403_s6] ss:$0 sm:$0xff] }
 0x79d   : > { %v5203_v14 = vpack.c.bf16 %v12910_v19, %v12905_v37  ;;  %v5136_v40 = vsel %vm1486_vm5, %v7758_v51, %v7763_v55 }
 0x79e   : > { %v7831_v1 = vpop.permute.xlu1 %7830  ;;  %v5167_v26 = vsel %vm1651_vm11, %v5136_v40, %v7768_v41  ;;  %v7788_v41 = vunpack.i.h.bf16 %v12854_v57  ;;  %v5080_v22 = vsel %vm5055_vm1, %v12500_v35, %v7852_v4  ;;  %v5081_v57 = vsel %vm5055_vm1, %v12503_v12, %v7853_v48 }
 0x79f   : > { %v7833_v11 = vunpack.i.h.bf16 %v7831_v1  ;;  %v7832_v61 = vunpack.i.l.bf16 %v7831_v1  ;;  %5406 = vmatmul.bf16.gmra.mxu2 %v5197_v29  ;;  %v5198_v51 = vpack.c.bf16 %v5167_v26, %v5166_v30  ;;  %v5168_v1 = vsel %vm1651_vm11, %v5137_v21, %v7787_v45 }
 0x7a0   : > { %v12929_v18 = vpop.permute.xlu0 %7825  ;;  %v5169_v55 = vsel %vm1651_vm11, %v5138_v44, %v7788_v41  ;;  %v7802_v44 = vunpack.i.l.bf16 %v12863_v3  ;;  %v7803_v41 = vunpack.i.h.bf16 %v12863_v3 }
 0x7a1   : > { %v5078_v7 = vsel %vm5055_vm1, %v12507_v59, %v7832_v61  ;;  %v5079_v36 = vsel %vm5055_vm1, %v12510_v62, %v7833_v11  ;;  %v12952_v62 = vpop.permute.xlu2 %7865  ;;  %v5200_v35 = vpack.c.bf16 %v5169_v55, %v5168_v1 }
 0x7a2   : > { %v12940_v63 = vsel %vm5088_vm2, %v5078_v7, %v7837_v5  ;;  %v12945_v8 = vsel %vm5088_vm2, %v5079_v36, %v7838_v42 }
 0x7a3   : > { %v5205_v59 = vpack.c.bf16 %v12945_v8, %v12940_v63 }
 0x7a6   : > { %v12949_v53 = vpop.permute.xlu1 %7845  ;;  %5969 = vmatmul.msk.bf16.gmra.mxu3 %vm5311_vm3, %v5198_v51 }
 0x7a8   : > { %v12954_v29 = vpop.permute.xlu0 %7840 }
 0x7a9   : > { %v12986_v13 = vpop.permute.xlu2 %7880 }
 0x7ae   : > { %v12958_v20 = vpop.permute.xlu1 %7860 }
 0x7af   : > { %5411 = vmatmul.bf16.gmra.mxu2 %v5199_v50 }
 0x7b0   : > { %v12976_v38 = vpop.permute.xlu0 %7855 }
 0x7b1   : > { %v7858_v17 = vunpack.i.h.bf16 %v12976_v38  ;;  %v7857_v15 = vunpack.i.l.bf16 %v12976_v38  ;;  %v5372_v31 = vpop.f32.mrf.mxu2  ;;  %v13014_v45 = vpop.permute.xlu2 %7895 }
 0x7b2   : > { %v5373_v43 = vadd.f32 %v12969_v54, %v5372_v31  ;;  %v5461_v60 = vpop.f32.mrf.mxu3 }
 0x7b3   : > { %v12992_v50 = vsel %vm5088_vm2, %v5080_v22, %v7857_v15  ;;  %v12997_v11 = vsel %vm5088_vm2, %v5081_v57, %v7858_v17  ;;  %v5140_v22 = vsel %vm1486_vm5, %v7798_v6, %v7803_v41 }
 0x7b4   : > { %v5462_v61 = vadd.f32 %v5461_v60, %v5373_v43  ;;  %v5207_v12 = vpack.c.bf16 %v12997_v11, %v12992_v50 }
 0x7b6   : > { %v13001_v46 = vpop.permute.xlu1 %7875  ;;  %v5541_v40 = vmax.f32 %v5462_v61, 0.0  ;;  %5970 = vmatmul.msk.bf16.gmra.mxu3 %vm5311_vm3, %v5200_v35  ;;  %v7808_v61 = vunpack.i.h.bf16 %v12832_v52  ;;  %v7807_v35 = vunpack.i.l.bf16 %v12832_v52 }
 0x7b7   : > { %v7878_v51 = vunpack.i.h.bf16 %v13001_v46  ;;  %v7877_v56 = vunpack.i.l.bf16 %v13001_v46 }
 0x7b8   : > { %v7871_v7 = vpop.permute.xlu0 %7870  ;;  %5605 = vrot.lane.b32.xlu1 %v5541_v40, %s8020_s22  ;;  %v7898_v40 = vunpack.i.h.bf16 %v13014_v45 }
 0x7b9   : > { %v7873_v36 = vunpack.i.h.bf16 %v7871_v7  ;;  %v7872_v30 = vunpack.i.l.bf16 %v7871_v7  ;;  %v5374_v26 = vpop.f32.mrf.mxu2  ;;  %v7897_v7 = vunpack.i.l.bf16 %v13014_v45 }
 0x7ba   : > { %v5375_v16 = vadd.f32 %v12969_v54, %v5374_v26  ;;  %v5463_v21 = vpop.f32.mrf.mxu3 }
 0x7bb   : > { %v5082_v48 = vsel %vm5055_vm1, %v12549_v24, %v7872_v30  ;;  %v5083_v4 = vsel %vm5055_vm1, %v12557_v27, %v7873_v36  ;;  %v5139_v24 = vsel %vm1486_vm5, %v7797_v47, %v7802_v44  ;;  %v5171_v36 = vsel %vm1651_vm11, %v5140_v22, %v7808_v61 }
 0x7bc   : > { %v5464_v31 = vadd.f32 %v5463_v21, %v5375_v16  ;;  %v13019_v1 = vsel %vm5088_vm2, %v5082_v48, %v7877_v56  ;;  %v13024_v55 = vsel %vm5088_vm2, %v5083_v4, %v7878_v51  ;;  %v5170_v52 = vsel %vm1651_vm11, %v5139_v24, %v7807_v35  ;;  %v7911_v16 = vpop.permute.xlu2 %7910 }
 0x7bd   : > { %v5209_v3 = vpack.c.bf16 %v13024_v55, %v13019_v1  ;;  %v5202_v32 = vpack.c.bf16 %v5171_v36, %v5170_v52  ;;  %v7913_v4 = vunpack.i.h.bf16 %v7911_v16  ;;  %v7912_v41 = vunpack.i.l.bf16 %v7911_v16 }
 0x7be   : > { %v7891_v27 = vpop.permute.xlu1 %7890  ;;  %v5542_v57 = vmax.f32 %v5464_v31, 0.0  ;;  %v7822_v24 = vunpack.i.l.bf16 %v12859_v33  ;;  %v7827_v22 = vunpack.i.l.bf16 %v12929_v18 }
 0x7bf   : > { %v7893_v43 = vunpack.i.h.bf16 %v7891_v27  ;;  %v7892_v60 = vunpack.i.l.bf16 %v7891_v27  ;;  %5416 = vmatmul.bf16.gmra.mxu2 %v5201_v0  ;;  %v7828_v27 = vunpack.i.h.bf16 %v12929_v18  ;;  %v5087_v18 = vsel %vm5055_vm1, %v12665_v25, %v7913_v4 }
 0x7c0   : > { %v13045_v47 = vpop.permute.xlu0 %7885  ;;  %5607 = vrot.lane.b32.xlu2 %v5542_v57, %s8020_s22  ;;  %v7823_v57 = vunpack.i.h.bf16 %v12859_v33  ;;  %v5086_v33 = vsel %vm5055_vm1, %v12662_v58, %v7912_v41  ;;  %v7848_v4 = vunpack.i.h.bf16 %v12949_v53  ;;  %v7847_v41 = vunpack.i.l.bf16 %v12949_v53 }
 0x7c1   : > { %v5084_v34 = vsel %vm5055_vm1, %v12609_v2, %v7892_v60  ;;  %v5085_v6 = vsel %vm5055_vm1, %v12612_v39, %v7893_v43  ;;  %v5141_v43 = vsel %vm1486_vm5, %v7817_v9, %v7822_v24 }
 0x7c2   : > { %v13053_v30 = vsel %vm5088_vm2, %v5084_v34, %v7897_v7  ;;  %v13058_v2 = vsel %vm5088_vm2, %v5085_v6, %v7898_v40  ;;  %v5377_v28 = vpop.f32.mrf.mxu2  ;;  %v5142_v60 = vsel %vm1486_vm5, %v7818_v23, %v7823_v57  ;;  %v5172_v23 = vsel %vm1651_vm11, %v5141_v43, %v7827_v22 }
 0x7c3   : > { %v5211_v39 = vpack.c.bf16 %v13058_v2, %v13053_v30  ;;  %v5378_v0 = vadd.f32 %v12969_v54, %v5377_v28  ;;  %v5173_v19 = vsel %vm1651_vm11, %v5142_v60, %v7828_v27  ;;  %v7843_v28 = vunpack.i.h.bf16 %v12954_v29 }
 0x7c4   : > { %v5204_v25 = vpack.c.bf16 %v5173_v19, %v5172_v23  ;;  %v7862_v43 = vunpack.i.l.bf16 %v12958_v20 }
 0x7c6   : > { %5971 = vmatmul.msk.bf16.gmra.mxu3 %vm5311_vm3, %v5202_v32  ;;  %v7842_v32 = vunpack.i.l.bf16 %v12954_v29 }
 0x7c8   : > { %v13064_v26 = vpop.permute.xlu0 %7900 }
 0x7c9   : > { %v5466_v21 = vpop.f32.mrf.mxu3  ;;  %v7902_v55 = vunpack.i.l.bf16 %v13064_v26 }
 0x7ca   : > { %v5467_v44 = vadd.f32 %v5466_v21, %v5378_v0  ;;  %v5379_v48 = vpop.f32.mrf.mxu2 }
 0x7cb   : > { %v5380_v61 = vadd.f32 %v12969_v54, %v5379_v48  ;;  %v5144_v48 = vsel %vm1486_vm5, %v7838_v42, %v7843_v28  ;;  %v7882_v28 = vunpack.i.l.bf16 %v12986_v13 }
 0x7cc   : > { %v5543_v31 = vmax.f32 %v5467_v44, 0.0  ;;  %v5143_v44 = vsel %vm1486_vm5, %v7837_v5, %v7842_v32  ;;  %v5175_v5 = vsel %vm1651_vm11, %v5144_v48, %v7848_v4 }
 0x7cd   : > { %v5174_v24 = vsel %vm1651_vm11, %v5143_v44, %v7847_v41  ;;  %v5147_v32 = vsel %vm1486_vm5, %v7877_v56, %v7882_v28 }
 0x7ce   : > { %5609 = vrot.lane.b32.xlu0 %v5543_v31, %s8020_s22  ;;  %v5206_v22 = vpack.c.bf16 %v5175_v5, %v5174_v24  ;;  %v5149_v24 = vsel %vm1486_vm5, %v7897_v7, %v7902_v55 }
 0x7cf   : > { %5421 = vmatmul.bf16.gmra.mxu2 %v5203_v14 }
 0x7d0   : > { %v13081_v35 = vpop.permute.xlu0 %4714 }
 0x7d1   : > { %v13089_v9 = vsel %vm5088_vm2, %v5086_v33, %v13081_v35  ;;  %v13093_v37 = vsel %vm5088_vm2, %v5087_v18, %v13081_v35  ;;  %v5468_v49 = vpop.f32.mrf.mxu3  ;;  %v7868_v18 = vunpack.i.h.bf16 %v12952_v62 }
 0x7d2   : > { %v5469_v14 = vadd.f32 %v5468_v49, %v5380_v61  ;;  %v5382_v34 = vpop.f32.mrf.mxu2  ;;  %v5213_v58 = vpack.c.bf16 %v13093_v37, %v13089_v9  ;;  %v5145_v61 = vsel %vm1486_vm5, %v7857_v15, %v7862_v43  ;;  %v7867_v49 = vunpack.i.l.bf16 %v12952_v62 }
 0x7d3   : > { %v5383_v52 = vadd.f32 %v12969_v54, %v5382_v34 }
 0x7d4   : > { %v5544_v6 = vmax.f32 %v5469_v14, 0.0  ;;  %v5176_v19 = vsel %vm1651_vm11, %v5145_v61, %v7867_v49  ;;  %v14441_v61 = vld [vmem:[#allocation28_spill] sm:$0xff] }
 0x7d6   : > { %5972 = vmatmul.msk.bf16.gmra.mxu3 %vm5311_vm3, %v5204_v25  ;;  %5611 = vrot.lane.b32.xlu1 %v5544_v6, %s8020_s22  ;;  %v7888_v25 = vunpack.i.h.bf16 %v13045_v47 }
 0x7d9   : > { %v5471_v36 = vpop.f32.mrf.mxu3 }
 0x7da   : > { %v5472_v0 = vadd.f32 %v5471_v36, %v5383_v52  ;;  %v5384_v16 = vpop.f32.mrf.mxu2  ;;  %v7887_v52 = vunpack.i.l.bf16 %v13045_v47  ;;  %v7883_v36 = vunpack.i.h.bf16 %v12986_v13 }
 0x7db   : > { %v5385_v29 = vadd.f32 %v12969_v54, %v5384_v16 }
 0x7dc   : > { %v5545_v21 = vmax.f32 %v5472_v0, 0.0  ;;  %v5148_v0 = vsel %vm1486_vm5, %v7878_v51, %v7883_v36  ;;  %v5178_v16 = vsel %vm1651_vm11, %v5147_v32, %v7887_v52  ;;  %v7903_v51 = vunpack.i.h.bf16 %v13064_v26 }
 0x7dd   : > { %v5179_v13 = vsel %vm1651_vm11, %v5148_v0, %v7888_v25  ;;  %v14445_v0 = vld [vmem:[#allocation38_spill] sm:$0xff] }
 0x7de   : > { %5613 = vrot.lane.b32.xlu2 %v5545_v21, %s8020_s22  ;;  %v5210_v4 = vpack.c.bf16 %v5179_v13, %v5178_v16  ;;  %v5150_v5 = vsel %vm1486_vm5, %v7898_v40, %v7903_v51 }
 0x7df   : > { %5426 = vmatmul.bf16.gmra.mxu2 %v5205_v59  ;;  %v7863_v59 = vunpack.i.h.bf16 %v12958_v20 }
 0x7e1   : > { %v5473_v31 = vpop.f32.mrf.mxu3  ;;  %v5146_v33 = vsel %vm1486_vm5, %v7858_v17, %v7863_v59  ;;  %v14440_v59 = vld [vmem:[#allocation17_spill] sm:$0xff] }
 0x7e2   : > { %v5474_v10 = vadd.f32 %v5473_v31, %v5385_v29  ;;  %v5387_v27 = vpop.f32.mrf.mxu2  ;;  %v5177_v15 = vsel %vm1651_vm11, %v5146_v33, %v7868_v18  ;;  %v7906_v29 = vpop.permute.xlu1 %7905  ;;  %v14442_v33 = vunpack.i.l.bf16 %v14441_v61 }
 0x7e3   : > { %v5388_v53 = vadd.f32 %v12969_v54, %v5387_v27  ;;  %v5208_v34 = vpack.c.bf16 %v5177_v15, %v5176_v19  ;;  %v7907_v27 = vunpack.i.l.bf16 %v7906_v29 }
 0x7e4   : > { %v5546_v42 = vmax.f32 %v5474_v10, 0.0  ;;  %v7908_v10 = vunpack.i.h.bf16 %v7906_v29  ;;  %v5151_v18 = vsel %vm1486_vm5, %v13081_v35, %v14442_v33 }
 0x7e6   : > { %5973 = vmatmul.msk.bf16.gmra.mxu3 %vm5311_vm3, %v5206_v22  ;;  %5615 = vrot.lane.b32.xlu0 %v5546_v42, %s8020_s22  ;;  %v5180_v22 = vsel %vm1651_vm11, %v5149_v24, %v7907_v27  ;;  %v5181_v7 = vsel %vm1651_vm11, %v5150_v5, %v7908_v10 }
 0x7e9   : > { %v5476_v57 = vpop.f32.mrf.mxu3 }
 0x7ea   : > { %v5477_v63 = vadd.f32 %v5476_v57, %v5388_v53  ;;  %v5389_v8 = vpop.f32.mrf.mxu2  ;;  %v5212_v57 = vpack.c.bf16 %v5181_v7, %v5180_v22  ;;  %v14448_v7 = vld [vmem:[#allocation37_spill] sm:$0xff] }
 0x7eb   : > { %v5390_v20 = vadd.f32 %v12969_v54, %v5389_v8 }
 0x7ec   : > { %v5547_v60 = vmax.f32 %v5477_v63, 0.0 }
 0x7ee   : > { %5617 = vrot.lane.b32.xlu1 %v5547_v60, %s8020_s22 }
 0x7ef   : > { %5431 = vmatmul.bf16.gmra.mxu2 %v5207_v12 }
 0x7f1   : > { %v5478_v23 = vpop.f32.mrf.mxu3 }
 0x7f2   : > { %v5479_v38 = vadd.f32 %v5478_v23, %v5390_v20  ;;  %v5392_v14 = vpop.f32.mrf.mxu2  ;;  %v14443_v20 = vld [vmem:[#allocation14_spill] sm:$0xff] }
 0x7f3   : > { %v5393_v62 = vadd.f32 %v12969_v54, %v5392_v14  ;;  %v5182_v23 = vsel %vm1651_vm11, %v5151_v18, %v14443_v20 }
 0x7f4   : > { %v5548_v17 = vmax.f32 %v5479_v38, 0.0  ;;  %v5214_v14 = vpack.c.bf16 %v5182_v23, %v5182_v23 }
 0x7f6   : > { %5974 = vmatmul.msk.bf16.gmra.mxu3 %vm5311_vm3, %v5208_v34  ;;  %5619 = vrot.lane.b32.xlu2 %v5548_v17, %s8020_s22 }
 0x7f9   : > { %v5481_v6 = vpop.f32.mrf.mxu3 }
 0x7fa   : > { %v5482_v50 = vadd.f32 %v5481_v6, %v5393_v62  ;;  %v5394_v11 = vpop.f32.mrf.mxu2  ;;  %v14444_v62 = vld [vmem:[#allocation52_spill] sm:$0xff] }
 0x7fb   : > { %v5395_v47 = vadd.f32 %v12969_v54, %v5394_v11 }
 0x7fc   : > { %v5549_v12 = vmax.f32 %v5482_v50, 0.0 }
 0x7fe   : > { %5621 = vrot.lane.b32.xlu0 %v5549_v12, %s8020_s22 }
 0x7ff   : > { %5436 = vmatmul.bf16.gmra.mxu2 %v5209_v3 }
 0x801   : > { %v5483_v21 = vpop.f32.mrf.mxu3 }
 0x802   : > { %v5484_v44 = vadd.f32 %v5483_v21, %v5395_v47  ;;  %v5397_v48 = vpop.f32.mrf.mxu2 }
 0x803   : > { %v5398_v56 = vadd.f32 %v12969_v54, %v5397_v48 }
 0x804   : > { %v5550_v1 = vmax.f32 %v5484_v44, 0.0 }
 0x806   : > { %5975 = vmatmul.msk.bf16.gmra.mxu3 %vm5311_vm3, %v5210_v4  ;;  %5623 = vrot.lane.b32.xlu1 %v5550_v1, %s8020_s22  ;;  %v14446_v1 = vld [vmem:[#allocation43_spill] sm:$0xff] }
 0x809   : > { %v5486_v46 = vpop.f32.mrf.mxu3 }
 0x80a   : > { %v5487_v3 = vadd.f32 %v5486_v46, %v5398_v56  ;;  %v5399_v41 = vpop.f32.mrf.mxu2 }
 0x80b   : > { %v5400_v26 = vadd.f32 %v12969_v54, %v5399_v41 }
 0x80c   : > { %v5551_v31 = vmax.f32 %v5487_v3, 0.0 }
 0x80e   : > { %5625 = vrot.lane.b32.xlu2 %v5551_v31, %s8020_s22  ;;  %v14447_v31 = vld [vmem:[#allocation25_spill] sm:$0xff] }
 0x80f   : > { %5441 = vmatmul.bf16.gmra.mxu2 %v5211_v39 }
 0x811   : > { %v5488_v42 = vpop.f32.mrf.mxu3 }
 0x812   : > { %v5489_v53 = vadd.f32 %v5488_v42, %v5400_v26  ;;  %v5402_v45 = vpop.f32.mrf.mxu2 }
 0x813   : > { %v5403_v30 = vadd.f32 %v12969_v54, %v5402_v45 }
 0x814   : > { %v5552_v40 = vmax.f32 %v5489_v53, 0.0 }
 0x816   : > { %5976 = vmatmul.msk.bf16.gmra.mxu3 %vm5311_vm3, %v5212_v57  ;;  %5627 = vrot.lane.b32.xlu0 %v5552_v40, %s8020_s22 }
 0x819   : > { %v5491_v2 = vpop.f32.mrf.mxu3 }
 0x81a   : > { %v5492_v39 = vadd.f32 %v5491_v2, %v5403_v30  ;;  %v5608_v63 = vpop.permute.xlu2 %5607  ;;  %v5404_v8 = vpop.f32.mrf.mxu2 }
 0x81b   : > { %v5702_v43 = vsel %vm1552_vm9, %v14440_v59, %v5608_v63  ;;  %v5405_v49 = vadd.f32 %v12969_v54, %v5404_v8  ;;  %v14449_v63 = vld [vmem:[#allocation81_spill] sm:$0xff] }
 0x81c   : > { %v5553_v60 = vmax.f32 %v5492_v39, 0.0  ;;  %5734 = vst.msk [vmem:[%s13185_s21 + $0x8] sm:$0xff] %vm1618_vm10, %v5702_v43 }
 0x81e   : > { %5629 = vrot.lane.b32.xlu1 %v5553_v60, %s8020_s22 }
 0x81f   : > { %5446 = vmatmul.bf16.gmra.mxu2 %v5213_v58 }
 0x821   : > { %v5493_v19 = vpop.f32.mrf.mxu3 }
 0x822   : > { %v5494_v15 = vadd.f32 %v5493_v19, %v5405_v49  ;;  %v5407_v38 = vpop.f32.mrf.mxu2  ;;  %v14450_v49 = vld [vmem:[#allocation68_spill] sm:$0xff] }
 0x823   : > { %v5408_v35 = vadd.f32 %v12969_v54, %v5407_v38 }
 0x824   : > { %v5554_v17 = vmax.f32 %v5494_v15, 0.0 }
 0x826   : > { %5977 = vmatmul.msk.bf16.gmra.mxu3 %vm5311_vm3, %v5214_v14  ;;  %5631 = vrot.lane.b32.xlu2 %v5554_v17, %s8020_s22 }
 0x829   : > { %v5496_v34 = vpop.f32.mrf.mxu3 }
 0x82a   : > { %v5497_v9 = vadd.f32 %v5496_v34, %v5408_v35  ;;  %v5606_v37 = vpop.permute.xlu1 %5605  ;;  %v5409_v58 = vpop.f32.mrf.mxu2  ;;  %v14451_v35 = vld [vmem:[#allocation39_spill] sm:$0xff] }
 0x82b   : > { %v5701_v6 = vsel %vm1552_vm9, %v14444_v62, %v5606_v37  ;;  %v5410_v11 = vadd.f32 %v12969_v54, %v5409_v58 }
 0x82c   : > { %v5555_v50 = vmax.f32 %v5497_v9, 0.0  ;;  %5733 = vst.msk [vmem:[%s13185_s21] sm:$0xff] %vm1618_vm10, %v5701_v6 }
 0x82e   : > { %5633 = vrot.lane.b32.xlu0 %v5555_v50, %s8020_s22 }
 0x831   : > { %v5498_v12 = vpop.f32.mrf.mxu3 }
 0x832   : > { %v5499_v25 = vadd.f32 %v5498_v12, %v5410_v11  ;;  %v5412_v52 = vpop.f32.mrf.mxu2  ;;  %v14452_v11 = vld [vmem:[#allocation97_spill] sm:$0xff] }
 0x833   : > { %v5413_v28 = vadd.f32 %v12969_v54, %v5412_v52 }
 0x834   : > { %v5556_v36 = vmax.f32 %v5499_v25, 0.0 }
 0x836   : > { %5635 = vrot.lane.b32.xlu1 %v5556_v36, %s8020_s22 }
 0x838   : > { %v5614_v32 = vpop.permute.xlu2 %5613 }
 0x839   : > { %v5705_v47 = vsel %vm1552_vm9, %v14445_v0, %v5614_v32  ;;  %v5501_v16 = vpop.f32.mrf.mxu3 }
 0x83a   : > { %5737 = vst.msk [vmem:[%s13185_s21 + $0x20] sm:$0xff] %vm1618_vm10, %v5705_v47  ;;  %v5502_v13 = vadd.f32 %v5501_v16, %v5413_v28  ;;  %v5414_v21 = vpop.f32.mrf.mxu2  ;;  %v14453_v47 = vld [vmem:[#allocation47_spill] sm:$0xff] }
 0x83b   : > { %v5415_v48 = vadd.f32 %v12969_v54, %v5414_v21 }
 0x83c   : > { %v5557_v44 = vmax.f32 %v5502_v13, 0.0 }
 0x83e   : > { %5637 = vrot.lane.b32.xlu2 %v5557_v44, %s8020_s22 }
 0x840   : > { %v5610_v4 = vpop.permute.xlu0 %5609 }
 0x841   : > { %v5703_v56 = vsel %vm1552_vm9, %v14446_v1, %v5610_v4  ;;  %v5503_v46 = vpop.f32.mrf.mxu3 }
 0x842   : > { %5735 = vst.msk [vmem:[%s13185_s21 + $0x10] sm:$0xff] %vm1618_vm10, %v5703_v56  ;;  %v5504_v51 = vadd.f32 %v5503_v46, %v5415_v48  ;;  %v5417_v55 = vpop.f32.mrf.mxu2  ;;  %v14454_v56 = vld [vmem:[#allocation49_spill] sm:$0xff] }
 0x843   : > { %v5418_v41 = vadd.f32 %v12969_v54, %v5417_v55 }
 0x844   : > { %v5558_v3 = vmax.f32 %v5504_v51, 0.0 }
 0x846   : > { %5639 = vrot.lane.b32.xlu0 %v5558_v3, %s8020_s22 }
 0x848   : > { %v5612_v29 = vpop.permute.xlu1 %5611 }
 0x849   : > { %v5704_v24 = vsel %vm1552_vm9, %v14447_v31, %v5612_v29  ;;  %v5506_v5 = vpop.f32.mrf.mxu3 }
 0x84a   : > { %5736 = vst.msk [vmem:[%s13185_s21 + $0x18] sm:$0xff] %vm1618_vm10, %v5704_v24  ;;  %v5507_v10 = vadd.f32 %v5506_v5, %v5418_v41  ;;  %v5419_v27 = vpop.f32.mrf.mxu2  ;;  %v14455_v24 = vld [vmem:[#allocation21_spill] sm:$0xff] }
 0x84b   : > { %v5420_v42 = vadd.f32 %v12969_v54, %v5419_v27 }
 0x84c   : > { %v5559_v26 = vmax.f32 %v5507_v10, 0.0 }
 0x84e   : > { %5641 = vrot.lane.b32.xlu1 %v5559_v26, %s8020_s22 }
 0x850   : > { %v5620_v22 = vpop.permute.xlu2 %5619 }
 0x851   : > { %v5708_v53 = vsel %vm1552_vm9, %v14448_v7, %v5620_v22  ;;  %v5508_v45 = vpop.f32.mrf.mxu3 }
 0x852   : > { %5740 = vst.msk [vmem:[%s13185_s21 + $0x38] sm:$0xff] %vm1618_vm10, %v5708_v53  ;;  %v5509_v40 = vadd.f32 %v5508_v45, %v5420_v42  ;;  %v5422_v57 = vpop.f32.mrf.mxu2  ;;  %v14456_v53 = vld [vmem:[#allocation92_spill] sm:$0xff] }
 0x853   : > { %v5423_v2 = vadd.f32 %v12969_v54, %v5422_v57 }
 0x854   : > { %v5560_v30 = vmax.f32 %v5509_v40, 0.0 }
 0x856   : > { %5643 = vrot.lane.b32.xlu2 %v5560_v30, %s8020_s22 }
 0x858   : > { %v5616_v39 = vpop.permute.xlu0 %5615 }
 0x859   : > { %v5706_v8 = vsel %vm1552_vm9, %v14449_v63, %v5616_v39  ;;  %v5511_v59 = vpop.f32.mrf.mxu3 }
 0x85a   : > { %5738 = vst.msk [vmem:[%s13185_s21 + $0x28] sm:$0xff] %vm1618_vm10, %v5706_v8  ;;  %v5512_v43 = vadd.f32 %v5511_v59, %v5423_v2  ;;  %v5424_v60 = vpop.f32.mrf.mxu2  ;;  %v14457_v8 = vld [vmem:[#allocation54_spill] sm:$0xff] }
 0x85b   : > { %v5425_v33 = vadd.f32 %v12969_v54, %v5424_v60 }
 0x85c   : > { %v5561_v61 = vmax.f32 %v5512_v43, 0.0 }
 0x85e   : > { %5645 = vrot.lane.b32.xlu0 %v5561_v61, %s8020_s22 }
 0x860   : > { %v5618_v18 = vpop.permute.xlu1 %5617 }
 0x861   : > { %v5707_v20 = vsel %vm1552_vm9, %v14450_v49, %v5618_v18  ;;  %v5513_v23 = vpop.f32.mrf.mxu3 }
 0x862   : > { %5739 = vst.msk [vmem:[%s13185_s21 + $0x30] sm:$0xff] %vm1618_vm10, %v5707_v20  ;;  %v5514_v19 = vadd.f32 %v5513_v23, %v5425_v33  ;;  %v5427_v15 = vpop.f32.mrf.mxu2  ;;  %v14458_v20 = vld [vmem:[#allocation16_spill] sm:$0xff] }
 0x863   : > { %v5428_v14 = vadd.f32 %v12969_v54, %v5427_v15 }
 0x864   : > { %v5562_v38 = vmax.f32 %v5514_v19, 0.0 }
 0x866   : > { %5647 = vrot.lane.b32.xlu1 %v5562_v38, %s8020_s22 }
 0x868   : > { %v5626_v17 = vpop.permute.xlu2 %5625 }
 0x869   : > { %v5711_v34 = vsel %vm1552_vm9, %v14451_v35, %v5626_v17  ;;  %v5516_v9 = vpop.f32.mrf.mxu3 }
 0x86a   : > { %5743 = vst.msk [vmem:[%s13185_s21 + $0x50] sm:$0xff] %vm1618_vm10, %v5711_v34  ;;  %v5517_v37 = vadd.f32 %v5516_v9, %v5428_v14  ;;  %v5429_v58 = vpop.f32.mrf.mxu2  ;;  %v14459_v34 = vld [vmem:[#allocation56_spill] sm:$0xff] }
 0x86b   : > { %v5430_v6 = vadd.f32 %v12969_v54, %v5429_v58 }
 0x86c   : > { %v5563_v62 = vmax.f32 %v5517_v37, 0.0 }
 0x86e   : > { %5649 = vrot.lane.b32.xlu2 %v5563_v62, %s8020_s22 }
 0x870   : > { %v5622_v50 = vpop.permute.xlu0 %5621 }
 0x871   : > { %v5709_v12 = vsel %vm1552_vm9, %v14452_v11, %v5622_v50  ;;  %v5518_v25 = vpop.f32.mrf.mxu3 }
 0x872   : > { %5741 = vst.msk [vmem:[%s13185_s21 + $0x40] sm:$0xff] %vm1618_vm10, %v5709_v12  ;;  %v5519_v52 = vadd.f32 %v5518_v25, %v5430_v6  ;;  %v5432_v36 = vpop.f32.mrf.mxu2  ;;  %v14460_v12 = vld [vmem:[#allocation34_spill] sm:$0xff] }
 0x873   : > { %v5433_v32 = vadd.f32 %v12969_v54, %v5432_v36 }
 0x874   : > { %v5564_v28 = vmax.f32 %v5519_v52, 0.0 }
 0x876   : > { %5651 = vrot.lane.b32.xlu0 %v5564_v28, %s8020_s22 }
 0x878   : > { %v5624_v0 = vpop.permute.xlu1 %5623 }
 0x879   : > { %v5710_v16 = vsel %vm1552_vm9, %v14453_v47, %v5624_v0  ;;  %v5521_v13 = vpop.f32.mrf.mxu3  ;;  %v14461_v0 = vld [vmem:[#allocation61_spill] sm:$0xff] }
 0x87a   : > { %5742 = vst.msk [vmem:[%s13185_s21 + $0x48] sm:$0xff] %vm1618_vm10, %v5710_v16  ;;  %v5522_v21 = vadd.f32 %v5521_v13, %v5433_v32  ;;  %v5434_v44 = vpop.f32.mrf.mxu2  ;;  %v14462_v16 = vld [vmem:[#allocation22_spill] sm:$0xff] }
 0x87b   : > { %v5435_v4 = vadd.f32 %v12969_v54, %v5434_v44  ;;  %v14463_v44 = vld [vmem:[#allocation20_spill] sm:$0xff] }
 0x87c   : > { %v5565_v48 = vmax.f32 %v5522_v21, 0.0 }
 0x87e   : > { %5653 = vrot.lane.b32.xlu1 %v5565_v48, %s8020_s22 }
 0x880   : > { %v5632_v1 = vpop.permute.xlu2 %5631 }
 0x881   : > { %v5714_v46 = vsel %vm1552_vm9, %v14454_v56, %v5632_v1  ;;  %v5523_v51 = vpop.f32.mrf.mxu3  ;;  %v14464_v1 = vld [vmem:[#allocation51_spill] sm:$0xff] }
 0x882   : > { %5746 = vst.msk [vmem:[%s13185_s21 + $0x68] sm:$0xff] %vm1618_vm10, %v5714_v46  ;;  %v5524_v55 = vadd.f32 %v5523_v51, %v5435_v4  ;;  %v5437_v3 = vpop.f32.mrf.mxu2  ;;  %v14465_v51 = vld [vmem:[#allocation73_spill] sm:$0xff] }
 0x883   : > { %v5438_v29 = vadd.f32 %v12969_v54, %v5437_v3 }
 0x884   : > { %v5566_v41 = vmax.f32 %v5524_v55, 0.0 }
 0x886   : > { %5655 = vrot.lane.b32.xlu2 %v5566_v41, %s8020_s22  ;;  %v14466_v41 = vld [vmem:[#allocation32_spill] sm:$0xff] }
 0x888   : > { %v5628_v31 = vpop.permute.xlu0 %5627 }
 0x889   : > { %v5712_v5 = vsel %vm1552_vm9, %v14455_v24, %v5628_v31  ;;  %v5526_v10 = vpop.f32.mrf.mxu3  ;;  %v14467_v24 = vld [vmem:[#allocation91_spill] sm:$0xff] }
 0x88a   : > { %5744 = vst.msk [vmem:[%s13185_s21 + $0x58] sm:$0xff] %vm1618_vm10, %v5712_v5  ;;  %v5527_v27 = vadd.f32 %v5526_v10, %v5438_v29  ;;  %v5439_v26 = vpop.f32.mrf.mxu2 }
 0x88b   : > { %v5440_v22 = vadd.f32 %v12969_v54, %v5439_v26 }
 0x88c   : > { %v5567_v42 = vmax.f32 %v5527_v27, 0.0  ;;  %v14468_v27 = vld [vmem:[#allocation109_spill] sm:$0xff] }
 0x88e   : > { %5657 = vrot.lane.b32.xlu0 %v5567_v42, %s8020_s22 }
 0x890   : > { %v5630_v7 = vpop.permute.xlu1 %5629 }
 0x891   : > { %v5713_v45 = vsel %vm1552_vm9, %v14456_v53, %v5630_v7  ;;  %v5528_v40 = vpop.f32.mrf.mxu3 }
 0x892   : > { %5745 = vst.msk [vmem:[%s13185_s21 + $0x60] sm:$0xff] %vm1618_vm10, %v5713_v45  ;;  %v5529_v57 = vadd.f32 %v5528_v40, %v5440_v22  ;;  %v5442_v30 = vpop.f32.mrf.mxu2  ;;  %v14469_v22 = vld [vmem:[#allocation117_spill] sm:$0xff]  ;;  %v14470_v45 = vld [vmem:[#allocation112_spill] sm:$0xff] }
 0x893   : > { %v5443_v39 = vadd.f32 %v12969_v54, %v5442_v30  ;;  %v14471_v30 = vld [vmem:[#allocation111_spill] sm:$0xff] }
 0x894   : > { %v5568_v2 = vmax.f32 %v5529_v57, 0.0 }
 0x896   : > { %5659 = vrot.lane.b32.xlu1 %v5568_v2, %s8020_s22 }
 0x898   : > { %v5638_v63 = vpop.permute.xlu2 %5637 }
 0x899   : > { %v5717_v59 = vsel %vm1552_vm9, %v14457_v8, %v5638_v63  ;;  %v5531_v43 = vpop.f32.mrf.mxu3  ;;  %v14472_v63 = vld [vmem:[#allocation132_spill] sm:$0xff] }
 0x89a   : > { %5749 = vst.msk [vmem:[%s13185_s21 + $0x80] sm:$0xff] %vm1618_vm10, %v5717_v59  ;;  %v5532_v60 = vadd.f32 %v5531_v43, %v5443_v39  ;;  %v5444_v61 = vpop.f32.mrf.mxu2  ;;  %v14473_v43 = vld [vmem:[#allocation134_spill] sm:$0xff] }
 0x89b   : > { %v5445_v18 = vadd.f32 %v12969_v54, %v5444_v61 }
 0x89c   : > { %v5569_v33 = vmax.f32 %v5532_v60, 0.0 }
 0x89e   : > { %5661 = vrot.lane.b32.xlu2 %v5569_v33, %s8020_s22  ;;  %v14474_v33 = vld [vmem:[#allocation122_spill] sm:$0xff] }
 0x8a0   : > { %v5634_v49 = vpop.permute.xlu0 %5633 }
 0x8a1   : > { %v5715_v23 = vsel %vm1552_vm9, %v14458_v20, %v5634_v49  ;;  %v5533_v19 = vpop.f32.mrf.mxu3 }
 0x8a2   : > { %5747 = vst.msk [vmem:[%s13185_s21 + $0x70] sm:$0xff] %vm1618_vm10, %v5715_v23  ;;  %v5534_v15 = vadd.f32 %v5533_v19, %v5445_v18  ;;  %v5447_v38 = vpop.f32.mrf.mxu2 }
 0x8a3   : > { %v5448_v17 = vadd.f32 %v12969_v54, %v5447_v38 }
 0x8a4   : > { %v5570_v14 = vmax.f32 %v5534_v15, 0.0 }
 0x8a6   : > { %5663 = vrot.lane.b32.xlu0 %v5570_v14, %s8020_s22 }
 0x8a8   : > { %v5636_v35 = vpop.permute.xlu1 %5635 }
 0x8a9   : > { %v5716_v9 = vsel %vm1552_vm9, %v14459_v34, %v5636_v35  ;;  %v5536_v37 = vpop.f32.mrf.mxu3 }
 0x8aa   : > { %5748 = vst.msk [vmem:[%s13185_s21 + $0x78] sm:$0xff] %vm1618_vm10, %v5716_v9  ;;  %v5537_v58 = vadd.f32 %v5536_v37, %v5448_v17  ;;  %v5449_v6 = vpop.f32.mrf.mxu2 }
 0x8ab   : > { %v5450_v50 = vadd.f32 %v12969_v54, %v5449_v6 }
 0x8ac   : > { %v5571_v62 = vmax.f32 %v5537_v58, 0.0 }
 0x8ae   : > { %5665 = vrot.lane.b32.xlu1 %v5571_v62, %s8020_s22 }
 0x8b0   : > { %v5644_v11 = vpop.permute.xlu2 %5643 }
 0x8b1   : > { %v5720_v25 = vsel %vm1552_vm9, %v14460_v12, %v5644_v11  ;;  %v5538_v52 = vpop.f32.mrf.mxu3 }
 0x8b2   : > { %5752 = vst.msk [vmem:[%s13185_s21 + $0x98] sm:$0xff] %vm1618_vm10, %v5720_v25  ;;  %v5539_v36 = vadd.f32 %v5538_v52, %v5450_v50 }
 0x8b4   : > { %v5572_v28 = vmax.f32 %v5539_v36, 0.0 }
 0x8b6   : > { %5667 = vrot.lane.b32.xlu2 %v5572_v28, %s8020_s22  ;;  %s6004_s22 = sshll.u32 %s8096_s28, 8  ;;  %s5766_s28 = scalar_lea.sflag [#allocation3], %s269_s15 }
 0x8b7   : > { %s5777_s23 = scalar_lea.hbm %s13404_s7, %s6004_s22 }
 0x8b8   : > { %v5640_v32 = vpop.permute.xlu0 %5639  ;;  %s5780_s9 = sshll.u32 %s5777_s23, 4  ;;  %s5781_s9 = int_to_ptr.hbm [resolvable:$true] %s5780_s9 }
 0x8b9   : > { %v5718_v47 = vsel %vm1552_vm9, %v14461_v0, %v5640_v32  ;;  %s7965_s13 = sshra.s32 %s5781_s9, 4  ;;  %s7966_s13 = int_to_ptr.hbm [resolvable:$true] %s7965_s13 }
 0x8ba   : > { %5750 = vst.msk [vmem:[%s13185_s21 + $0x88] sm:$0xff] %vm1618_vm10, %v5718_v47  ;;  %s7967_s14 = scalar_lea.hbm %s7966_s13, 256  ;;  %p7972_p0 = scmp.lt.s32.totalorder %s7966_s13, %s13404_s7 }
 0x8bb   : > { %p7968_p11 = scmp.ne.s32.totalorder %s7966_s13, %s7967_s14  ;;  %p7973_p1 = scmp.lt.s32.totalorder %s7971_s16, %s7967_s14 }
 0x8bd   : > { %p7969_p12 = pnand %p7968_p11, %p8113_p5  ;;  %p7974_p2 = por %p7973_p1, %p7972_p0 }
 0x8bf   : > { %p7970_p13 = pneg %p7969_p12 }
 0x8c0   : > { %v5642_v54 = vpop.permute.xlu1 %5641 }
 0x8c1   : > { %v5719_v13 = vsel %vm1552_vm9, %v14462_v16, %v5642_v54  ;;  %p7975_p3 = pnand %p7974_p2, %p7970_p13 }
 0x8c2   : > { %5751 = vst.msk [vmem:[%s13185_s21 + $0x90] sm:$0xff] %vm1618_vm10, %v5719_v13 }
 0x8c8   : > { %v5650_v21 = vpop.permute.xlu2 %5649 }
 0x8c9   : > { %v5723_v48 = vsel %vm1552_vm9, %v14463_v44, %v5650_v21 }
 0x8ca   : > { %5755 = vst.msk [vmem:[%s13185_s21 + $0xb0] sm:$0xff] %vm1618_vm10, %v5723_v48 }
 0x8d0   : > { %v5646_v4 = vpop.permute.xlu0 %5645 }
 0x8d1   : > { %v5721_v56 = vsel %vm1552_vm9, %v14464_v1, %v5646_v4 }
 0x8d2   : > { %5753 = vst.msk [vmem:[%s13185_s21 + $0xa0] sm:$0xff] %vm1618_vm10, %v5721_v56 }
 0x8d8   : > { %v5648_v46 = vpop.permute.xlu1 %5647 }
 0x8d9   : > { %v5722_v55 = vsel %vm1552_vm9, %v14465_v51, %v5648_v46 }
 0x8da   : > { %5754 = vst.msk [vmem:[%s13185_s21 + $0xa8] sm:$0xff] %vm1618_vm10, %v5722_v55 }
 0x8e0   : > { %v5656_v3 = vpop.permute.xlu2 %5655 }
 0x8e1   : > { %v5726_v29 = vsel %vm1552_vm9, %v14466_v41, %v5656_v3 }
 0x8e2   : > { %5758 = vst.msk [vmem:[%s13185_s21 + $0xc8] sm:$0xff] %vm1618_vm10, %v5726_v29 }
 0x8e8   : > { %v5652_v31 = vpop.permute.xlu0 %5651 }
 0x8e9   : > { %v5724_v5 = vsel %vm1552_vm9, %v14467_v24, %v5652_v31 }
 0x8ea   : > { %5756 = vst.msk [vmem:[%s13185_s21 + $0xb8] sm:$0xff] %vm1618_vm10, %v5724_v5 }
 0x8f0   : > { %v5654_v10 = vpop.permute.xlu1 %5653 }
 0x8f1   : > { %v5725_v26 = vsel %vm1552_vm9, %v14468_v27, %v5654_v10 }
 0x8f2   : > { %5757 = vst.msk [vmem:[%s13185_s21 + $0xc0] sm:$0xff] %vm1618_vm10, %v5725_v26 }
 0x8f8   : > { %v5662_v42 = vpop.permute.xlu2 %5661 }
 0x8f9   : > { %v5729_v7 = vsel %vm1552_vm9, %v14469_v22, %v5662_v42 }
 0x8fa   : > { %5761 = vst.msk [vmem:[%s13185_s21 + $0xe0] sm:$0xff] %vm1618_vm10, %v5729_v7 }
 0x900   : > { %v5658_v53 = vpop.permute.xlu0 %5657 }
 0x901   : > { %v5727_v40 = vsel %vm1552_vm9, %v14470_v45, %v5658_v53 }
 0x902   : > { %5759 = vst.msk [vmem:[%s13185_s21 + $0xd0] sm:$0xff] %vm1618_vm10, %v5727_v40 }
 0x908   : > { %v5660_v57 = vpop.permute.xlu1 %5659 }
 0x909   : > { %v5728_v2 = vsel %vm1552_vm9, %v14471_v30, %v5660_v57 }
 0x90a   : > { %5760 = vst.msk [vmem:[%s13185_s21 + $0xd8] sm:$0xff] %vm1618_vm10, %v5728_v2 }
 0x910   : > { %v5668_v39 = vpop.permute.xlu2 %5667 }
 0x911   : > { %v5732_v8 = vsel %vm1552_vm9, %v14472_v63, %v5668_v39 }
 0x912   : > { %5764 = vst.msk [vmem:[%s13185_s21 + $0xf8] sm:$0xff] %vm1618_vm10, %v5732_v8 }
 0x918   : > { %v5664_v59 = vpop.permute.xlu0 %5663 }
 0x919   : > { %v5730_v60 = vsel %vm1552_vm9, %v14473_v43, %v5664_v59 }
 0x91a   : > { %5762 = vst.msk [vmem:[%s13185_s21 + $0xe8] sm:$0xff] %vm1618_vm10, %v5730_v60 }
 0x920   : > { %v5666_v61 = vpop.permute.xlu1 %5665 }
 0x921   : > { %v5731_v18 = vsel %vm1552_vm9, %v14474_v33, %v5666_v61 }
 0x922   : > { %5763 = vst.msk [vmem:[%s13185_s21 + $0xf0] sm:$0xff] %vm1618_vm10, %v5731_v18 }
 0x923   : > { %7978 = shalt.err (!%p7975_p3)
}
 0x924   : > { %s8034_s15 = smov 128  }
 0x925   : > { %6005 = dma.vmem_to_hbm [thread:$0]  (%p8113_p5), %s5779_s29, 4096, %s5781_s9, %s5766_s28, %s8034_s15, %s8034_s15, %s8017_s19  }
 0x926 PF: > { %p6011_p4 = scmp.ge.s32.totalorder %s8013_s27, 2  ;;  %s5795_s21 = sand.u32 1, %s8001_s24  }
 0x927   : > { %s5796_s18 = scalar_lea.sflag [#allocation3], %s5795_s21 }
 0x928   : > { %p6008_p7 = pnand %p6011_p4, %p8117_p6 }
 0x92a   : > { %p6009_p8 = pneg %p6008_p7 }
 0x92c   : > { %7996 = dma.done.wait (%p6009_p8), %s5796_s18, 4096  }
 0x92d   : > { %7998 = vsyncadd (%p6009_p8), %s5796_s18, 4294963200  ;;  %p17_p9 = scmp.ge.s32.totalorder %s8100_s30, 4   ;;  %s14475_s24 = smov %s8005_s25 }
 0x92e   : > { %s14476_s25 = smov %s8009_s26  ;;  %s14477_s26 = smov %s8111_s10 }
 0x92f   : > { %s14478_s27 = smov %s8100_s30  ;;  %19 = sbr.rel (!%p17_p9) target bundleno = 3 (0x3), region = 83 }
 0x934   :  { %5802 = vsyncpa [#allocation3], 1 }
 0x935   :  { %5804 = vsyncpa [#allocation3 + $0x1], 1 }

</bundles_post_ra>
